<compile_context>
chip_gen: v7x
topology: tpu7x:2x2x1
jax: 0.10.0
libtpu: 0.0.40
codegen_flags: <defaults>
</compile_context>

<pallas_src>
import functools
import math

import jax
import jax.numpy as jnp
from jax.experimental import pallas as pl
from jax.experimental.pallas import tpu as pltpu

# ----------------------- configuration (scaled-down GeoTr) -----------------------
HDIM = 32            # GeoTr.hidden_dim (256 in the original)
NHEAD = 4            # nn.MultiheadAttention nhead (8 in the original)
DIM_FF = 64          # attnLayer dim_feedforward (2048 in the original)
NUM_ATTN_LAYERS = 2
FLOW_HIDDEN = 64     # FlowHead hidden (256 in the original)
MASK_HIDDEN = 64     # UpdateBlock mask hidden (256 in the original)
LN_EPS = 1e-5

_ROW_TILE_TARGET = 512     # linear / upsample row tile (multiple of 8)
_SEQ_TILE_TARGET = 256     # query-row tile inside the cross-attention kernel


def _vmem_limit_bytes():
    # ~75% of physical VMEM (v5e/v6e: 128 MiB -> 96 MiB; v7x: 64 MiB -> 48 MiB).
    try:
        cap = getattr(pltpu.get_tpu_info(), "vmem_capacity_bytes", 64 * 1024 * 1024)
    except Exception:  # pragma: no cover - conservative fallback
        cap = 64 * 1024 * 1024
    return int(min(96 * 1024 * 1024, max(32 * 1024 * 1024, cap * 3 // 4)))


_VMEM_LIMIT_BYTES = _vmem_limit_bytes()


def _row_tile(M, target=_ROW_TILE_TARGET):
    # last-two-dims rule: TM must be a multiple of 8 OR equal the full dim.
    return M if M <= target else target


def _cparams(n_axes):
    return pltpu.CompilerParams(
        dimension_semantics=("parallel",) * n_axes,
        vmem_limit_bytes=_VMEM_LIMIT_BYTES)


def _layer_norm(x, gamma, beta, eps):
    mu = jnp.mean(x, axis=-1, keepdims=True)
    xc = x - mu
    var = jnp.mean(xc * xc, axis=-1, keepdims=True)
    return xc * jax.lax.rsqrt(var + eps) * gamma + beta


# =============================== Pallas kernels ===============================

# ---------- generic row-tiled linear (+ optional relu / output scale) ----------
def _linear_kernel(x_ref, w_ref, b_ref, o_ref, *, activation, out_scale):
    x = x_ref[...].astype(jnp.bfloat16)
    y = jnp.dot(x, w_ref[...], preferred_element_type=jnp.float32) + b_ref[...]
    if activation == "relu":
        y = jnp.maximum(y, 0.0)
    if out_scale != 1.0:
        y = y * out_scale
    o_ref[...] = y.astype(o_ref.dtype)


def pallas_linear(x, w, b, activation=None, out_scale=1.0, out_dtype=jnp.float32):
    """y = x @ w + b (+ optional relu / scale). x:(M,K), w:(K,N), b:(N,)."""
    M, K = x.shape
    N = w.shape[1]
    TM = _row_tile(M)
    return pl.pallas_call(
        functools.partial(_linear_kernel, activation=activation, out_scale=out_scale),
        out_shape=jax.ShapeDtypeStruct((M, N), out_dtype),
        grid=(pl.cdiv(M, TM),),
        in_specs=[
            pl.BlockSpec((TM, K), lambda i: (i, 0)),
            pl.BlockSpec((K, N), lambda i: (0, 0)),
            pl.BlockSpec((1, N), lambda i: (0, 0)),
        ],
        out_specs=pl.BlockSpec((TM, N), lambda i: (i, 0)),
        compiler_params=_cparams(1),
    )(x, w.astype(jnp.bfloat16), b.reshape(1, N).astype(jnp.float32))


# --------------------- shared multi-head-attention core ---------------------
def _mha_core(q_in, k_in, v_in, wq_ref, wk_ref, wv_ref, wo_ref,
              bq_ref, bk_ref, bv_ref, nhead):
    """q_in:(TQ,E) / k_in,v_in:(Sk,E) bf16.  Weights pre-split per head:
    wq/wk/wv:(nhead,E,Dh) bf16 (wq,bq pre-scaled by 1/sqrt(Dh)),
    bq/bk/bv:(nhead,1,Dh) f32, wo:(nhead,Dh,E) bf16.
    Returns (TQ,E) f32 attention output WITH the out-projection folded in
    (bias NOT added): out = sum_h softmax(q_h k_h^T) @ (v_h @ Wo_h)."""
    out = None
    for h in range(nhead):
        qh = jnp.dot(q_in, wq_ref[h], preferred_element_type=jnp.float32) + bq_ref[h]
        kh = jnp.dot(k_in, wk_ref[h], preferred_element_type=jnp.float32) + bk_ref[h]
        vh = jnp.dot(v_in, wv_ref[h], preferred_element_type=jnp.float32) + bv_ref[h]
        s = jax.lax.dot_general(qh.astype(jnp.bfloat16), kh.astype(jnp.bfloat16),
                                (((1,), (1,)), ((), ())),
                                preferred_element_type=jnp.float32)     # (TQ, Sk)
        s = s - jnp.max(s, axis=-1, keepdims=True)
        p = jnp.exp(s)
        inv = pl.reciprocal(jnp.sum(p, axis=-1, keepdims=True), approx=True)
        p = (p * inv).astype(jnp.bfloat16)
        vo = jnp.dot(vh.astype(jnp.bfloat16), wo_ref[h],
                     preferred_element_type=jnp.float32)                 # (Sk, E)
        contrib = jnp.dot(p, vo.astype(jnp.bfloat16),
                          preferred_element_type=jnp.float32)            # (TQ, E)
        out = contrib if out is None else out + contrib
    return out


# ------------- fused self-attention block: QKV + attn + proj + res + LN -------------
def _self_attn_block_kernel(x_ref, pos_ref,
                            wq_ref, wk_ref, wv_ref, wo_ref,
                            bq_ref, bk_ref, bv_ref, bo_ref,
                            g_ref, be_ref, o_ref, *, nhead, eps):
    x = x_ref[0]                                   # (S, E) f32
    pos = pos_ref[0]
    qk_in = (x + pos).astype(jnp.bfloat16)
    v_in = x.astype(jnp.bfloat16)
    attn = _mha_core(qk_in, qk_in, v_in, wq_ref, wk_ref, wv_ref, wo_ref,
                     bq_ref, bk_ref, bv_ref, nhead)
    y = x + attn + bo_ref[...]
    o_ref[0] = _layer_norm(y, g_ref[...], be_ref[...], eps).astype(o_ref.dtype)


# --- fused cross-attention block + FFN: QKV + attn + proj + res + LN + FFN + LN ---
def _cross_attn_ffn_kernel(tgt_ref, pos_ref, mem_ref, mpos_ref,
                           wq_ref, wk_ref, wv_ref, wo_ref,
                           bq_ref, bk_ref, bv_ref, bo_ref,
                           g2_ref, be2_ref,
                           w1_ref, b1_ref, w2_ref, b2_ref, g3_ref, be3_ref,
                           o_ref, *, nhead, eps):
    tgt = tgt_ref[0]                               # (TQ, E) f32
    pos = pos_ref[0]
    mem = mem_ref[0]                               # (Sk, E) f32
    mpos = mpos_ref[0]
    q_in = (tgt + pos).astype(jnp.bfloat16)
    k_in = (mem + mpos).astype(jnp.bfloat16)
    v_in = mem.astype(jnp.bfloat16)
    attn = _mha_core(q_in, k_in, v_in, wq_ref, wk_ref, wv_ref, wo_ref,
                     bq_ref, bk_ref, bv_ref, nhead)
    x = _layer_norm(tgt + attn + bo_ref[...], g2_ref[...], be2_ref[...], eps)
    # FFN: linear1 + relu + linear2 + residual + LayerNorm (norm3), all in VMEM.
    h = jnp.dot(x.astype(jnp.bfloat16), w1_ref[...],
                preferred_element_type=jnp.float32) + b1_ref[...]
    h = jnp.maximum(h, 0.0)
    y = jnp.dot(h.astype(jnp.bfloat16), w2_ref[...],
                preferred_element_type=jnp.float32) + b2_ref[...]
    z = x + y
    o_ref[0] = _layer_norm(z, g3_ref[...], be3_ref[...], eps).astype(o_ref.dtype)


def _pack_mha_params(mp, E, nhead):
    """Split torch-layout MHA weights per head; fold 1/sqrt(Dh) into Wq/bq."""
    Dh = E // nhead
    scale = 1.0 / math.sqrt(Dh)
    in_w, in_b = mp["in_w"], mp["in_b"]
    wq = (in_w[:E].T * scale).reshape(E, nhead, Dh).transpose(1, 0, 2)
    wk = in_w[E:2 * E].T.reshape(E, nhead, Dh).transpose(1, 0, 2)
    wv = in_w[2 * E:].T.reshape(E, nhead, Dh).transpose(1, 0, 2)
    bq = (in_b[:E] * scale).reshape(nhead, 1, Dh)
    bk = in_b[E:2 * E].reshape(nhead, 1, Dh)
    bv = in_b[2 * E:].reshape(nhead, 1, Dh)
    wo = mp["out_w"].T.reshape(nhead, Dh, E)        # rows h*Dh:(h+1)*Dh of Wo
    bo = mp["out_b"].reshape(1, E)
    return (wq.astype(jnp.bfloat16), wk.astype(jnp.bfloat16), wv.astype(jnp.bfloat16),
            wo.astype(jnp.bfloat16), bq.astype(jnp.float32), bk.astype(jnp.float32),
            bv.astype(jnp.float32), bo.astype(jnp.float32))


def pallas_self_attn_block(x, pos, mp, norm, nhead):
    """norm1(x + MHA(q=k=x+pos, v=x)); x,pos:(B,S,E) f32 -> (B,S,E) f32."""
    B, S, E = x.shape
    Dh = E // nhead
    wq, wk, wv, wo, bq, bk, bv, bo = _pack_mha_params(mp, E, nhead)
    seq = pl.BlockSpec((1, S, E), lambda b: (b, 0, 0))
    whead = pl.BlockSpec((nhead, E, Dh), lambda b: (0, 0, 0))
    wohead = pl.BlockSpec((nhead, Dh, E), lambda b: (0, 0, 0))
    bhead = pl.BlockSpec((nhead, 1, Dh), lambda b: (0, 0, 0))
    vec = pl.BlockSpec((1, E), lambda b: (0, 0))
    return pl.pallas_call(
        functools.partial(_self_attn_block_kernel, nhead=nhead, eps=LN_EPS),
        out_shape=jax.ShapeDtypeStruct((B, S, E), jnp.float32),
        grid=(B,),
        in_specs=[seq, seq, whead, whead, whead, wohead,
                  bhead, bhead, bhead, vec, vec, vec],
        out_specs=seq,
        compiler_params=_cparams(1),
    )(x, pos, wq, wk, wv, wo, bq, bk, bv, bo,
      norm[0].reshape(1, E).astype(jnp.float32),
      norm[1].reshape(1, E).astype(jnp.float32))


def pallas_cross_attn_ffn_block(tgt, pos, mem, mpos, mp, norm2, ffn, norm3, nhead):
    """norm3(x + FFN(x)) where x = norm2(tgt + MHA(q=tgt+pos, k=mem+mpos, v=mem))."""
    B, S, E = tgt.shape
    Sk = mem.shape[1]
    Dh = E // nhead
    wq, wk, wv, wo, bq, bk, bv, bo = _pack_mha_params(mp, E, nhead)
    w1, b1, w2, b2 = ffn
    FF = w1.shape[1]
    TQ = S if S <= _SEQ_TILE_TARGET else _SEQ_TILE_TARGET
    qrow = pl.BlockSpec((1, TQ, E), lambda b, i: (b, i, 0))
    kvrow = pl.BlockSpec((1, Sk, E), lambda b, i: (b, 0, 0))
    whead = pl.BlockSpec((nhead, E, Dh), lambda b, i: (0, 0, 0))
    wohead = pl.BlockSpec((nhead, Dh, E), lambda b, i: (0, 0, 0))
    bhead = pl.BlockSpec((nhead, 1, Dh), lambda b, i: (0, 0, 0))
    vec_e = pl.BlockSpec((1, E), lambda b, i: (0, 0))
    w1s = pl.BlockSpec((E, FF), lambda b, i: (0, 0))
    b1s = pl.BlockSpec((1, FF), lambda b, i: (0, 0))
    w2s = pl.BlockSpec((FF, E), lambda b, i: (0, 0))
    return pl.pallas_call(
        functools.partial(_cross_attn_ffn_kernel, nhead=nhead, eps=LN_EPS),
        out_shape=jax.ShapeDtypeStruct((B, S, E), jnp.float32),
        grid=(B, pl.cdiv(S, TQ)),
        in_specs=[qrow, qrow, kvrow, kvrow,
                  whead, whead, whead, wohead, bhead, bhead, bhead, vec_e,
                  vec_e, vec_e,
                  w1s, b1s, w2s, vec_e, vec_e, vec_e],
        out_specs=qrow,
        compiler_params=_cparams(2),
    )(tgt, pos, mem, mpos, wq, wk, wv, wo, bq, bk, bv, bo,
      norm2[0].reshape(1, E).astype(jnp.float32),
      norm2[1].reshape(1, E).astype(jnp.float32),
      w1.astype(jnp.bfloat16), b1.reshape(1, FF).astype(jnp.float32),
      w2.astype(jnp.bfloat16), b2.reshape(1, E).astype(jnp.float32),
      norm3[0].reshape(1, E).astype(jnp.float32),
      norm3[1].reshape(1, E).astype(jnp.float32))


# --------------------- direct 3x3 conv (hoisted kx shifts) ---------------------
def _conv3x3_kernel(xp_ref, w_ref, b_ref, o_ref, *, H, W, activation):
    Cin = xp_ref.shape[-1]
    Cout = w_ref.shape[-1]
    x = xp_ref[0]                                       # (H+2, W+2, Cin)
    # Hoist the kx (sublane) shifts: 3 shifted slabs flattened once; each of the
    # 9 taps is then a contiguous leading-row slice of one slab (was 9 unaligned
    # slice+repack per grid step).
    slabs = [jax.lax.slice_in_dim(x, kx, kx + W, axis=1).reshape((H + 2) * W, Cin)
             for kx in range(3)]
    acc = jnp.zeros((H * W, Cout), jnp.float32)
    for ky in range(3):
        for kx in range(3):
            patch = jax.lax.slice_in_dim(slabs[kx], ky * W, ky * W + H * W, axis=0)
            acc = acc + jnp.dot(patch, w_ref[ky * 3 + kx],
                                preferred_element_type=jnp.float32)
    y = acc + b_ref[...]
    if activation == "relu":
        y = jnp.maximum(y, 0.0)
    o_ref[0] = y.reshape(H, W, Cout).astype(o_ref.dtype)


def pallas_conv3x3(xp_nhwc, w, b, *, H, W, activation=None, out_dtype=jnp.float32):
    """xp_nhwc: pre-padded (N,H+2,W+2,Cin) bf16; w: (Cout,Cin,3,3) torch layout."""
    N, _, _, Cin = xp_nhwc.shape
    Cout = w.shape[0]
    wt = jnp.transpose(w, (2, 3, 1, 0)).reshape(9, Cin, Cout).astype(jnp.bfloat16)
    return pl.pallas_call(
        functools.partial(_conv3x3_kernel, H=H, W=W, activation=activation),
        out_shape=jax.ShapeDtypeStruct((N, H, W, Cout), out_dtype),
        grid=(N,),
        in_specs=[
            pl.BlockSpec((1, H + 2, W + 2, Cin), lambda n: (n, 0, 0, 0)),
            pl.BlockSpec((9, Cin, Cout), lambda n: (0, 0, 0)),
            pl.BlockSpec((1, Cout), lambda n: (0, 0)),
        ],
        out_specs=pl.BlockSpec((1, H, W, Cout), lambda n: (n, 0, 0, 0)),
        compiler_params=_cparams(1),
    )(xp_nhwc, wt, b.reshape(1, Cout).astype(jnp.float32))


# ---------------------- convex upsample (softmax over 9 taps) ----------------------
def _upsample_kernel(m_ref, f_ref, o_ref):
    m = m_ref[...]                                       # (T, 9, 64) f32
    e = jnp.exp(m - jnp.max(m, axis=1, keepdims=True))
    inv = pl.reciprocal(jnp.sum(e, axis=1), approx=True)  # (T, 64)
    f = f_ref[...]                                       # (T, 2, 9) f32
    for c in range(2):
        acc = jnp.zeros_like(inv)
        for j in range(9):
            acc = acc + e[:, j, :] * f[:, c, j:j + 1]     # FMA accumulation
        o_ref[:, c, :] = acc * inv


def pallas_upsample(mask3, unf):
    """mask3:(M,9,64), unf:(M,2,9) -> (M,2,64); softmax over the 9 taps."""
    M = mask3.shape[0]
    T = _row_tile(M, target=1024)
    return pl.pallas_call(
        _upsample_kernel,
        out_shape=jax.ShapeDtypeStruct((M, 2, 64), jnp.float32),
        grid=(pl.cdiv(M, T),),
        in_specs=[pl.BlockSpec((T, 9, 64), lambda i: (i, 0, 0)),
                  pl.BlockSpec((T, 2, 9), lambda i: (i, 0, 0))],
        out_specs=pl.BlockSpec((T, 2, 64), lambda i: (i, 0, 0)),
        compiler_params=_cparams(1),
    )(mask3, unf)


# =============================== model components ===============================

def attn_layer_forward(tgt, memory, pos, mpos, p, nhead):
    """attnLayer.forward_post with memory_list=[memory]; tgt/memory/pos: (B,S,E).
    Two fused pallas_calls per layer."""
    tgt = pallas_self_attn_block(tgt, pos, p["self_attn"], p["norm1"], nhead)
    tgt = pallas_cross_attn_ffn_block(
        tgt, pos, memory, mpos, p["cross_attn"][0], p["norm2"][0],
        (p["linear1_w"], p["linear1_b"], p["linear2_w"], p["linear2_b"]),
        p["norm3"], nhead)
    return tgt


# TODO(synk): build_position_encoding is not defined in the provided source;
# reproducing the standard DETR/DocTr PositionEmbeddingSine(normalize=True).
def position_embedding_sine(B, h, w, hidden_dim, temperature=10000.0):
    num_pos_feats = hidden_dim // 2
    eps = 1e-6
    scale = 2.0 * math.pi
    ones = jnp.ones((B, h, w), jnp.float32)
    y_embed = jnp.cumsum(ones, axis=1)
    x_embed = jnp.cumsum(ones, axis=2)
    y_embed = y_embed / (y_embed[:, -1:, :] + eps) * scale
    x_embed = x_embed / (x_embed[:, :, -1:] + eps) * scale
    dim_t = jnp.arange(num_pos_feats, dtype=jnp.float32)
    dim_t = temperature ** (2.0 * jnp.floor(dim_t / 2.0) / num_pos_feats)
    pos_x = x_embed[..., None] / dim_t
    pos_y = y_embed[..., None] / dim_t
    pos_x = jnp.stack([jnp.sin(pos_x[..., 0::2]), jnp.cos(pos_x[..., 1::2])],
                      axis=4).reshape(B, h, w, num_pos_feats)
    pos_y = jnp.stack([jnp.sin(pos_y[..., 0::2]), jnp.cos(pos_y[..., 1::2])],
                      axis=4).reshape(B, h, w, num_pos_feats)
    pos = jnp.concatenate([pos_y, pos_x], axis=3).transpose(0, 3, 1, 2)
    return pos                                           # (B, hidden_dim, h, w)


def trans_encoder(fmap, pos_bse, layers, nhead):
    B, C, h, w = fmap.shape
    x = fmap.reshape(B, C, h * w).transpose(0, 2, 1)     # (B, hw, C)
    for lp in layers:
        x = attn_layer_forward(x, x, pos_bse, pos_bse, lp, nhead)
    return x.transpose(0, 2, 1).reshape(B, C, h, w)


def trans_decoder(fmap, pos_bse, query_embed, layers, nhead):
    B, C, h, w = fmap.shape
    mem = fmap.reshape(B, C, h * w).transpose(0, 2, 1)   # (B, hw, C)
    q = jnp.tile(query_embed[None], (B, 1, 1))           # (B, nq, C), nq == hw
    for lp in layers:
        q = attn_layer_forward(q, mem, pos_bse, pos_bse, lp, nhead)
    return q.transpose(0, 2, 1).reshape(B, C, h, w)


def fnet_forward(img, p):
    # TODO(synk): BasicEncoder (RAFT-style residual encoder) is not defined in the
    # provided source; substituting a stride-8 patch-embedding conv + InstanceNorm
    # with the same contract: (N,3,H,W) -> (N,HDIM,H/8,W/8).
    N, C, H, W = img.shape
    h, w = H // 8, W // 8
    patches = img.reshape(N, C, h, 8, w, 8).transpose(0, 2, 4, 1, 3, 5)
    patches = patches.reshape(N * h * w, C * 64)
    y = pallas_linear(patches, p["w"], p["b"])
    y = y.reshape(N, h, w, HDIM).transpose(0, 3, 1, 2)
    mu = jnp.mean(y, axis=(2, 3), keepdims=True)
    var = jnp.var(y, axis=(2, 3), keepdims=True)
    return (y - mu) / jnp.sqrt(var + 1e-5)               # InstanceNorm2d(affine=False)


def update_block_forward(fmap, coords1, p):
    """UpdateBlock: mask head (conv3x3+relu -> conv1x1, x0.25) and FlowHead."""
    N, C, H, W = fmap.shape
    x_nhwc = jnp.transpose(fmap, (0, 2, 3, 1)).astype(jnp.bfloat16)
    xp = jnp.pad(x_nhwc, ((0, 0), (1, 1), (1, 1), (0, 0)))

    # mask head (kept in the flat (N*H*W, 576) layout consumed by the upsample kernel)
    m1 = pallas_conv3x3(xp, p["mask_w1"], p["mask_b1"], H=H, W=W,
                        activation="relu", out_dtype=jnp.bfloat16)   # (N,H,W,Mh)
    mhid = p["mask_w2"].shape[1]
    mask_flat = pallas_linear(m1.reshape(N * H * W, mhid),
                              p["mask_w2"].reshape(-1, mhid).T, p["mask_b2"],
                              out_scale=0.25)                        # (NHW, 576)

    # flow head
    f1 = pallas_conv3x3(xp, p["flow_w1"], p["flow_b1"], H=H, W=W,
                        activation="relu", out_dtype=jnp.bfloat16)
    f1p = jnp.pad(f1, ((0, 0), (1, 1), (1, 1), (0, 0)))
    dflow = pallas_conv3x3(f1p, p["flow_w2"], p["flow_b2"], H=H, W=W,
                           activation=None, out_dtype=jnp.float32)   # (N,H,W,2)
    dflow = jnp.transpose(dflow, (0, 3, 1, 2))
    return mask_flat, coords1 + dflow


def coords_grid(batch, ht, wd):
    yy, xx = jnp.meshgrid(jnp.arange(ht), jnp.arange(wd), indexing="ij")
    coords = jnp.stack([xx, yy], axis=0).astype(jnp.float32)   # reversed: x then y
    return jnp.tile(coords[None], (batch, 1, 1, 1))


def upsample_flow(flow, mask_flat):
    """Convex 8x upsampling: F.unfold(8*flow) weighted by softmax(mask)."""
    N, _, H, W = flow.shape
    fp = jnp.pad(8.0 * flow, ((0, 0), (0, 0), (1, 1), (1, 1)))
    taps = jnp.stack([fp[:, :, ky:ky + H, kx:kx + W]
                      for ky in range(3) for kx in range(3)], axis=-1)  # (N,2,H,W,9)
    unf = jnp.transpose(taps, (0, 2, 3, 1, 4)).reshape(N * H * W, 2, 9)
    mask3 = mask_flat.reshape(N * H * W, 9, 64)        # channel = j*64 + (p1*8+p2)
    out = pallas_upsample(mask3, unf)                                   # (NHW,2,64)
    out = out.reshape(N, H, W, 2, 8, 8).transpose(0, 3, 1, 4, 2, 5)
    return out.reshape(N, 2, 8 * H, 8 * W)


def geotr_forward(image1, params):
    N, _, H, W = image1.shape
    h, w = H // 8, W // 8

    fmap = fnet_forward(image1, params["fnet"])
    fmap = jnp.maximum(fmap, 0.0)                          # torch.relu(fmap)

    # position encoding computed once and shared by encoder & decoder
    pos = position_embedding_sine(N, h, w, HDIM)           # (N, C, h, w)
    pos_bse = pos.reshape(N, HDIM, h * w).transpose(0, 2, 1)   # (N, hw, C)

    fmap = trans_encoder(fmap, pos_bse, params["enc_layers"], NHEAD)
    fmap = trans_decoder(fmap, pos_bse, params["query_embed"],
                         params["dec_layers"], NHEAD)

    coodslar = coords_grid(N, H, W)
    coords0 = coords_grid(N, h, w)
    coords1 = coords_grid(N, h, w)

    mask_flat, coords1 = update_block_forward(fmap, coords1, params["update"])
    flow_up = upsample_flow(coords1 - coords0, mask_flat)
    bm_up = coodslar + flow_up
    return bm_up


# =============================== parameter init ===============================

def _normal(key, shape, scale=0.02):
    return scale * jax.random.normal(key, shape, dtype=jnp.float32)


def init_mha(key, E):
    k1, k2 = jax.random.split(key)
    return {"in_w": _normal(k1, (3 * E, E)), "in_b": jnp.zeros((3 * E,), jnp.float32),
            "out_w": _normal(k2, (E, E)), "out_b": jnp.zeros((E,), jnp.float32)}


def init_attn_layer(key, E, FF):
    ks = jax.random.split(key, 5)
    return {
        "self_attn": init_mha(ks[0], E),
        "cross_attn": [init_mha(ks[1], E), init_mha(ks[2], E)],   # only [0] is used
        "linear1_w": _normal(ks[3], (E, FF)), "linear1_b": jnp.zeros((FF,), jnp.float32),
        "linear2_w": _normal(ks[4], (FF, E)), "linear2_b": jnp.zeros((E,), jnp.float32),
        "norm1": (jnp.ones((E,), jnp.float32), jnp.zeros((E,), jnp.float32)),
        "norm2": [(jnp.ones((E,), jnp.float32), jnp.zeros((E,), jnp.float32)),
                  (jnp.ones((E,), jnp.float32), jnp.zeros((E,), jnp.float32))],
        "norm3": (jnp.ones((E,), jnp.float32), jnp.zeros((E,), jnp.float32)),
    }


def init_params(key, image_shape):
    N, C, H, W = image_shape
    nq = (H // 8) * (W // 8)        # nn.Embedding(1296, hdim) scaled to h*w queries
    ks = jax.random.split(key, 10)
    return {
        "fnet": {"w": _normal(ks[0], (C * 64, HDIM)), "b": jnp.zeros((HDIM,), jnp.float32)},
        "enc_layers": [init_attn_layer(k, HDIM, DIM_FF)
                       for k in jax.random.split(ks[1], NUM_ATTN_LAYERS)],
        "dec_layers": [init_attn_layer(k, HDIM, DIM_FF)
                       for k in jax.random.split(ks[2], NUM_ATTN_LAYERS)],
        "query_embed": _normal(ks[3], (nq, HDIM), scale=1.0),
        "update": {
            "mask_w1": _normal(ks[4], (MASK_HIDDEN, HDIM, 3, 3)),
            "mask_b1": jnp.zeros((MASK_HIDDEN,), jnp.float32),
            "mask_w2": _normal(ks[5], (64 * 9, MASK_HIDDEN, 1, 1)),
            "mask_b2": jnp.zeros((64 * 9,), jnp.float32),
            "flow_w1": _normal(ks[6], (FLOW_HIDDEN, HDIM, 3, 3)),
            "flow_b1": jnp.zeros((FLOW_HIDDEN,), jnp.float32),
            "flow_w2": _normal(ks[7], (2, FLOW_HIDDEN, 3, 3)),
            "flow_b2": jnp.zeros((2,), jnp.float32),
        },
    }


# ==================================== main ====================================

if __name__ == "__main__":
    key = jax.random.PRNGKey(0)
    k_img, k_par = jax.random.split(key)
    image1 = jax.random.normal(k_img, (2, 3, 16, 16), dtype=jnp.float32)
    params = init_params(k_par, image1.shape)

    fwd = jax.jit(geotr_forward)
    out = fwd(image1, params)
    out = jax.block_until_ready(out)

    assert out.shape == (2, 2, 16, 16), out.shape
    assert bool(jnp.all(jnp.isfinite(out)))
    print("KERNEL_OK")
</pallas_src>

<mosaic_0001>
module attributes {stable_mosaic.version = 11 : i64} {
  func.func @_cross_attn_ffn_kernel(%arg0: i32, %arg1: i32, %arg2: memref<1x4x32xf32, #tpu.memory_space<vmem>>, %arg3: memref<1x4x32xf32, #tpu.memory_space<vmem>>, %arg4: memref<1x4x32xf32, #tpu.memory_space<vmem>>, %arg5: memref<1x4x32xf32, #tpu.memory_space<vmem>>, %arg6: memref<4x32x8xbf16, #tpu.memory_space<vmem>>, %arg7: memref<4x32x8xbf16, #tpu.memory_space<vmem>>, %arg8: memref<4x32x8xbf16, #tpu.memory_space<vmem>>, %arg9: memref<4x8x32xbf16, #tpu.memory_space<vmem>>, %arg10: memref<4x1x8xf32, #tpu.memory_space<vmem>>, %arg11: memref<4x1x8xf32, #tpu.memory_space<vmem>>, %arg12: memref<4x1x8xf32, #tpu.memory_space<vmem>>, %arg13: memref<1x32xf32, #tpu.memory_space<vmem>>, %arg14: memref<1x32xf32, #tpu.memory_space<vmem>>, %arg15: memref<1x32xf32, #tpu.memory_space<vmem>>, %arg16: memref<32x64xbf16, #tpu.memory_space<vmem>>, %arg17: memref<1x64xf32, #tpu.memory_space<vmem>>, %arg18: memref<64x32xbf16, #tpu.memory_space<vmem>>, %arg19: memref<1x32xf32, #tpu.memory_space<vmem>>, %arg20: memref<1x32xf32, #tpu.memory_space<vmem>>, %arg21: memref<1x32xf32, #tpu.memory_space<vmem>>, %arg22: memref<1x4x32xf32, #tpu.memory_space<vmem>>) attributes {dimension_semantics = [#tpu.dimension_semantics<parallel>, #tpu.dimension_semantics<parallel>], iteration_bounds = array<i64: 2, 1>, scalar_prefetch = 0 : i64, scratch_operands = 0 : i64, tpu.core_type = #tpu.core_type<tc>, window_params = [{transform_indices = @transform_0, window_bounds = array<i64: 1, 4, 32>}, {transform_indices = @transform_1, window_bounds = array<i64: 1, 4, 32>}, {transform_indices = @transform_2, window_bounds = array<i64: 1, 4, 32>}, {transform_indices = @transform_3, window_bounds = array<i64: 1, 4, 32>}, {pipeline_mode = #tpu.pipeline_mode<synchronous>, transform_indices = @transform_4, window_bounds = array<i64: 4, 32, 8>}, {pipeline_mode = #tpu.pipeline_mode<synchronous>, transform_indices = @transform_5, window_bounds = array<i64: 4, 32, 8>}, {pipeline_mode = #tpu.pipeline_mode<synchronous>, transform_indices = @transform_6, window_bounds = array<i64: 4, 32, 8>}, {pipeline_mode = #tpu.pipeline_mode<synchronous>, transform_indices = @transform_7, window_bounds = array<i64: 4, 8, 32>}, {pipeline_mode = #tpu.pipeline_mode<synchronous>, transform_indices = @transform_8, window_bounds = array<i64: 4, 1, 8>}, {pipeline_mode = #tpu.pipeline_mode<synchronous>, transform_indices = @transform_9, window_bounds = array<i64: 4, 1, 8>}, {pipeline_mode = #tpu.pipeline_mode<synchronous>, transform_indices = @transform_10, window_bounds = array<i64: 4, 1, 8>}, {pipeline_mode = #tpu.pipeline_mode<synchronous>, transform_indices = @transform_11, window_bounds = array<i64: 1, 32>}, {pipeline_mode = #tpu.pipeline_mode<synchronous>, transform_indices = @transform_12, window_bounds = array<i64: 1, 32>}, {pipeline_mode = #tpu.pipeline_mode<synchronous>, transform_indices = @transform_13, window_bounds = array<i64: 1, 32>}, {pipeline_mode = #tpu.pipeline_mode<synchronous>, transform_indices = @transform_14, window_bounds = array<i64: 32, 64>}, {pipeline_mode = #tpu.pipeline_mode<synchronous>, transform_indices = @transform_15, window_bounds = array<i64: 1, 64>}, {pipeline_mode = #tpu.pipeline_mode<synchronous>, transform_indices = @transform_16, window_bounds = array<i64: 64, 32>}, {pipeline_mode = #tpu.pipeline_mode<synchronous>, transform_indices = @transform_17, window_bounds = array<i64: 1, 32>}, {pipeline_mode = #tpu.pipeline_mode<synchronous>, transform_indices = @transform_18, window_bounds = array<i64: 1, 32>}, {pipeline_mode = #tpu.pipeline_mode<synchronous>, transform_indices = @transform_19, window_bounds = array<i64: 1, 32>}, {transform_indices = @transform_20, window_bounds = array<i64: 1, 4, 32>}]} {
    %c0 = arith.constant 0 : index
    %c0_0 = arith.constant 0 : index
    %c0_1 = arith.constant 0 : index
    %0 = vector.load %arg2[%c0, %c0_0, %c0_1] : memref<1x4x32xf32, #tpu.memory_space<vmem>>, vector<1x4x32xf32>
    %1 = vector.shape_cast %0 : vector<1x4x32xf32> to vector<4x32xf32>
    %c0_2 = arith.constant 0 : index
    %c0_3 = arith.constant 0 : index
    %c0_4 = arith.constant 0 : index
    %2 = vector.load %arg3[%c0_2, %c0_3, %c0_4] : memref<1x4x32xf32, #tpu.memory_space<vmem>>, vector<1x4x32xf32>
    %3 = vector.shape_cast %2 : vector<1x4x32xf32> to vector<4x32xf32>
    %c0_5 = arith.constant 0 : index
    %c0_6 = arith.constant 0 : index
    %c0_7 = arith.constant 0 : index
    %4 = vector.load %arg4[%c0_5, %c0_6, %c0_7] : memref<1x4x32xf32, #tpu.memory_space<vmem>>, vector<1x4x32xf32>
    %5 = vector.shape_cast %4 : vector<1x4x32xf32> to vector<4x32xf32>
    %c0_8 = arith.constant 0 : index
    %c0_9 = arith.constant 0 : index
    %c0_10 = arith.constant 0 : index
    %6 = vector.load %arg5[%c0_8, %c0_9, %c0_10] : memref<1x4x32xf32, #tpu.memory_space<vmem>>, vector<1x4x32xf32>
    %7 = vector.shape_cast %6 : vector<1x4x32xf32> to vector<4x32xf32>
    %8 = arith.addf %1, %3 : vector<4x32xf32>
    %9 = arith.truncf %8 : vector<4x32xf32> to vector<4x32xbf16>
    %10 = arith.addf %5, %7 : vector<4x32xf32>
    %11 = arith.truncf %10 : vector<4x32xf32> to vector<4x32xbf16>
    %12 = arith.truncf %5 : vector<4x32xf32> to vector<4x32xbf16>
    %c0_11 = arith.constant 0 : index
    %c0_12 = arith.constant 0 : index
    %c0_13 = arith.constant 0 : index
    %13 = vector.load %arg6[%c0_11, %c0_12, %c0_13] : memref<4x32x8xbf16, #tpu.memory_space<vmem>>, vector<1x32x8xbf16>
    %14 = vector.shape_cast %13 : vector<1x32x8xbf16> to vector<32x8xbf16>
    %cst = arith.constant dense<0.000000e+00> : vector<4x8xf32>
    %15 = tpu.matmul %9, %14, %cst {dimension_numbers = #tpu.dot_dimension_numbers<[1], [0], [0], [1], [0, 0, 1, 1], [], []>} : vector<4x32xbf16>, vector<32x8xbf16>, vector<4x8xf32> -> vector<4x8xf32>
    %c0_14 = arith.constant 0 : index
    %c0_15 = arith.constant 0 : index
    %c0_16 = arith.constant 0 : index
    %16 = vector.load %arg10[%c0_14, %c0_15, %c0_16] : memref<4x1x8xf32, #tpu.memory_space<vmem>>, vector<1x1x8xf32>
    %17 = vector.shape_cast %16 : vector<1x1x8xf32> to vector<1x8xf32>
    %18 = vector.broadcast %17 : vector<1x8xf32> to vector<4x8xf32>
    %19 = arith.addf %15, %18 : vector<4x8xf32>
    %c0_17 = arith.constant 0 : index
    %c0_18 = arith.constant 0 : index
    %c0_19 = arith.constant 0 : index
    %20 = vector.load %arg7[%c0_17, %c0_18, %c0_19] : memref<4x32x8xbf16, #tpu.memory_space<vmem>>, vector<1x32x8xbf16>
    %21 = vector.shape_cast %20 : vector<1x32x8xbf16> to vector<32x8xbf16>
    %cst_20 = arith.constant dense<0.000000e+00> : vector<4x8xf32>
    %22 = tpu.matmul %11, %21, %cst_20 {dimension_numbers = #tpu.dot_dimension_numbers<[1], [0], [0], [1], [0, 0, 1, 1], [], []>} : vector<4x32xbf16>, vector<32x8xbf16>, vector<4x8xf32> -> vector<4x8xf32>
    %c0_21 = arith.constant 0 : index
    %c0_22 = arith.constant 0 : index
    %c0_23 = arith.constant 0 : index
    %23 = vector.load %arg11[%c0_21, %c0_22, %c0_23] : memref<4x1x8xf32, #tpu.memory_space<vmem>>, vector<1x1x8xf32>
    %24 = vector.shape_cast %23 : vector<1x1x8xf32> to vector<1x8xf32>
    %25 = vector.broadcast %24 : vector<1x8xf32> to vector<4x8xf32>
    %26 = arith.addf %22, %25 : vector<4x8xf32>
    %c0_24 = arith.constant 0 : index
    %c0_25 = arith.constant 0 : index
    %c0_26 = arith.constant 0 : index
    %27 = vector.load %arg8[%c0_24, %c0_25, %c0_26] : memref<4x32x8xbf16, #tpu.memory_space<vmem>>, vector<1x32x8xbf16>
    %28 = vector.shape_cast %27 : vector<1x32x8xbf16> to vector<32x8xbf16>
    %cst_27 = arith.constant dense<0.000000e+00> : vector<4x8xf32>
    %29 = tpu.matmul %12, %28, %cst_27 {dimension_numbers = #tpu.dot_dimension_numbers<[1], [0], [0], [1], [0, 0, 1, 1], [], []>} : vector<4x32xbf16>, vector<32x8xbf16>, vector<4x8xf32> -> vector<4x8xf32>
    %c0_28 = arith.constant 0 : index
    %c0_29 = arith.constant 0 : index
    %c0_30 = arith.constant 0 : index
    %30 = vector.load %arg12[%c0_28, %c0_29, %c0_30] : memref<4x1x8xf32, #tpu.memory_space<vmem>>, vector<1x1x8xf32>
    %31 = vector.shape_cast %30 : vector<1x1x8xf32> to vector<1x8xf32>
    %32 = vector.broadcast %31 : vector<1x8xf32> to vector<4x8xf32>
    %33 = arith.addf %29, %32 : vector<4x8xf32>
    %34 = arith.truncf %19 : vector<4x8xf32> to vector<4x8xbf16>
    %35 = arith.truncf %26 : vector<4x8xf32> to vector<4x8xbf16>
    %cst_31 = arith.constant dense<0.000000e+00> : vector<4x4xf32>
    %36 = tpu.matmul %34, %35, %cst_31 {dimension_numbers = #tpu.dot_dimension_numbers<[1], [1], [0], [0], [0, 0, 1, 0], [], []>} : vector<4x8xbf16>, vector<4x8xbf16>, vector<4x4xf32> -> vector<4x4xf32>
    %cst_32 = arith.constant dense<0xFF800000> : vector<4xf32>
    %37 = vector.multi_reduction <maximumf>, %36, %cst_32 [1] : vector<4x4xf32> to vector<4xf32>
    %38 = vector.shape_cast %37 : vector<4xf32> to vector<4x1xf32>
    %39 = vector.broadcast %38 : vector<4x1xf32> to vector<4x4xf32>
    %40 = arith.subf %36, %39 : vector<4x4xf32>
    %41 = math.exp %40 : vector<4x4xf32>
    %cst_33 = arith.constant dense<0.000000e+00> : vector<4xf32>
    %42 = vector.multi_reduction <add>, %41, %cst_33 [1] : vector<4x4xf32> to vector<4xf32>
    %43 = vector.shape_cast %42 : vector<4xf32> to vector<4x1xf32>
    %44 = tpu.reciprocal %43 {approx = true} : vector<4x1xf32> -> vector<4x1xf32>
    %45 = vector.broadcast %44 : vector<4x1xf32> to vector<4x4xf32>
    %46 = arith.mulf %41, %45 : vector<4x4xf32>
    %47 = arith.truncf %46 : vector<4x4xf32> to vector<4x4xbf16>
    %48 = arith.truncf %33 : vector<4x8xf32> to vector<4x8xbf16>
    %c0_34 = arith.constant 0 : index
    %c0_35 = arith.constant 0 : index
    %c0_36 = arith.constant 0 : index
    %49 = vector.load %arg9[%c0_34, %c0_35, %c0_36] : memref<4x8x32xbf16, #tpu.memory_space<vmem>>, vector<1x8x32xbf16>
    %50 = vector.shape_cast %49 : vector<1x8x32xbf16> to vector<8x32xbf16>
    %cst_37 = arith.constant dense<0.000000e+00> : vector<4x32xf32>
    %51 = tpu.matmul %48, %50, %cst_37 {dimension_numbers = #tpu.dot_dimension_numbers<[1], [0], [0], [1], [0, 0, 1, 1], [], []>} : vector<4x8xbf16>, vector<8x32xbf16>, vector<4x32xf32> -> vector<4x32xf32>
    %52 = arith.truncf %51 : vector<4x32xf32> to vector<4x32xbf16>
    %cst_38 = arith.constant dense<0.000000e+00> : vector<4x32xf32>
    %53 = tpu.matmul %47, %52, %cst_38 {dimension_numbers = #tpu.dot_dimension_numbers<[1], [0], [0], [1], [0, 0, 1, 1], [], []>} : vector<4x4xbf16>, vector<4x32xbf16>, vector<4x32xf32> -> vector<4x32xf32>
    %c1 = arith.constant 1 : index
    %c0_39 = arith.constant 0 : index
    %c0_40 = arith.constant 0 : index
    %54 = vector.load %arg6[%c1, %c0_39, %c0_40] : memref<4x32x8xbf16, #tpu.memory_space<vmem>>, vector<1x32x8xbf16>
    %55 = vector.shape_cast %54 : vector<1x32x8xbf16> to vector<32x8xbf16>
    %cst_41 = arith.constant dense<0.000000e+00> : vector<4x8xf32>
    %56 = tpu.matmul %9, %55, %cst_41 {dimension_numbers = #tpu.dot_dimension_numbers<[1], [0], [0], [1], [0, 0, 1, 1], [], []>} : vector<4x32xbf16>, vector<32x8xbf16>, vector<4x8xf32> -> vector<4x8xf32>
    %c1_42 = arith.constant 1 : index
    %c0_43 = arith.constant 0 : index
    %c0_44 = arith.constant 0 : index
    %57 = vector.load %arg10[%c1_42, %c0_43, %c0_44] : memref<4x1x8xf32, #tpu.memory_space<vmem>>, vector<1x1x8xf32>
    %58 = vector.shape_cast %57 : vector<1x1x8xf32> to vector<1x8xf32>
    %59 = vector.broadcast %58 : vector<1x8xf32> to vector<4x8xf32>
    %60 = arith.addf %56, %59 : vector<4x8xf32>
    %c1_45 = arith.constant 1 : index
    %c0_46 = arith.constant 0 : index
    %c0_47 = arith.constant 0 : index
    %61 = vector.load %arg7[%c1_45, %c0_46, %c0_47] : memref<4x32x8xbf16, #tpu.memory_space<vmem>>, vector<1x32x8xbf16>
    %62 = vector.shape_cast %61 : vector<1x32x8xbf16> to vector<32x8xbf16>
    %cst_48 = arith.constant dense<0.000000e+00> : vector<4x8xf32>
    %63 = tpu.matmul %11, %62, %cst_48 {dimension_numbers = #tpu.dot_dimension_numbers<[1], [0], [0], [1], [0, 0, 1, 1], [], []>} : vector<4x32xbf16>, vector<32x8xbf16>, vector<4x8xf32> -> vector<4x8xf32>
    %c1_49 = arith.constant 1 : index
    %c0_50 = arith.constant 0 : index
    %c0_51 = arith.constant 0 : index
    %64 = vector.load %arg11[%c1_49, %c0_50, %c0_51] : memref<4x1x8xf32, #tpu.memory_space<vmem>>, vector<1x1x8xf32>
    %65 = vector.shape_cast %64 : vector<1x1x8xf32> to vector<1x8xf32>
    %66 = vector.broadcast %65 : vector<1x8xf32> to vector<4x8xf32>
    %67 = arith.addf %63, %66 : vector<4x8xf32>
    %c1_52 = arith.constant 1 : index
    %c0_53 = arith.constant 0 : index
    %c0_54 = arith.constant 0 : index
    %68 = vector.load %arg8[%c1_52, %c0_53, %c0_54] : memref<4x32x8xbf16, #tpu.memory_space<vmem>>, vector<1x32x8xbf16>
    %69 = vector.shape_cast %68 : vector<1x32x8xbf16> to vector<32x8xbf16>
    %cst_55 = arith.constant dense<0.000000e+00> : vector<4x8xf32>
    %70 = tpu.matmul %12, %69, %cst_55 {dimension_numbers = #tpu.dot_dimension_numbers<[1], [0], [0], [1], [0, 0, 1, 1], [], []>} : vector<4x32xbf16>, vector<32x8xbf16>, vector<4x8xf32> -> vector<4x8xf32>
    %c1_56 = arith.constant 1 : index
    %c0_57 = arith.constant 0 : index
    %c0_58 = arith.constant 0 : index
    %71 = vector.load %arg12[%c1_56, %c0_57, %c0_58] : memref<4x1x8xf32, #tpu.memory_space<vmem>>, vector<1x1x8xf32>
    %72 = vector.shape_cast %71 : vector<1x1x8xf32> to vector<1x8xf32>
    %73 = vector.broadcast %72 : vector<1x8xf32> to vector<4x8xf32>
    %74 = arith.addf %70, %73 : vector<4x8xf32>
    %75 = arith.truncf %60 : vector<4x8xf32> to vector<4x8xbf16>
    %76 = arith.truncf %67 : vector<4x8xf32> to vector<4x8xbf16>
    %cst_59 = arith.constant dense<0.000000e+00> : vector<4x4xf32>
    %77 = tpu.matmul %75, %76, %cst_59 {dimension_numbers = #tpu.dot_dimension_numbers<[1], [1], [0], [0], [0, 0, 1, 0], [], []>} : vector<4x8xbf16>, vector<4x8xbf16>, vector<4x4xf32> -> vector<4x4xf32>
    %cst_60 = arith.constant dense<0xFF800000> : vector<4xf32>
    %78 = vector.multi_reduction <maximumf>, %77, %cst_60 [1] : vector<4x4xf32> to vector<4xf32>
    %79 = vector.shape_cast %78 : vector<4xf32> to vector<4x1xf32>
    %80 = vector.broadcast %79 : vector<4x1xf32> to vector<4x4xf32>
    %81 = arith.subf %77, %80 : vector<4x4xf32>
    %82 = math.exp %81 : vector<4x4xf32>
    %cst_61 = arith.constant dense<0.000000e+00> : vector<4xf32>
    %83 = vector.multi_reduction <add>, %82, %cst_61 [1] : vector<4x4xf32> to vector<4xf32>
    %84 = vector.shape_cast %83 : vector<4xf32> to vector<4x1xf32>
    %85 = tpu.reciprocal %84 {approx = true} : vector<4x1xf32> -> vector<4x1xf32>
    %86 = vector.broadcast %85 : vector<4x1xf32> to vector<4x4xf32>
    %87 = arith.mulf %82, %86 : vector<4x4xf32>
    %88 = arith.truncf %87 : vector<4x4xf32> to vector<4x4xbf16>
    %89 = arith.truncf %74 : vector<4x8xf32> to vector<4x8xbf16>
    %c1_62 = arith.constant 1 : index
    %c0_63 = arith.constant 0 : index
    %c0_64 = arith.constant 0 : index
    %90 = vector.load %arg9[%c1_62, %c0_63, %c0_64] : memref<4x8x32xbf16, #tpu.memory_space<vmem>>, vector<1x8x32xbf16>
    %91 = vector.shape_cast %90 : vector<1x8x32xbf16> to vector<8x32xbf16>
    %cst_65 = arith.constant dense<0.000000e+00> : vector<4x32xf32>
    %92 = tpu.matmul %89, %91, %cst_65 {dimension_numbers = #tpu.dot_dimension_numbers<[1], [0], [0], [1], [0, 0, 1, 1], [], []>} : vector<4x8xbf16>, vector<8x32xbf16>, vector<4x32xf32> -> vector<4x32xf32>
    %93 = arith.truncf %92 : vector<4x32xf32> to vector<4x32xbf16>
    %cst_66 = arith.constant dense<0.000000e+00> : vector<4x32xf32>
    %94 = tpu.matmul %88, %93, %cst_66 {dimension_numbers = #tpu.dot_dimension_numbers<[1], [0], [0], [1], [0, 0, 1, 1], [], []>} : vector<4x4xbf16>, vector<4x32xbf16>, vector<4x32xf32> -> vector<4x32xf32>
    %95 = arith.addf %53, %94 : vector<4x32xf32>
    %c2 = arith.constant 2 : index
    %c0_67 = arith.constant 0 : index
    %c0_68 = arith.constant 0 : index
    %96 = vector.load %arg6[%c2, %c0_67, %c0_68] : memref<4x32x8xbf16, #tpu.memory_space<vmem>>, vector<1x32x8xbf16>
    %97 = vector.shape_cast %96 : vector<1x32x8xbf16> to vector<32x8xbf16>
    %cst_69 = arith.constant dense<0.000000e+00> : vector<4x8xf32>
    %98 = tpu.matmul %9, %97, %cst_69 {dimension_numbers = #tpu.dot_dimension_numbers<[1], [0], [0], [1], [0, 0, 1, 1], [], []>} : vector<4x32xbf16>, vector<32x8xbf16>, vector<4x8xf32> -> vector<4x8xf32>
    %c2_70 = arith.constant 2 : index
    %c0_71 = arith.constant 0 : index
    %c0_72 = arith.constant 0 : index
    %99 = vector.load %arg10[%c2_70, %c0_71, %c0_72] : memref<4x1x8xf32, #tpu.memory_space<vmem>>, vector<1x1x8xf32>
    %100 = vector.shape_cast %99 : vector<1x1x8xf32> to vector<1x8xf32>
    %101 = vector.broadcast %100 : vector<1x8xf32> to vector<4x8xf32>
    %102 = arith.addf %98, %101 : vector<4x8xf32>
    %c2_73 = arith.constant 2 : index
    %c0_74 = arith.constant 0 : index
    %c0_75 = arith.constant 0 : index
    %103 = vector.load %arg7[%c2_73, %c0_74, %c0_75] : memref<4x32x8xbf16, #tpu.memory_space<vmem>>, vector<1x32x8xbf16>
    %104 = vector.shape_cast %103 : vector<1x32x8xbf16> to vector<32x8xbf16>
    %cst_76 = arith.constant dense<0.000000e+00> : vector<4x8xf32>
    %105 = tpu.matmul %11, %104, %cst_76 {dimension_numbers = #tpu.dot_dimension_numbers<[1], [0], [0], [1], [0, 0, 1, 1], [], []>} : vector<4x32xbf16>, vector<32x8xbf16>, vector<4x8xf32> -> vector<4x8xf32>
    %c2_77 = arith.constant 2 : index
    %c0_78 = arith.constant 0 : index
    %c0_79 = arith.constant 0 : index
    %106 = vector.load %arg11[%c2_77, %c0_78, %c0_79] : memref<4x1x8xf32, #tpu.memory_space<vmem>>, vector<1x1x8xf32>
    %107 = vector.shape_cast %106 : vector<1x1x8xf32> to vector<1x8xf32>
    %108 = vector.broadcast %107 : vector<1x8xf32> to vector<4x8xf32>
    %109 = arith.addf %105, %108 : vector<4x8xf32>
    %c2_80 = arith.constant 2 : index
    %c0_81 = arith.constant 0 : index
    %c0_82 = arith.constant 0 : index
    %110 = vector.load %arg8[%c2_80, %c0_81, %c0_82] : memref<4x32x8xbf16, #tpu.memory_space<vmem>>, vector<1x32x8xbf16>
    %111 = vector.shape_cast %110 : vector<1x32x8xbf16> to vector<32x8xbf16>
    %cst_83 = arith.constant dense<0.000000e+00> : vector<4x8xf32>
    %112 = tpu.matmul %12, %111, %cst_83 {dimension_numbers = #tpu.dot_dimension_numbers<[1], [0], [0], [1], [0, 0, 1, 1], [], []>} : vector<4x32xbf16>, vector<32x8xbf16>, vector<4x8xf32> -> vector<4x8xf32>
    %c2_84 = arith.constant 2 : index
    %c0_85 = arith.constant 0 : index
    %c0_86 = arith.constant 0 : index
    %113 = vector.load %arg12[%c2_84, %c0_85, %c0_86] : memref<4x1x8xf32, #tpu.memory_space<vmem>>, vector<1x1x8xf32>
    %114 = vector.shape_cast %113 : vector<1x1x8xf32> to vector<1x8xf32>
    %115 = vector.broadcast %114 : vector<1x8xf32> to vector<4x8xf32>
    %116 = arith.addf %112, %115 : vector<4x8xf32>
    %117 = arith.truncf %102 : vector<4x8xf32> to vector<4x8xbf16>
    %118 = arith.truncf %109 : vector<4x8xf32> to vector<4x8xbf16>
    %cst_87 = arith.constant dense<0.000000e+00> : vector<4x4xf32>
    %119 = tpu.matmul %117, %118, %cst_87 {dimension_numbers = #tpu.dot_dimension_numbers<[1], [1], [0], [0], [0, 0, 1, 0], [], []>} : vector<4x8xbf16>, vector<4x8xbf16>, vector<4x4xf32> -> vector<4x4xf32>
    %cst_88 = arith.constant dense<0xFF800000> : vector<4xf32>
    %120 = vector.multi_reduction <maximumf>, %119, %cst_88 [1] : vector<4x4xf32> to vector<4xf32>
    %121 = vector.shape_cast %120 : vector<4xf32> to vector<4x1xf32>
    %122 = vector.broadcast %121 : vector<4x1xf32> to vector<4x4xf32>
    %123 = arith.subf %119, %122 : vector<4x4xf32>
    %124 = math.exp %123 : vector<4x4xf32>
    %cst_89 = arith.constant dense<0.000000e+00> : vector<4xf32>
    %125 = vector.multi_reduction <add>, %124, %cst_89 [1] : vector<4x4xf32> to vector<4xf32>
    %126 = vector.shape_cast %125 : vector<4xf32> to vector<4x1xf32>
    %127 = tpu.reciprocal %126 {approx = true} : vector<4x1xf32> -> vector<4x1xf32>
    %128 = vector.broadcast %127 : vector<4x1xf32> to vector<4x4xf32>
    %129 = arith.mulf %124, %128 : vector<4x4xf32>
    %130 = arith.truncf %129 : vector<4x4xf32> to vector<4x4xbf16>
    %131 = arith.truncf %116 : vector<4x8xf32> to vector<4x8xbf16>
    %c2_90 = arith.constant 2 : index
    %c0_91 = arith.constant 0 : index
    %c0_92 = arith.constant 0 : index
    %132 = vector.load %arg9[%c2_90, %c0_91, %c0_92] : memref<4x8x32xbf16, #tpu.memory_space<vmem>>, vector<1x8x32xbf16>
    %133 = vector.shape_cast %132 : vector<1x8x32xbf16> to vector<8x32xbf16>
    %cst_93 = arith.constant dense<0.000000e+00> : vector<4x32xf32>
    %134 = tpu.matmul %131, %133, %cst_93 {dimension_numbers = #tpu.dot_dimension_numbers<[1], [0], [0], [1], [0, 0, 1, 1], [], []>} : vector<4x8xbf16>, vector<8x32xbf16>, vector<4x32xf32> -> vector<4x32xf32>
    %135 = arith.truncf %134 : vector<4x32xf32> to vector<4x32xbf16>
    %cst_94 = arith.constant dense<0.000000e+00> : vector<4x32xf32>
    %136 = tpu.matmul %130, %135, %cst_94 {dimension_numbers = #tpu.dot_dimension_numbers<[1], [0], [0], [1], [0, 0, 1, 1], [], []>} : vector<4x4xbf16>, vector<4x32xbf16>, vector<4x32xf32> -> vector<4x32xf32>
    %137 = arith.addf %95, %136 : vector<4x32xf32>
    %c3 = arith.constant 3 : index
    %c0_95 = arith.constant 0 : index
    %c0_96 = arith.constant 0 : index
    %138 = vector.load %arg6[%c3, %c0_95, %c0_96] : memref<4x32x8xbf16, #tpu.memory_space<vmem>>, vector<1x32x8xbf16>
    %139 = vector.shape_cast %138 : vector<1x32x8xbf16> to vector<32x8xbf16>
    %cst_97 = arith.constant dense<0.000000e+00> : vector<4x8xf32>
    %140 = tpu.matmul %9, %139, %cst_97 {dimension_numbers = #tpu.dot_dimension_numbers<[1], [0], [0], [1], [0, 0, 1, 1], [], []>} : vector<4x32xbf16>, vector<32x8xbf16>, vector<4x8xf32> -> vector<4x8xf32>
    %c3_98 = arith.constant 3 : index
    %c0_99 = arith.constant 0 : index
    %c0_100 = arith.constant 0 : index
    %141 = vector.load %arg10[%c3_98, %c0_99, %c0_100] : memref<4x1x8xf32, #tpu.memory_space<vmem>>, vector<1x1x8xf32>
    %142 = vector.shape_cast %141 : vector<1x1x8xf32> to vector<1x8xf32>
    %143 = vector.broadcast %142 : vector<1x8xf32> to vector<4x8xf32>
    %144 = arith.addf %140, %143 : vector<4x8xf32>
    %c3_101 = arith.constant 3 : index
    %c0_102 = arith.constant 0 : index
    %c0_103 = arith.constant 0 : index
    %145 = vector.load %arg7[%c3_101, %c0_102, %c0_103] : memref<4x32x8xbf16, #tpu.memory_space<vmem>>, vector<1x32x8xbf16>
    %146 = vector.shape_cast %145 : vector<1x32x8xbf16> to vector<32x8xbf16>
    %cst_104 = arith.constant dense<0.000000e+00> : vector<4x8xf32>
    %147 = tpu.matmul %11, %146, %cst_104 {dimension_numbers = #tpu.dot_dimension_numbers<[1], [0], [0], [1], [0, 0, 1, 1], [], []>} : vector<4x32xbf16>, vector<32x8xbf16>, vector<4x8xf32> -> vector<4x8xf32>
    %c3_105 = arith.constant 3 : index
    %c0_106 = arith.constant 0 : index
    %c0_107 = arith.constant 0 : index
    %148 = vector.load %arg11[%c3_105, %c0_106, %c0_107] : memref<4x1x8xf32, #tpu.memory_space<vmem>>, vector<1x1x8xf32>
    %149 = vector.shape_cast %148 : vector<1x1x8xf32> to vector<1x8xf32>
    %150 = vector.broadcast %149 : vector<1x8xf32> to vector<4x8xf32>
    %151 = arith.addf %147, %150 : vector<4x8xf32>
    %c3_108 = arith.constant 3 : index
    %c0_109 = arith.constant 0 : index
    %c0_110 = arith.constant 0 : index
    %152 = vector.load %arg8[%c3_108, %c0_109, %c0_110] : memref<4x32x8xbf16, #tpu.memory_space<vmem>>, vector<1x32x8xbf16>
    %153 = vector.shape_cast %152 : vector<1x32x8xbf16> to vector<32x8xbf16>
    %cst_111 = arith.constant dense<0.000000e+00> : vector<4x8xf32>
    %154 = tpu.matmul %12, %153, %cst_111 {dimension_numbers = #tpu.dot_dimension_numbers<[1], [0], [0], [1], [0, 0, 1, 1], [], []>} : vector<4x32xbf16>, vector<32x8xbf16>, vector<4x8xf32> -> vector<4x8xf32>
    %c3_112 = arith.constant 3 : index
    %c0_113 = arith.constant 0 : index
    %c0_114 = arith.constant 0 : index
    %155 = vector.load %arg12[%c3_112, %c0_113, %c0_114] : memref<4x1x8xf32, #tpu.memory_space<vmem>>, vector<1x1x8xf32>
    %156 = vector.shape_cast %155 : vector<1x1x8xf32> to vector<1x8xf32>
    %157 = vector.broadcast %156 : vector<1x8xf32> to vector<4x8xf32>
    %158 = arith.addf %154, %157 : vector<4x8xf32>
    %159 = arith.truncf %144 : vector<4x8xf32> to vector<4x8xbf16>
    %160 = arith.truncf %151 : vector<4x8xf32> to vector<4x8xbf16>
    %cst_115 = arith.constant dense<0.000000e+00> : vector<4x4xf32>
    %161 = tpu.matmul %159, %160, %cst_115 {dimension_numbers = #tpu.dot_dimension_numbers<[1], [1], [0], [0], [0, 0, 1, 0], [], []>} : vector<4x8xbf16>, vector<4x8xbf16>, vector<4x4xf32> -> vector<4x4xf32>
    %cst_116 = arith.constant dense<0xFF800000> : vector<4xf32>
    %162 = vector.multi_reduction <maximumf>, %161, %cst_116 [1] : vector<4x4xf32> to vector<4xf32>
    %163 = vector.shape_cast %162 : vector<4xf32> to vector<4x1xf32>
    %164 = vector.broadcast %163 : vector<4x1xf32> to vector<4x4xf32>
    %165 = arith.subf %161, %164 : vector<4x4xf32>
    %166 = math.exp %165 : vector<4x4xf32>
    %cst_117 = arith.constant dense<0.000000e+00> : vector<4xf32>
    %167 = vector.multi_reduction <add>, %166, %cst_117 [1] : vector<4x4xf32> to vector<4xf32>
    %168 = vector.shape_cast %167 : vector<4xf32> to vector<4x1xf32>
    %169 = tpu.reciprocal %168 {approx = true} : vector<4x1xf32> -> vector<4x1xf32>
    %170 = vector.broadcast %169 : vector<4x1xf32> to vector<4x4xf32>
    %171 = arith.mulf %166, %170 : vector<4x4xf32>
    %172 = arith.truncf %171 : vector<4x4xf32> to vector<4x4xbf16>
    %173 = arith.truncf %158 : vector<4x8xf32> to vector<4x8xbf16>
    %c3_118 = arith.constant 3 : index
    %c0_119 = arith.constant 0 : index
    %c0_120 = arith.constant 0 : index
    %174 = vector.load %arg9[%c3_118, %c0_119, %c0_120] : memref<4x8x32xbf16, #tpu.memory_space<vmem>>, vector<1x8x32xbf16>
    %175 = vector.shape_cast %174 : vector<1x8x32xbf16> to vector<8x32xbf16>
    %cst_121 = arith.constant dense<0.000000e+00> : vector<4x32xf32>
    %176 = tpu.matmul %173, %175, %cst_121 {dimension_numbers = #tpu.dot_dimension_numbers<[1], [0], [0], [1], [0, 0, 1, 1], [], []>} : vector<4x8xbf16>, vector<8x32xbf16>, vector<4x32xf32> -> vector<4x32xf32>
    %177 = arith.truncf %176 : vector<4x32xf32> to vector<4x32xbf16>
    %cst_122 = arith.constant dense<0.000000e+00> : vector<4x32xf32>
    %178 = tpu.matmul %172, %177, %cst_122 {dimension_numbers = #tpu.dot_dimension_numbers<[1], [0], [0], [1], [0, 0, 1, 1], [], []>} : vector<4x4xbf16>, vector<4x32xbf16>, vector<4x32xf32> -> vector<4x32xf32>
    %179 = arith.addf %137, %178 : vector<4x32xf32>
    %180 = arith.addf %1, %179 : vector<4x32xf32>
    %c0_123 = arith.constant 0 : index
    %c0_124 = arith.constant 0 : index
    %181 = vector.load %arg13[%c0_123, %c0_124] : memref<1x32xf32, #tpu.memory_space<vmem>>, vector<1x32xf32>
    %182 = vector.broadcast %181 : vector<1x32xf32> to vector<4x32xf32>
    %183 = arith.addf %180, %182 : vector<4x32xf32>
    %c0_125 = arith.constant 0 : index
    %c0_126 = arith.constant 0 : index
    %184 = vector.load %arg14[%c0_125, %c0_126] : memref<1x32xf32, #tpu.memory_space<vmem>>, vector<1x32xf32>
    %c0_127 = arith.constant 0 : index
    %c0_128 = arith.constant 0 : index
    %185 = vector.load %arg15[%c0_127, %c0_128] : memref<1x32xf32, #tpu.memory_space<vmem>>, vector<1x32xf32>
    %cst_129 = arith.constant dense<0.000000e+00> : vector<4xf32>
    %186 = vector.multi_reduction <add>, %183, %cst_129 [1] : vector<4x32xf32> to vector<4xf32>
    %187 = vector.shape_cast %186 : vector<4xf32> to vector<4x1xf32>
    %cst_130 = arith.constant 3.200000e+01 : f32
    %188 = vector.broadcast %cst_130 : f32 to vector<4x1xf32>
    %189 = arith.divf %187, %188 : vector<4x1xf32>
    %190 = vector.broadcast %189 : vector<4x1xf32> to vector<4x32xf32>
    %191 = arith.subf %183, %190 : vector<4x32xf32>
    %192 = arith.mulf %191, %191 : vector<4x32xf32>
    %cst_131 = arith.constant dense<0.000000e+00> : vector<4xf32>
    %193 = vector.multi_reduction <add>, %192, %cst_131 [1] : vector<4x32xf32> to vector<4xf32>
    %194 = vector.shape_cast %193 : vector<4xf32> to vector<4x1xf32>
    %cst_132 = arith.constant 3.200000e+01 : f32
    %195 = vector.broadcast %cst_132 : f32 to vector<4x1xf32>
    %196 = arith.divf %194, %195 : vector<4x1xf32>
    %cst_133 = arith.constant 9.99999974E-6 : f32
    %197 = vector.broadcast %cst_133 : f32 to vector<4x1xf32>
    %198 = arith.addf %196, %197 : vector<4x1xf32>
    %199 = math.rsqrt %198 : vector<4x1xf32>
    %200 = vector.broadcast %199 : vector<4x1xf32> to vector<4x32xf32>
    %201 = arith.mulf %191, %200 : vector<4x32xf32>
    %202 = vector.broadcast %184 : vector<1x32xf32> to vector<4x32xf32>
    %203 = arith.mulf %201, %202 : vector<4x32xf32>
    %204 = vector.broadcast %185 : vector<1x32xf32> to vector<4x32xf32>
    %205 = arith.addf %203, %204 : vector<4x32xf32>
    %206 = arith.truncf %205 : vector<4x32xf32> to vector<4x32xbf16>
    %c0_134 = arith.constant 0 : index
    %c0_135 = arith.constant 0 : index
    %207 = vector.load %arg16[%c0_134, %c0_135] : memref<32x64xbf16, #tpu.memory_space<vmem>>, vector<32x64xbf16>
    %cst_136 = arith.constant dense<0.000000e+00> : vector<4x64xf32>
    %208 = tpu.matmul %206, %207, %cst_136 {dimension_numbers = #tpu.dot_dimension_numbers<[1], [0], [0], [1], [0, 0, 1, 1], [], []>} : vector<4x32xbf16>, vector<32x64xbf16>, vector<4x64xf32> -> vector<4x64xf32>
    %c0_137 = arith.constant 0 : index
    %c0_138 = arith.constant 0 : index
    %209 = vector.load %arg17[%c0_137, %c0_138] : memref<1x64xf32, #tpu.memory_space<vmem>>, vector<1x64xf32>
    %210 = vector.broadcast %209 : vector<1x64xf32> to vector<4x64xf32>
    %211 = arith.addf %208, %210 : vector<4x64xf32>
    %cst_139 = arith.constant 0.000000e+00 : f32
    %212 = vector.broadcast %cst_139 : f32 to vector<4x64xf32>
    %213 = arith.maximumf %211, %212 : vector<4x64xf32>
    %214 = arith.truncf %213 : vector<4x64xf32> to vector<4x64xbf16>
    %c0_140 = arith.constant 0 : index
    %c0_141 = arith.constant 0 : index
    %215 = vector.load %arg18[%c0_140, %c0_141] : memref<64x32xbf16, #tpu.memory_space<vmem>>, vector<64x32xbf16>
    %cst_142 = arith.constant dense<0.000000e+00> : vector<4x32xf32>
    %216 = tpu.matmul %214, %215, %cst_142 {dimension_numbers = #tpu.dot_dimension_numbers<[1], [0], [0], [1], [0, 0, 1, 1], [], []>} : vector<4x64xbf16>, vector<64x32xbf16>, vector<4x32xf32> -> vector<4x32xf32>
    %c0_143 = arith.constant 0 : index
    %c0_144 = arith.constant 0 : index
    %217 = vector.load %arg19[%c0_143, %c0_144] : memref<1x32xf32, #tpu.memory_space<vmem>>, vector<1x32xf32>
    %218 = vector.broadcast %217 : vector<1x32xf32> to vector<4x32xf32>
    %219 = arith.addf %216, %218 : vector<4x32xf32>
    %220 = arith.addf %205, %219 : vector<4x32xf32>
    %c0_145 = arith.constant 0 : index
    %c0_146 = arith.constant 0 : index
    %221 = vector.load %arg20[%c0_145, %c0_146] : memref<1x32xf32, #tpu.memory_space<vmem>>, vector<1x32xf32>
    %c0_147 = arith.constant 0 : index
    %c0_148 = arith.constant 0 : index
    %222 = vector.load %arg21[%c0_147, %c0_148] : memref<1x32xf32, #tpu.memory_space<vmem>>, vector<1x32xf32>
    %cst_149 = arith.constant dense<0.000000e+00> : vector<4xf32>
    %223 = vector.multi_reduction <add>, %220, %cst_149 [1] : vector<4x32xf32> to vector<4xf32>
    %224 = vector.shape_cast %223 : vector<4xf32> to vector<4x1xf32>
    %cst_150 = arith.constant 3.200000e+01 : f32
    %225 = vector.broadcast %cst_150 : f32 to vector<4x1xf32>
    %226 = arith.divf %224, %225 : vector<4x1xf32>
    %227 = vector.broadcast %226 : vector<4x1xf32> to vector<4x32xf32>
    %228 = arith.subf %220, %227 : vector<4x32xf32>
    %229 = arith.mulf %228, %228 : vector<4x32xf32>
    %cst_151 = arith.constant dense<0.000000e+00> : vector<4xf32>
    %230 = vector.multi_reduction <add>, %229, %cst_151 [1] : vector<4x32xf32> to vector<4xf32>
    %231 = vector.shape_cast %230 : vector<4xf32> to vector<4x1xf32>
    %cst_152 = arith.constant 3.200000e+01 : f32
    %232 = vector.broadcast %cst_152 : f32 to vector<4x1xf32>
    %233 = arith.divf %231, %232 : vector<4x1xf32>
    %cst_153 = arith.constant 9.99999974E-6 : f32
    %234 = vector.broadcast %cst_153 : f32 to vector<4x1xf32>
    %235 = arith.addf %233, %234 : vector<4x1xf32>
    %236 = math.rsqrt %235 : vector<4x1xf32>
    %237 = vector.broadcast %236 : vector<4x1xf32> to vector<4x32xf32>
    %238 = arith.mulf %228, %237 : vector<4x32xf32>
    %239 = vector.broadcast %221 : vector<1x32xf32> to vector<4x32xf32>
    %240 = arith.mulf %238, %239 : vector<4x32xf32>
    %241 = vector.broadcast %222 : vector<1x32xf32> to vector<4x32xf32>
    %242 = arith.addf %240, %241 : vector<4x32xf32>
    %c0_154 = arith.constant 0 : index
    %c0_155 = arith.constant 0 : index
    %c0_156 = arith.constant 0 : index
    %243 = vector.load %arg22[%c0_154, %c0_155, %c0_156] : memref<1x4x32xf32, #tpu.memory_space<vmem>>, vector<1x4x32xf32>
    %244 = vector.shape_cast %243 : vector<1x4x32xf32> to vector<4x32xf32>
    %245 = vector.shape_cast %242 : vector<4x32xf32> to vector<1x4x32xf32>
    tpu.vector_store %arg22[%c0_154, %c0_155, %c0_156], %245 {strides = array<i32>} : memref<1x4x32xf32, #tpu.memory_space<vmem>>, vector<1x4x32xf32>,
    return
  }
  func.func @transform_0(%arg0: i32, %arg1: i32) -> (i32, i32, i32) {
    %c0_i32 = arith.constant 0 : i32
    %c0_i32_0 = arith.constant 0 : i32
    return %arg0, %arg1, %c0_i32 : i32, i32, i32
  }
  func.func @transform_1(%arg0: i32, %arg1: i32) -> (i32, i32, i32) {
    %c0_i32 = arith.constant 0 : i32
    %c0_i32_0 = arith.constant 0 : i32
    return %arg0, %arg1, %c0_i32 : i32, i32, i32
  }
  func.func @transform_2(%arg0: i32, %arg1: i32) -> (i32, i32, i32) {
    %c0_i32 = arith.constant 0 : i32
    %c0_i32_0 = arith.constant 0 : i32
    %c0_i32_1 = arith.constant 0 : i32
    return %arg0, %c0_i32, %c0_i32_0 : i32, i32, i32
  }
  func.func @transform_3(%arg0: i32, %arg1: i32) -> (i32, i32, i32) {
    %c0_i32 = arith.constant 0 : i32
    %c0_i32_0 = arith.constant 0 : i32
    %c0_i32_1 = arith.constant 0 : i32
    return %arg0, %c0_i32, %c0_i32_0 : i32, i32, i32
  }
  func.func @transform_4(%arg0: i32, %arg1: i32) -> (i32, i32, i32) {
    %c0_i32 = arith.constant 0 : i32
    %c0_i32_0 = arith.constant 0 : i32
    %c0_i32_1 = arith.constant 0 : i32
    %c0_i32_2 = arith.constant 0 : i32
    return %c0_i32, %c0_i32_0, %c0_i32_1 : i32, i32, i32
  }
  func.func @transform_5(%arg0: i32, %arg1: i32) -> (i32, i32, i32) {
    %c0_i32 = arith.constant 0 : i32
    %c0_i32_0 = arith.constant 0 : i32
    %c0_i32_1 = arith.constant 0 : i32
    %c0_i32_2 = arith.constant 0 : i32
    return %c0_i32, %c0_i32_0, %c0_i32_1 : i32, i32, i32
  }
  func.func @transform_6(%arg0: i32, %arg1: i32) -> (i32, i32, i32) {
    %c0_i32 = arith.constant 0 : i32
    %c0_i32_0 = arith.constant 0 : i32
    %c0_i32_1 = arith.constant 0 : i32
    %c0_i32_2 = arith.constant 0 : i32
    return %c0_i32, %c0_i32_0, %c0_i32_1 : i32, i32, i32
  }
  func.func @transform_7(%arg0: i32, %arg1: i32) -> (i32, i32, i32) {
    %c0_i32 = arith.constant 0 : i32
    %c0_i32_0 = arith.constant 0 : i32
    %c0_i32_1 = arith.constant 0 : i32
    %c0_i32_2 = arith.constant 0 : i32
    return %c0_i32, %c0_i32_0, %c0_i32_1 : i32, i32, i32
  }
  func.func @transform_8(%arg0: i32, %arg1: i32) -> (i32, i32, i32) {
    %c0_i32 = arith.constant 0 : i32
    %c0_i32_0 = arith.constant 0 : i32
    %c0_i32_1 = arith.constant 0 : i32
    %c0_i32_2 = arith.constant 0 : i32
    return %c0_i32, %c0_i32_0, %c0_i32_1 : i32, i32, i32
  }
  func.func @transform_9(%arg0: i32, %arg1: i32) -> (i32, i32, i32) {
    %c0_i32 = arith.constant 0 : i32
    %c0_i32_0 = arith.constant 0 : i32
    %c0_i32_1 = arith.constant 0 : i32
    %c0_i32_2 = arith.constant 0 : i32
    return %c0_i32, %c0_i32_0, %c0_i32_1 : i32, i32, i32
  }
  func.func @transform_10(%arg0: i32, %arg1: i32) -> (i32, i32, i32) {
    %c0_i32 = arith.constant 0 : i32
    %c0_i32_0 = arith.constant 0 : i32
    %c0_i32_1 = arith.constant 0 : i32
    %c0_i32_2 = arith.constant 0 : i32
    return %c0_i32, %c0_i32_0, %c0_i32_1 : i32, i32, i32
  }
  func.func @transform_11(%arg0: i32, %arg1: i32) -> (i32, i32) {
    %c0_i32 = arith.constant 0 : i32
    %c0_i32_0 = arith.constant 0 : i32
    %c0_i32_1 = arith.constant 0 : i32
    return %c0_i32, %c0_i32_0 : i32, i32
  }
  func.func @transform_12(%arg0: i32, %arg1: i32) -> (i32, i32) {
    %c0_i32 = arith.constant 0 : i32
    %c0_i32_0 = arith.constant 0 : i32
    %c0_i32_1 = arith.constant 0 : i32
    return %c0_i32, %c0_i32_0 : i32, i32
  }
  func.func @transform_13(%arg0: i32, %arg1: i32) -> (i32, i32) {
    %c0_i32 = arith.constant 0 : i32
    %c0_i32_0 = arith.constant 0 : i32
    %c0_i32_1 = arith.constant 0 : i32
    return %c0_i32, %c0_i32_0 : i32, i32
  }
  func.func @transform_14(%arg0: i32, %arg1: i32) -> (i32, i32) {
    %c0_i32 = arith.constant 0 : i32
    %c0_i32_0 = arith.constant 0 : i32
    %c0_i32_1 = arith.constant 0 : i32
    return %c0_i32, %c0_i32_0 : i32, i32
  }
  func.func @transform_15(%arg0: i32, %arg1: i32) -> (i32, i32) {
    %c0_i32 = arith.constant 0 : i32
    %c0_i32_0 = arith.constant 0 : i32
    %c0_i32_1 = arith.constant 0 : i32
    return %c0_i32, %c0_i32_0 : i32, i32
  }
  func.func @transform_16(%arg0: i32, %arg1: i32) -> (i32, i32) {
    %c0_i32 = arith.constant 0 : i32
    %c0_i32_0 = arith.constant 0 : i32
    %c0_i32_1 = arith.constant 0 : i32
    return %c0_i32, %c0_i32_0 : i32, i32
  }
  func.func @transform_17(%arg0: i32, %arg1: i32) -> (i32, i32) {
    %c0_i32 = arith.constant 0 : i32
    %c0_i32_0 = arith.constant 0 : i32
    %c0_i32_1 = arith.constant 0 : i32
    return %c0_i32, %c0_i32_0 : i32, i32
  }
  func.func @transform_18(%arg0: i32, %arg1: i32) -> (i32, i32) {
    %c0_i32 = arith.constant 0 : i32
    %c0_i32_0 = arith.constant 0 : i32
    %c0_i32_1 = arith.constant 0 : i32
    return %c0_i32, %c0_i32_0 : i32, i32
  }
  func.func @transform_19(%arg0: i32, %arg1: i32) -> (i32, i32) {
    %c0_i32 = arith.constant 0 : i32
    %c0_i32_0 = arith.constant 0 : i32
    %c0_i32_1 = arith.constant 0 : i32
    return %c0_i32, %c0_i32_0 : i32, i32
  }
  func.func @transform_20(%arg0: i32, %arg1: i32) -> (i32, i32, i32) {
    %c0_i32 = arith.constant 0 : i32
    %c0_i32_0 = arith.constant 0 : i32
    return %arg0, %arg1, %c0_i32 : i32, i32, i32
  }
}

module attributes {stable_mosaic.version = 11 : i64} {
  func.func @_linear_kernel(%arg0: i32, %arg1: memref<8x192xf32, #tpu.memory_space<vmem>>, %arg2: memref<192x32xbf16, #tpu.memory_space<vmem>>, %arg3: memref<1x32xf32, #tpu.memory_space<vmem>>, %arg4: memref<8x32xf32, #tpu.memory_space<vmem>>) attributes {dimension_semantics = [#tpu.dimension_semantics<parallel>], iteration_bounds = array<i64: 1>, scalar_prefetch = 0 : i64, scratch_operands = 0 : i64, tpu.core_type = #tpu.core_type<tc>, window_params = [{transform_indices = @transform_0, window_bounds = array<i64: 8, 192>}, {pipeline_mode = #tpu.pipeline_mode<synchronous>, transform_indices = @transform_1, window_bounds = array<i64: 192, 32>}, {pipeline_mode = #tpu.pipeline_mode<synchronous>, transform_indices = @transform_2, window_bounds = array<i64: 1, 32>}, {transform_indices = @transform_3, window_bounds = array<i64: 8, 32>}]} {
    %c0 = arith.constant 0 : index
    %c0_0 = arith.constant 0 : index
    %0 = vector.load %arg1[%c0, %c0_0] : memref<8x192xf32, #tpu.memory_space<vmem>>, vector<8x192xf32>
    %1 = arith.truncf %0 : vector<8x192xf32> to vector<8x192xbf16>
    %c0_1 = arith.constant 0 : index
    %c0_2 = arith.constant 0 : index
    %2 = vector.load %arg2[%c0_1, %c0_2] : memref<192x32xbf16, #tpu.memory_space<vmem>>, vector<192x32xbf16>
    %cst = arith.constant dense<0.000000e+00> : vector<8x32xf32>
    %3 = tpu.matmul %1, %2, %cst {dimension_numbers = #tpu.dot_dimension_numbers<[1], [0], [0], [1], [0, 0, 1, 1], [], []>} : vector<8x192xbf16>, vector<192x32xbf16>, vector<8x32xf32> -> vector<8x32xf32>
    %c0_3 = arith.constant 0 : index
    %c0_4 = arith.constant 0 : index
    %4 = vector.load %arg3[%c0_3, %c0_4] : memref<1x32xf32, #tpu.memory_space<vmem>>, vector<1x32xf32>
    %5 = vector.broadcast %4 : vector<1x32xf32> to vector<8x32xf32>
    %6 = arith.addf %3, %5 : vector<8x32xf32>
    %c0_5 = arith.constant 0 : index
    %c0_6 = arith.constant 0 : index
    %7 = vector.load %arg4[%c0_5, %c0_6] : memref<8x32xf32, #tpu.memory_space<vmem>>, vector<8x32xf32>
    tpu.vector_store %arg4[%c0_5, %c0_6], %6 {strides = array<i32>} : memref<8x32xf32, #tpu.memory_space<vmem>>, vector<8x32xf32>,
    return
  }
  func.func @transform_0(%arg0: i32) -> (i32, i32) {
    %c0_i32 = arith.constant 0 : i32
    %c0_i32_0 = arith.constant 0 : i32
    return %arg0, %c0_i32 : i32, i32
  }
  func.func @transform_1(%arg0: i32) -> (i32, i32) {
    %c0_i32 = arith.constant 0 : i32
    %c0_i32_0 = arith.constant 0 : i32
    %c0_i32_1 = arith.constant 0 : i32
    return %c0_i32, %c0_i32_0 : i32, i32
  }
  func.func @transform_2(%arg0: i32) -> (i32, i32) {
    %c0_i32 = arith.constant 0 : i32
    %c0_i32_0 = arith.constant 0 : i32
    %c0_i32_1 = arith.constant 0 : i32
    return %c0_i32, %c0_i32_0 : i32, i32
  }
  func.func @transform_3(%arg0: i32) -> (i32, i32) {
    %c0_i32 = arith.constant 0 : i32
    %c0_i32_0 = arith.constant 0 : i32
    return %arg0, %c0_i32 : i32, i32
  }
}

module attributes {stable_mosaic.version = 11 : i64} {
  func.func @_self_attn_block_kernel(%arg0: i32, %arg1: memref<1x4x32xf32, #tpu.memory_space<vmem>>, %arg2: memref<1x4x32xf32, #tpu.memory_space<vmem>>, %arg3: memref<4x32x8xbf16, #tpu.memory_space<vmem>>, %arg4: memref<4x32x8xbf16, #tpu.memory_space<vmem>>, %arg5: memref<4x32x8xbf16, #tpu.memory_space<vmem>>, %arg6: memref<4x8x32xbf16, #tpu.memory_space<vmem>>, %arg7: memref<4x1x8xf32, #tpu.memory_space<vmem>>, %arg8: memref<4x1x8xf32, #tpu.memory_space<vmem>>, %arg9: memref<4x1x8xf32, #tpu.memory_space<vmem>>, %arg10: memref<1x32xf32, #tpu.memory_space<vmem>>, %arg11: memref<1x32xf32, #tpu.memory_space<vmem>>, %arg12: memref<1x32xf32, #tpu.memory_space<vmem>>, %arg13: memref<1x4x32xf32, #tpu.memory_space<vmem>>) attributes {dimension_semantics = [#tpu.dimension_semantics<parallel>], iteration_bounds = array<i64: 2>, scalar_prefetch = 0 : i64, scratch_operands = 0 : i64, tpu.core_type = #tpu.core_type<tc>, window_params = [{transform_indices = @transform_0, window_bounds = array<i64: 1, 4, 32>}, {transform_indices = @transform_1, window_bounds = array<i64: 1, 4, 32>}, {pipeline_mode = #tpu.pipeline_mode<synchronous>, transform_indices = @transform_2, window_bounds = array<i64: 4, 32, 8>}, {pipeline_mode = #tpu.pipeline_mode<synchronous>, transform_indices = @transform_3, window_bounds = array<i64: 4, 32, 8>}, {pipeline_mode = #tpu.pipeline_mode<synchronous>, transform_indices = @transform_4, window_bounds = array<i64: 4, 32, 8>}, {pipeline_mode = #tpu.pipeline_mode<synchronous>, transform_indices = @transform_5, window_bounds = array<i64: 4, 8, 32>}, {pipeline_mode = #tpu.pipeline_mode<synchronous>, transform_indices = @transform_6, window_bounds = array<i64: 4, 1, 8>}, {pipeline_mode = #tpu.pipeline_mode<synchronous>, transform_indices = @transform_7, window_bounds = array<i64: 4, 1, 8>}, {pipeline_mode = #tpu.pipeline_mode<synchronous>, transform_indices = @transform_8, window_bounds = array<i64: 4, 1, 8>}, {pipeline_mode = #tpu.pipeline_mode<synchronous>, transform_indices = @transform_9, window_bounds = array<i64: 1, 32>}, {pipeline_mode = #tpu.pipeline_mode<synchronous>, transform_indices = @transform_10, window_bounds = array<i64: 1, 32>}, {pipeline_mode = #tpu.pipeline_mode<synchronous>, transform_indices = @transform_11, window_bounds = array<i64: 1, 32>}, {transform_indices = @transform_12, window_bounds = array<i64: 1, 4, 32>}]} {
    %c0 = arith.constant 0 : index
    %c0_0 = arith.constant 0 : index
    %c0_1 = arith.constant 0 : index
    %0 = vector.load %arg1[%c0, %c0_0, %c0_1] : memref<1x4x32xf32, #tpu.memory_space<vmem>>, vector<1x4x32xf32>
    %1 = vector.shape_cast %0 : vector<1x4x32xf32> to vector<4x32xf32>
    %c0_2 = arith.constant 0 : index
    %c0_3 = arith.constant 0 : index
    %c0_4 = arith.constant 0 : index
    %2 = vector.load %arg2[%c0_2, %c0_3, %c0_4] : memref<1x4x32xf32, #tpu.memory_space<vmem>>, vector<1x4x32xf32>
    %3 = vector.shape_cast %2 : vector<1x4x32xf32> to vector<4x32xf32>
    %4 = arith.addf %1, %3 : vector<4x32xf32>
    %5 = arith.truncf %4 : vector<4x32xf32> to vector<4x32xbf16>
    %6 = arith.truncf %1 : vector<4x32xf32> to vector<4x32xbf16>
    %c0_5 = arith.constant 0 : index
    %c0_6 = arith.constant 0 : index
    %c0_7 = arith.constant 0 : index
    %7 = vector.load %arg3[%c0_5, %c0_6, %c0_7] : memref<4x32x8xbf16, #tpu.memory_space<vmem>>, vector<1x32x8xbf16>
    %8 = vector.shape_cast %7 : vector<1x32x8xbf16> to vector<32x8xbf16>
    %cst = arith.constant dense<0.000000e+00> : vector<4x8xf32>
    %9 = tpu.matmul %5, %8, %cst {dimension_numbers = #tpu.dot_dimension_numbers<[1], [0], [0], [1], [0, 0, 1, 1], [], []>} : vector<4x32xbf16>, vector<32x8xbf16>, vector<4x8xf32> -> vector<4x8xf32>
    %c0_8 = arith.constant 0 : index
    %c0_9 = arith.constant 0 : index
    %c0_10 = arith.constant 0 : index
    %10 = vector.load %arg7[%c0_8, %c0_9, %c0_10] : memref<4x1x8xf32, #tpu.memory_space<vmem>>, vector<1x1x8xf32>
    %11 = vector.shape_cast %10 : vector<1x1x8xf32> to vector<1x8xf32>
    %12 = vector.broadcast %11 : vector<1x8xf32> to vector<4x8xf32>
    %13 = arith.addf %9, %12 : vector<4x8xf32>
    %c0_11 = arith.constant 0 : index
    %c0_12 = arith.constant 0 : index
    %c0_13 = arith.constant 0 : index
    %14 = vector.load %arg4[%c0_11, %c0_12, %c0_13] : memref<4x32x8xbf16, #tpu.memory_space<vmem>>, vector<1x32x8xbf16>
    %15 = vector.shape_cast %14 : vector<1x32x8xbf16> to vector<32x8xbf16>
    %cst_14 = arith.constant dense<0.000000e+00> : vector<4x8xf32>
    %16 = tpu.matmul %5, %15, %cst_14 {dimension_numbers = #tpu.dot_dimension_numbers<[1], [0], [0], [1], [0, 0, 1, 1], [], []>} : vector<4x32xbf16>, vector<32x8xbf16>, vector<4x8xf32> -> vector<4x8xf32>
    %c0_15 = arith.constant 0 : index
    %c0_16 = arith.constant 0 : index
    %c0_17 = arith.constant 0 : index
    %17 = vector.load %arg8[%c0_15, %c0_16, %c0_17] : memref<4x1x8xf32, #tpu.memory_space<vmem>>, vector<1x1x8xf32>
    %18 = vector.shape_cast %17 : vector<1x1x8xf32> to vector<1x8xf32>
    %19 = vector.broadcast %18 : vector<1x8xf32> to vector<4x8xf32>
    %20 = arith.addf %16, %19 : vector<4x8xf32>
    %c0_18 = arith.constant 0 : index
    %c0_19 = arith.constant 0 : index
    %c0_20 = arith.constant 0 : index
    %21 = vector.load %arg5[%c0_18, %c0_19, %c0_20] : memref<4x32x8xbf16, #tpu.memory_space<vmem>>, vector<1x32x8xbf16>
    %22 = vector.shape_cast %21 : vector<1x32x8xbf16> to vector<32x8xbf16>
    %cst_21 = arith.constant dense<0.000000e+00> : vector<4x8xf32>
    %23 = tpu.matmul %6, %22, %cst_21 {dimension_numbers = #tpu.dot_dimension_numbers<[1], [0], [0], [1], [0, 0, 1, 1], [], []>} : vector<4x32xbf16>, vector<32x8xbf16>, vector<4x8xf32> -> vector<4x8xf32>
    %c0_22 = arith.constant 0 : index
    %c0_23 = arith.constant 0 : index
    %c0_24 = arith.constant 0 : index
    %24 = vector.load %arg9[%c0_22, %c0_23, %c0_24] : memref<4x1x8xf32, #tpu.memory_space<vmem>>, vector<1x1x8xf32>
    %25 = vector.shape_cast %24 : vector<1x1x8xf32> to vector<1x8xf32>
    %26 = vector.broadcast %25 : vector<1x8xf32> to vector<4x8xf32>
    %27 = arith.addf %23, %26 : vector<4x8xf32>
    %28 = arith.truncf %13 : vector<4x8xf32> to vector<4x8xbf16>
    %29 = arith.truncf %20 : vector<4x8xf32> to vector<4x8xbf16>
    %cst_25 = arith.constant dense<0.000000e+00> : vector<4x4xf32>
    %30 = tpu.matmul %28, %29, %cst_25 {dimension_numbers = #tpu.dot_dimension_numbers<[1], [1], [0], [0], [0, 0, 1, 0], [], []>} : vector<4x8xbf16>, vector<4x8xbf16>, vector<4x4xf32> -> vector<4x4xf32>
    %cst_26 = arith.constant dense<0xFF800000> : vector<4xf32>
    %31 = vector.multi_reduction <maximumf>, %30, %cst_26 [1] : vector<4x4xf32> to vector<4xf32>
    %32 = vector.shape_cast %31 : vector<4xf32> to vector<4x1xf32>
    %33 = vector.broadcast %32 : vector<4x1xf32> to vector<4x4xf32>
    %34 = arith.subf %30, %33 : vector<4x4xf32>
    %35 = math.exp %34 : vector<4x4xf32>
    %cst_27 = arith.constant dense<0.000000e+00> : vector<4xf32>
    %36 = vector.multi_reduction <add>, %35, %cst_27 [1] : vector<4x4xf32> to vector<4xf32>
    %37 = vector.shape_cast %36 : vector<4xf32> to vector<4x1xf32>
    %38 = tpu.reciprocal %37 {approx = true} : vector<4x1xf32> -> vector<4x1xf32>
    %39 = vector.broadcast %38 : vector<4x1xf32> to vector<4x4xf32>
    %40 = arith.mulf %35, %39 : vector<4x4xf32>
    %41 = arith.truncf %40 : vector<4x4xf32> to vector<4x4xbf16>
    %42 = arith.truncf %27 : vector<4x8xf32> to vector<4x8xbf16>
    %c0_28 = arith.constant 0 : index
    %c0_29 = arith.constant 0 : index
    %c0_30 = arith.constant 0 : index
    %43 = vector.load %arg6[%c0_28, %c0_29, %c0_30] : memref<4x8x32xbf16, #tpu.memory_space<vmem>>, vector<1x8x32xbf16>
    %44 = vector.shape_cast %43 : vector<1x8x32xbf16> to vector<8x32xbf16>
    %cst_31 = arith.constant dense<0.000000e+00> : vector<4x32xf32>
    %45 = tpu.matmul %42, %44, %cst_31 {dimension_numbers = #tpu.dot_dimension_numbers<[1], [0], [0], [1], [0, 0, 1, 1], [], []>} : vector<4x8xbf16>, vector<8x32xbf16>, vector<4x32xf32> -> vector<4x32xf32>
    %46 = arith.truncf %45 : vector<4x32xf32> to vector<4x32xbf16>
    %cst_32 = arith.constant dense<0.000000e+00> : vector<4x32xf32>
    %47 = tpu.matmul %41, %46, %cst_32 {dimension_numbers = #tpu.dot_dimension_numbers<[1], [0], [0], [1], [0, 0, 1, 1], [], []>} : vector<4x4xbf16>, vector<4x32xbf16>, vector<4x32xf32> -> vector<4x32xf32>
    %c1 = arith.constant 1 : index
    %c0_33 = arith.constant 0 : index
    %c0_34 = arith.constant 0 : index
    %48 = vector.load %arg3[%c1, %c0_33, %c0_34] : memref<4x32x8xbf16, #tpu.memory_space<vmem>>, vector<1x32x8xbf16>
    %49 = vector.shape_cast %48 : vector<1x32x8xbf16> to vector<32x8xbf16>
    %cst_35 = arith.constant dense<0.000000e+00> : vector<4x8xf32>
    %50 = tpu.matmul %5, %49, %cst_35 {dimension_numbers = #tpu.dot_dimension_numbers<[1], [0], [0], [1], [0, 0, 1, 1], [], []>} : vector<4x32xbf16>, vector<32x8xbf16>, vector<4x8xf32> -> vector<4x8xf32>
    %c1_36 = arith.constant 1 : index
    %c0_37 = arith.constant 0 : index
    %c0_38 = arith.constant 0 : index
    %51 = vector.load %arg7[%c1_36, %c0_37, %c0_38] : memref<4x1x8xf32, #tpu.memory_space<vmem>>, vector<1x1x8xf32>
    %52 = vector.shape_cast %51 : vector<1x1x8xf32> to vector<1x8xf32>
    %53 = vector.broadcast %52 : vector<1x8xf32> to vector<4x8xf32>
    %54 = arith.addf %50, %53 : vector<4x8xf32>
    %c1_39 = arith.constant 1 : index
    %c0_40 = arith.constant 0 : index
    %c0_41 = arith.constant 0 : index
    %55 = vector.load %arg4[%c1_39, %c0_40, %c0_41] : memref<4x32x8xbf16, #tpu.memory_space<vmem>>, vector<1x32x8xbf16>
    %56 = vector.shape_cast %55 : vector<1x32x8xbf16> to vector<32x8xbf16>
    %cst_42 = arith.constant dense<0.000000e+00> : vector<4x8xf32>
    %57 = tpu.matmul %5, %56, %cst_42 {dimension_numbers = #tpu.dot_dimension_numbers<[1], [0], [0], [1], [0, 0, 1, 1], [], []>} : vector<4x32xbf16>, vector<32x8xbf16>, vector<4x8xf32> -> vector<4x8xf32>
    %c1_43 = arith.constant 1 : index
    %c0_44 = arith.constant 0 : index
    %c0_45 = arith.constant 0 : index
    %58 = vector.load %arg8[%c1_43, %c0_44, %c0_45] : memref<4x1x8xf32, #tpu.memory_space<vmem>>, vector<1x1x8xf32>
    %59 = vector.shape_cast %58 : vector<1x1x8xf32> to vector<1x8xf32>
    %60 = vector.broadcast %59 : vector<1x8xf32> to vector<4x8xf32>
    %61 = arith.addf %57, %60 : vector<4x8xf32>
    %c1_46 = arith.constant 1 : index
    %c0_47 = arith.constant 0 : index
    %c0_48 = arith.constant 0 : index
    %62 = vector.load %arg5[%c1_46, %c0_47, %c0_48] : memref<4x32x8xbf16, #tpu.memory_space<vmem>>, vector<1x32x8xbf16>
    %63 = vector.shape_cast %62 : vector<1x32x8xbf16> to vector<32x8xbf16>
    %cst_49 = arith.constant dense<0.000000e+00> : vector<4x8xf32>
    %64 = tpu.matmul %6, %63, %cst_49 {dimension_numbers = #tpu.dot_dimension_numbers<[1], [0], [0], [1], [0, 0, 1, 1], [], []>} : vector<4x32xbf16>, vector<32x8xbf16>, vector<4x8xf32> -> vector<4x8xf32>
    %c1_50 = arith.constant 1 : index
    %c0_51 = arith.constant 0 : index
    %c0_52 = arith.constant 0 : index
    %65 = vector.load %arg9[%c1_50, %c0_51, %c0_52] : memref<4x1x8xf32, #tpu.memory_space<vmem>>, vector<1x1x8xf32>
    %66 = vector.shape_cast %65 : vector<1x1x8xf32> to vector<1x8xf32>
    %67 = vector.broadcast %66 : vector<1x8xf32> to vector<4x8xf32>
    %68 = arith.addf %64, %67 : vector<4x8xf32>
    %69 = arith.truncf %54 : vector<4x8xf32> to vector<4x8xbf16>
    %70 = arith.truncf %61 : vector<4x8xf32> to vector<4x8xbf16>
    %cst_53 = arith.constant dense<0.000000e+00> : vector<4x4xf32>
    %71 = tpu.matmul %69, %70, %cst_53 {dimension_numbers = #tpu.dot_dimension_numbers<[1], [1], [0], [0], [0, 0, 1, 0], [], []>} : vector<4x8xbf16>, vector<4x8xbf16>, vector<4x4xf32> -> vector<4x4xf32>
    %cst_54 = arith.constant dense<0xFF800000> : vector<4xf32>
    %72 = vector.multi_reduction <maximumf>, %71, %cst_54 [1] : vector<4x4xf32> to vector<4xf32>
    %73 = vector.shape_cast %72 : vector<4xf32> to vector<4x1xf32>
    %74 = vector.broadcast %73 : vector<4x1xf32> to vector<4x4xf32>
    %75 = arith.subf %71, %74 : vector<4x4xf32>
    %76 = math.exp %75 : vector<4x4xf32>
    %cst_55 = arith.constant dense<0.000000e+00> : vector<4xf32>
    %77 = vector.multi_reduction <add>, %76, %cst_55 [1] : vector<4x4xf32> to vector<4xf32>
    %78 = vector.shape_cast %77 : vector<4xf32> to vector<4x1xf32>
    %79 = tpu.reciprocal %78 {approx = true} : vector<4x1xf32> -> vector<4x1xf32>
    %80 = vector.broadcast %79 : vector<4x1xf32> to vector<4x4xf32>
    %81 = arith.mulf %76, %80 : vector<4x4xf32>
    %82 = arith.truncf %81 : vector<4x4xf32> to vector<4x4xbf16>
    %83 = arith.truncf %68 : vector<4x8xf32> to vector<4x8xbf16>
    %c1_56 = arith.constant 1 : index
    %c0_57 = arith.constant 0 : index
    %c0_58 = arith.constant 0 : index
    %84 = vector.load %arg6[%c1_56, %c0_57, %c0_58] : memref<4x8x32xbf16, #tpu.memory_space<vmem>>, vector<1x8x32xbf16>
    %85 = vector.shape_cast %84 : vector<1x8x32xbf16> to vector<8x32xbf16>
    %cst_59 = arith.constant dense<0.000000e+00> : vector<4x32xf32>
    %86 = tpu.matmul %83, %85, %cst_59 {dimension_numbers = #tpu.dot_dimension_numbers<[1], [0], [0], [1], [0, 0, 1, 1], [], []>} : vector<4x8xbf16>, vector<8x32xbf16>, vector<4x32xf32> -> vector<4x32xf32>
    %87 = arith.truncf %86 : vector<4x32xf32> to vector<4x32xbf16>
    %cst_60 = arith.constant dense<0.000000e+00> : vector<4x32xf32>
    %88 = tpu.matmul %82, %87, %cst_60 {dimension_numbers = #tpu.dot_dimension_numbers<[1], [0], [0], [1], [0, 0, 1, 1], [], []>} : vector<4x4xbf16>, vector<4x32xbf16>, vector<4x32xf32> -> vector<4x32xf32>
    %89 = arith.addf %47, %88 : vector<4x32xf32>
    %c2 = arith.constant 2 : index
    %c0_61 = arith.constant 0 : index
    %c0_62 = arith.constant 0 : index
    %90 = vector.load %arg3[%c2, %c0_61, %c0_62] : memref<4x32x8xbf16, #tpu.memory_space<vmem>>, vector<1x32x8xbf16>
    %91 = vector.shape_cast %90 : vector<1x32x8xbf16> to vector<32x8xbf16>
    %cst_63 = arith.constant dense<0.000000e+00> : vector<4x8xf32>
    %92 = tpu.matmul %5, %91, %cst_63 {dimension_numbers = #tpu.dot_dimension_numbers<[1], [0], [0], [1], [0, 0, 1, 1], [], []>} : vector<4x32xbf16>, vector<32x8xbf16>, vector<4x8xf32> -> vector<4x8xf32>
    %c2_64 = arith.constant 2 : index
    %c0_65 = arith.constant 0 : index
    %c0_66 = arith.constant 0 : index
    %93 = vector.load %arg7[%c2_64, %c0_65, %c0_66] : memref<4x1x8xf32, #tpu.memory_space<vmem>>, vector<1x1x8xf32>
    %94 = vector.shape_cast %93 : vector<1x1x8xf32> to vector<1x8xf32>
    %95 = vector.broadcast %94 : vector<1x8xf32> to vector<4x8xf32>
    %96 = arith.addf %92, %95 : vector<4x8xf32>
    %c2_67 = arith.constant 2 : index
    %c0_68 = arith.constant 0 : index
    %c0_69 = arith.constant 0 : index
    %97 = vector.load %arg4[%c2_67, %c0_68, %c0_69] : memref<4x32x8xbf16, #tpu.memory_space<vmem>>, vector<1x32x8xbf16>
    %98 = vector.shape_cast %97 : vector<1x32x8xbf16> to vector<32x8xbf16>
    %cst_70 = arith.constant dense<0.000000e+00> : vector<4x8xf32>
    %99 = tpu.matmul %5, %98, %cst_70 {dimension_numbers = #tpu.dot_dimension_numbers<[1], [0], [0], [1], [0, 0, 1, 1], [], []>} : vector<4x32xbf16>, vector<32x8xbf16>, vector<4x8xf32> -> vector<4x8xf32>
    %c2_71 = arith.constant 2 : index
    %c0_72 = arith.constant 0 : index
    %c0_73 = arith.constant 0 : index
    %100 = vector.load %arg8[%c2_71, %c0_72, %c0_73] : memref<4x1x8xf32, #tpu.memory_space<vmem>>, vector<1x1x8xf32>
    %101 = vector.shape_cast %100 : vector<1x1x8xf32> to vector<1x8xf32>
    %102 = vector.broadcast %101 : vector<1x8xf32> to vector<4x8xf32>
    %103 = arith.addf %99, %102 : vector<4x8xf32>
    %c2_74 = arith.constant 2 : index
    %c0_75 = arith.constant 0 : index
    %c0_76 = arith.constant 0 : index
    %104 = vector.load %arg5[%c2_74, %c0_75, %c0_76] : memref<4x32x8xbf16, #tpu.memory_space<vmem>>, vector<1x32x8xbf16>
    %105 = vector.shape_cast %104 : vector<1x32x8xbf16> to vector<32x8xbf16>
    %cst_77 = arith.constant dense<0.000000e+00> : vector<4x8xf32>
    %106 = tpu.matmul %6, %105, %cst_77 {dimension_numbers = #tpu.dot_dimension_numbers<[1], [0], [0], [1], [0, 0, 1, 1], [], []>} : vector<4x32xbf16>, vector<32x8xbf16>, vector<4x8xf32> -> vector<4x8xf32>
    %c2_78 = arith.constant 2 : index
    %c0_79 = arith.constant 0 : index
    %c0_80 = arith.constant 0 : index
    %107 = vector.load %arg9[%c2_78, %c0_79, %c0_80] : memref<4x1x8xf32, #tpu.memory_space<vmem>>, vector<1x1x8xf32>
    %108 = vector.shape_cast %107 : vector<1x1x8xf32> to vector<1x8xf32>
    %109 = vector.broadcast %108 : vector<1x8xf32> to vector<4x8xf32>
    %110 = arith.addf %106, %109 : vector<4x8xf32>
    %111 = arith.truncf %96 : vector<4x8xf32> to vector<4x8xbf16>
    %112 = arith.truncf %103 : vector<4x8xf32> to vector<4x8xbf16>
    %cst_81 = arith.constant dense<0.000000e+00> : vector<4x4xf32>
    %113 = tpu.matmul %111, %112, %cst_81 {dimension_numbers = #tpu.dot_dimension_numbers<[1], [1], [0], [0], [0, 0, 1, 0], [], []>} : vector<4x8xbf16>, vector<4x8xbf16>, vector<4x4xf32> -> vector<4x4xf32>
    %cst_82 = arith.constant dense<0xFF800000> : vector<4xf32>
    %114 = vector.multi_reduction <maximumf>, %113, %cst_82 [1] : vector<4x4xf32> to vector<4xf32>
    %115 = vector.shape_cast %114 : vector<4xf32> to vector<4x1xf32>
    %116 = vector.broadcast %115 : vector<4x1xf32> to vector<4x4xf32>
    %117 = arith.subf %113, %116 : vector<4x4xf32>
    %118 = math.exp %117 : vector<4x4xf32>
    %cst_83 = arith.constant dense<0.000000e+00> : vector<4xf32>
    %119 = vector.multi_reduction <add>, %118, %cst_83 [1] : vector<4x4xf32> to vector<4xf32>
    %120 = vector.shape_cast %119 : vector<4xf32> to vector<4x1xf32>
    %121 = tpu.reciprocal %120 {approx = true} : vector<4x1xf32> -> vector<4x1xf32>
    %122 = vector.broadcast %121 : vector<4x1xf32> to vector<4x4xf32>
    %123 = arith.mulf %118, %122 : vector<4x4xf32>
    %124 = arith.truncf %123 : vector<4x4xf32> to vector<4x4xbf16>
    %125 = arith.truncf %110 : vector<4x8xf32> to vector<4x8xbf16>
    %c2_84 = arith.constant 2 : index
    %c0_85 = arith.constant 0 : index
    %c0_86 = arith.constant 0 : index
    %126 = vector.load %arg6[%c2_84, %c0_85, %c0_86] : memref<4x8x32xbf16, #tpu.memory_space<vmem>>, vector<1x8x32xbf16>
    %127 = vector.shape_cast %126 : vector<1x8x32xbf16> to vector<8x32xbf16>
    %cst_87 = arith.constant dense<0.000000e+00> : vector<4x32xf32>
    %128 = tpu.matmul %125, %127, %cst_87 {dimension_numbers = #tpu.dot_dimension_numbers<[1], [0], [0], [1], [0, 0, 1, 1], [], []>} : vector<4x8xbf16>, vector<8x32xbf16>, vector<4x32xf32> -> vector<4x32xf32>
    %129 = arith.truncf %128 : vector<4x32xf32> to vector<4x32xbf16>
    %cst_88 = arith.constant dense<0.000000e+00> : vector<4x32xf32>
    %130 = tpu.matmul %124, %129, %cst_88 {dimension_numbers = #tpu.dot_dimension_numbers<[1], [0], [0], [1], [0, 0, 1, 1], [], []>} : vector<4x4xbf16>, vector<4x32xbf16>, vector<4x32xf32> -> vector<4x32xf32>
    %131 = arith.addf %89, %130 : vector<4x32xf32>
    %c3 = arith.constant 3 : index
    %c0_89 = arith.constant 0 : index
    %c0_90 = arith.constant 0 : index
    %132 = vector.load %arg3[%c3, %c0_89, %c0_90] : memref<4x32x8xbf16, #tpu.memory_space<vmem>>, vector<1x32x8xbf16>
    %133 = vector.shape_cast %132 : vector<1x32x8xbf16> to vector<32x8xbf16>
    %cst_91 = arith.constant dense<0.000000e+00> : vector<4x8xf32>
    %134 = tpu.matmul %5, %133, %cst_91 {dimension_numbers = #tpu.dot_dimension_numbers<[1], [0], [0], [1], [0, 0, 1, 1], [], []>} : vector<4x32xbf16>, vector<32x8xbf16>, vector<4x8xf32> -> vector<4x8xf32>
    %c3_92 = arith.constant 3 : index
    %c0_93 = arith.constant 0 : index
    %c0_94 = arith.constant 0 : index
    %135 = vector.load %arg7[%c3_92, %c0_93, %c0_94] : memref<4x1x8xf32, #tpu.memory_space<vmem>>, vector<1x1x8xf32>
    %136 = vector.shape_cast %135 : vector<1x1x8xf32> to vector<1x8xf32>
    %137 = vector.broadcast %136 : vector<1x8xf32> to vector<4x8xf32>
    %138 = arith.addf %134, %137 : vector<4x8xf32>
    %c3_95 = arith.constant 3 : index
    %c0_96 = arith.constant 0 : index
    %c0_97 = arith.constant 0 : index
    %139 = vector.load %arg4[%c3_95, %c0_96, %c0_97] : memref<4x32x8xbf16, #tpu.memory_space<vmem>>, vector<1x32x8xbf16>
    %140 = vector.shape_cast %139 : vector<1x32x8xbf16> to vector<32x8xbf16>
    %cst_98 = arith.constant dense<0.000000e+00> : vector<4x8xf32>
    %141 = tpu.matmul %5, %140, %cst_98 {dimension_numbers = #tpu.dot_dimension_numbers<[1], [0], [0], [1], [0, 0, 1, 1], [], []>} : vector<4x32xbf16>, vector<32x8xbf16>, vector<4x8xf32> -> vector<4x8xf32>
    %c3_99 = arith.constant 3 : index
    %c0_100 = arith.constant 0 : index
    %c0_101 = arith.constant 0 : index
    %142 = vector.load %arg8[%c3_99, %c0_100, %c0_101] : memref<4x1x8xf32, #tpu.memory_space<vmem>>, vector<1x1x8xf32>
    %143 = vector.shape_cast %142 : vector<1x1x8xf32> to vector<1x8xf32>
    %144 = vector.broadcast %143 : vector<1x8xf32> to vector<4x8xf32>
    %145 = arith.addf %141, %144 : vector<4x8xf32>
    %c3_102 = arith.constant 3 : index
    %c0_103 = arith.constant 0 : index
    %c0_104 = arith.constant 0 : index
    %146 = vector.load %arg5[%c3_102, %c0_103, %c0_104] : memref<4x32x8xbf16, #tpu.memory_space<vmem>>, vector<1x32x8xbf16>
    %147 = vector.shape_cast %146 : vector<1x32x8xbf16> to vector<32x8xbf16>
    %cst_105 = arith.constant dense<0.000000e+00> : vector<4x8xf32>
    %148 = tpu.matmul %6, %147, %cst_105 {dimension_numbers = #tpu.dot_dimension_numbers<[1], [0], [0], [1], [0, 0, 1, 1], [], []>} : vector<4x32xbf16>, vector<32x8xbf16>, vector<4x8xf32> -> vector<4x8xf32>
    %c3_106 = arith.constant 3 : index
    %c0_107 = arith.constant 0 : index
    %c0_108 = arith.constant 0 : index
    %149 = vector.load %arg9[%c3_106, %c0_107, %c0_108] : memref<4x1x8xf32, #tpu.memory_space<vmem>>, vector<1x1x8xf32>
    %150 = vector.shape_cast %149 : vector<1x1x8xf32> to vector<1x8xf32>
    %151 = vector.broadcast %150 : vector<1x8xf32> to vector<4x8xf32>
    %152 = arith.addf %148, %151 : vector<4x8xf32>
    %153 = arith.truncf %138 : vector<4x8xf32> to vector<4x8xbf16>
    %154 = arith.truncf %145 : vector<4x8xf32> to vector<4x8xbf16>
    %cst_109 = arith.constant dense<0.000000e+00> : vector<4x4xf32>
    %155 = tpu.matmul %153, %154, %cst_109 {dimension_numbers = #tpu.dot_dimension_numbers<[1], [1], [0], [0], [0, 0, 1, 0], [], []>} : vector<4x8xbf16>, vector<4x8xbf16>, vector<4x4xf32> -> vector<4x4xf32>
    %cst_110 = arith.constant dense<0xFF800000> : vector<4xf32>
    %156 = vector.multi_reduction <maximumf>, %155, %cst_110 [1] : vector<4x4xf32> to vector<4xf32>
    %157 = vector.shape_cast %156 : vector<4xf32> to vector<4x1xf32>
    %158 = vector.broadcast %157 : vector<4x1xf32> to vector<4x4xf32>
    %159 = arith.subf %155, %158 : vector<4x4xf32>
    %160 = math.exp %159 : vector<4x4xf32>
    %cst_111 = arith.constant dense<0.000000e+00> : vector<4xf32>
    %161 = vector.multi_reduction <add>, %160, %cst_111 [1] : vector<4x4xf32> to vector<4xf32>
    %162 = vector.shape_cast %161 : vector<4xf32> to vector<4x1xf32>
    %163 = tpu.reciprocal %162 {approx = true} : vector<4x1xf32> -> vector<4x1xf32>
    %164 = vector.broadcast %163 : vector<4x1xf32> to vector<4x4xf32>
    %165 = arith.mulf %160, %164 : vector<4x4xf32>
    %166 = arith.truncf %165 : vector<4x4xf32> to vector<4x4xbf16>
    %167 = arith.truncf %152 : vector<4x8xf32> to vector<4x8xbf16>
    %c3_112 = arith.constant 3 : index
    %c0_113 = arith.constant 0 : index
    %c0_114 = arith.constant 0 : index
    %168 = vector.load %arg6[%c3_112, %c0_113, %c0_114] : memref<4x8x32xbf16, #tpu.memory_space<vmem>>, vector<1x8x32xbf16>
    %169 = vector.shape_cast %168 : vector<1x8x32xbf16> to vector<8x32xbf16>
    %cst_115 = arith.constant dense<0.000000e+00> : vector<4x32xf32>
    %170 = tpu.matmul %167, %169, %cst_115 {dimension_numbers = #tpu.dot_dimension_numbers<[1], [0], [0], [1], [0, 0, 1, 1], [], []>} : vector<4x8xbf16>, vector<8x32xbf16>, vector<4x32xf32> -> vector<4x32xf32>
    %171 = arith.truncf %170 : vector<4x32xf32> to vector<4x32xbf16>
    %cst_116 = arith.constant dense<0.000000e+00> : vector<4x32xf32>
    %172 = tpu.matmul %166, %171, %cst_116 {dimension_numbers = #tpu.dot_dimension_numbers<[1], [0], [0], [1], [0, 0, 1, 1], [], []>} : vector<4x4xbf16>, vector<4x32xbf16>, vector<4x32xf32> -> vector<4x32xf32>
    %173 = arith.addf %131, %172 : vector<4x32xf32>
    %174 = arith.addf %1, %173 : vector<4x32xf32>
    %c0_117 = arith.constant 0 : index
    %c0_118 = arith.constant 0 : index
    %175 = vector.load %arg10[%c0_117, %c0_118] : memref<1x32xf32, #tpu.memory_space<vmem>>, vector<1x32xf32>
    %176 = vector.broadcast %175 : vector<1x32xf32> to vector<4x32xf32>
    %177 = arith.addf %174, %176 : vector<4x32xf32>
    %c0_119 = arith.constant 0 : index
    %c0_120 = arith.constant 0 : index
    %178 = vector.load %arg11[%c0_119, %c0_120] : memref<1x32xf32, #tpu.memory_space<vmem>>, vector<1x32xf32>
    %c0_121 = arith.constant 0 : index
    %c0_122 = arith.constant 0 : index
    %179 = vector.load %arg12[%c0_121, %c0_122] : memref<1x32xf32, #tpu.memory_space<vmem>>, vector<1x32xf32>
    %cst_123 = arith.constant dense<0.000000e+00> : vector<4xf32>
    %180 = vector.multi_reduction <add>, %177, %cst_123 [1] : vector<4x32xf32> to vector<4xf32>
    %181 = vector.shape_cast %180 : vector<4xf32> to vector<4x1xf32>
    %cst_124 = arith.constant 3.200000e+01 : f32
    %182 = vector.broadcast %cst_124 : f32 to vector<4x1xf32>
    %183 = arith.divf %181, %182 : vector<4x1xf32>
    %184 = vector.broadcast %183 : vector<4x1xf32> to vector<4x32xf32>
    %185 = arith.subf %177, %184 : vector<4x32xf32>
    %186 = arith.mulf %185, %185 : vector<4x32xf32>
    %cst_125 = arith.constant dense<0.000000e+00> : vector<4xf32>
    %187 = vector.multi_reduction <add>, %186, %cst_125 [1] : vector<4x32xf32> to vector<4xf32>
    %188 = vector.shape_cast %187 : vector<4xf32> to vector<4x1xf32>
    %cst_126 = arith.constant 3.200000e+01 : f32
    %189 = vector.broadcast %cst_126 : f32 to vector<4x1xf32>
    %190 = arith.divf %188, %189 : vector<4x1xf32>
    %cst_127 = arith.constant 9.99999974E-6 : f32
    %191 = vector.broadcast %cst_127 : f32 to vector<4x1xf32>
    %192 = arith.addf %190, %191 : vector<4x1xf32>
    %193 = math.rsqrt %192 : vector<4x1xf32>
    %194 = vector.broadcast %193 : vector<4x1xf32> to vector<4x32xf32>
    %195 = arith.mulf %185, %194 : vector<4x32xf32>
    %196 = vector.broadcast %178 : vector<1x32xf32> to vector<4x32xf32>
    %197 = arith.mulf %195, %196 : vector<4x32xf32>
    %198 = vector.broadcast %179 : vector<1x32xf32> to vector<4x32xf32>
    %199 = arith.addf %197, %198 : vector<4x32xf32>
    %c0_128 = arith.constant 0 : index
    %c0_129 = arith.constant 0 : index
    %c0_130 = arith.constant 0 : index
    %200 = vector.load %arg13[%c0_128, %c0_129, %c0_130] : memref<1x4x32xf32, #tpu.memory_space<vmem>>, vector<1x4x32xf32>
    %201 = vector.shape_cast %200 : vector<1x4x32xf32> to vector<4x32xf32>
    %202 = vector.shape_cast %199 : vector<4x32xf32> to vector<1x4x32xf32>
    tpu.vector_store %arg13[%c0_128, %c0_129, %c0_130], %202 {strides = array<i32>} : memref<1x4x32xf32, #tpu.memory_space<vmem>>, vector<1x4x32xf32>,
    return
  }
  func.func @transform_0(%arg0: i32) -> (i32, i32, i32) {
    %c0_i32 = arith.constant 0 : i32
    %c0_i32_0 = arith.constant 0 : i32
    %c0_i32_1 = arith.constant 0 : i32
    return %arg0, %c0_i32, %c0_i32_0 : i32, i32, i32
  }
  func.func @transform_1(%arg0: i32) -> (i32, i32, i32) {
    %c0_i32 = arith.constant 0 : i32
    %c0_i32_0 = arith.constant 0 : i32
    %c0_i32_1 = arith.constant 0 : i32
    return %arg0, %c0_i32, %c0_i32_0 : i32, i32, i32
  }
  func.func @transform_2(%arg0: i32) -> (i32, i32, i32) {
    %c0_i32 = arith.constant 0 : i32
    %c0_i32_0 = arith.constant 0 : i32
    %c0_i32_1 = arith.constant 0 : i32
    %c0_i32_2 = arith.constant 0 : i32
    return %c0_i32, %c0_i32_0, %c0_i32_1 : i32, i32, i32
  }
  func.func @transform_3(%arg0: i32) -> (i32, i32, i32) {
    %c0_i32 = arith.constant 0 : i32
    %c0_i32_0 = arith.constant 0 : i32
    %c0_i32_1 = arith.constant 0 : i32
    %c0_i32_2 = arith.constant 0 : i32
    return %c0_i32, %c0_i32_0, %c0_i32_1 : i32, i32, i32
  }
  func.func @transform_4(%arg0: i32) -> (i32, i32, i32) {
    %c0_i32 = arith.constant 0 : i32
    %c0_i32_0 = arith.constant 0 : i32
    %c0_i32_1 = arith.constant 0 : i32
    %c0_i32_2 = arith.constant 0 : i32
    return %c0_i32, %c0_i32_0, %c0_i32_1 : i32, i32, i32
  }
  func.func @transform_5(%arg0: i32) -> (i32, i32, i32) {
    %c0_i32 = arith.constant 0 : i32
    %c0_i32_0 = arith.constant 0 : i32
    %c0_i32_1 = arith.constant 0 : i32
    %c0_i32_2 = arith.constant 0 : i32
    return %c0_i32, %c0_i32_0, %c0_i32_1 : i32, i32, i32
  }
  func.func @transform_6(%arg0: i32) -> (i32, i32, i32) {
    %c0_i32 = arith.constant 0 : i32
    %c0_i32_0 = arith.constant 0 : i32
    %c0_i32_1 = arith.constant 0 : i32
    %c0_i32_2 = arith.constant 0 : i32
    return %c0_i32, %c0_i32_0, %c0_i32_1 : i32, i32, i32
  }
  func.func @transform_7(%arg0: i32) -> (i32, i32, i32) {
    %c0_i32 = arith.constant 0 : i32
    %c0_i32_0 = arith.constant 0 : i32
    %c0_i32_1 = arith.constant 0 : i32
    %c0_i32_2 = arith.constant 0 : i32
    return %c0_i32, %c0_i32_0, %c0_i32_1 : i32, i32, i32
  }
  func.func @transform_8(%arg0: i32) -> (i32, i32, i32) {
    %c0_i32 = arith.constant 0 : i32
    %c0_i32_0 = arith.constant 0 : i32
    %c0_i32_1 = arith.constant 0 : i32
    %c0_i32_2 = arith.constant 0 : i32
    return %c0_i32, %c0_i32_0, %c0_i32_1 : i32, i32, i32
  }
  func.func @transform_9(%arg0: i32) -> (i32, i32) {
    %c0_i32 = arith.constant 0 : i32
    %c0_i32_0 = arith.constant 0 : i32
    %c0_i32_1 = arith.constant 0 : i32
    return %c0_i32, %c0_i32_0 : i32, i32
  }
  func.func @transform_10(%arg0: i32) -> (i32, i32) {
    %c0_i32 = arith.constant 0 : i32
    %c0_i32_0 = arith.constant 0 : i32
    %c0_i32_1 = arith.constant 0 : i32
    return %c0_i32, %c0_i32_0 : i32, i32
  }
  func.func @transform_11(%arg0: i32) -> (i32, i32) {
    %c0_i32 = arith.constant 0 : i32
    %c0_i32_0 = arith.constant 0 : i32
    %c0_i32_1 = arith.constant 0 : i32
    return %c0_i32, %c0_i32_0 : i32, i32
  }
  func.func @transform_12(%arg0: i32) -> (i32, i32, i32) {
    %c0_i32 = arith.constant 0 : i32
    %c0_i32_0 = arith.constant 0 : i32
    %c0_i32_1 = arith.constant 0 : i32
    return %arg0, %c0_i32, %c0_i32_0 : i32, i32, i32
  }
}

module attributes {stable_mosaic.version = 11 : i64} {
  func.func @_conv3x3_kernel(%arg0: i32, %arg1: memref<1x4x4x32xbf16, #tpu.memory_space<vmem>>, %arg2: memref<9x32x64xbf16, #tpu.memory_space<vmem>>, %arg3: memref<1x64xf32, #tpu.memory_space<vmem>>, %arg4: memref<1x2x2x64xbf16, #tpu.memory_space<vmem>>) attributes {dimension_semantics = [#tpu.dimension_semantics<parallel>], iteration_bounds = array<i64: 2>, scalar_prefetch = 0 : i64, scratch_operands = 0 : i64, tpu.core_type = #tpu.core_type<tc>, window_params = [{transform_indices = @transform_0, window_bounds = array<i64: 1, 4, 4, 32>}, {pipeline_mode = #tpu.pipeline_mode<synchronous>, transform_indices = @transform_1, window_bounds = array<i64: 9, 32, 64>}, {pipeline_mode = #tpu.pipeline_mode<synchronous>, transform_indices = @transform_2, window_bounds = array<i64: 1, 64>}, {transform_indices = @transform_3, window_bounds = array<i64: 1, 2, 2, 64>}]} {
    %c0 = arith.constant 0 : index
    %c0_0 = arith.constant 0 : index
    %c0_1 = arith.constant 0 : index
    %c0_2 = arith.constant 0 : index
    %0 = vector.load %arg1[%c0, %c0_0, %c0_1, %c0_2] : memref<1x4x4x32xbf16, #tpu.memory_space<vmem>>, vector<1x4x4x32xbf16>
    %1 = vector.shape_cast %0 : vector<1x4x4x32xbf16> to vector<4x4x32xbf16>
    %2 = vector.extract_strided_slice %1 {offsets = [0, 0, 0], sizes = [4, 2, 32], strides = [1, 1, 1]} : vector<4x4x32xbf16> to vector<4x2x32xbf16>
    %3 = vector.shape_cast %2 : vector<4x2x32xbf16> to vector<8x32xbf16>
    %4 = vector.extract_strided_slice %1 {offsets = [0, 1, 0], sizes = [4, 2, 32], strides = [1, 1, 1]} : vector<4x4x32xbf16> to vector<4x2x32xbf16>
    %5 = vector.shape_cast %4 : vector<4x2x32xbf16> to vector<8x32xbf16>
    %6 = vector.extract_strided_slice %1 {offsets = [0, 2, 0], sizes = [4, 2, 32], strides = [1, 1, 1]} : vector<4x4x32xbf16> to vector<4x2x32xbf16>
    %7 = vector.shape_cast %6 : vector<4x2x32xbf16> to vector<8x32xbf16>
    %cst = arith.constant 0.000000e+00 : f32
    %8 = vector.broadcast %cst : f32 to vector<4x64xf32>
    %9 = vector.extract_strided_slice %3 {offsets = [0, 0], sizes = [4, 32], strides = [1, 1]} : vector<8x32xbf16> to vector<4x32xbf16>
    %c0_3 = arith.constant 0 : index
    %c0_4 = arith.constant 0 : index
    %c0_5 = arith.constant 0 : index
    %10 = vector.load %arg2[%c0_3, %c0_4, %c0_5] : memref<9x32x64xbf16, #tpu.memory_space<vmem>>, vector<1x32x64xbf16>
    %11 = vector.shape_cast %10 : vector<1x32x64xbf16> to vector<32x64xbf16>
    %cst_6 = arith.constant dense<0.000000e+00> : vector<4x64xf32>
    %12 = tpu.matmul %9, %11, %cst_6 {dimension_numbers = #tpu.dot_dimension_numbers<[1], [0], [0], [1], [0, 0, 1, 1], [], []>} : vector<4x32xbf16>, vector<32x64xbf16>, vector<4x64xf32> -> vector<4x64xf32>
    %13 = arith.addf %8, %12 : vector<4x64xf32>
    %14 = vector.extract_strided_slice %5 {offsets = [0, 0], sizes = [4, 32], strides = [1, 1]} : vector<8x32xbf16> to vector<4x32xbf16>
    %c1 = arith.constant 1 : index
    %c0_7 = arith.constant 0 : index
    %c0_8 = arith.constant 0 : index
    %15 = vector.load %arg2[%c1, %c0_7, %c0_8] : memref<9x32x64xbf16, #tpu.memory_space<vmem>>, vector<1x32x64xbf16>
    %16 = vector.shape_cast %15 : vector<1x32x64xbf16> to vector<32x64xbf16>
    %cst_9 = arith.constant dense<0.000000e+00> : vector<4x64xf32>
    %17 = tpu.matmul %14, %16, %cst_9 {dimension_numbers = #tpu.dot_dimension_numbers<[1], [0], [0], [1], [0, 0, 1, 1], [], []>} : vector<4x32xbf16>, vector<32x64xbf16>, vector<4x64xf32> -> vector<4x64xf32>
    %18 = arith.addf %13, %17 : vector<4x64xf32>
    %19 = vector.extract_strided_slice %7 {offsets = [0, 0], sizes = [4, 32], strides = [1, 1]} : vector<8x32xbf16> to vector<4x32xbf16>
    %c2 = arith.constant 2 : index
    %c0_10 = arith.constant 0 : index
    %c0_11 = arith.constant 0 : index
    %20 = vector.load %arg2[%c2, %c0_10, %c0_11] : memref<9x32x64xbf16, #tpu.memory_space<vmem>>, vector<1x32x64xbf16>
    %21 = vector.shape_cast %20 : vector<1x32x64xbf16> to vector<32x64xbf16>
    %cst_12 = arith.constant dense<0.000000e+00> : vector<4x64xf32>
    %22 = tpu.matmul %19, %21, %cst_12 {dimension_numbers = #tpu.dot_dimension_numbers<[1], [0], [0], [1], [0, 0, 1, 1], [], []>} : vector<4x32xbf16>, vector<32x64xbf16>, vector<4x64xf32> -> vector<4x64xf32>
    %23 = arith.addf %18, %22 : vector<4x64xf32>
    %24 = vector.extract_strided_slice %3 {offsets = [2, 0], sizes = [4, 32], strides = [1, 1]} : vector<8x32xbf16> to vector<4x32xbf16>
    %c3 = arith.constant 3 : index
    %c0_13 = arith.constant 0 : index
    %c0_14 = arith.constant 0 : index
    %25 = vector.load %arg2[%c3, %c0_13, %c0_14] : memref<9x32x64xbf16, #tpu.memory_space<vmem>>, vector<1x32x64xbf16>
    %26 = vector.shape_cast %25 : vector<1x32x64xbf16> to vector<32x64xbf16>
    %cst_15 = arith.constant dense<0.000000e+00> : vector<4x64xf32>
    %27 = tpu.matmul %24, %26, %cst_15 {dimension_numbers = #tpu.dot_dimension_numbers<[1], [0], [0], [1], [0, 0, 1, 1], [], []>} : vector<4x32xbf16>, vector<32x64xbf16>, vector<4x64xf32> -> vector<4x64xf32>
    %28 = arith.addf %23, %27 : vector<4x64xf32>
    %29 = vector.extract_strided_slice %5 {offsets = [2, 0], sizes = [4, 32], strides = [1, 1]} : vector<8x32xbf16> to vector<4x32xbf16>
    %c4 = arith.constant 4 : index
    %c0_16 = arith.constant 0 : index
    %c0_17 = arith.constant 0 : index
    %30 = vector.load %arg2[%c4, %c0_16, %c0_17] : memref<9x32x64xbf16, #tpu.memory_space<vmem>>, vector<1x32x64xbf16>
    %31 = vector.shape_cast %30 : vector<1x32x64xbf16> to vector<32x64xbf16>
    %cst_18 = arith.constant dense<0.000000e+00> : vector<4x64xf32>
    %32 = tpu.matmul %29, %31, %cst_18 {dimension_numbers = #tpu.dot_dimension_numbers<[1], [0], [0], [1], [0, 0, 1, 1], [], []>} : vector<4x32xbf16>, vector<32x64xbf16>, vector<4x64xf32> -> vector<4x64xf32>
    %33 = arith.addf %28, %32 : vector<4x64xf32>
    %34 = vector.extract_strided_slice %7 {offsets = [2, 0], sizes = [4, 32], strides = [1, 1]} : vector<8x32xbf16> to vector<4x32xbf16>
    %c5 = arith.constant 5 : index
    %c0_19 = arith.constant 0 : index
    %c0_20 = arith.constant 0 : index
    %35 = vector.load %arg2[%c5, %c0_19, %c0_20] : memref<9x32x64xbf16, #tpu.memory_space<vmem>>, vector<1x32x64xbf16>
    %36 = vector.shape_cast %35 : vector<1x32x64xbf16> to vector<32x64xbf16>
    %cst_21 = arith.constant dense<0.000000e+00> : vector<4x64xf32>
    %37 = tpu.matmul %34, %36, %cst_21 {dimension_numbers = #tpu.dot_dimension_numbers<[1], [0], [0], [1], [0, 0, 1, 1], [], []>} : vector<4x32xbf16>, vector<32x64xbf16>, vector<4x64xf32> -> vector<4x64xf32>
    %38 = arith.addf %33, %37 : vector<4x64xf32>
    %39 = vector.extract_strided_slice %3 {offsets = [4, 0], sizes = [4, 32], strides = [1, 1]} : vector<8x32xbf16> to vector<4x32xbf16>
    %c6 = arith.constant 6 : index
    %c0_22 = arith.constant 0 : index
    %c0_23 = arith.constant 0 : index
    %40 = vector.load %arg2[%c6, %c0_22, %c0_23] : memref<9x32x64xbf16, #tpu.memory_space<vmem>>, vector<1x32x64xbf16>
    %41 = vector.shape_cast %40 : vector<1x32x64xbf16> to vector<32x64xbf16>
    %cst_24 = arith.constant dense<0.000000e+00> : vector<4x64xf32>
    %42 = tpu.matmul %39, %41, %cst_24 {dimension_numbers = #tpu.dot_dimension_numbers<[1], [0], [0], [1], [0, 0, 1, 1], [], []>} : vector<4x32xbf16>, vector<32x64xbf16>, vector<4x64xf32> -> vector<4x64xf32>
    %43 = arith.addf %38, %42 : vector<4x64xf32>
    %44 = vector.extract_strided_slice %5 {offsets = [4, 0], sizes = [4, 32], strides = [1, 1]} : vector<8x32xbf16> to vector<4x32xbf16>
    %c7 = arith.constant 7 : index
    %c0_25 = arith.constant 0 : index
    %c0_26 = arith.constant 0 : index
    %45 = vector.load %arg2[%c7, %c0_25, %c0_26] : memref<9x32x64xbf16, #tpu.memory_space<vmem>>, vector<1x32x64xbf16>
    %46 = vector.shape_cast %45 : vector<1x32x64xbf16> to vector<32x64xbf16>
    %cst_27 = arith.constant dense<0.000000e+00> : vector<4x64xf32>
    %47 = tpu.matmul %44, %46, %cst_27 {dimension_numbers = #tpu.dot_dimension_numbers<[1], [0], [0], [1], [0, 0, 1, 1], [], []>} : vector<4x32xbf16>, vector<32x64xbf16>, vector<4x64xf32> -> vector<4x64xf32>
    %48 = arith.addf %43, %47 : vector<4x64xf32>
    %49 = vector.extract_strided_slice %7 {offsets = [4, 0], sizes = [4, 32], strides = [1, 1]} : vector<8x32xbf16> to vector<4x32xbf16>
    %c8 = arith.constant 8 : index
    %c0_28 = arith.constant 0 : index
    %c0_29 = arith.constant 0 : index
    %50 = vector.load %arg2[%c8, %c0_28, %c0_29] : memref<9x32x64xbf16, #tpu.memory_space<vmem>>, vector<1x32x64xbf16>
    %51 = vector.shape_cast %50 : vector<1x32x64xbf16> to vector<32x64xbf16>
    %cst_30 = arith.constant dense<0.000000e+00> : vector<4x64xf32>
    %52 = tpu.matmul %49, %51, %cst_30 {dimension_numbers = #tpu.dot_dimension_numbers<[1], [0], [0], [1], [0, 0, 1, 1], [], []>} : vector<4x32xbf16>, vector<32x64xbf16>, vector<4x64xf32> -> vector<4x64xf32>
    %53 = arith.addf %48, %52 : vector<4x64xf32>
    %c0_31 = arith.constant 0 : index
    %c0_32 = arith.constant 0 : index
    %54 = vector.load %arg3[%c0_31, %c0_32] : memref<1x64xf32, #tpu.memory_space<vmem>>, vector<1x64xf32>
    %55 = vector.broadcast %54 : vector<1x64xf32> to vector<4x64xf32>
    %56 = arith.addf %53, %55 : vector<4x64xf32>
    %cst_33 = arith.constant 0.000000e+00 : f32
    %57 = vector.broadcast %cst_33 : f32 to vector<4x64xf32>
    %58 = arith.maximumf %56, %57 : vector<4x64xf32>
    %59 = vector.shape_cast %58 : vector<4x64xf32> to vector<2x2x64xf32>
    %60 = arith.truncf %59 : vector<2x2x64xf32> to vector<2x2x64xbf16>
    %c0_34 = arith.constant 0 : index
    %c0_35 = arith.constant 0 : index
    %c0_36 = arith.constant 0 : index
    %c0_37 = arith.constant 0 : index
    %61 = vector.load %arg4[%c0_34, %c0_35, %c0_36, %c0_37] : memref<1x2x2x64xbf16, #tpu.memory_space<vmem>>, vector<1x2x2x64xbf16>
    %62 = vector.shape_cast %61 : vector<1x2x2x64xbf16> to vector<2x2x64xbf16>
    %63 = vector.shape_cast %60 : vector<2x2x64xbf16> to vector<1x2x2x64xbf16>
    tpu.vector_store %arg4[%c0_34, %c0_35, %c0_36, %c0_37], %63 {strides = array<i32>} : memref<1x2x2x64xbf16, #tpu.memory_space<vmem>>, vector<1x2x2x64xbf16>,
    return
  }
  func.func @transform_0(%arg0: i32) -> (i32, i32, i32, i32) {
    %c0_i32 = arith.constant 0 : i32
    %c0_i32_0 = arith.constant 0 : i32
    %c0_i32_1 = arith.constant 0 : i32
    %c0_i32_2 = arith.constant 0 : i32
    return %arg0, %c0_i32, %c0_i32_0, %c0_i32_1 : i32, i32, i32, i32
  }
  func.func @transform_1(%arg0: i32) -> (i32, i32, i32) {
    %c0_i32 = arith.constant 0 : i32
    %c0_i32_0 = arith.constant 0 : i32
    %c0_i32_1 = arith.constant 0 : i32
    %c0_i32_2 = arith.constant 0 : i32
    return %c0_i32, %c0_i32_0, %c0_i32_1 : i32, i32, i32
  }
  func.func @transform_2(%arg0: i32) -> (i32, i32) {
    %c0_i32 = arith.constant 0 : i32
    %c0_i32_0 = arith.constant 0 : i32
    %c0_i32_1 = arith.constant 0 : i32
    return %c0_i32, %c0_i32_0 : i32, i32
  }
  func.func @transform_3(%arg0: i32) -> (i32, i32, i32, i32) {
    %c0_i32 = arith.constant 0 : i32
    %c0_i32_0 = arith.constant 0 : i32
    %c0_i32_1 = arith.constant 0 : i32
    %c0_i32_2 = arith.constant 0 : i32
    return %arg0, %c0_i32, %c0_i32_0, %c0_i32_1 : i32, i32, i32, i32
  }
}

module attributes {stable_mosaic.version = 11 : i64} {
  func.func @_conv3x3_kernel(%arg0: i32, %arg1: memref<1x4x4x64xbf16, #tpu.memory_space<vmem>>, %arg2: memref<9x64x2xbf16, #tpu.memory_space<vmem>>, %arg3: memref<1x2xf32, #tpu.memory_space<vmem>>, %arg4: memref<1x2x2x2xf32, #tpu.memory_space<vmem>>) attributes {dimension_semantics = [#tpu.dimension_semantics<parallel>], iteration_bounds = array<i64: 2>, scalar_prefetch = 0 : i64, scratch_operands = 0 : i64, tpu.core_type = #tpu.core_type<tc>, window_params = [{transform_indices = @transform_0, window_bounds = array<i64: 1, 4, 4, 64>}, {pipeline_mode = #tpu.pipeline_mode<synchronous>, transform_indices = @transform_1, window_bounds = array<i64: 9, 64, 2>}, {pipeline_mode = #tpu.pipeline_mode<synchronous>, transform_indices = @transform_2, window_bounds = array<i64: 1, 2>}, {transform_indices = @transform_3, window_bounds = array<i64: 1, 2, 2, 2>}]} {
    %c0 = arith.constant 0 : index
    %c0_0 = arith.constant 0 : index
    %c0_1 = arith.constant 0 : index
    %c0_2 = arith.constant 0 : index
    %0 = vector.load %arg1[%c0, %c0_0, %c0_1, %c0_2] : memref<1x4x4x64xbf16, #tpu.memory_space<vmem>>, vector<1x4x4x64xbf16>
    %1 = vector.shape_cast %0 : vector<1x4x4x64xbf16> to vector<4x4x64xbf16>
    %2 = vector.extract_strided_slice %1 {offsets = [0, 0, 0], sizes = [4, 2, 64], strides = [1, 1, 1]} : vector<4x4x64xbf16> to vector<4x2x64xbf16>
    %3 = vector.shape_cast %2 : vector<4x2x64xbf16> to vector<8x64xbf16>
    %4 = vector.extract_strided_slice %1 {offsets = [0, 1, 0], sizes = [4, 2, 64], strides = [1, 1, 1]} : vector<4x4x64xbf16> to vector<4x2x64xbf16>
    %5 = vector.shape_cast %4 : vector<4x2x64xbf16> to vector<8x64xbf16>
    %6 = vector.extract_strided_slice %1 {offsets = [0, 2, 0], sizes = [4, 2, 64], strides = [1, 1, 1]} : vector<4x4x64xbf16> to vector<4x2x64xbf16>
    %7 = vector.shape_cast %6 : vector<4x2x64xbf16> to vector<8x64xbf16>
    %cst = arith.constant 0.000000e+00 : f32
    %8 = vector.broadcast %cst : f32 to vector<4x2xf32>
    %9 = vector.extract_strided_slice %3 {offsets = [0, 0], sizes = [4, 64], strides = [1, 1]} : vector<8x64xbf16> to vector<4x64xbf16>
    %c0_3 = arith.constant 0 : index
    %c0_4 = arith.constant 0 : index
    %c0_5 = arith.constant 0 : index
    %10 = vector.load %arg2[%c0_3, %c0_4, %c0_5] : memref<9x64x2xbf16, #tpu.memory_space<vmem>>, vector<1x64x2xbf16>
    %11 = vector.shape_cast %10 : vector<1x64x2xbf16> to vector<64x2xbf16>
    %cst_6 = arith.constant dense<0.000000e+00> : vector<4x2xf32>
    %12 = tpu.matmul %9, %11, %cst_6 {dimension_numbers = #tpu.dot_dimension_numbers<[1], [0], [0], [1], [0, 0, 1, 1], [], []>} : vector<4x64xbf16>, vector<64x2xbf16>, vector<4x2xf32> -> vector<4x2xf32>
    %13 = arith.addf %8, %12 : vector<4x2xf32>
    %14 = vector.extract_strided_slice %5 {offsets = [0, 0], sizes = [4, 64], strides = [1, 1]} : vector<8x64xbf16> to vector<4x64xbf16>
    %c1 = arith.constant 1 : index
    %c0_7 = arith.constant 0 : index
    %c0_8 = arith.constant 0 : index
    %15 = vector.load %arg2[%c1, %c0_7, %c0_8] : memref<9x64x2xbf16, #tpu.memory_space<vmem>>, vector<1x64x2xbf16>
    %16 = vector.shape_cast %15 : vector<1x64x2xbf16> to vector<64x2xbf16>
    %cst_9 = arith.constant dense<0.000000e+00> : vector<4x2xf32>
    %17 = tpu.matmul %14, %16, %cst_9 {dimension_numbers = #tpu.dot_dimension_numbers<[1], [0], [0], [1], [0, 0, 1, 1], [], []>} : vector<4x64xbf16>, vector<64x2xbf16>, vector<4x2xf32> -> vector<4x2xf32>
    %18 = arith.addf %13, %17 : vector<4x2xf32>
    %19 = vector.extract_strided_slice %7 {offsets = [0, 0], sizes = [4, 64], strides = [1, 1]} : vector<8x64xbf16> to vector<4x64xbf16>
    %c2 = arith.constant 2 : index
    %c0_10 = arith.constant 0 : index
    %c0_11 = arith.constant 0 : index
    %20 = vector.load %arg2[%c2, %c0_10, %c0_11] : memref<9x64x2xbf16, #tpu.memory_space<vmem>>, vector<1x64x2xbf16>
    %21 = vector.shape_cast %20 : vector<1x64x2xbf16> to vector<64x2xbf16>
    %cst_12 = arith.constant dense<0.000000e+00> : vector<4x2xf32>
    %22 = tpu.matmul %19, %21, %cst_12 {dimension_numbers = #tpu.dot_dimension_numbers<[1], [0], [0], [1], [0, 0, 1, 1], [], []>} : vector<4x64xbf16>, vector<64x2xbf16>, vector<4x2xf32> -> vector<4x2xf32>
    %23 = arith.addf %18, %22 : vector<4x2xf32>
    %24 = vector.extract_strided_slice %3 {offsets = [2, 0], sizes = [4, 64], strides = [1, 1]} : vector<8x64xbf16> to vector<4x64xbf16>
    %c3 = arith.constant 3 : index
    %c0_13 = arith.constant 0 : index
    %c0_14 = arith.constant 0 : index
    %25 = vector.load %arg2[%c3, %c0_13, %c0_14] : memref<9x64x2xbf16, #tpu.memory_space<vmem>>, vector<1x64x2xbf16>
    %26 = vector.shape_cast %25 : vector<1x64x2xbf16> to vector<64x2xbf16>
    %cst_15 = arith.constant dense<0.000000e+00> : vector<4x2xf32>
    %27 = tpu.matmul %24, %26, %cst_15 {dimension_numbers = #tpu.dot_dimension_numbers<[1], [0], [0], [1], [0, 0, 1, 1], [], []>} : vector<4x64xbf16>, vector<64x2xbf16>, vector<4x2xf32> -> vector<4x2xf32>
    %28 = arith.addf %23, %27 : vector<4x2xf32>
    %29 = vector.extract_strided_slice %5 {offsets = [2, 0], sizes = [4, 64], strides = [1, 1]} : vector<8x64xbf16> to vector<4x64xbf16>
    %c4 = arith.constant 4 : index
    %c0_16 = arith.constant 0 : index
    %c0_17 = arith.constant 0 : index
    %30 = vector.load %arg2[%c4, %c0_16, %c0_17] : memref<9x64x2xbf16, #tpu.memory_space<vmem>>, vector<1x64x2xbf16>
    %31 = vector.shape_cast %30 : vector<1x64x2xbf16> to vector<64x2xbf16>
    %cst_18 = arith.constant dense<0.000000e+00> : vector<4x2xf32>
    %32 = tpu.matmul %29, %31, %cst_18 {dimension_numbers = #tpu.dot_dimension_numbers<[1], [0], [0], [1], [0, 0, 1, 1], [], []>} : vector<4x64xbf16>, vector<64x2xbf16>, vector<4x2xf32> -> vector<4x2xf32>
    %33 = arith.addf %28, %32 : vector<4x2xf32>
    %34 = vector.extract_strided_slice %7 {offsets = [2, 0], sizes = [4, 64], strides = [1, 1]} : vector<8x64xbf16> to vector<4x64xbf16>
    %c5 = arith.constant 5 : index
    %c0_19 = arith.constant 0 : index
    %c0_20 = arith.constant 0 : index
    %35 = vector.load %arg2[%c5, %c0_19, %c0_20] : memref<9x64x2xbf16, #tpu.memory_space<vmem>>, vector<1x64x2xbf16>
    %36 = vector.shape_cast %35 : vector<1x64x2xbf16> to vector<64x2xbf16>
    %cst_21 = arith.constant dense<0.000000e+00> : vector<4x2xf32>
    %37 = tpu.matmul %34, %36, %cst_21 {dimension_numbers = #tpu.dot_dimension_numbers<[1], [0], [0], [1], [0, 0, 1, 1], [], []>} : vector<4x64xbf16>, vector<64x2xbf16>, vector<4x2xf32> -> vector<4x2xf32>
    %38 = arith.addf %33, %37 : vector<4x2xf32>
    %39 = vector.extract_strided_slice %3 {offsets = [4, 0], sizes = [4, 64], strides = [1, 1]} : vector<8x64xbf16> to vector<4x64xbf16>
    %c6 = arith.constant 6 : index
    %c0_22 = arith.constant 0 : index
    %c0_23 = arith.constant 0 : index
    %40 = vector.load %arg2[%c6, %c0_22, %c0_23] : memref<9x64x2xbf16, #tpu.memory_space<vmem>>, vector<1x64x2xbf16>
    %41 = vector.shape_cast %40 : vector<1x64x2xbf16> to vector<64x2xbf16>
    %cst_24 = arith.constant dense<0.000000e+00> : vector<4x2xf32>
    %42 = tpu.matmul %39, %41, %cst_24 {dimension_numbers = #tpu.dot_dimension_numbers<[1], [0], [0], [1], [0, 0, 1, 1], [], []>} : vector<4x64xbf16>, vector<64x2xbf16>, vector<4x2xf32> -> vector<4x2xf32>
    %43 = arith.addf %38, %42 : vector<4x2xf32>
    %44 = vector.extract_strided_slice %5 {offsets = [4, 0], sizes = [4, 64], strides = [1, 1]} : vector<8x64xbf16> to vector<4x64xbf16>
    %c7 = arith.constant 7 : index
    %c0_25 = arith.constant 0 : index
    %c0_26 = arith.constant 0 : index
    %45 = vector.load %arg2[%c7, %c0_25, %c0_26] : memref<9x64x2xbf16, #tpu.memory_space<vmem>>, vector<1x64x2xbf16>
    %46 = vector.shape_cast %45 : vector<1x64x2xbf16> to vector<64x2xbf16>
    %cst_27 = arith.constant dense<0.000000e+00> : vector<4x2xf32>
    %47 = tpu.matmul %44, %46, %cst_27 {dimension_numbers = #tpu.dot_dimension_numbers<[1], [0], [0], [1], [0, 0, 1, 1], [], []>} : vector<4x64xbf16>, vector<64x2xbf16>, vector<4x2xf32> -> vector<4x2xf32>
    %48 = arith.addf %43, %47 : vector<4x2xf32>
    %49 = vector.extract_strided_slice %7 {offsets = [4, 0], sizes = [4, 64], strides = [1, 1]} : vector<8x64xbf16> to vector<4x64xbf16>
    %c8 = arith.constant 8 : index
    %c0_28 = arith.constant 0 : index
    %c0_29 = arith.constant 0 : index
    %50 = vector.load %arg2[%c8, %c0_28, %c0_29] : memref<9x64x2xbf16, #tpu.memory_space<vmem>>, vector<1x64x2xbf16>
    %51 = vector.shape_cast %50 : vector<1x64x2xbf16> to vector<64x2xbf16>
    %cst_30 = arith.constant dense<0.000000e+00> : vector<4x2xf32>
    %52 = tpu.matmul %49, %51, %cst_30 {dimension_numbers = #tpu.dot_dimension_numbers<[1], [0], [0], [1], [0, 0, 1, 1], [], []>} : vector<4x64xbf16>, vector<64x2xbf16>, vector<4x2xf32> -> vector<4x2xf32>
    %53 = arith.addf %48, %52 : vector<4x2xf32>
    %c0_31 = arith.constant 0 : index
    %c0_32 = arith.constant 0 : index
    %54 = vector.load %arg3[%c0_31, %c0_32] : memref<1x2xf32, #tpu.memory_space<vmem>>, vector<1x2xf32>
    %55 = vector.broadcast %54 : vector<1x2xf32> to vector<4x2xf32>
    %56 = arith.addf %53, %55 : vector<4x2xf32>
    %57 = vector.shape_cast %56 : vector<4x2xf32> to vector<2x2x2xf32>
    %c0_33 = arith.constant 0 : index
    %c0_34 = arith.constant 0 : index
    %c0_35 = arith.constant 0 : index
    %c0_36 = arith.constant 0 : index
    %58 = vector.load %arg4[%c0_33, %c0_34, %c0_35, %c0_36] : memref<1x2x2x2xf32, #tpu.memory_space<vmem>>, vector<1x2x2x2xf32>
    %59 = vector.shape_cast %58 : vector<1x2x2x2xf32> to vector<2x2x2xf32>
    %60 = vector.shape_cast %57 : vector<2x2x2xf32> to vector<1x2x2x2xf32>
    tpu.vector_store %arg4[%c0_33, %c0_34, %c0_35, %c0_36], %60 {strides = array<i32>} : memref<1x2x2x2xf32, #tpu.memory_space<vmem>>, vector<1x2x2x2xf32>,
    return
  }
  func.func @transform_0(%arg0: i32) -> (i32, i32, i32, i32) {
    %c0_i32 = arith.constant 0 : i32
    %c0_i32_0 = arith.constant 0 : i32
    %c0_i32_1 = arith.constant 0 : i32
    %c0_i32_2 = arith.constant 0 : i32
    return %arg0, %c0_i32, %c0_i32_0, %c0_i32_1 : i32, i32, i32, i32
  }
  func.func @transform_1(%arg0: i32) -> (i32, i32, i32) {
    %c0_i32 = arith.constant 0 : i32
    %c0_i32_0 = arith.constant 0 : i32
    %c0_i32_1 = arith.constant 0 : i32
    %c0_i32_2 = arith.constant 0 : i32
    return %c0_i32, %c0_i32_0, %c0_i32_1 : i32, i32, i32
  }
  func.func @transform_2(%arg0: i32) -> (i32, i32) {
    %c0_i32 = arith.constant 0 : i32
    %c0_i32_0 = arith.constant 0 : i32
    %c0_i32_1 = arith.constant 0 : i32
    return %c0_i32, %c0_i32_0 : i32, i32
  }
  func.func @transform_3(%arg0: i32) -> (i32, i32, i32, i32) {
    %c0_i32 = arith.constant 0 : i32
    %c0_i32_0 = arith.constant 0 : i32
    %c0_i32_1 = arith.constant 0 : i32
    %c0_i32_2 = arith.constant 0 : i32
    return %arg0, %c0_i32, %c0_i32_0, %c0_i32_1 : i32, i32, i32, i32
  }
}

module attributes {stable_mosaic.version = 11 : i64} {
  func.func @_linear_kernel(%arg0: i32, %arg1: memref<8x64xbf16, #tpu.memory_space<vmem>>, %arg2: memref<64x576xbf16, #tpu.memory_space<vmem>>, %arg3: memref<1x576xf32, #tpu.memory_space<vmem>>, %arg4: memref<8x576xf32, #tpu.memory_space<vmem>>) attributes {dimension_semantics = [#tpu.dimension_semantics<parallel>], iteration_bounds = array<i64: 1>, scalar_prefetch = 0 : i64, scratch_operands = 0 : i64, tpu.core_type = #tpu.core_type<tc>, window_params = [{transform_indices = @transform_0, window_bounds = array<i64: 8, 64>}, {pipeline_mode = #tpu.pipeline_mode<synchronous>, transform_indices = @transform_1, window_bounds = array<i64: 64, 576>}, {pipeline_mode = #tpu.pipeline_mode<synchronous>, transform_indices = @transform_2, window_bounds = array<i64: 1, 576>}, {transform_indices = @transform_3, window_bounds = array<i64: 8, 576>}]} {
    %c0 = arith.constant 0 : index
    %c0_0 = arith.constant 0 : index
    %0 = vector.load %arg1[%c0, %c0_0] : memref<8x64xbf16, #tpu.memory_space<vmem>>, vector<8x64xbf16>
    %c0_1 = arith.constant 0 : index
    %c0_2 = arith.constant 0 : index
    %1 = vector.load %arg2[%c0_1, %c0_2] : memref<64x576xbf16, #tpu.memory_space<vmem>>, vector<64x576xbf16>
    %cst = arith.constant dense<0.000000e+00> : vector<8x576xf32>
    %2 = tpu.matmul %0, %1, %cst {dimension_numbers = #tpu.dot_dimension_numbers<[1], [0], [0], [1], [0, 0, 1, 1], [], []>} : vector<8x64xbf16>, vector<64x576xbf16>, vector<8x576xf32> -> vector<8x576xf32>
    %c0_3 = arith.constant 0 : index
    %c0_4 = arith.constant 0 : index
    %3 = vector.load %arg3[%c0_3, %c0_4] : memref<1x576xf32, #tpu.memory_space<vmem>>, vector<1x576xf32>
    %4 = vector.broadcast %3 : vector<1x576xf32> to vector<8x576xf32>
    %5 = arith.addf %2, %4 : vector<8x576xf32>
    %cst_5 = arith.constant 2.500000e-01 : f32
    %6 = vector.broadcast %cst_5 : f32 to vector<8x576xf32>
    %7 = arith.mulf %5, %6 : vector<8x576xf32>
    %c0_6 = arith.constant 0 : index
    %c0_7 = arith.constant 0 : index
    %8 = vector.load %arg4[%c0_6, %c0_7] : memref<8x576xf32, #tpu.memory_space<vmem>>, vector<8x576xf32>
    tpu.vector_store %arg4[%c0_6, %c0_7], %7 {strides = array<i32>} : memref<8x576xf32, #tpu.memory_space<vmem>>, vector<8x576xf32>,
    return
  }
  func.func @transform_0(%arg0: i32) -> (i32, i32) {
    %c0_i32 = arith.constant 0 : i32
    %c0_i32_0 = arith.constant 0 : i32
    return %arg0, %c0_i32 : i32, i32
  }
  func.func @transform_1(%arg0: i32) -> (i32, i32) {
    %c0_i32 = arith.constant 0 : i32
    %c0_i32_0 = arith.constant 0 : i32
    %c0_i32_1 = arith.constant 0 : i32
    return %c0_i32, %c0_i32_0 : i32, i32
  }
  func.func @transform_2(%arg0: i32) -> (i32, i32) {
    %c0_i32 = arith.constant 0 : i32
    %c0_i32_0 = arith.constant 0 : i32
    %c0_i32_1 = arith.constant 0 : i32
    return %c0_i32, %c0_i32_0 : i32, i32
  }
  func.func @transform_3(%arg0: i32) -> (i32, i32) {
    %c0_i32 = arith.constant 0 : i32
    %c0_i32_0 = arith.constant 0 : i32
    return %arg0, %c0_i32 : i32, i32
  }
}

module attributes {stable_mosaic.version = 11 : i64} {
  func.func @_upsample_kernel(%arg0: i32, %arg1: memref<8x9x64xf32, #tpu.memory_space<vmem>>, %arg2: memref<8x2x9xf32, #tpu.memory_space<vmem>>, %arg3: memref<8x2x64xf32, #tpu.memory_space<vmem>>) attributes {dimension_semantics = [#tpu.dimension_semantics<parallel>], iteration_bounds = array<i64: 1>, scalar_prefetch = 0 : i64, scratch_operands = 0 : i64, tpu.core_type = #tpu.core_type<tc>, window_params = [{transform_indices = @transform_0, window_bounds = array<i64: 8, 9, 64>}, {transform_indices = @transform_1, window_bounds = array<i64: 8, 2, 9>}, {transform_indices = @transform_2, window_bounds = array<i64: 8, 2, 64>}]} {
    %c0 = arith.constant 0 : index
    %c0_0 = arith.constant 0 : index
    %c0_1 = arith.constant 0 : index
    %0 = vector.load %arg1[%c0, %c0_0, %c0_1] : memref<8x9x64xf32, #tpu.memory_space<vmem>>, vector<8x9x64xf32>
    %cst = arith.constant dense<0xFF800000> : vector<8x64xf32>
    %1 = vector.multi_reduction <maximumf>, %0, %cst [1] : vector<8x9x64xf32> to vector<8x64xf32>
    %2 = vector.shape_cast %1 : vector<8x64xf32> to vector<8x1x64xf32>
    %3 = vector.broadcast %2 : vector<8x1x64xf32> to vector<8x9x64xf32>
    %4 = arith.subf %0, %3 : vector<8x9x64xf32>
    %5 = math.exp %4 : vector<8x9x64xf32>
    %cst_2 = arith.constant dense<0.000000e+00> : vector<8x64xf32>
    %6 = vector.multi_reduction <add>, %5, %cst_2 [1] : vector<8x9x64xf32> to vector<8x64xf32>
    %7 = tpu.reciprocal %6 {approx = true} : vector<8x64xf32> -> vector<8x64xf32>
    %c0_3 = arith.constant 0 : index
    %c0_4 = arith.constant 0 : index
    %c0_5 = arith.constant 0 : index
    %8 = vector.load %arg2[%c0_3, %c0_4, %c0_5] : memref<8x2x9xf32, #tpu.memory_space<vmem>>, vector<8x2x9xf32>
    %cst_6 = arith.constant 0.000000e+00 : f32
    %9 = vector.broadcast %cst_6 : f32 to vector<8x64xf32>
    %10 = vector.extract_strided_slice %5 {offsets = [0, 0, 0], sizes = [8, 1, 64], strides = [1, 1, 1]} : vector<8x9x64xf32> to vector<8x1x64xf32>
    %11 = vector.shape_cast %10 : vector<8x1x64xf32> to vector<8x64xf32>
    %12 = vector.extract_strided_slice %8 {offsets = [0, 0, 0], sizes = [8, 1, 1], strides = [1, 1, 1]} : vector<8x2x9xf32> to vector<8x1x1xf32>
    %13 = vector.shape_cast %12 : vector<8x1x1xf32> to vector<8x1xf32>
    %14 = vector.broadcast %13 : vector<8x1xf32> to vector<8x64xf32>
    %15 = arith.mulf %11, %14 : vector<8x64xf32>
    %16 = arith.addf %9, %15 : vector<8x64xf32>
    %17 = vector.extract_strided_slice %5 {offsets = [0, 1, 0], sizes = [8, 1, 64], strides = [1, 1, 1]} : vector<8x9x64xf32> to vector<8x1x64xf32>
    %18 = vector.shape_cast %17 : vector<8x1x64xf32> to vector<8x64xf32>
    %19 = vector.extract_strided_slice %8 {offsets = [0, 0, 1], sizes = [8, 1, 1], strides = [1, 1, 1]} : vector<8x2x9xf32> to vector<8x1x1xf32>
    %20 = vector.shape_cast %19 : vector<8x1x1xf32> to vector<8x1xf32>
    %21 = vector.broadcast %20 : vector<8x1xf32> to vector<8x64xf32>
    %22 = arith.mulf %18, %21 : vector<8x64xf32>
    %23 = arith.addf %16, %22 : vector<8x64xf32>
    %24 = vector.extract_strided_slice %5 {offsets = [0, 2, 0], sizes = [8, 1, 64], strides = [1, 1, 1]} : vector<8x9x64xf32> to vector<8x1x64xf32>
    %25 = vector.shape_cast %24 : vector<8x1x64xf32> to vector<8x64xf32>
    %26 = vector.extract_strided_slice %8 {offsets = [0, 0, 2], sizes = [8, 1, 1], strides = [1, 1, 1]} : vector<8x2x9xf32> to vector<8x1x1xf32>
    %27 = vector.shape_cast %26 : vector<8x1x1xf32> to vector<8x1xf32>
    %28 = vector.broadcast %27 : vector<8x1xf32> to vector<8x64xf32>
    %29 = arith.mulf %25, %28 : vector<8x64xf32>
    %30 = arith.addf %23, %29 : vector<8x64xf32>
    %31 = vector.extract_strided_slice %5 {offsets = [0, 3, 0], sizes = [8, 1, 64], strides = [1, 1, 1]} : vector<8x9x64xf32> to vector<8x1x64xf32>
    %32 = vector.shape_cast %31 : vector<8x1x64xf32> to vector<8x64xf32>
    %33 = vector.extract_strided_slice %8 {offsets = [0, 0, 3], sizes = [8, 1, 1], strides = [1, 1, 1]} : vector<8x2x9xf32> to vector<8x1x1xf32>
    %34 = vector.shape_cast %33 : vector<8x1x1xf32> to vector<8x1xf32>
    %35 = vector.broadcast %34 : vector<8x1xf32> to vector<8x64xf32>
    %36 = arith.mulf %32, %35 : vector<8x64xf32>
    %37 = arith.addf %30, %36 : vector<8x64xf32>
    %38 = vector.extract_strided_slice %5 {offsets = [0, 4, 0], sizes = [8, 1, 64], strides = [1, 1, 1]} : vector<8x9x64xf32> to vector<8x1x64xf32>
    %39 = vector.shape_cast %38 : vector<8x1x64xf32> to vector<8x64xf32>
    %40 = vector.extract_strided_slice %8 {offsets = [0, 0, 4], sizes = [8, 1, 1], strides = [1, 1, 1]} : vector<8x2x9xf32> to vector<8x1x1xf32>
    %41 = vector.shape_cast %40 : vector<8x1x1xf32> to vector<8x1xf32>
    %42 = vector.broadcast %41 : vector<8x1xf32> to vector<8x64xf32>
    %43 = arith.mulf %39, %42 : vector<8x64xf32>
    %44 = arith.addf %37, %43 : vector<8x64xf32>
    %45 = vector.extract_strided_slice %5 {offsets = [0, 5, 0], sizes = [8, 1, 64], strides = [1, 1, 1]} : vector<8x9x64xf32> to vector<8x1x64xf32>
    %46 = vector.shape_cast %45 : vector<8x1x64xf32> to vector<8x64xf32>
    %47 = vector.extract_strided_slice %8 {offsets = [0, 0, 5], sizes = [8, 1, 1], strides = [1, 1, 1]} : vector<8x2x9xf32> to vector<8x1x1xf32>
    %48 = vector.shape_cast %47 : vector<8x1x1xf32> to vector<8x1xf32>
    %49 = vector.broadcast %48 : vector<8x1xf32> to vector<8x64xf32>
    %50 = arith.mulf %46, %49 : vector<8x64xf32>
    %51 = arith.addf %44, %50 : vector<8x64xf32>
    %52 = vector.extract_strided_slice %5 {offsets = [0, 6, 0], sizes = [8, 1, 64], strides = [1, 1, 1]} : vector<8x9x64xf32> to vector<8x1x64xf32>
    %53 = vector.shape_cast %52 : vector<8x1x64xf32> to vector<8x64xf32>
    %54 = vector.extract_strided_slice %8 {offsets = [0, 0, 6], sizes = [8, 1, 1], strides = [1, 1, 1]} : vector<8x2x9xf32> to vector<8x1x1xf32>
    %55 = vector.shape_cast %54 : vector<8x1x1xf32> to vector<8x1xf32>
    %56 = vector.broadcast %55 : vector<8x1xf32> to vector<8x64xf32>
    %57 = arith.mulf %53, %56 : vector<8x64xf32>
    %58 = arith.addf %51, %57 : vector<8x64xf32>
    %59 = vector.extract_strided_slice %5 {offsets = [0, 7, 0], sizes = [8, 1, 64], strides = [1, 1, 1]} : vector<8x9x64xf32> to vector<8x1x64xf32>
    %60 = vector.shape_cast %59 : vector<8x1x64xf32> to vector<8x64xf32>
    %61 = vector.extract_strided_slice %8 {offsets = [0, 0, 7], sizes = [8, 1, 1], strides = [1, 1, 1]} : vector<8x2x9xf32> to vector<8x1x1xf32>
    %62 = vector.shape_cast %61 : vector<8x1x1xf32> to vector<8x1xf32>
    %63 = vector.broadcast %62 : vector<8x1xf32> to vector<8x64xf32>
    %64 = arith.mulf %60, %63 : vector<8x64xf32>
    %65 = arith.addf %58, %64 : vector<8x64xf32>
    %66 = vector.extract_strided_slice %5 {offsets = [0, 8, 0], sizes = [8, 1, 64], strides = [1, 1, 1]} : vector<8x9x64xf32> to vector<8x1x64xf32>
    %67 = vector.shape_cast %66 : vector<8x1x64xf32> to vector<8x64xf32>
    %68 = vector.extract_strided_slice %8 {offsets = [0, 0, 8], sizes = [8, 1, 1], strides = [1, 1, 1]} : vector<8x2x9xf32> to vector<8x1x1xf32>
    %69 = vector.shape_cast %68 : vector<8x1x1xf32> to vector<8x1xf32>
    %70 = vector.broadcast %69 : vector<8x1xf32> to vector<8x64xf32>
    %71 = arith.mulf %67, %70 : vector<8x64xf32>
    %72 = arith.addf %65, %71 : vector<8x64xf32>
    %73 = arith.mulf %72, %7 : vector<8x64xf32>
    %c0_7 = arith.constant 0 : index
    %c0_8 = arith.constant 0 : index
    %c0_9 = arith.constant 0 : index
    %74 = vector.load %arg3[%c0_7, %c0_8, %c0_9] : memref<8x2x64xf32, #tpu.memory_space<vmem>>, vector<8x1x64xf32>
    %75 = vector.shape_cast %74 : vector<8x1x64xf32> to vector<8x64xf32>
    %76 = vector.shape_cast %73 : vector<8x64xf32> to vector<8x1x64xf32>
    tpu.vector_store %arg3[%c0_7, %c0_8, %c0_9], %76 {strides = array<i32>} : memref<8x2x64xf32, #tpu.memory_space<vmem>>, vector<8x1x64xf32>,
    %cst_10 = arith.constant 0.000000e+00 : f32
    %77 = vector.broadcast %cst_10 : f32 to vector<8x64xf32>
    %78 = vector.extract_strided_slice %5 {offsets = [0, 0, 0], sizes = [8, 1, 64], strides = [1, 1, 1]} : vector<8x9x64xf32> to vector<8x1x64xf32>
    %79 = vector.shape_cast %78 : vector<8x1x64xf32> to vector<8x64xf32>
    %80 = vector.extract_strided_slice %8 {offsets = [0, 1, 0], sizes = [8, 1, 1], strides = [1, 1, 1]} : vector<8x2x9xf32> to vector<8x1x1xf32>
    %81 = vector.shape_cast %80 : vector<8x1x1xf32> to vector<8x1xf32>
    %82 = vector.broadcast %81 : vector<8x1xf32> to vector<8x64xf32>
    %83 = arith.mulf %79, %82 : vector<8x64xf32>
    %84 = arith.addf %77, %83 : vector<8x64xf32>
    %85 = vector.extract_strided_slice %5 {offsets = [0, 1, 0], sizes = [8, 1, 64], strides = [1, 1, 1]} : vector<8x9x64xf32> to vector<8x1x64xf32>
    %86 = vector.shape_cast %85 : vector<8x1x64xf32> to vector<8x64xf32>
    %87 = vector.extract_strided_slice %8 {offsets = [0, 1, 1], sizes = [8, 1, 1], strides = [1, 1, 1]} : vector<8x2x9xf32> to vector<8x1x1xf32>
    %88 = vector.shape_cast %87 : vector<8x1x1xf32> to vector<8x1xf32>
    %89 = vector.broadcast %88 : vector<8x1xf32> to vector<8x64xf32>
    %90 = arith.mulf %86, %89 : vector<8x64xf32>
    %91 = arith.addf %84, %90 : vector<8x64xf32>
    %92 = vector.extract_strided_slice %5 {offsets = [0, 2, 0], sizes = [8, 1, 64], strides = [1, 1, 1]} : vector<8x9x64xf32> to vector<8x1x64xf32>
    %93 = vector.shape_cast %92 : vector<8x1x64xf32> to vector<8x64xf32>
    %94 = vector.extract_strided_slice %8 {offsets = [0, 1, 2], sizes = [8, 1, 1], strides = [1, 1, 1]} : vector<8x2x9xf32> to vector<8x1x1xf32>
    %95 = vector.shape_cast %94 : vector<8x1x1xf32> to vector<8x1xf32>
    %96 = vector.broadcast %95 : vector<8x1xf32> to vector<8x64xf32>
    %97 = arith.mulf %93, %96 : vector<8x64xf32>
    %98 = arith.addf %91, %97 : vector<8x64xf32>
    %99 = vector.extract_strided_slice %5 {offsets = [0, 3, 0], sizes = [8, 1, 64], strides = [1, 1, 1]} : vector<8x9x64xf32> to vector<8x1x64xf32>
    %100 = vector.shape_cast %99 : vector<8x1x64xf32> to vector<8x64xf32>
    %101 = vector.extract_strided_slice %8 {offsets = [0, 1, 3], sizes = [8, 1, 1], strides = [1, 1, 1]} : vector<8x2x9xf32> to vector<8x1x1xf32>
    %102 = vector.shape_cast %101 : vector<8x1x1xf32> to vector<8x1xf32>
    %103 = vector.broadcast %102 : vector<8x1xf32> to vector<8x64xf32>
    %104 = arith.mulf %100, %103 : vector<8x64xf32>
    %105 = arith.addf %98, %104 : vector<8x64xf32>
    %106 = vector.extract_strided_slice %5 {offsets = [0, 4, 0], sizes = [8, 1, 64], strides = [1, 1, 1]} : vector<8x9x64xf32> to vector<8x1x64xf32>
    %107 = vector.shape_cast %106 : vector<8x1x64xf32> to vector<8x64xf32>
    %108 = vector.extract_strided_slice %8 {offsets = [0, 1, 4], sizes = [8, 1, 1], strides = [1, 1, 1]} : vector<8x2x9xf32> to vector<8x1x1xf32>
    %109 = vector.shape_cast %108 : vector<8x1x1xf32> to vector<8x1xf32>
    %110 = vector.broadcast %109 : vector<8x1xf32> to vector<8x64xf32>
    %111 = arith.mulf %107, %110 : vector<8x64xf32>
    %112 = arith.addf %105, %111 : vector<8x64xf32>
    %113 = vector.extract_strided_slice %5 {offsets = [0, 5, 0], sizes = [8, 1, 64], strides = [1, 1, 1]} : vector<8x9x64xf32> to vector<8x1x64xf32>
    %114 = vector.shape_cast %113 : vector<8x1x64xf32> to vector<8x64xf32>
    %115 = vector.extract_strided_slice %8 {offsets = [0, 1, 5], sizes = [8, 1, 1], strides = [1, 1, 1]} : vector<8x2x9xf32> to vector<8x1x1xf32>
    %116 = vector.shape_cast %115 : vector<8x1x1xf32> to vector<8x1xf32>
    %117 = vector.broadcast %116 : vector<8x1xf32> to vector<8x64xf32>
    %118 = arith.mulf %114, %117 : vector<8x64xf32>
    %119 = arith.addf %112, %118 : vector<8x64xf32>
    %120 = vector.extract_strided_slice %5 {offsets = [0, 6, 0], sizes = [8, 1, 64], strides = [1, 1, 1]} : vector<8x9x64xf32> to vector<8x1x64xf32>
    %121 = vector.shape_cast %120 : vector<8x1x64xf32> to vector<8x64xf32>
    %122 = vector.extract_strided_slice %8 {offsets = [0, 1, 6], sizes = [8, 1, 1], strides = [1, 1, 1]} : vector<8x2x9xf32> to vector<8x1x1xf32>
    %123 = vector.shape_cast %122 : vector<8x1x1xf32> to vector<8x1xf32>
    %124 = vector.broadcast %123 : vector<8x1xf32> to vector<8x64xf32>
    %125 = arith.mulf %121, %124 : vector<8x64xf32>
    %126 = arith.addf %119, %125 : vector<8x64xf32>
    %127 = vector.extract_strided_slice %5 {offsets = [0, 7, 0], sizes = [8, 1, 64], strides = [1, 1, 1]} : vector<8x9x64xf32> to vector<8x1x64xf32>
    %128 = vector.shape_cast %127 : vector<8x1x64xf32> to vector<8x64xf32>
    %129 = vector.extract_strided_slice %8 {offsets = [0, 1, 7], sizes = [8, 1, 1], strides = [1, 1, 1]} : vector<8x2x9xf32> to vector<8x1x1xf32>
    %130 = vector.shape_cast %129 : vector<8x1x1xf32> to vector<8x1xf32>
    %131 = vector.broadcast %130 : vector<8x1xf32> to vector<8x64xf32>
    %132 = arith.mulf %128, %131 : vector<8x64xf32>
    %133 = arith.addf %126, %132 : vector<8x64xf32>
    %134 = vector.extract_strided_slice %5 {offsets = [0, 8, 0], sizes = [8, 1, 64], strides = [1, 1, 1]} : vector<8x9x64xf32> to vector<8x1x64xf32>
    %135 = vector.shape_cast %134 : vector<8x1x64xf32> to vector<8x64xf32>
    %136 = vector.extract_strided_slice %8 {offsets = [0, 1, 8], sizes = [8, 1, 1], strides = [1, 1, 1]} : vector<8x2x9xf32> to vector<8x1x1xf32>
    %137 = vector.shape_cast %136 : vector<8x1x1xf32> to vector<8x1xf32>
    %138 = vector.broadcast %137 : vector<8x1xf32> to vector<8x64xf32>
    %139 = arith.mulf %135, %138 : vector<8x64xf32>
    %140 = arith.addf %133, %139 : vector<8x64xf32>
    %141 = arith.mulf %140, %7 : vector<8x64xf32>
    %c0_11 = arith.constant 0 : index
    %c1 = arith.constant 1 : index
    %c0_12 = arith.constant 0 : index
    %142 = vector.load %arg3[%c0_11, %c1, %c0_12] : memref<8x2x64xf32, #tpu.memory_space<vmem>>, vector<8x1x64xf32>
    %143 = vector.shape_cast %142 : vector<8x1x64xf32> to vector<8x64xf32>
    %144 = vector.shape_cast %141 : vector<8x64xf32> to vector<8x1x64xf32>
    tpu.vector_store %arg3[%c0_11, %c1, %c0_12], %144 {strides = array<i32>} : memref<8x2x64xf32, #tpu.memory_space<vmem>>, vector<8x1x64xf32>,
    return
  }
  func.func @transform_0(%arg0: i32) -> (i32, i32, i32) {
    %c0_i32 = arith.constant 0 : i32
    %c0_i32_0 = arith.constant 0 : i32
    %c0_i32_1 = arith.constant 0 : i32
    return %arg0, %c0_i32, %c0_i32_0 : i32, i32, i32
  }
  func.func @transform_1(%arg0: i32) -> (i32, i32, i32) {
    %c0_i32 = arith.constant 0 : i32
    %c0_i32_0 = arith.constant 0 : i32
    %c0_i32_1 = arith.constant 0 : i32
    return %arg0, %c0_i32, %c0_i32_0 : i32, i32, i32
  }
  func.func @transform_2(%arg0: i32) -> (i32, i32, i32) {
    %c0_i32 = arith.constant 0 : i32
    %c0_i32_0 = arith.constant 0 : i32
    %c0_i32_1 = arith.constant 0 : i32
    return %arg0, %c0_i32, %c0_i32_0 : i32, i32, i32
  }
}

</mosaic_0001>

<bundles_post_ra>
// kernel: geotr_forward.14
= control target key start
LH: loop header
LB: loop body
LE: loop exit
PB: predicated region body
PF: predicated region fallthrough
CT: control target
= control target key end

     0   :  { %v199_v0 = vmov 0   ;;  %vm122_vm0 = vcmask 523264   ;;  %vm166_vm1 = vcmask 261120   ;;  %s268_s1 = inlined_call_operand.vmem [shape: bf16[192,32], index: 1, kind: input, shape index: {}]   ;;  %s269_s0 = inlined_call_operand.vmem [shape: f32[8,192], index: 0, kind: input, shape index: {}]   ;;  %s270_s2 = inlined_call_operand.vmem [shape: f32[1,32], index: 2, kind: input, shape index: {}]   ;;  %s271_s3 = inlined_call_operand.vmem [shape: f32[8,32], index: 3, kind: output, shape index: {}]  }
   0x1   :  { %126 = vmatprep.subr.bf16.mxu0 %v199_v0  ;;  %v187_v1 = vld [vmem:[%s268_s1] sm:$0xff]   ;;  %v188_v2 = vld [vmem:[%s268_s1 + $0x8] sm:$0xff]   ;;  %v189_v3 = vld [vmem:[%s268_s1 + $0x10] sm:$0xff]  }
   0x2   :  { %127 = vmatpush1.bf16.msra.mxu0 %v187_v1  ;;  %v190_v4 = vld [vmem:[%s268_s1 + $0x18] sm:$0xff]   ;;  %v16_v5 = vld [vmem:[%s269_s0 + $0x8] sm:$0xff]  ;;  %v191_v7 = vld [vmem:[%s268_s1 + $0x20] sm:$0xff]  }
   0x3   :  { %128 = vmatprep.subr.bf16.mxu0 %v199_v0  ;;  %v18_v6 = vpack.c.bf16 %v16_v5, %v16_v5  ;;  %v192_v8 = vld [vmem:[%s268_s1 + $0x28] sm:$0xff]   ;;  %v193_v9 = vld [vmem:[%s268_s1 + $0x30] sm:$0xff]   ;;  %v194_v10 = vld [vmem:[%s268_s1 + $0x38] sm:$0xff]  }
   0x4   :  { %v195_v11 = vld [vmem:[%s268_s1 + $0x40] sm:$0xff]   ;;  %v196_v12 = vld [vmem:[%s268_s1 + $0x48] sm:$0xff]   ;;  %v197_v13 = vld [vmem:[%s268_s1 + $0x50] sm:$0xff]  }
   0x5   :  { %185 = vmatprep.mubr.msk.bf16.mxu0 %vm122_vm0, %v18_v6  ;;  %v198_v14 = vld [vmem:[%s268_s1 + $0x58] sm:$0xff]   ;;  %v15_v15 = vld [vmem:[%s269_s0] sm:$0xff] }
   0x6   :  { %129 = vmatpush1.bf16.msra.mxu0 %v188_v2  ;;  %v17_v16 = vpack.c.bf16 %v15_v15, %v15_v15  ;;  %v172_v17 = vld [vmem:[%s270_s2] ss:$0 sm:$0xff] }
   0x7   :  { %130 = vmatprep.subr.bf16.mxu0 %v199_v0 }
   0xa   :  { %131 = vmatpush1.bf16.msra.mxu0 %v189_v3 }
   0xb   :  { %132 = vmatprep.subr.bf16.mxu0 %v199_v0 }
   0xe   :  { %133 = vmatpush1.bf16.msra.mxu0 %v190_v4 }
   0xf   :  { %134 = vmatprep.subr.bf16.mxu0 %v199_v0 }
  0x12   :  { %135 = vmatpush1.bf16.msra.mxu0 %v191_v7 }
  0x13   :  { %136 = vmatprep.subr.bf16.mxu0 %v199_v0 }
  0x16   :  { %137 = vmatpush1.bf16.msra.mxu0 %v192_v8 }
  0x17   :  { %138 = vmatprep.subr.bf16.mxu0 %v199_v0 }
  0x1a   :  { %139 = vmatpush1.bf16.msra.mxu0 %v193_v9 }
  0x1b   :  { %140 = vmatprep.subr.bf16.mxu0 %v199_v0 }
  0x1e   :  { %141 = vmatpush1.bf16.msra.mxu0 %v194_v10 }
  0x1f   :  { %142 = vmatprep.subr.bf16.mxu0 %v199_v0 }
  0x22   :  { %143 = vmatpush1.bf16.msra.mxu0 %v195_v11 }
  0x23   :  { %144 = vmatprep.subr.bf16.mxu0 %v199_v0 }
  0x26   :  { %145 = vmatpush1.bf16.msra.mxu0 %v196_v12 }
  0x27   :  { %146 = vmatprep.subr.bf16.mxu0 %v199_v0 }
  0x2a   :  { %147 = vmatpush1.bf16.msra.mxu0 %v197_v13 }
  0x2b   :  { %148 = vmatprep.subr.bf16.mxu0 %v199_v0 }
  0x2e   :  { %149 = vmatpush1.bf16.msra.mxu0 %v198_v14 }
  0x31   :  { %159 = vmatmul.mubr.bf16.vlgmr.msra.gmra.mrb[0].mxu0 %v17_v16 }
 0x104   :  { %v160_v18 = vpop.f32.mrb[0].mxu0 }
 0x105   :  { %v161_v19 = vadd.f32 %v172_v17, %v160_v18  ;;  %v162_v20 = vpop.f32.mrb[1].mxu0 }
 0x106   :  { %v163_v21 = vpop.f32.mrb[2].mxu0 }
 0x107   :  { %167 = vst.msk [vmem:[%s271_s3] sm:$0xff] %vm166_vm1, %v161_v19  ;;  %v164_v22 = vpop.f32.mrb[3].mxu0 }

// kernel: geotr_forward.16
= control target key start
LH: loop header
LB: loop body
LE: loop exit
PB: predicated region body
PF: predicated region fallthrough
CT: control target
= control target key end

     0   :  { %s3078_s22 = smov 0   ;;  %s3080_s23 = smov 0   ;;  %s3453_s0 = inlined_call_operand.vmem [shape: f32[2,4,32], index: 0, kind: input, shape index: {}]   ;;  %s3454_s1 = inlined_call_operand.vmem [shape: f32[2,4,32], index: 1, kind: input, shape index: {}, may-alias: {1,3}]   ;;  %s3455_s2 = inlined_call_operand.vmem [shape: f32[2,4,32], index: 2, kind: input, shape index: {}]   ;;  %s3456_s3 = inlined_call_operand.vmem [shape: f32[2,4,32], index: 3, kind: input, shape index: {}, may-alias: {1,3}]   ;;  %s3457_s4 = inlined_call_operand.vmem [shape: bf16[4,32,8], index: 4, kind: input, shape index: {}]   ;;  %s3458_s5 = inlined_call_operand.vmem [shape: bf16[4,32,8], index: 5, kind: input, shape index: {}]   ;;  %s3459_s6 = inlined_call_operand.vmem [shape: bf16[4,32,8], index: 6, kind: input, shape index: {}]   ;;  %s3460_s7 = inlined_call_operand.vmem [shape: bf16[4,8,32], index: 7, kind: input, shape index: {}]   ;;  %s3461_s8 = inlined_call_operand.vmem [shape: f32[4,1,8], index: 8, kind: input, shape index: {}]   ;;  %s3462_s9 = inlined_call_operand.vmem [shape: f32[4,1,8], index: 9, kind: input, shape index: {}]   ;;  %s3463_s10 = inlined_call_operand.vmem [shape: f32[4,1,8], index: 10, kind: input, shape index: {}]   ;;  %s3464_s11 = inlined_call_operand.vmem [shape: f32[1,32], index: 11, kind: input, shape index: {}]   ;;  %s3465_s12 = inlined_call_operand.vmem [shape: f32[1,32], index: 12, kind: input, shape index: {}]   ;;  %s3466_s13 = inlined_call_operand.vmem [shape: f32[1,32], index: 13, kind: input, shape index: {}]   ;;  %s3467_s14 = inlined_call_operand.vmem [shape: bf16[32,64], index: 14, kind: input, shape index: {}]   ;;  %s3468_s15 = inlined_call_operand.vmem [shape: f32[1,64], index: 15, kind: input, shape index: {}]   ;;  %s3469_s16 = inlined_call_operand.vmem [shape: bf16[64,32], index: 16, kind: input, shape index: {}]   ;;  %s3470_s17 = inlined_call_operand.vmem [shape: f32[1,32], index: 17, kind: input, shape index: {}]   ;;  %s3471_s18 = inlined_call_operand.vmem [shape: f32[1,32], index: 18, kind: input, shape index: {}]   ;;  %s3472_s19 = inlined_call_operand.vmem [shape: f32[1,32], index: 19, kind: input, shape index: {}]   ;;  %s3473_s20 = inlined_call_operand.vmem [shape: f32[2,4,32], index: 20, kind: output, shape index: {}]  }
   0x1   :  { %3477 = sst [smem:[#allocation5_spill]] %s3453_s0 }
   0x2   :  { %3478 = sst [smem:[#allocation6_spill]] %s3454_s1  ;;  %s3076_s1 = smov 0  }
   0x3   :  { %3479 = sst [smem:[#allocation7_spill]] %s3455_s2 }
   0x4   :  { %3480 = sst [smem:[#allocation8_spill]] %s3456_s3 }
   0x5   :  { %3481 = sst [smem:[#allocation9_spill]] %s3457_s4 }
   0x6   :  { %3482 = sst [smem:[#allocation10_spill]] %s3473_s20 }
   0x7 LB: > { %3483 = sst [smem:[#allocation2_spill]] %s2963_s22  ;;  %s42_s24 = sadd.s32 1, %s2963_s22  ;;  %s2967_s23 = sphi %s3080_s23, %s30_s23   ;;  %s2963_s22 = sphi %s3078_s22, %s3494_s22   ;;  %s2959_s1 = sphi %s3076_s1, %s3493_s1  }
   0x8   : > { %3484 = sst [smem:[#allocation3_spill]] %s2967_s23  ;;  %p2482_p0 = scmp.ge.s32.totalorder %s2967_s23, 1 }
   0x9   : > { %p44_p1 = scmp.ge.s32.totalorder %s42_s24, 2  ;;  %p612_p2 = scmp.lt.s32.totalorder %s2967_s23, 3 }
   0xb   : > { %s3496_s24 = smov (%p44_p1, %s42_s24), 0  ;;  %p613_p3 = pnand %p2482_p0, %p612_p2 }
   0xc   : > { %3485 = sst [smem:[#allocation4_spill]] %s3496_s24  ;;  %s3486_s3 = sld [smem:[#allocation9_spill]] (!%p613_p3)  ;;  %v2969_v1 = vmov (!%p613_p3), 0.0   ;;  %v2896_v2 = vld [vmem:[%s3458_s5] sm:$0xff] (!%p613_p3)   ;;  %vm2970_vm0 = vmmov (!%p613_p3), 0   ;;  %v2898_v4 = vld [vmem:[%s3458_s5 + $0x8] sm:$0xff] (!%p613_p3)  }
   0xd   : > { %616 = sbr.rel (%p613_p3) target bundleno = 3806 (0xede), region = 100  ;;  %2681 = vmatprep.subr.bf16.mxu0 (!%p613_p3), %v2969_v1  ;;  %2689 = vmatprep.subr.bf16.mxu1 (!%p613_p3), %v2969_v1  ;;  %p689_p4 = scmp.lt.s32.totalorder (!%p613_p3), %s2959_s1, 1  ;;  %vm751_vm1 = vcmask (!%p613_p3), 261120   ;;  %v2899_v7 = vld [vmem:[%s3459_s6] sm:$0xff] (!%p613_p3)   ;;  %v2900_v13 = vld [vmem:[%s3459_s6 + $0x8] sm:$0xff] (!%p613_p3)   ;;  %vm994_vm2 = vcmask (!%p613_p3), 1043456  }
   0xe   : > { %2685 = vmatprep.mubr.msk.bf16.mxu0 (!%p613_p3), %vm2970_vm0, %v2969_v1  ;;  %2690 = vmatpush3.bf16.msra.mxu1 (!%p613_p3), %v2896_v2  ;;  %s3487_s25 = sld [smem:[#allocation5_spill]] (!%p613_p3)  ;;  %s3488_s4 = sld [smem:[#allocation6_spill]] (!%p613_p3)  ;;  %v990_v16 = vld [vmem:[%s3460_s7] sm:$0xf] (!%p613_p3)  ;;  %vm929_vm3 = vcmask (!%p613_p3), 64512   ;;  %v2902_v37 = vld [vmem:[%s3458_s5 + $0x10] sm:$0xff] (!%p613_p3)  }
   0xf   : > { %2691 = vmatprep.subr.bf16.mxu1 (!%p613_p3), %v2969_v1  ;;  %2693 = vmatprep.mubr.msk.bf16.mxu1 (!%p613_p3), %vm2970_vm0, %v2969_v1  ;;  %s3489_s24 = sld [smem:[#allocation7_spill]] (!%p613_p3)  ;;  %v996_v17 = vsel (!%p613_p3), %vm994_vm2, %v990_v16, 0  ;;  %v2492_v19 = vld [vmem:[%s3462_s9] ss:$0 sm:$0xff] (!%p613_p3)  ;;  %v2904_v42 = vld [vmem:[%s3458_s5 + $0x18] sm:$0xff] (!%p613_p3)   ;;  %v2905_v44 = vld [vmem:[%s3459_s6 + $0x10] sm:$0xff] (!%p613_p3)  }
  0x10   : > { %v2488_v29 = vld [vmem:[%s3461_s8] ss:$0 sm:$0xff] (!%p613_p3)  ;;  %v2906_v45 = vld [vmem:[%s3459_s6 + $0x18] sm:$0xff] (!%p613_p3)   ;;  %v2530_v46 = vld [vmem:[%s3460_s7 + $0x4] sm:$0xf] (!%p613_p3)  ;;  %vm976_vm4 = vcmask (!%p613_p3), 27648  }
  0x11   : > { %v2496_v30 = vld [vmem:[%s3463_s10] ss:$0 sm:$0xff] (!%p613_p3)  ;;  %v1301_v47 = vsel (!%p613_p3), %vm994_vm2, %v2530_v46, 0  ;;  %v2516_v57 = vld [vmem:[%s3462_s9 + $0x1] ss:$0 sm:$0xff] (!%p613_p3)  ;;  %vm1348_vm5 = vcmask (!%p613_p3), 1041408  }
  0x12   : > { %v2895_v0 = vld [vmem:[%s3486_s3] sm:$0xff] (!%p613_p3)   ;;  %v2897_v3 = vld [vmem:[%s3486_s3 + $0x8] sm:$0xff] (!%p613_p3)   ;;  %2692 = vmatpush3.bf16.msra.mxu1 (!%p613_p3), %v2898_v4  ;;  %v2901_v40 = vld [vmem:[%s3486_s3 + $0x10] sm:$0xff] (!%p613_p3)   ;;  %vm1344_vm6 = vcmask (!%p613_p3), 31744   ;;  %vm2153_vm7 = vcmask (!%p613_p3), 257024   ;;  %vm2290_vm8 = vcmask (!%p613_p3), 523264  }
  0x13   : > { %2682 = vmatpush3.bf16.msra.mxu0 (!%p613_p3), %v2895_v0  ;;  %2705 = vmatprep.subr.bf16.mxu1 (!%p613_p3), %v2969_v1  ;;  %v2903_v43 = vld [vmem:[%s3486_s3 + $0x18] sm:$0xff] (!%p613_p3)   ;;  %v2507_v62 = vld [vmem:[%s3461_s8 + $0x1] ss:$0 sm:$0xff] (!%p613_p3) }
  0x14   : > { %2683 = vmatprep.subr.bf16.mxu0 %v2969_v1  ;;  %s3498_s1 = smov (!%p689_p4, %s2959_s1), 1 }
  0x15   : > { %s3114_s0 = sshll.u32 %s3498_s1, 2 }
  0x16   : > { %s695_s26 = scalar_lea.vmem %s3487_s25, %s3114_s0  ;;  %s702_s29 = scalar_lea.vmem %s3488_s4, %s3114_s0 }
  0x17   : > { %2684 = vmatpush3.bf16.msra.mxu0 %v2897_v3  ;;  %v3125_v5 = vld [vmem:[%s695_s26] sm:$0xf]  ;;  %s706_s22 = scalar_lea.vmem %s3489_s24, %s3114_s0  ;;  %s3490_s25 = sld [smem:[#allocation8_spill]] }
  0x18   : > { %2697 = vmatprep.subr.bf16.mxu0 %v2969_v1  ;;  %v720_v6 = vld [vmem:[%s702_s29] sm:$0xf]  ;;  %s3491_s26 = sld [smem:[#allocation10_spill]] }
  0x19   : > { %v723_v8 = vadd.f32 %v720_v6, %v3125_v5  ;;  %v721_v9 = vld [vmem:[%s706_s22] sm:$0xf] }
  0x1a   : > { %v3156_v15 = vpack.c.bf16 %v721_v9, %v721_v9 }
  0x1b   : > { %v3140_v11 = vpack.c.bf16 %v723_v8, %v723_v8 }
  0x1d   : > { %s710_s27 = scalar_lea.vmem %s3490_s25, %s3114_s0  ;;  %2686 = vmatmul.mubr.msk.bf16.vlgmr.msra.gmra.mrb[0].mxu0 %vm751_vm1, %v3140_v11 }
  0x1e   : > { %v722_v10 = vld [vmem:[%s710_s27] sm:$0xf]  ;;  %2698 = vmatpush3.bf16.msra.mxu0 %v2899_v7  ;;  %2701 = vmatprep.mubr.msk.bf16.mxu0 %vm2970_vm0, %v2969_v1  ;;  %s717_s28 = scalar_lea.vmem %s3491_s26, %s3114_s0 }
  0x1f   : > { %v725_v12 = vadd.f32 %v722_v10, %v721_v9  ;;  %2699 = vmatprep.subr.bf16.mxu0 %v2969_v1  ;;  %v2525_v9 = vld [vmem:[%s3463_s10 + $0x1] ss:$0 sm:$0xff] }
  0x21   : > { %v3147_v14 = vpack.c.bf16 %v725_v12, %v725_v12 }
  0x22   : > { %2700 = vmatpush3.bf16.msra.mxu0 %v2900_v13 }
  0x23   : > { %2694 = vmatmul.mubr.msk.bf16.vlgmr.msra.gmra.mrb[0].mxu1 %vm751_vm1, %v3147_v14  ;;  %2711 = vmatprep.subr.bf16.mxu0 %v2969_v1 }
  0x24   : > { %2707 = vmatprep.mubr.msk.bf16.mxu1 %vm2970_vm0, %v2969_v1 }
  0x25   : > { %2702 = vmatmul.mubr.msk.bf16.vlgmr.msra.gmra.mrb[4].mxu0 %vm751_vm1, %v3156_v15 }
  0x26   : > { %2713 = vmatprep.mubr.msk.bf16.mxu0 %vm2970_vm0, %v2969_v1  ;;  %2712 = vmatpush3.bf16.msra.mxu0 %v996_v17 }
  0x27   : > { %2725 = vmatprep.subr.bf16.mxu0 %v2969_v1 }
  0xf0   : > { %v789_v18 = vpop.f32.mrb[0].mxu0 }
  0xf1   : > { %v2687_v20 = vpop.f32.mrb[1].mxu0  ;;  %v790_v33 = vadd.f32 %v2488_v29, %v789_v18 }
  0xf2   : > { %v792_v22 = vpop.f32.mrb[2].mxu0 }
  0xf3   : > { %v2688_v24 = vpop.f32.mrb[3].mxu0  ;;  %v927_v41 = vpack.c.bf16 %v790_v33, %v790_v33 }
  0xf6   : > { %v855_v21 = vpop.f32.mrb[0].mxu1 }
  0xf7   : > { %v856_v23 = vadd.f32 %v2492_v19, %v855_v21  ;;  %v2695_v25 = vpop.f32.mrb[1].mxu1 }
  0xf8   : > { %v858_v26 = vpop.f32.mrb[2].mxu1  ;;  %v921_v32 = vpop.f32.mrb[4].mxu0 }
  0xf9   : > { %v928_v27 = vpack.c.bf16 %v856_v23, %v856_v23  ;;  %v2696_v28 = vpop.f32.mrb[3].mxu1  ;;  %v922_v34 = vadd.f32 %v2496_v30, %v921_v32  ;;  %v2703_v35 = vpop.f32.mrb[5].mxu0 }
  0xfa   : > { %v924_v36 = vpop.f32.mrb[6].mxu0 }
  0xfb   : > { %v934_v31 = vsel %vm929_vm3, %v928_v27, 0  ;;  %v989_v38 = vpack.c.bf16 %v922_v34, %v922_v34  ;;  %v2704_v39 = vpop.f32.mrb[7].mxu0 }
  0xfc   : > { %2706 = vmatpush3.bf16.xpose.msra.mxu1 %v934_v31 }
  0xfd   : > { %2717 = vmatprep.subr.bf16.mxu1 %v2969_v1  ;;  %2714 = vmatmul.mubr.msk.bf16.vlgmr.msra.gmra.mrb[8].mxu0 %vm929_vm3, %v989_v38 }
  0xfe   : > { %2726 = vmatpush3.bf16.msra.mxu0 %v2902_v37  ;;  %2729 = vmatprep.mubr.msk.bf16.mxu0 %vm2970_vm0, %v2969_v1 }
  0xff   : > { %2727 = vmatprep.subr.bf16.mxu0 %v2969_v1 }
 0x102   : > { %2728 = vmatpush3.bf16.msra.mxu0 %v2904_v42 }
 0x103   : > { %2708 = vmatmul.mubr.msk.bf16.vlgmr.msra.gmra.mrb[4].mxu1 %vm929_vm3, %v927_v41  ;;  %2741 = vmatprep.subr.bf16.mxu0 %v2969_v1 }
 0x104   : > { %2718 = vmatpush3.bf16.msra.mxu1 %v2901_v40  ;;  %2721 = vmatprep.mubr.msk.bf16.mxu1 %vm2970_vm0, %v2969_v1 }
 0x105   : > { %2719 = vmatprep.subr.bf16.mxu1 %v2969_v1  ;;  %2730 = vmatmul.mubr.msk.bf16.vlgmr.msra.gmra.mrb[12].mxu0 %vm751_vm1, %v3147_v14 }
 0x106   : > { %2743 = vmatprep.mubr.msk.bf16.mxu0 %vm2970_vm0, %v2969_v1 }
 0x108   : > { %2720 = vmatpush3.bf16.msra.mxu1 %v2903_v43 }
 0x109   : > { %2733 = vmatprep.subr.bf16.mxu1 %v2969_v1 }
 0x10b   : > { %2722 = vmatmul.mubr.msk.bf16.vlgmr.msra.gmra.mrb[8].mxu1 %vm751_vm1, %v3140_v11 }
 0x10c   : > { %2734 = vmatpush3.bf16.msra.mxu1 %v2905_v44  ;;  %2737 = vmatprep.mubr.msk.bf16.mxu1 %vm2970_vm0, %v2969_v1 }
 0x10d   : > { %2735 = vmatprep.subr.bf16.mxu1 %v2969_v1 }
 0x110   : > { %2736 = vmatpush3.bf16.msra.mxu1 %v2906_v45 }
 0x111   : > { %2747 = vmatprep.subr.bf16.mxu1 %v2969_v1 }
 0x113   : > { %2738 = vmatmul.mubr.msk.bf16.vlgmr.msra.gmra.mrb[12].mxu1 %vm751_vm1, %v3156_v15 }
 0x114   : > { %2749 = vmatprep.mubr.msk.bf16.mxu1 %vm2970_vm0, %v2969_v1  ;;  %2748 = vmatpush3.bf16.msra.mxu1 %v1301_v47  ;;  %v2907_v47 = vld [vmem:[%s3458_s5 + $0x20] sm:$0xff]  }
 0x115   : > { %2759 = vmatprep.subr.bf16.mxu1 %v2969_v1 }
 0x1d0   : > { %v1032_v48 = vpop.f32.mrb[8].mxu0 }
 0x1d1   : > { %v2715_v49 = vpop.f32.mrb[9].mxu0  ;;  %v1038_v13 = vpack.c.bf16 %v1032_v48, %v1032_v48  ;;  %v2908_v48 = vld [vmem:[%s3458_s5 + $0x28] sm:$0xff]  }
 0x1d2   : > { %v1035_v51 = vpop.f32.mrb[10].mxu0 }
 0x1d3   : > { %v2716_v54 = vpop.f32.mrb[11].mxu0  ;;  %v1396_v21 = vsel %vm1348_vm5, %v1038_v13, 0  ;;  %v2539_v13 = vld [vmem:[%s3461_s8 + $0x2] ss:$0 sm:$0xff] }
 0x1d6   : > { %v970_v50 = vpop.f32.mrb[4].mxu1 }
 0x1d7   : > { %v2709_v52 = vpop.f32.mrb[5].mxu1  ;;  %v977_v53 = vsel %vm976_vm4, %v970_v50, -inf }
 0x1d8   : > { %978 = vmax.xlane.f32.xlu0 %v977_v53  ;;  %v973_v55 = vpop.f32.mrb[6].mxu1  ;;  %v1163_v58 = vpop.f32.mrb[12].mxu0 }
 0x1d9   : > { %v2710_v56 = vpop.f32.mrb[7].mxu1  ;;  %v1164_v59 = vadd.f32 %v2516_v57, %v1163_v58  ;;  %v2731_v60 = vpop.f32.mrb[13].mxu0  ;;  %v2910_v58 = vld [vmem:[%s3486_s3 + $0x28] sm:$0xff]  }
 0x1da   : > { %v1166_v61 = vpop.f32.mrb[14].mxu0  ;;  %v2909_v56 = vld [vmem:[%s3486_s3 + $0x20] sm:$0xff]  }
 0x1db   : > { %v1235_v0 = vpack.c.bf16 %v1164_v59, %v1164_v59  ;;  %v2732_v2 = vpop.f32.mrb[15].mxu0  ;;  %v2548_v59 = vld [vmem:[%s3462_s9 + $0x2] ss:$0 sm:$0xff] }
 0x1dd   : > { %v1240_v6 = vsel %vm929_vm3, %v1235_v0, 0 }
 0x1de   : > { %v1098_v63 = vpop.f32.mrb[8].mxu1  ;;  %2742 = vmatpush3.bf16.xpose.msra.mxu0 %v1240_v6  ;;  %v2912_v6 = vld [vmem:[%s3459_s6 + $0x28] sm:$0xff]  }
 0x1df   : > { %v2723_v3 = vpop.f32.mrb[9].mxu1  ;;  %v1099_v7 = vadd.f32 %v2507_v62, %v1098_v63  ;;  %2753 = vmatprep.subr.bf16.mxu0 %v2969_v1 }
 0x1e0   : > { %v1101_v4 = vpop.f32.mrb[10].mxu1 }
 0x1e1   : > { %v2724_v8 = vpop.f32.mrb[11].mxu1  ;;  %v1234_v10 = vpack.c.bf16 %v1099_v7, %v1099_v7  ;;  %v2911_v4 = vld [vmem:[%s3459_s6 + $0x20] sm:$0xff]  }
 0x1e5   : > { %2744 = vmatmul.mubr.msk.bf16.vlgmr.msra.gmra.mrb[16].mxu0 %vm929_vm3, %v1234_v10 }
 0x1e6   : > { %v1228_v12 = vpop.f32.mrb[12].mxu1  ;;  %2755 = vmatprep.mubr.msk.bf16.mxu0 %vm2970_vm0, %v2969_v1 }
 0x1e7   : > { %v1229_v16 = vadd.f32 %v2525_v9, %v1228_v12  ;;  %v2739_v17 = vpop.f32.mrb[13].mxu1 }
 0x1e8   : > { %v1231_v18 = vpop.f32.mrb[14].mxu1 }
 0x1e9   : > { %v1294_v19 = vpack.c.bf16 %v1229_v16, %v1229_v16  ;;  %v2740_v20 = vpop.f32.mrb[15].mxu1 }
 0x1eb   : > { %2750 = vmatmul.mubr.msk.bf16.vlgmr.msra.gmra.mrb[16].mxu1 %vm929_vm3, %v1294_v19 }
 0x1ec   : > { %2760 = vmatpush3.bf16.msra.mxu1 %v1396_v21  ;;  %2761 = vmatprep.mubr.msk.bf16.mxu1 %vm2970_vm0, %v2969_v1 }
 0x1ed   : > { %2773 = vmatprep.subr.bf16.mxu1 %v2969_v1 }
 0x265   : > { %v979_v22 = vpop.xlane.xlu0 %978 }
 0x266   : > { %v980_v23 = vsub.f32 %v970_v50, %v979_v22  ;;  %v2562_v22 = vld [vmem:[%s3460_s7 + $0x8] sm:$0xf] }
 0x268   : > { %v981_v24 = vmul.f32 1.442695, %v980_v23  ;;  %v1700_v23 = vsel %vm994_vm2, %v2562_v22, 0 }
 0x26a   : > { %2925 = vpow2.f32 %v981_v24  ;;  %v2557_v24 = vld [vmem:[%s3463_s10 + $0x2] ss:$0 sm:$0xff] }
 0x274   : > { %v2926_v25 = vpop.eup %2925 }
 0x275   : > { %v983_v26 = vsel %vm976_vm4, %v2926_v25, 0.0 }
 0x276   : > { %984 = vadd.xlane.f32.xlu1 %v983_v26 }
 0x2b8   : > { %v1276_v27 = vpop.f32.mrb[16].mxu0 }
 0x2b9   : > { %v2745_v28 = vpop.f32.mrb[17].mxu0  ;;  %v1282_v29 = vsel %vm976_vm4, %v1276_v27, -inf }
 0x2ba   : > { %1283 = vmax.xlane.f32.xlu0 %v1282_v29  ;;  %v1279_v30 = vpop.f32.mrb[18].mxu0 }
 0x2bb   : > { %v2746_v31 = vpop.f32.mrb[19].mxu0 }
 0x2be   : > { %v1337_v32 = vpop.f32.mrb[16].mxu1 }
 0x2bf   : > { %v1343_v33 = vpack.c.bf16 %v1337_v32, %v1337_v32  ;;  %v2751_v34 = vpop.f32.mrb[17].mxu1 }
 0x2c0   : > { %v1340_v35 = vpop.f32.mrb[18].mxu1 }
 0x2c1   : > { %v1350_v36 = vsel %vm1348_vm5, %v1343_v33, 0  ;;  %v2752_v37 = vpop.f32.mrb[19].mxu1 }
 0x2c2   : > { %2754 = vmatpush3.bf16.msra.mxu0 %v1350_v36 }
 0x2c3   : > { %2765 = vmatprep.subr.bf16.mxu0 %v2969_v1 }
 0x303   : > { %v985_v38 = vpop.xlane.xlu1 %984 }
 0x304   : > { %2927 = vrcp.f32 %v985_v38 }
 0x30e   : > { %v2928_v39 = vpop.eup %2927 }
 0x30f   : > { %v987_v40 = vmul.f32 %v2928_v39, %v2926_v25 }
 0x311   : > { %v988_v41 = vpack.c.bf16 %v987_v40, %v987_v40 }
 0x313   : > { %2762 = vmatmul.mubr.msk.bf16.vlgmr.msra.gmra.mrb[20].mxu1 %vm1344_vm6, %v988_v41 }
 0x314   : > { %2777 = vmatprep.mubr.msk.bf16.mxu1 %vm2970_vm0, %v2969_v1  ;;  %2774 = vmatpush3.bf16.msra.mxu1 %v2907_v47  ;;  %v2915_v47 = vld [vmem:[%s3486_s3 + $0x30] sm:$0xff]  }
 0x315   : > { %2775 = vmatprep.subr.bf16.mxu1 %v2969_v1 }
 0x318   : > { %2776 = vmatpush3.bf16.msra.mxu1 %v2908_v48  ;;  %v2916_v48 = vld [vmem:[%s3486_s3 + $0x38] sm:$0xff]  }
 0x319   : > { %2789 = vmatprep.subr.bf16.mxu1 %v2969_v1 }
 0x31b   : > { %2778 = vmatmul.mubr.msk.bf16.vlgmr.msra.gmra.mrb[24].mxu1 %vm751_vm1, %v3147_v14 }
 0x31c   : > { %2791 = vmatprep.mubr.msk.bf16.mxu1 %vm2970_vm0, %v2969_v1 }
 0x347   : > { %v1284_v42 = vpop.xlane.xlu0 %1283 }
 0x348   : > { %v1285_v43 = vsub.f32 %v1276_v27, %v1284_v42 }
 0x34a   : > { %v1286_v44 = vmul.f32 1.442695, %v1285_v43 }
 0x34c   : > { %2929 = vpow2.f32 %v1286_v44 }
 0x356   : > { %v2930_v45 = vpop.eup %2929 }
 0x357   : > { %v1288_v46 = vsel %vm976_vm4, %v2930_v45, 0.0 }
 0x358   : > { %1289 = vadd.xlane.f32.xlu1 %v1288_v46 }
 0x3e5   : > { %v1290_v53 = vpop.xlane.xlu1 %1289 }
 0x3e6   : > { %v1432_v49 = vpop.f32.mrb[20].mxu1  ;;  %2931 = vrcp.f32 %v1290_v53 }
 0x3e7   : > { %v2763_v50 = vpop.f32.mrb[21].mxu1 }
 0x3e8   : > { %v1435_v51 = vpop.f32.mrb[22].mxu1 }
 0x3e9   : > { %v2764_v52 = vpop.f32.mrb[23].mxu1 }
 0x3ea   : > { %v2913_v52 = vld [vmem:[%s3458_s5 + $0x30] sm:$0xff]  }
 0x3ee   : > { %v1562_v60 = vpop.f32.mrb[24].mxu1 }
 0x3ef   : > { %v1563_v61 = vadd.f32 %v2548_v59, %v1562_v60  ;;  %v2779_v62 = vpop.f32.mrb[25].mxu1  ;;  %v2918_v59 = vld [vmem:[%s3459_s6 + $0x38] sm:$0xff]  }
 0x3f0   : > { %v2932_v54 = vpop.eup %2931  ;;  %v1565_v63 = vpop.f32.mrb[26].mxu1 }
 0x3f1   : > { %v1292_v55 = vmul.f32 %v2932_v54, %v2930_v45  ;;  %v1634_v0 = vpack.c.bf16 %v1563_v61, %v1563_v61  ;;  %v2780_v2 = vpop.f32.mrb[27].mxu1  ;;  %v2914_v54 = vld [vmem:[%s3458_s5 + $0x38] sm:$0xff]  }
 0x3f3   : > { %v1293_v57 = vpack.c.bf16 %v1292_v55, %v1292_v55  ;;  %v1639_v3 = vsel %vm929_vm3, %v1634_v0, 0  ;;  %v2579_v0 = vld [vmem:[%s3462_s9 + $0x3] ss:$0 sm:$0xff] }
 0x3f4   : > { %2790 = vmatpush3.bf16.xpose.msra.mxu1 %v1639_v3 }
 0x3f5   : > { %2756 = vmatmul.mubr.msk.bf16.vlgmr.msra.gmra.mrb[20].mxu0 %vm1344_vm6, %v1293_v57  ;;  %2801 = vmatprep.subr.bf16.mxu1 %v2969_v1 }
 0x3f6   : > { %2766 = vmatpush3.bf16.msra.mxu0 %v2909_v56  ;;  %2769 = vmatprep.mubr.msk.bf16.mxu0 %vm2970_vm0, %v2969_v1 }
 0x3f7   : > { %2767 = vmatprep.subr.bf16.mxu0 %v2969_v1 }
 0x3fa   : > { %2768 = vmatpush3.bf16.msra.mxu0 %v2910_v58  ;;  %v2917_v58 = vld [vmem:[%s3459_s6 + $0x30] sm:$0xff]  }
 0x3fb   : > { %2781 = vmatprep.subr.bf16.mxu0 %v2969_v1 }
 0x3fd   : > { %2770 = vmatmul.mubr.msk.bf16.vlgmr.msra.gmra.mrb[24].mxu0 %vm751_vm1, %v3140_v11 }
 0x3fe   : > { %2785 = vmatprep.mubr.msk.bf16.mxu0 %vm2970_vm0, %v2969_v1  ;;  %2782 = vmatpush3.bf16.msra.mxu0 %v2911_v4 }
 0x3ff   : > { %2783 = vmatprep.subr.bf16.mxu0 %v2969_v1 }
 0x402   : > { %2784 = vmatpush3.bf16.msra.mxu0 %v2912_v6 }
 0x403   : > { %2795 = vmatprep.subr.bf16.mxu0 %v2969_v1 }
 0x405   : > { %2786 = vmatmul.mubr.msk.bf16.vlgmr.msra.gmra.mrb[28].mxu0 %vm751_vm1, %v3156_v15 }
 0x406   : > { %2797 = vmatprep.mubr.msk.bf16.mxu0 %vm2970_vm0, %v2969_v1  ;;  %2796 = vmatpush3.bf16.msra.mxu0 %v1700_v23 }
 0x407   : > { %2807 = vmatprep.subr.bf16.mxu0 %v2969_v1 }
 0x4c8   : > { %v1386_v7 = vpop.f32.mrb[20].mxu0 }
 0x4c9   : > { %v3298_v8 = vadd.f32 %v1432_v49, %v1386_v7  ;;  %v2757_v9 = vpop.f32.mrb[21].mxu0 }
 0x4ca   : > { %v1389_v10 = vpop.f32.mrb[22].mxu0 }
 0x4cb   : > { %v2758_v12 = vpop.f32.mrb[23].mxu0 }
 0x4d0   : > { %v1497_v16 = vpop.f32.mrb[24].mxu0 }
 0x4d1   : > { %v1498_v17 = vadd.f32 %v2539_v13, %v1497_v16  ;;  %v2771_v18 = vpop.f32.mrb[25].mxu0  ;;  %v2593_v13 = vld [vmem:[%s3460_s7 + $0xc] sm:$0xf] }
 0x4d2   : > { %v1500_v19 = vpop.f32.mrb[26].mxu0  ;;  %v2052_v16 = vsel %vm994_vm2, %v2593_v13, 0 }
 0x4d3   : > { %v1633_v20 = vpack.c.bf16 %v1498_v17, %v1498_v17  ;;  %v2772_v21 = vpop.f32.mrb[27].mxu0  ;;  %v2588_v17 = vld [vmem:[%s3463_s10 + $0x3] ss:$0 sm:$0xff] }
 0x4d5   : > { %2792 = vmatmul.mubr.msk.bf16.vlgmr.msra.gmra.mrb[28].mxu1 %vm929_vm3, %v1633_v20 }
 0x4d6   : > { %2803 = vmatprep.mubr.msk.bf16.mxu1 %vm2970_vm0, %v2969_v1 }
 0x4d8   : > { %v1627_v25 = vpop.f32.mrb[28].mxu0 }
 0x4d9   : > { %v1628_v26 = vadd.f32 %v2557_v24, %v1627_v25  ;;  %v2787_v27 = vpop.f32.mrb[29].mxu0 }
 0x4da   : > { %v1630_v28 = vpop.f32.mrb[30].mxu0 }
 0x4db   : > { %v1693_v29 = vpack.c.bf16 %v1628_v26, %v1628_v26  ;;  %v2788_v30 = vpop.f32.mrb[31].mxu0 }
 0x4dd   : > { %2798 = vmatmul.mubr.msk.bf16.vlgmr.msra.gmra.mrb[32].mxu0 %vm929_vm3, %v1693_v29 }
 0x4de   : > { %2811 = vmatprep.mubr.msk.bf16.mxu0 %vm2970_vm0, %v2969_v1  ;;  %2808 = vmatpush3.bf16.msra.mxu0 %v2915_v47 }
 0x4df   : > { %2809 = vmatprep.subr.bf16.mxu0 %v2969_v1 }
 0x4e2   : > { %2810 = vmatpush3.bf16.msra.mxu0 %v2916_v48  ;;  %v2596_v48 = vld [vmem:[%s3464_s11] ss:$0 sm:$0xff] }
 0x4e3   : > { %2823 = vmatprep.subr.bf16.mxu0 %v2969_v1 }
 0x4e5   : > { %2812 = vmatmul.mubr.msk.bf16.vlgmr.msra.gmra.mrb[36].mxu0 %vm751_vm1, %v3140_v11 }
 0x4e6   : > { %2827 = vmatprep.mubr.msk.bf16.mxu0 %vm2970_vm0, %v2969_v1  ;;  %2824 = vmatpush3.bf16.msra.mxu0 %v2917_v58  ;;  %v2921_v58 = vld [vmem:[%s3469_s16] sm:$0xff]  }
 0x4e7   : > { %2825 = vmatprep.subr.bf16.mxu0 %v2969_v1 }
 0x4ea   : > { %2826 = vmatpush3.bf16.msra.mxu0 %v2918_v59  ;;  %v2922_v59 = vld [vmem:[%s3469_s16 + $0x8] sm:$0xff]  }
 0x4eb   : > { %2837 = vmatprep.subr.bf16.mxu0 %v2969_v1 }
 0x4ed   : > { %2828 = vmatmul.mubr.msk.bf16.vlgmr.msra.gmra.mrb[40].mxu0 %vm751_vm1, %v3156_v15  ;;  %v2570_v15 = vld [vmem:[%s3461_s8 + $0x3] ss:$0 sm:$0xff] }
 0x4ee   : > { %2839 = vmatprep.mubr.msk.bf16.mxu0 %vm2970_vm0, %v2969_v1  ;;  %2838 = vmatpush3.bf16.msra.mxu0 %v2052_v16 }
 0x4ef   : > { %2849 = vmatprep.subr.bf16.mxu0 %v2969_v1 }
 0x5a8   : > { %v1675_v31 = vpop.f32.mrb[28].mxu1 }
 0x5a9   : > { %v2793_v32 = vpop.f32.mrb[29].mxu1  ;;  %v1681_v33 = vsel %vm976_vm4, %v1675_v31, -inf }
 0x5aa   : > { %1682 = vmax.xlane.f32.xlu0 %v1681_v33  ;;  %v1678_v34 = vpop.f32.mrb[30].mxu1 }
 0x5ab   : > { %v2794_v35 = vpop.f32.mrb[31].mxu1 }
 0x5b0   : > { %v1736_v41 = vpop.f32.mrb[32].mxu0 }
 0x5b1   : > { %v2799_v42 = vpop.f32.mrb[33].mxu0  ;;  %v1742_v44 = vpack.c.bf16 %v1736_v41, %v1736_v41 }
 0x5b2   : > { %v1739_v43 = vpop.f32.mrb[34].mxu0 }
 0x5b3   : > { %v2800_v45 = vpop.f32.mrb[35].mxu0  ;;  %v1747_v46 = vsel %vm1348_vm5, %v1742_v44, 0 }
 0x5b4   : > { %2802 = vmatpush3.bf16.msra.mxu1 %v1747_v46 }
 0x5b5   : > { %2815 = vmatprep.subr.bf16.mxu1 %v2969_v1 }
 0x5b8   : > { %v1849_v11 = vpop.f32.mrb[36].mxu0 }
 0x5b9   : > { %v2813_v55 = vpop.f32.mrb[37].mxu0 }
 0x5ba   : > { %v1852_v56 = vpop.f32.mrb[38].mxu0 }
 0x5bb   : > { %v2814_v57 = vpop.f32.mrb[39].mxu0 }
 0x5bc   : > { %v2919_v57 = vld [vmem:[%s3467_s14] sm:$0xff]  }
 0x5c0   : > { %v1979_v18 = vpop.f32.mrb[40].mxu0 }
 0x5c1   : > { %v1980_v19 = vadd.f32 %v2588_v17, %v1979_v18  ;;  %v2829_v20 = vpop.f32.mrb[41].mxu0 }
 0x5c2   : > { %v1982_v21 = vpop.f32.mrb[42].mxu0 }
 0x5c3   : > { %v2045_v22 = vpack.c.bf16 %v1980_v19, %v1980_v19  ;;  %v2830_v23 = vpop.f32.mrb[43].mxu0 }
 0x5c5   : > { %2840 = vmatmul.mubr.msk.bf16.vlgmr.msra.gmra.mrb[44].mxu0 %vm929_vm3, %v2045_v22 }
 0x5c6   : > { %2853 = vmatprep.mubr.msk.bf16.mxu0 %vm2970_vm0, %v2969_v1  ;;  %2850 = vmatpush3.bf16.msra.mxu0 %v2919_v57 }
 0x5c7   : > { %2851 = vmatprep.subr.bf16.mxu0 %v2969_v1 }
 0x637   : > { %v1683_v36 = vpop.xlane.xlu0 %1682 }
 0x638   : > { %v1684_v37 = vsub.f32 %v1675_v31, %v1683_v36 }
 0x63a   : > { %v1685_v38 = vmul.f32 1.442695, %v1684_v37 }
 0x63c   : > { %2933 = vpow2.f32 %v1685_v38 }
 0x646   : > { %v2934_v39 = vpop.eup %2933 }
 0x647   : > { %v1687_v40 = vsel %vm976_vm4, %v2934_v39, 0.0 }
 0x648   : > { %1688 = vadd.xlane.f32.xlu1 %v1687_v40 }
 0x698   : > { %v2088_v34 = vpop.f32.mrb[44].mxu0 }
 0x699   : > { %v2841_v35 = vpop.f32.mrb[45].mxu0  ;;  %v2094_v37 = vpack.c.bf16 %v2088_v34, %v2088_v34 }
 0x69a   : > { %v2091_v36 = vpop.f32.mrb[46].mxu0  ;;  %v2609_v35 = vld [vmem:[%s3471_s18] ss:$0 sm:$0xff] }
 0x69b   : > { %v2842_v38 = vpop.f32.mrb[47].mxu0 }
 0x6d5   : > { %v1689_v49 = vpop.xlane.xlu1 %1688 }
 0x6d6   : > { %2935 = vrcp.f32 %v1689_v49 }
 0x6e0   : > { %v2936_v50 = vpop.eup %2935 }
 0x6e1   : > { %v1691_v51 = vmul.f32 %v2936_v50, %v2934_v39  ;;  %v2099_v39 = vsel %vm1348_vm5, %v2094_v37, 0  ;;  %v2610_v37 = vld [vmem:[%s3472_s19] ss:$0 sm:$0xff] }
 0x6e3   : > { %v1692_v53 = vpack.c.bf16 %v1691_v51, %v1691_v51 }
 0x6e5   : > { %2804 = vmatmul.mubr.msk.bf16.vlgmr.msra.gmra.mrb[32].mxu1 %vm1344_vm6, %v1692_v53 }
 0x6e6   : > { %2816 = vmatpush3.bf16.msra.mxu1 %v2913_v52  ;;  %2819 = vmatprep.mubr.msk.bf16.mxu1 %vm2970_vm0, %v2969_v1 }
 0x6e7   : > { %2817 = vmatprep.subr.bf16.mxu1 %v2969_v1 }
 0x6ea   : > { %2818 = vmatpush3.bf16.msra.mxu1 %v2914_v54 }
 0x6eb   : > { %2831 = vmatprep.subr.bf16.mxu1 %v2969_v1 }
 0x6ed   : > { %2820 = vmatmul.mubr.msk.bf16.vlgmr.msra.gmra.mrb[36].mxu1 %vm751_vm1, %v3147_v14 }
 0x6ee   : > { %2833 = vmatprep.mubr.msk.bf16.mxu1 %vm2970_vm0, %v2969_v1 }
 0x7b8   : > { %v1783_v14 = vpop.f32.mrb[32].mxu1 }
 0x7b9   : > { %v1789_v60 = vadd.f32 %v1783_v14, %v3298_v8  ;;  %v2805_v61 = vpop.f32.mrb[33].mxu1  ;;  %v1850_v8 = vadd.f32 %v2570_v15, %v1849_v11  ;;  %v2923_v15 = vld [vmem:[%s3469_s16 + $0x10] sm:$0xff]  }
 0x7ba   : > { %v1786_v62 = vpop.f32.mrb[34].mxu1 }
 0x7bb   : > { %v2806_v63 = vpop.f32.mrb[35].mxu1  ;;  %v1985_v12 = vpack.c.bf16 %v1850_v8, %v1850_v8 }
 0x7bc   : > { %v2597_v63 = vld [vmem:[%s3465_s12] ss:$0 sm:$0xff] }
 0x7c0   : > { %v1914_v2 = vpop.f32.mrb[36].mxu1 }
 0x7c1   : > { %v1915_v3 = vadd.f32 %v2579_v0, %v1914_v2  ;;  %v2821_v4 = vpop.f32.mrb[37].mxu1  ;;  %v2598_v2 = vld [vmem:[%s3466_s13] ss:$0 sm:$0xff] }
 0x7c2   : > { %v1917_v6 = vpop.f32.mrb[38].mxu1 }
 0x7c3   : > { %v1986_v7 = vpack.c.bf16 %v1915_v3, %v1915_v3  ;;  %v2822_v9 = vpop.f32.mrb[39].mxu1 }
 0x7c4   : > { %v2599_v9 = vld [vmem:[%s3468_s15] ss:$0 sm:$0xff] }
 0x7c5   : > { %v1991_v10 = vsel %vm929_vm3, %v1986_v7, 0  ;;  %v2924_v7 = vld [vmem:[%s3469_s16 + $0x18] sm:$0xff]  }
 0x7c6   : > { %2832 = vmatpush3.bf16.xpose.msra.mxu1 %v1991_v10 }
 0x7c7   : > { %2843 = vmatprep.subr.bf16.mxu1 %v2969_v1 }
 0x7cd   : > { %2834 = vmatmul.mubr.msk.bf16.vlgmr.msra.gmra.mrb[40].mxu1 %vm929_vm3, %v1985_v12 }
 0x7ce   : > { %2845 = vmatprep.mubr.msk.bf16.mxu1 %vm2970_vm0, %v2969_v1  ;;  %2844 = vmatpush3.bf16.msra.mxu1 %v2099_v39 }
 0x7cf   : > { %2857 = vmatprep.subr.bf16.mxu1 %v2969_v1 }
 0x8a0   : > { %v2027_v24 = vpop.f32.mrb[40].mxu1 }
 0x8a1   : > { %v2835_v25 = vpop.f32.mrb[41].mxu1  ;;  %v2033_v26 = vsel %vm976_vm4, %v2027_v24, -inf }
 0x8a2   : > { %2034 = vmax.xlane.f32.xlu0 %v2033_v26  ;;  %v2030_v27 = vpop.f32.mrb[42].mxu1 }
 0x8a3   : > { %v2836_v28 = vpop.f32.mrb[43].mxu1 }
 0x92f   : > { %v2035_v29 = vpop.xlane.xlu0 %2034 }
 0x930   : > { %v2036_v30 = vsub.f32 %v2027_v24, %v2035_v29 }
 0x932   : > { %v2037_v31 = vmul.f32 1.442695, %v2036_v30 }
 0x934   : > { %2937 = vpow2.f32 %v2037_v31 }
 0x93e   : > { %v2938_v32 = vpop.eup %2937 }
 0x93f   : > { %v2039_v33 = vsel %vm976_vm4, %v2938_v32, 0.0 }
 0x940   : > { %2040 = vadd.xlane.f32.xlu1 %v2039_v33 }
 0x9cd   : > { %v2041_v40 = vpop.xlane.xlu1 %2040 }
 0x9ce   : > { %2939 = vrcp.f32 %v2041_v40 }
 0x9d8   : > { %v2940_v41 = vpop.eup %2939 }
 0x9d9   : > { %v2043_v42 = vmul.f32 %v2940_v41, %v2938_v32 }
 0x9db   : > { %v2044_v43 = vpack.c.bf16 %v2043_v42, %v2043_v42 }
 0x9dd   : > { %2846 = vmatmul.mubr.msk.bf16.vlgmr.msra.gmra.mrb[44].mxu1 %vm1344_vm6, %v2044_v43 }
 0x9de   : > { %2865 = vmatprep.mubr.msk.bf16.mxu1 %vm2970_vm0, %v2969_v1  ;;  %2858 = vmatpush3.bf16.msra.mxu1 %v2921_v58 }
 0x9df   : > { %2859 = vmatprep.subr.bf16.mxu1 %v2969_v1 }
 0x9e2   : > { %2860 = vmatpush3.bf16.msra.mxu1 %v2922_v59 }
 0x9e3   : > { %2861 = vmatprep.subr.bf16.mxu1 %v2969_v1 }
 0x9e6   : > { %2862 = vmatpush3.bf16.msra.mxu1 %v2923_v15 }
 0x9e7   : > { %2863 = vmatprep.subr.bf16.mxu1 %v2969_v1  ;;  %v2603_v1 = vld [vmem:[%s3470_s17] ss:$0 sm:$0xff] }
 0x9ea   : > { %2864 = vmatpush3.bf16.msra.mxu1 %v2924_v7 }
 0xab0   : > { %v2135_v44 = vpop.f32.mrb[44].mxu1 }
 0xab1   : > { %v2141_v45 = vadd.f32 %v2135_v44, %v1789_v60  ;;  %v2847_v46 = vpop.f32.mrb[45].mxu1 }
 0xab2   : > { %v2138_v47 = vpop.f32.mrb[46].mxu1 }
 0xab3   : > { %v2142_v49 = vadd.f32 %v2141_v45, %v3125_v5  ;;  %v2848_v50 = vpop.f32.mrb[47].mxu1  ;;  %v2920_v5 = vld [vmem:[%s3467_s14 + $0x8] sm:$0xff]  }
 0xab4   : > { %2852 = vmatpush3.bf16.msra.mxu0 %v2920_v5 }
 0xab5   : > { %v2150_v51 = vadd.f32 %v2596_v48, %v2142_v49 }
 0xab7   : > { %v2154_v52 = vsel %vm2153_vm7, %v2150_v51, 0.0 }
 0xab8   : > { %2155 = vadd.xlane.f32.xlu0 %v2154_v52 }
 0xb45   : > { %v2156_v53 = vpop.xlane.xlu0 %2155 }
 0xb46   : > { %v2158_v54 = vmul.f32 0.03125, %v2156_v53 }
 0xb48   : > { %v2159_v11 = vsub.f32 %v2150_v51, %v2158_v54 }
 0xb4a   : > { %v2160_v55 = vmul.f32 %v2159_v11, %v2159_v11 }
 0xb4c   : > { %v2161_v56 = vsel %vm2153_vm7, %v2160_v55, 0.0 }
 0xb4d   : > { %2162 = vadd.xlane.f32.xlu1 %v2161_v56 }
 0xbda   : > { %v2163_v14 = vpop.xlane.xlu1 %2162 }
 0xbdb   : > { %v2164_v60 = vmul.f32 0.03125, %v2163_v14 }
 0xbdd   : > { %v2165_v61 = vadd.f32 1e-05, %v2164_v60 }
 0xbdf   : > { %2941 = vrsqrt.f32 %v2165_v61 }
 0xbe9   : > { %v2942_v62 = vpop.eup %2941 }
 0xbea   : > { %v2167_v0 = vmul.f32 %v2942_v62, %v2159_v11 }
 0xbec   : > { %v2174_v3 = vmul.f32 %v2597_v63, %v2167_v0 }
 0xbee   : > { %v2181_v4 = vadd.f32 %v2598_v2, %v2174_v3 }
 0xbf0   : > { %v2182_v6 = vpack.c.bf16 %v2181_v4, %v2181_v4 }
 0xbf2   : > { %2854 = vmatmul.mubr.msk.bf16.vlgmr.msra.gmra.mrb[48].mxu0 %vm751_vm1, %v2182_v6 }
 0xcc5   : > { %v2243_v10 = vpop.f32.mrb[48].mxu0 }
 0xcc6   : > { %v2244_v8 = vadd.f32 %v2599_v9, %v2243_v10  ;;  %v2855_v12 = vpop.f32.mrb[49].mxu0 }
 0xcc7   : > { %v2246_v13 = vpop.f32.mrb[50].mxu0 }
 0xcc8   : > { %v2249_v16 = vmax.f32 %v2244_v8, 0.0  ;;  %v2856_v17 = vpop.f32.mrb[51].mxu0 }
 0xcca   : > { %v2250_v18 = vpack.c.bf16 %v2249_v16, %v2249_v16 }
 0xccc   : > { %2866 = vmatmul.mubr.msk.bf16.vlgmr.msra.gmra.mrb[48].mxu1 %vm2290_vm8, %v2250_v18 }
 0xd9f   : > { %v2328_v19 = vpop.f32.mrb[48].mxu1 }
 0xda0   : > { %v2329_v20 = vadd.f32 %v2603_v1, %v2328_v19  ;;  %v2867_v21 = vpop.f32.mrb[49].mxu1 }
 0xda1   : > { %v2331_v22 = vpop.f32.mrb[50].mxu1 }
 0xda2   : > { %v2868_v23 = vpop.f32.mrb[51].mxu1  ;;  %v2334_v24 = vadd.f32 %v2329_v20, %v2181_v4 }
 0xda4   : > { %v2337_v25 = vsel %vm2153_vm7, %v2334_v24, 0.0 }
 0xda5   : > { %2338 = vadd.xlane.f32.xlu0 %v2337_v25 }
 0xe32   : > { %v2339_v26 = vpop.xlane.xlu0 %2338 }
 0xe33   : > { %v2340_v27 = vmul.f32 0.03125, %v2339_v26 }
 0xe35   : > { %v2341_v28 = vsub.f32 %v2334_v24, %v2340_v27 }
 0xe37   : > { %v2342_v29 = vmul.f32 %v2341_v28, %v2341_v28 }
 0xe39   : > { %v2343_v30 = vsel %vm2153_vm7, %v2342_v29, 0.0 }
 0xe3a   : > { %2344 = vadd.xlane.f32.xlu1 %v2343_v30 }
 0xec7   : > { %v2345_v31 = vpop.xlane.xlu1 %2344 }
 0xec8   : > { %v2346_v32 = vmul.f32 0.03125, %v2345_v31 }
 0xeca   : > { %v2347_v33 = vadd.f32 1e-05, %v2346_v32 }
 0xecc   : > { %2943 = vrsqrt.f32 %v2347_v33 }
 0xed6   : > { %v2944_v34 = vpop.eup %2943 }
 0xed7   : > { %v2349_v36 = vmul.f32 %v2944_v34, %v2341_v28 }
 0xed9   : > { %v2356_v38 = vmul.f32 %v2609_v35, %v2349_v36 }
 0xedb   : > { %v2363_v39 = vadd.f32 %v2610_v37, %v2356_v38 }
 0xedd   : > { %2364 = vst.msk [vmem:[%s717_s28] sm:$0xf] %vm2153_vm7, %v2363_v39 }
 0xede PF: > { %s3492_s20 = sld [smem:[#allocation3_spill]]  ;;  %s3493_s1 = sld [smem:[#allocation2_spill]] }
 0xedf   : > { %s3494_s22 = sld [smem:[#allocation4_spill]] }
 0xee4   : > { %s30_s23 = sadd.s32 1, %s3492_s20  }
 0xee5   : > { %p27_p5 = scmp.ge.s32.totalorder %s30_s23, 4  }
 0xee7   :  { %29 = sbr.rel (!%p27_p5) target bundleno = 7 (0x7), region = 160 }

// kernel: geotr_forward.25
= control target key start
LH: loop header
LB: loop body
LE: loop exit
PB: predicated region body
PF: predicated region fallthrough
CT: control target
= control target key end

     0   :  { %s1260_s12 = smov 0   ;;  %s1445_s0 = inlined_call_operand.vmem [shape: bf16[2,4,4,32], index: 0, kind: input, shape index: {}]   ;;  %s1446_s1 = inlined_call_operand.vmem [shape: bf16[9,32,64], index: 1, kind: input, shape index: {}]   ;;  %s1447_s2 = inlined_call_operand.vmem [shape: f32[1,64], index: 2, kind: input, shape index: {}]   ;;  %s1448_s3 = inlined_call_operand.vmem [shape: bf16[2,2,2,64], index: 3, kind: output, shape index: {}]  }
   0x1 LB: > { %s1021_s13 = sadd.s32 4294967295, %s1234_s12   ;;  %p1025_p0 = scmp.ge.s32.totalorder %s1234_s12, 1  ;;  %s1234_s12 = sphi %s1260_s12, %s13_s12  }
   0x2   : > { %p137_p1 = scmp.lt.s32.totalorder %s1234_s12, 3 }
   0x4   : > { %p138_p2 = pnand %p1025_p0, %p137_p1 }
   0x5   : > { %v1210_v0 = vld [vmem:[%s1446_s1 + $0x10] sm:$0xff] (!%p138_p2)   ;;  %v1236_v1 = vmov (!%p138_p2), 0.0   ;;  %v1211_v2 = vld [vmem:[%s1446_s1] sm:$0xff] (!%p138_p2)   ;;  %v181_v3 = vlaneseq (!%p138_p2)  ;;  %v1212_v4 = vld [vmem:[%s1446_s1 + $0x18] sm:$0xff] (!%p138_p2)   ;;  %vm1237_vm0 = vmmov (!%p138_p2), 0   ;;  %p160_p3 = scmp.lt.s32.totalorder (!%p138_p2), %s1021_s13, 1 }
   0x6   : > { %141 = sbr.rel (%p138_p2) target bundleno = 287 (0x11f), region = 32  ;;  %1126 = vmatprep.subr.bf16.mxu0 (!%p138_p2), %v1236_v1  ;;  %1134 = vmatprep.subr.bf16.mxu1 (!%p138_p2), %v1236_v1  ;;  %v1213_v5 = vld [vmem:[%s1446_s1 + $0x8] sm:$0xff] (!%p138_p2)   ;;  %vm210_vm1 = vsmask.f32 (!%p138_p2), 256  ;;  %v1238_v6 = vmov (!%p138_p2), 1966171168  }
   0x7   : > { %1127 = vmatpush3.bf16.msra.mxu0 (!%p138_p2), %v1210_v0  ;;  %1130 = vmatprep.mubr.msk.bf16.mxu0 (!%p138_p2), %vm1237_vm0, %v1236_v1  ;;  %v179_v7 = vunpack.c.l.s4 (!%p138_p2), %v1238_v6  ;;  %v1290_v8 = vshrl.u32 (!%p138_p2), %v181_v3, 7  ;;  %vm211_vm2 = vsmask.f32 (!%p138_p2), 1284  ;;  %vm213_vm3 = vsmask.f32 (!%p138_p2), 2312  ;;  %v1215_v29 = vld [vmem:[%s1446_s1 + $0x30] sm:$0xff] (!%p138_p2)  }
   0x8   : > { %1135 = vmatpush3.bf16.msra.mxu1 (!%p138_p2), %v1211_v2  ;;  %1128 = vmatprep.subr.bf16.mxu0 (!%p138_p2), %v1236_v1  ;;  %vm212_vm4 = vmor (!%p138_p2), %vm210_vm1, %vm211_vm2  ;;  %vm215_vm5 = vsmask.f32 (!%p138_p2), 3340  ;;  %vm217_vm7 = vsmask.f32 (!%p138_p2), 4368  ;;  %vm219_vm8 = vsmask.f32 (!%p138_p2), 5396 }
   0x9   : > { %1136 = vmatprep.subr.bf16.mxu1 (!%p138_p2), %v1236_v1  ;;  %1138 = vmatprep.mubr.msk.bf16.mxu1 (!%p138_p2), %vm1237_vm0, %v1236_v1  ;;  %v180_v9 = vunpack.c.0.s8 (!%p138_p2), %v179_v7  ;;  %vm214_vm6 = vmor (!%p138_p2), %vm212_vm4, %vm213_vm3  ;;  %vm221_vm10 = vsmask.f32 (!%p138_p2), 6424  ;;  %vm223_vm13 = vsmask.f32 (!%p138_p2), 7452  ;;  %vm297_vm1 = vcmask (!%p138_p2), 261120   ;;  %v1217_v37 = vld [vmem:[%s1446_s1 + $0x38] sm:$0xff] (!%p138_p2)  }
   0xa   : > { %vm216_vm9 = vmor (!%p138_p2), %vm214_vm6, %vm215_vm5  ;;  %v1214_v39 = vld [vmem:[%s1446_s1 + $0x20] sm:$0xff] (!%p138_p2)   ;;  %v1219_v48 = vld [vmem:[%s1446_s1 + $0x50] sm:$0xff] (!%p138_p2)  }
   0xb   : > { %1129 = vmatpush3.bf16.msra.mxu0 (!%p138_p2), %v1212_v4  ;;  %v1301_v13 = vsub.s32 (!%p138_p2), %v180_v9, %v1290_v8  ;;  %vm218_vm11 = vmor (!%p138_p2), %vm216_vm9, %vm217_vm7  ;;  %v1216_v51 = vld [vmem:[%s1446_s1 + $0x28] sm:$0xff] (!%p138_p2)   ;;  %v1221_v54 = vld [vmem:[%s1446_s1 + $0x58] sm:$0xff] (!%p138_p2)  }
   0xc   : > { %1137 = vmatpush3.bf16.msra.mxu1 (!%p138_p2), %v1213_v5  ;;  %1142 = vmatprep.subr.bf16.mxu0 (!%p138_p2), %v1236_v1  ;;  %vm220_vm12 = vmor (!%p138_p2), %vm218_vm11, %vm219_vm8  ;;  %v1218_v57 = vld [vmem:[%s1446_s1 + $0x40] sm:$0xff] (!%p138_p2)   ;;  %v1223_v60 = vld [vmem:[%s1446_s1 + $0x70] sm:$0xff] (!%p138_p2)  }
   0xd   : > { %s1452_s13 = smov (!%p160_p3, %s1021_s13), 1  ;;  %1150 = vmatprep.subr.bf16.mxu1 %v1236_v1  ;;  %vm222_vm14 = vmor %vm220_vm12, %vm221_vm10  ;;  %v1220_v62 = vld [vmem:[%s1446_s1 + $0x48] sm:$0xff]   ;;  %v1225_v0 = vld [vmem:[%s1446_s1 + $0x78] sm:$0xff]  }
   0xe   : > { %s1098_s22 = sshll.u32 %s1452_s13, 3  ;;  %vm1312_vm15 = vmor %vm222_vm14, %vm223_vm13  ;;  %v1222_v4 = vld [vmem:[%s1446_s1 + $0x60] sm:$0xff]   ;;  %v1224_v7 = vld [vmem:[%s1446_s1 + $0x68] sm:$0xff]   ;;  %s1028_s4 = sshll.u32 %s1452_s13, 1 }
   0xf   : > { %s164_s25 = scalar_lea.vmem %s1445_s0, %s1098_s22  ;;  %s168_s7 = scalar_lea.vmem %s1448_s3, %s1028_s4 }
  0x10   : > { %v170_v10 = vld [vmem:[%s164_s25] sm:$0x3]  ;;  %v171_v11 = vld [vmem:[%s164_s25 + $0x2] sm:$0x3]  ;;  %v1298_v12 = vld [vmem:[%s164_s25 + $0x4] sm:$0x3] }
  0x11   : > { %v341_v14 = vcombine.low %v170_v10, %v171_v11  ;;  %v184_v15 = vrot.slane %v170_v10, %v1301_v13  ;;  %v192_v16 = vrot.slane %v171_v11, %v1301_v13  ;;  %v1305_v17 = vld [vmem:[%s164_s25 + $0x6] sm:$0x3]  ;;  %v1310_v21 = vrot.slane %v1298_v12, %v1301_v13 }
  0x12   : > { %v492_v25 = vcombine.low %v171_v11, %v1298_v12  ;;  %v1319_v26 = vrot.slane %v1305_v17, %v1301_v13  ;;  %v720_v3 = vcombine.low %v1298_v12, %v1305_v17  ;;  %v1226_v11 = vld [vmem:[%s1446_s1 + $0x80] sm:$0xff]  }
  0x13   : > { %v348_v18 = vrot.slane %v341_v14, %v1301_v13  ;;  %v185_v19 = vcombine.high %v184_v15, %v184_v15  ;;  %v193_v20 = vcombine.high %v192_v16, %v192_v16  ;;  %v226_v23 = vshrl.u32 %v184_v15, 16  ;;  %v1227_v14 = vld [vmem:[%s1446_s1 + $0x88] sm:$0xff]  }
  0x14   : > { %v235_v24 = vshrl.u32 %v192_v16, 16  ;;  %v201_v31 = vcombine.high %v1310_v21, %v1310_v21  ;;  %v499_v35 = vrot.slane %v492_v25, %v1301_v13  ;;  %v209_v36 = vcombine.high %v1319_v26, %v1319_v26 }
  0x15   : > { %v231_v27 = vshll.u32 %v185_v19, 16  ;;  %v240_v28 = vshll.u32 %v193_v20, 16  ;;  %v355_v30 = vrot.slane %v348_v18, %v1301_v13  ;;  %v1047_v40 = vcombine.high %v184_v15, %v192_v16 }
  0x16   : > { %v244_v41 = vshrl.u32 %v1310_v21, 16  ;;  %v249_v42 = vshll.u32 %v201_v31, 16  ;;  %v253_v43 = vshrl.u32 %v1319_v26, 16  ;;  %v506_v45 = vrot.slane %v499_v35, %v1301_v13 }
  0x17   : > { %v233_v32 = vsel %vm1312_vm15, %v226_v23, %v231_v27  ;;  %v242_v33 = vsel %vm1312_vm15, %v235_v24, %v240_v28  ;;  %1139 = vmatmul.mubr.msk.bf16.vlgmr.msra.gmra.mrb[0].mxu1 %vm297_vm1, %v355_v30  ;;  %v1069_v46 = vcombine.high %v192_v16, %v1310_v21  ;;  %v258_v47 = vshll.u32 %v209_v36, 16 }
  0x18   : > { %v270_v34 = vcombine.low %v233_v32, %v242_v33  ;;  %1151 = vmatpush3.bf16.msra.mxu1 %v1215_v29  ;;  %1154 = vmatprep.mubr.msk.bf16.mxu1 %vm1237_vm0, %v1236_v1  ;;  %v423_v49 = vrot.slane %v1047_v40, %v1301_v13  ;;  %v251_v50 = vsel %vm1312_vm15, %v244_v41, %v249_v42 }
  0x19   : > { %1152 = vmatprep.subr.bf16.mxu1 %v1236_v1  ;;  %v651_v52 = vrot.slane %v1069_v46, %v1301_v13  ;;  %v260_v53 = vsel %vm1312_vm15, %v253_v43, %v258_v47  ;;  %v568_v55 = vcombine.low %v242_v33, %v251_v50  ;;  %v727_v6 = vrot.slane %v720_v3, %v1301_v13 }
  0x1a   : > { %v277_v38 = vrot.slane %v270_v34, %v1301_v13  ;;  %v430_v56 = vrot.slane %v423_v49, %v1301_v13  ;;  %v796_v58 = vcombine.low %v251_v50, %v260_v53  ;;  %v1091_v10 = vcombine.high %v1310_v21, %v1319_v26 }
  0x1b   : > { %v658_v59 = vrot.slane %v651_v52, %v1301_v13  ;;  %v575_v61 = vrot.slane %v568_v55, %v1301_v13  ;;  %v734_v9 = vrot.slane %v727_v6, %v1301_v13  ;;  %v1239_v53 = vmov 1983009808  }
  0x1c   : > { %v284_v44 = vrot.slane %v277_v38, %v1301_v13  ;;  %1153 = vmatpush3.bf16.msra.mxu1 %v1217_v37  ;;  %v803_v63 = vrot.slane %v796_v58, %v1301_v13  ;;  %v879_v12 = vrot.slane %v1091_v10, %v1301_v13 }
  0x1d   : > { %1166 = vmatprep.subr.bf16.mxu1 %v1236_v1  ;;  %v582_v2 = vrot.slane %v575_v61, %v1301_v13 }
  0x1e   : > { %1131 = vmatmul.mubr.msk.bf16.vlgmr.msra.gmra.mrb[0].mxu0 %vm297_vm1, %v284_v44  ;;  %v810_v5 = vrot.slane %v803_v63, %v1301_v13  ;;  %v886_v15 = vrot.slane %v879_v12, %v1301_v13 }
  0x1f   : > { %1143 = vmatpush3.bf16.msra.mxu0 %v1214_v39  ;;  %1146 = vmatprep.mubr.msk.bf16.mxu0 %vm1237_vm0, %v1236_v1 }
  0x20   : > { %1144 = vmatprep.subr.bf16.mxu0 %v1236_v1  ;;  %1155 = vmatmul.mubr.msk.bf16.vlgmr.msra.gmra.mrb[4].mxu1 %vm297_vm1, %v506_v45 }
  0x21   : > { %1167 = vmatpush3.bf16.msra.mxu1 %v1219_v48  ;;  %1170 = vmatprep.mubr.msk.bf16.mxu1 %vm1237_vm0, %v1236_v1 }
  0x22   : > { %1168 = vmatprep.subr.bf16.mxu1 %v1236_v1 }
  0x23   : > { %1145 = vmatpush3.bf16.msra.mxu0 %v1216_v51 }
  0x24   : > { %1158 = vmatprep.subr.bf16.mxu0 %v1236_v1 }
  0x25   : > { %1169 = vmatpush3.bf16.msra.mxu1 %v1221_v54  ;;  %v954_v54 = vunpack.c.l.s4 %v1239_v53 }
  0x26   : > { %1147 = vmatmul.mubr.msk.bf16.vlgmr.msra.gmra.mrb[4].mxu0 %vm297_vm1, %v430_v56  ;;  %1182 = vmatprep.subr.bf16.mxu1 %v1236_v1 }
  0x27   : > { %1159 = vmatpush3.bf16.msra.mxu0 %v1218_v57  ;;  %1162 = vmatprep.mubr.msk.bf16.mxu0 %vm1237_vm0, %v1236_v1  ;;  %v955_v55 = vunpack.c.0.s8 %v954_v54  ;;  %v1095_v57 = vld [vmem:[%s1447_s2] ss:$0 sm:$0xff] }
  0x28   : > { %1160 = vmatprep.subr.bf16.mxu0 %v1236_v1  ;;  %1171 = vmatmul.mubr.msk.bf16.vlgmr.msra.gmra.mrb[8].mxu1 %vm297_vm1, %v658_v59 }
  0x29   : > { %1183 = vmatpush3.bf16.msra.mxu1 %v1223_v60  ;;  %1186 = vmatprep.mubr.msk.bf16.mxu1 %vm1237_vm0, %v1236_v1 }
  0x2a   : > { %1184 = vmatprep.subr.bf16.mxu1 %v1236_v1 }
  0x2b   : > { %1161 = vmatpush3.bf16.msra.mxu0 %v1220_v62  ;;  %v958_v62 = vsub.s32 %v955_v55, %v1290_v8 }
  0x2c   : > { %1174 = vmatprep.subr.bf16.mxu0 %v1236_v1 }
  0x2d   : > { %1185 = vmatpush3.bf16.msra.mxu1 %v1225_v0 }
  0x2e   : > { %1163 = vmatmul.mubr.msk.bf16.vlgmr.msra.gmra.mrb[8].mxu0 %vm297_vm1, %v582_v2 }
  0x2f   : > { %1175 = vmatpush3.bf16.msra.mxu0 %v1222_v4  ;;  %1178 = vmatprep.mubr.msk.bf16.mxu0 %vm1237_vm0, %v1236_v1 }
  0x30   : > { %1176 = vmatprep.subr.bf16.mxu0 %v1236_v1  ;;  %1187 = vmatmul.mubr.msk.bf16.vlgmr.msra.gmra.mrb[12].mxu1 %vm297_vm1, %v810_v5 }
  0x33   : > { %1177 = vmatpush3.bf16.msra.mxu0 %v1224_v7 }
  0x34   : > { %1190 = vmatprep.subr.bf16.mxu0 %v1236_v1 }
  0x36   : > { %1179 = vmatmul.mubr.msk.bf16.vlgmr.msra.gmra.mrb[12].mxu0 %vm297_vm1, %v734_v9 }
  0x37   : > { %1191 = vmatpush3.bf16.msra.mxu0 %v1226_v11  ;;  %1194 = vmatprep.mubr.msk.bf16.mxu0 %vm1237_vm0, %v1236_v1  ;;  %vm965_vm0 = vcmask 516096  }
  0x38   : > { %1192 = vmatprep.subr.bf16.mxu0 %v1236_v1 }
  0x3b   : > { %1193 = vmatpush3.bf16.msra.mxu0 %v1227_v14 }
  0x3e   : > { %1195 = vmatmul.mubr.msk.bf16.vlgmr.msra.gmra.mrb[16].mxu0 %vm297_vm1, %v886_v15 }
  0xea   : > { %v405_v16 = vpop.f32.mrb[0].mxu1 }
  0xeb   : > { %v1140_v17 = vpop.f32.mrb[1].mxu1 }
  0xec   : > { %v408_v18 = vpop.f32.mrb[2].mxu1 }
  0xed   : > { %v1141_v19 = vpop.f32.mrb[3].mxu1 }
  0xf1   : > { %v335_v20 = vpop.f32.mrb[0].mxu0 }
  0xf2   : > { %v406_v21 = vadd.f32 %v405_v16, %v335_v20  ;;  %v1132_v22 = vpop.f32.mrb[1].mxu0 }
  0xf3   : > { %v338_v23 = vpop.f32.mrb[2].mxu0  ;;  %v556_v24 = vpop.f32.mrb[4].mxu1 }
  0xf4   : > { %v1133_v25 = vpop.f32.mrb[3].mxu0  ;;  %v1156_v26 = vpop.f32.mrb[5].mxu1 }
  0xf5   : > { %v559_v27 = vpop.f32.mrb[6].mxu1 }
  0xf6   : > { %v1157_v28 = vpop.f32.mrb[7].mxu1 }
  0xf9   : > { %v480_v29 = vpop.f32.mrb[4].mxu0 }
  0xfa   : > { %v486_v1 = vadd.f32 %v480_v29, %v406_v21  ;;  %v1148_v30 = vpop.f32.mrb[5].mxu0 }
  0xfb   : > { %v483_v13 = vpop.f32.mrb[6].mxu0  ;;  %v708_v31 = vpop.f32.mrb[8].mxu1 }
  0xfc   : > { %v562_v32 = vadd.f32 %v556_v24, %v486_v1  ;;  %v1149_v33 = vpop.f32.mrb[7].mxu0  ;;  %v1172_v34 = vpop.f32.mrb[9].mxu1 }
  0xfd   : > { %v711_v35 = vpop.f32.mrb[10].mxu1 }
  0xfe   : > { %v1173_v36 = vpop.f32.mrb[11].mxu1 }
 0x101   : > { %v632_v37 = vpop.f32.mrb[8].mxu0 }
 0x102   : > { %v638_v38 = vadd.f32 %v632_v37, %v562_v32  ;;  %v1164_v39 = vpop.f32.mrb[9].mxu0 }
 0x103   : > { %v635_v40 = vpop.f32.mrb[10].mxu0  ;;  %v860_v41 = vpop.f32.mrb[12].mxu1 }
 0x104   : > { %v714_v42 = vadd.f32 %v708_v31, %v638_v38  ;;  %v1165_v43 = vpop.f32.mrb[11].mxu0  ;;  %v1188_v44 = vpop.f32.mrb[13].mxu1 }
 0x105   : > { %v863_v45 = vpop.f32.mrb[14].mxu1 }
 0x106   : > { %v1189_v46 = vpop.f32.mrb[15].mxu1 }
 0x109   : > { %v784_v47 = vpop.f32.mrb[12].mxu0 }
 0x10a   : > { %v790_v48 = vadd.f32 %v784_v47, %v714_v42  ;;  %v1180_v49 = vpop.f32.mrb[13].mxu0 }
 0x10b   : > { %v787_v50 = vpop.f32.mrb[14].mxu0 }
 0x10c   : > { %v866_v51 = vadd.f32 %v860_v41, %v790_v48  ;;  %v1181_v52 = vpop.f32.mrb[15].mxu0 }
 0x111   : > { %v936_v56 = vpop.f32.mrb[16].mxu0 }
 0x112   : > { %v942_v58 = vadd.f32 %v936_v56, %v866_v51  ;;  %v1196_v59 = vpop.f32.mrb[17].mxu0 }
 0x113   : > { %v939_v60 = vpop.f32.mrb[18].mxu0 }
 0x114   : > { %v950_v61 = vadd.f32 %v1095_v57, %v942_v58  ;;  %v1197_v63 = vpop.f32.mrb[19].mxu0 }
 0x116   : > { %v951_v0 = vmax.f32 %v950_v61, 0.0 }
 0x118   : > { %v959_v2 = vrot.slane %v951_v0, %v958_v62 }
 0x11a   : > { %v960_v3 = vcombine.high %v959_v2, %v959_v2  ;;  %v963_v4 = vpack.c.bf16 %v959_v2, %v959_v2 }
 0x11c   : > { %v964_v5 = vpack.c.bf16 %v960_v3, %v960_v3  ;;  %966 = vst.msk [vmem:[%s168_s7] sm:$0x1] %vm965_vm0, %v963_v4 }
 0x11e   : > { %967 = vst.msk [vmem:[%s168_s7 + $0x1] sm:$0x1] %vm965_vm0, %v964_v5 }
 0x11f PF: > { %s13_s12 = sadd.s32 1, %s1234_s12  }
 0x120   : > { %p10_p4 = scmp.ge.s32.totalorder %s13_s12, 4  }
 0x122   :  { %12 = sbr.rel (!%p10_p4) target bundleno = 1 (0x1), region = 70 }

// kernel: geotr_forward.15
= control target key start
LH: loop header
LB: loop body
LE: loop exit
PB: predicated region body
PF: predicated region fallthrough
CT: control target
= control target key end

     0   :  { %s2425_s21 = smov 0   ;;  %s2735_s0 = inlined_call_operand.vmem [shape: f32[2,4,32], index: 0, kind: input, shape index: {}]   ;;  %s2736_s1 = inlined_call_operand.vmem [shape: f32[2,4,32], index: 1, kind: input, shape index: {}]   ;;  %s2737_s2 = inlined_call_operand.vmem [shape: bf16[4,32,8], index: 2, kind: input, shape index: {}]   ;;  %s2738_s3 = inlined_call_operand.vmem [shape: bf16[4,32,8], index: 3, kind: input, shape index: {}]   ;;  %s2739_s4 = inlined_call_operand.vmem [shape: bf16[4,32,8], index: 4, kind: input, shape index: {}]   ;;  %s2740_s5 = inlined_call_operand.vmem [shape: bf16[4,8,32], index: 5, kind: input, shape index: {}]   ;;  %s2741_s6 = inlined_call_operand.vmem [shape: f32[4,1,8], index: 6, kind: input, shape index: {}]   ;;  %s2742_s7 = inlined_call_operand.vmem [shape: f32[4,1,8], index: 7, kind: input, shape index: {}]   ;;  %s2743_s8 = inlined_call_operand.vmem [shape: f32[4,1,8], index: 8, kind: input, shape index: {}]   ;;  %s2744_s9 = inlined_call_operand.vmem [shape: f32[1,32], index: 9, kind: input, shape index: {}]   ;;  %s2745_s10 = inlined_call_operand.vmem [shape: f32[1,32], index: 10, kind: input, shape index: {}]   ;;  %s2746_s11 = inlined_call_operand.vmem [shape: f32[1,32], index: 11, kind: input, shape index: {}]   ;;  %s2747_s12 = inlined_call_operand.vmem [shape: f32[2,4,32], index: 12, kind: output, shape index: {}]  }
   0x1 LB: > { %s1949_s22 = sadd.s32 4294967295, %s2356_s21   ;;  %p1953_p0 = scmp.ge.s32.totalorder %s2356_s21, 1  ;;  %s2356_s21 = sphi %s2425_s21, %s22_s21  }
   0x2   : > { %p370_p1 = scmp.lt.s32.totalorder %s2356_s21, 3 }
   0x4   : > { %p371_p2 = pnand %p1953_p0, %p370_p1 }
   0x5   : > { %v2308_v0 = vld [vmem:[%s2737_s2] sm:$0xff] (!%p371_p2)   ;;  %v2358_v1 = vmov (!%p371_p2), 0.0   ;;  %v2310_v3 = vld [vmem:[%s2737_s2 + $0x8] sm:$0xff] (!%p371_p2)   ;;  %vm2359_vm0 = vmmov (!%p371_p2), 0   ;;  %p414_p3 = scmp.lt.s32.totalorder (!%p371_p2), %s1949_s22, 1  ;;  %vm455_vm1 = vcmask (!%p371_p2), 261120  }
   0x6   : > { %374 = sbr.rel (%p371_p2) target bundleno = 3050 (0xbea), region = 68  ;;  %2130 = vmatprep.subr.bf16.mxu0 (!%p371_p2), %v2358_v1  ;;  %2138 = vmatprep.subr.bf16.mxu1 (!%p371_p2), %v2358_v1  ;;  %v2309_v2 = vld [vmem:[%s2738_s3] sm:$0xff] (!%p371_p2)   ;;  %v2311_v4 = vld [vmem:[%s2738_s3 + $0x8] sm:$0xff] (!%p371_p2)   ;;  %vm695_vm2 = vcmask (!%p371_p2), 1043456   ;;  %vm630_vm3 = vcmask (!%p371_p2), 64512   ;;  %v2314_v33 = vld [vmem:[%s2737_s2 + $0x10] sm:$0xff] (!%p371_p2)  }
   0x7   : > { %2131 = vmatpush3.bf16.msra.mxu0 (!%p371_p2), %v2308_v0  ;;  %2134 = vmatprep.mubr.msk.bf16.mxu0 (!%p371_p2), %vm2359_vm0, %v2358_v1  ;;  %v2312_v7 = vld [vmem:[%s2739_s4] sm:$0xff] (!%p371_p2)   ;;  %v2313_v10 = vld [vmem:[%s2739_s4 + $0x8] sm:$0xff] (!%p371_p2)   ;;  %v2315_v34 = vld [vmem:[%s2738_s3 + $0x10] sm:$0xff] (!%p371_p2)   ;;  %vm677_vm4 = vcmask (!%p371_p2), 27648   ;;  %vm1049_vm5 = vcmask (!%p371_p2), 1041408   ;;  %vm1045_vm6 = vcmask (!%p371_p2), 31744  }
   0x8   : > { %2139 = vmatpush3.bf16.msra.mxu1 (!%p371_p2), %v2309_v2  ;;  %2132 = vmatprep.subr.bf16.mxu0 (!%p371_p2), %v2358_v1  ;;  %v691_v12 = vld [vmem:[%s2740_s5] sm:$0xf] (!%p371_p2)  ;;  %v2316_v38 = vld [vmem:[%s2737_s2 + $0x18] sm:$0xff] (!%p371_p2)   ;;  %v2318_v40 = vld [vmem:[%s2739_s4 + $0x10] sm:$0xff] (!%p371_p2)   ;;  %vm1854_vm7 = vcmask (!%p371_p2), 257024  }
   0x9   : > { %2140 = vmatprep.subr.bf16.mxu1 (!%p371_p2), %v2358_v1  ;;  %2142 = vmatprep.mubr.msk.bf16.mxu1 (!%p371_p2), %vm2359_vm0, %v2358_v1  ;;  %v697_v13 = vsel (!%p371_p2), %vm695_vm2, %v691_v12, 0  ;;  %v1961_v14 = vld [vmem:[%s2742_s7] ss:$0 sm:$0xff] (!%p371_p2)  ;;  %v2317_v39 = vld [vmem:[%s2738_s3 + $0x18] sm:$0xff] (!%p371_p2)   ;;  %v1999_v42 = vld [vmem:[%s2740_s5 + $0x4] sm:$0xf] (!%p371_p2) }
   0xa   : > { %v1957_v25 = vld [vmem:[%s2741_s6] ss:$0 sm:$0xff] (!%p371_p2)  ;;  %v2319_v41 = vld [vmem:[%s2739_s4 + $0x18] sm:$0xff] (!%p371_p2)   ;;  %v1002_v43 = vsel (!%p371_p2), %vm695_vm2, %v1999_v42, 0  ;;  %v1985_v53 = vld [vmem:[%s2742_s7 + $0x1] ss:$0 sm:$0xff] (!%p371_p2) }
   0xb   : > { %2133 = vmatpush3.bf16.msra.mxu0 (!%p371_p2), %v2310_v3  ;;  %v1965_v27 = vld [vmem:[%s2743_s8] ss:$0 sm:$0xff] (!%p371_p2)  ;;  %v1976_v60 = vld [vmem:[%s2741_s6 + $0x1] ss:$0 sm:$0xff] (!%p371_p2) }
   0xc   : > { %2141 = vmatpush3.bf16.msra.mxu1 (!%p371_p2), %v2311_v4  ;;  %2146 = vmatprep.subr.bf16.mxu0 (!%p371_p2), %v2358_v1  ;;  %v1994_v4 = vld [vmem:[%s2743_s8 + $0x1] ss:$0 sm:$0xff] (!%p371_p2) }
   0xd   : > { %s2749_s22 = smov (!%p414_p3, %s1949_s22), 1  ;;  %2154 = vmatprep.subr.bf16.mxu1 %v2358_v1  ;;  %v2320_v42 = vld [vmem:[%s2738_s3 + $0x20] sm:$0xff]  }
   0xe   : > { %s2453_s13 = sshll.u32 %s2749_s22, 2 }
   0xf   : > { %s417_s16 = scalar_lea.vmem %s2735_s0, %s2453_s13  ;;  %s421_s19 = scalar_lea.vmem %s2736_s1, %s2453_s13 }
  0x10   : > { %v2464_v5 = vld [vmem:[%s417_s16] sm:$0xf]  ;;  %s425_s20 = scalar_lea.vmem %s2747_s12, %s2453_s13 }
  0x11   : > { %v428_v6 = vld [vmem:[%s421_s19] sm:$0xf]  ;;  %v2487_v11 = vpack.c.bf16 %v2464_v5, %v2464_v5 }
  0x12   : > { %v429_v8 = vadd.f32 %v428_v6, %v2464_v5 }
  0x14   : > { %v2471_v9 = vpack.c.bf16 %v429_v8, %v429_v8 }
  0x16   : > { %2135 = vmatmul.mubr.msk.bf16.vlgmr.msra.gmra.mrb[0].mxu0 %vm455_vm1, %v2471_v9  ;;  %2143 = vmatmul.mubr.msk.bf16.vlgmr.msra.gmra.mrb[0].mxu1 %vm455_vm1, %v2471_v9 }
  0x17   : > { %2147 = vmatpush3.bf16.msra.mxu0 %v2312_v7  ;;  %2150 = vmatprep.mubr.msk.bf16.mxu0 %vm2359_vm0, %v2358_v1 }
  0x18   : > { %2148 = vmatprep.subr.bf16.mxu0 %v2358_v1  ;;  %2156 = vmatprep.mubr.msk.bf16.mxu1 %vm2359_vm0, %v2358_v1 }
  0x1b   : > { %2149 = vmatpush3.bf16.msra.mxu0 %v2313_v10 }
  0x1c   : > { %2160 = vmatprep.subr.bf16.mxu0 %v2358_v1 }
  0x1e   : > { %2151 = vmatmul.mubr.msk.bf16.vlgmr.msra.gmra.mrb[4].mxu0 %vm455_vm1, %v2487_v11 }
  0x1f   : > { %2162 = vmatprep.mubr.msk.bf16.mxu0 %vm2359_vm0, %v2358_v1  ;;  %2161 = vmatpush3.bf16.msra.mxu0 %v697_v13 }
  0x20   : > { %2174 = vmatprep.subr.bf16.mxu0 %v2358_v1 }
  0xe9   : > { %v493_v15 = vpop.f32.mrb[0].mxu0  ;;  %v556_v16 = vpop.f32.mrb[0].mxu1 }
  0xea   : > { %v557_v17 = vadd.f32 %v1961_v14, %v556_v16  ;;  %v2136_v18 = vpop.f32.mrb[1].mxu0  ;;  %v2144_v19 = vpop.f32.mrb[1].mxu1  ;;  %v494_v28 = vadd.f32 %v1957_v25, %v493_v15 }
  0xeb   : > { %v496_v20 = vpop.f32.mrb[2].mxu0  ;;  %v559_v21 = vpop.f32.mrb[2].mxu1 }
  0xec   : > { %v629_v22 = vpack.c.bf16 %v557_v17, %v557_v17  ;;  %v2137_v23 = vpop.f32.mrb[3].mxu0  ;;  %v2145_v24 = vpop.f32.mrb[3].mxu1  ;;  %v628_v35 = vpack.c.bf16 %v494_v28, %v494_v28 }
  0xee   : > { %v635_v26 = vsel %vm630_vm3, %v629_v22, 0 }
  0xef   : > { %2155 = vmatpush3.bf16.xpose.msra.mxu1 %v635_v26 }
  0xf0   : > { %2166 = vmatprep.subr.bf16.mxu1 %v2358_v1 }
  0xf1   : > { %v622_v29 = vpop.f32.mrb[4].mxu0 }
  0xf2   : > { %v623_v30 = vadd.f32 %v1965_v27, %v622_v29  ;;  %v2152_v31 = vpop.f32.mrb[5].mxu0 }
  0xf3   : > { %v625_v32 = vpop.f32.mrb[6].mxu0 }
  0xf4   : > { %v690_v36 = vpack.c.bf16 %v623_v30, %v623_v30  ;;  %v2153_v37 = vpop.f32.mrb[7].mxu0 }
  0xf6   : > { %2157 = vmatmul.mubr.msk.bf16.vlgmr.msra.gmra.mrb[4].mxu1 %vm630_vm3, %v628_v35  ;;  %2163 = vmatmul.mubr.msk.bf16.vlgmr.msra.gmra.mrb[8].mxu0 %vm630_vm3, %v690_v36 }
  0xf7   : > { %2167 = vmatpush3.bf16.msra.mxu1 %v2314_v33  ;;  %2175 = vmatpush3.bf16.msra.mxu0 %v2315_v34 }
  0xf8   : > { %2168 = vmatprep.subr.bf16.mxu1 %v2358_v1  ;;  %2176 = vmatprep.subr.bf16.mxu0 %v2358_v1 }
  0xf9   : > { %2170 = vmatprep.mubr.msk.bf16.mxu1 %vm2359_vm0, %v2358_v1  ;;  %2178 = vmatprep.mubr.msk.bf16.mxu0 %vm2359_vm0, %v2358_v1 }
  0xfb   : > { %2169 = vmatpush3.bf16.msra.mxu1 %v2316_v38  ;;  %2177 = vmatpush3.bf16.msra.mxu0 %v2317_v39 }
  0xfc   : > { %2182 = vmatprep.subr.bf16.mxu1 %v2358_v1  ;;  %2190 = vmatprep.subr.bf16.mxu0 %v2358_v1 }
  0xfe   : > { %2171 = vmatmul.mubr.msk.bf16.vlgmr.msra.gmra.mrb[8].mxu1 %vm455_vm1, %v2471_v9  ;;  %2179 = vmatmul.mubr.msk.bf16.vlgmr.msra.gmra.mrb[12].mxu0 %vm455_vm1, %v2471_v9 }
  0xff   : > { %2183 = vmatpush3.bf16.msra.mxu1 %v2318_v40  ;;  %2186 = vmatprep.mubr.msk.bf16.mxu1 %vm2359_vm0, %v2358_v1 }
 0x100   : > { %2184 = vmatprep.subr.bf16.mxu1 %v2358_v1  ;;  %2192 = vmatprep.mubr.msk.bf16.mxu0 %vm2359_vm0, %v2358_v1 }
 0x103   : > { %2185 = vmatpush3.bf16.msra.mxu1 %v2319_v41 }
 0x104   : > { %2196 = vmatprep.subr.bf16.mxu1 %v2358_v1 }
 0x106   : > { %2187 = vmatmul.mubr.msk.bf16.vlgmr.msra.gmra.mrb[12].mxu1 %vm455_vm1, %v2487_v11 }
 0x107   : > { %2198 = vmatprep.mubr.msk.bf16.mxu1 %vm2359_vm0, %v2358_v1  ;;  %2197 = vmatpush3.bf16.msra.mxu1 %v1002_v43  ;;  %v2321_v43 = vld [vmem:[%s2738_s3 + $0x28] sm:$0xff]  }
 0x108   : > { %2208 = vmatprep.subr.bf16.mxu1 %v2358_v1 }
 0x1c9   : > { %v671_v44 = vpop.f32.mrb[4].mxu1  ;;  %v733_v45 = vpop.f32.mrb[8].mxu0 }
 0x1ca   : > { %v2158_v46 = vpop.f32.mrb[5].mxu1  ;;  %v2164_v47 = vpop.f32.mrb[9].mxu0  ;;  %v678_v48 = vsel %vm677_vm4, %v671_v44, -inf  ;;  %v739_v7 = vpack.c.bf16 %v733_v45, %v733_v45 }
 0x1cb   : > { %679 = vmax.xlane.f32.xlu0 %v678_v48  ;;  %v674_v49 = vpop.f32.mrb[6].mxu1  ;;  %v736_v50 = vpop.f32.mrb[10].mxu0 }
 0x1cc   : > { %v2159_v51 = vpop.f32.mrb[7].mxu1  ;;  %v2165_v52 = vpop.f32.mrb[11].mxu0  ;;  %v1097_v16 = vsel %vm1049_vm5, %v739_v7, 0  ;;  %v2008_v7 = vld [vmem:[%s2741_s6 + $0x2] ss:$0 sm:$0xff] }
 0x1cd   : > { %v2322_v51 = vld [vmem:[%s2737_s2 + $0x20] sm:$0xff]  }
 0x1d1   : > { %v864_v54 = vpop.f32.mrb[12].mxu0  ;;  %v799_v55 = vpop.f32.mrb[8].mxu1 }
 0x1d2   : > { %v865_v56 = vadd.f32 %v1985_v53, %v864_v54  ;;  %v2180_v57 = vpop.f32.mrb[13].mxu0  ;;  %v2172_v58 = vpop.f32.mrb[9].mxu1  ;;  %v800_v3 = vadd.f32 %v1976_v60, %v799_v55  ;;  %v2323_v53 = vld [vmem:[%s2737_s2 + $0x28] sm:$0xff]   ;;  %v2017_v54 = vld [vmem:[%s2742_s7 + $0x2] ss:$0 sm:$0xff] }
 0x1d3   : > { %v867_v59 = vpop.f32.mrb[14].mxu0  ;;  %v802_v61 = vpop.f32.mrb[10].mxu1 }
 0x1d4   : > { %v936_v62 = vpack.c.bf16 %v865_v56, %v865_v56  ;;  %v2181_v63 = vpop.f32.mrb[15].mxu0  ;;  %v2173_v0 = vpop.f32.mrb[11].mxu1  ;;  %v935_v8 = vpack.c.bf16 %v800_v3, %v800_v3 }
 0x1d5   : > { %v2325_v63 = vld [vmem:[%s2739_s4 + $0x28] sm:$0xff]  }
 0x1d6   : > { %v941_v2 = vsel %vm630_vm3, %v936_v62, 0  ;;  %v2324_v62 = vld [vmem:[%s2739_s4 + $0x20] sm:$0xff]  }
 0x1d7   : > { %2191 = vmatpush3.bf16.xpose.msra.mxu0 %v941_v2 }
 0x1d8   : > { %2202 = vmatprep.subr.bf16.mxu0 %v2358_v1 }
 0x1d9   : > { %v929_v6 = vpop.f32.mrb[12].mxu1 }
 0x1da   : > { %v930_v10 = vadd.f32 %v1994_v4, %v929_v6  ;;  %v2188_v12 = vpop.f32.mrb[13].mxu1 }
 0x1db   : > { %v932_v13 = vpop.f32.mrb[14].mxu1 }
 0x1dc   : > { %v995_v14 = vpack.c.bf16 %v930_v10, %v930_v10  ;;  %v2189_v15 = vpop.f32.mrb[15].mxu1 }
 0x1de   : > { %2193 = vmatmul.mubr.msk.bf16.vlgmr.msra.gmra.mrb[16].mxu0 %vm630_vm3, %v935_v8  ;;  %2199 = vmatmul.mubr.msk.bf16.vlgmr.msra.gmra.mrb[16].mxu1 %vm630_vm3, %v995_v14 }
 0x1df   : > { %2209 = vmatpush3.bf16.msra.mxu1 %v1097_v16  ;;  %2210 = vmatprep.mubr.msk.bf16.mxu1 %vm2359_vm0, %v2358_v1  ;;  %v2031_v16 = vld [vmem:[%s2740_s5 + $0x8] sm:$0xf] }
 0x1e0   : > { %2222 = vmatprep.subr.bf16.mxu1 %v2358_v1  ;;  %2204 = vmatprep.mubr.msk.bf16.mxu0 %vm2359_vm0, %v2358_v1 }
 0x258   : > { %v680_v17 = vpop.xlane.xlu0 %679 }
 0x259   : > { %v681_v18 = vsub.f32 %v671_v44, %v680_v17  ;;  %v1401_v17 = vsel %vm695_vm2, %v2031_v16, 0 }
 0x25b   : > { %v682_v19 = vmul.f32 1.442695, %v681_v18  ;;  %v2026_v18 = vld [vmem:[%s2743_s8 + $0x2] ss:$0 sm:$0xff] }
 0x25d   : > { %2332 = vpow2.f32 %v682_v19 }
 0x267   : > { %v2333_v20 = vpop.eup %2332 }
 0x268   : > { %v684_v21 = vsel %vm677_vm4, %v2333_v20, 0.0 }
 0x269   : > { %685 = vadd.xlane.f32.xlu1 %v684_v21 }
 0x2b1   : > { %v977_v22 = vpop.f32.mrb[16].mxu0  ;;  %v1038_v27 = vpop.f32.mrb[16].mxu1 }
 0x2b2   : > { %v2194_v23 = vpop.f32.mrb[17].mxu0  ;;  %v983_v24 = vsel %vm677_vm4, %v977_v22, -inf  ;;  %v1044_v28 = vpack.c.bf16 %v1038_v27, %v1038_v27  ;;  %v2200_v29 = vpop.f32.mrb[17].mxu1 }
 0x2b3   : > { %984 = vmax.xlane.f32.xlu0 %v983_v24  ;;  %v980_v25 = vpop.f32.mrb[18].mxu0  ;;  %v1041_v30 = vpop.f32.mrb[18].mxu1 }
 0x2b4   : > { %v2195_v26 = vpop.f32.mrb[19].mxu0  ;;  %v1051_v31 = vsel %vm1049_vm5, %v1044_v28, 0  ;;  %v2201_v32 = vpop.f32.mrb[19].mxu1 }
 0x2b5   : > { %2203 = vmatpush3.bf16.msra.mxu0 %v1051_v31 }
 0x2b6   : > { %2214 = vmatprep.subr.bf16.mxu0 %v2358_v1 }
 0x2f6   : > { %v686_v33 = vpop.xlane.xlu1 %685 }
 0x2f7   : > { %2334 = vrcp.f32 %v686_v33 }
 0x301   : > { %v2335_v34 = vpop.eup %2334 }
 0x302   : > { %v688_v35 = vmul.f32 %v2335_v34, %v2333_v20 }
 0x304   : > { %v689_v36 = vpack.c.bf16 %v688_v35, %v688_v35 }
 0x306   : > { %2211 = vmatmul.mubr.msk.bf16.vlgmr.msra.gmra.mrb[20].mxu1 %vm1045_vm6, %v689_v36 }
 0x307   : > { %2226 = vmatprep.mubr.msk.bf16.mxu1 %vm2359_vm0, %v2358_v1  ;;  %2223 = vmatpush3.bf16.msra.mxu1 %v2320_v42  ;;  %v2329_v42 = vld [vmem:[%s2737_s2 + $0x38] sm:$0xff]  }
 0x308   : > { %2224 = vmatprep.subr.bf16.mxu1 %v2358_v1 }
 0x30b   : > { %2225 = vmatpush3.bf16.msra.mxu1 %v2321_v43 }
 0x30c   : > { %2238 = vmatprep.subr.bf16.mxu1 %v2358_v1 }
 0x30e   : > { %2227 = vmatmul.mubr.msk.bf16.vlgmr.msra.gmra.mrb[24].mxu1 %vm455_vm1, %v2471_v9 }
 0x30f   : > { %2240 = vmatprep.mubr.msk.bf16.mxu1 %vm2359_vm0, %v2358_v1 }
 0x340   : > { %v985_v37 = vpop.xlane.xlu0 %984 }
 0x341   : > { %v986_v38 = vsub.f32 %v977_v22, %v985_v37 }
 0x343   : > { %v987_v39 = vmul.f32 1.442695, %v986_v38 }
 0x345   : > { %2336 = vpow2.f32 %v987_v39 }
 0x34f   : > { %v2337_v40 = vpop.eup %2336 }
 0x350   : > { %v989_v41 = vsel %vm677_vm4, %v2337_v40, 0.0 }
 0x351   : > { %990 = vadd.xlane.f32.xlu1 %v989_v41  ;;  %v2328_v41 = vld [vmem:[%s2737_s2 + $0x30] sm:$0xff]  }
 0x3d9   : > { %v1133_v44 = vpop.f32.mrb[20].mxu1 }
 0x3da   : > { %v2212_v45 = vpop.f32.mrb[21].mxu1 }
 0x3db   : > { %v1136_v46 = vpop.f32.mrb[22].mxu1 }
 0x3dc   : > { %v2213_v47 = vpop.f32.mrb[23].mxu1  ;;  %v2326_v46 = vld [vmem:[%s2738_s3 + $0x30] sm:$0xff]  }
 0x3de   : > { %v991_v48 = vpop.xlane.xlu1 %990 }
 0x3df   : > { %2338 = vrcp.f32 %v991_v48  ;;  %v2327_v48 = vld [vmem:[%s2738_s3 + $0x38] sm:$0xff]  }
 0x3e1   : > { %v1263_v55 = vpop.f32.mrb[24].mxu1 }
 0x3e2   : > { %v1264_v56 = vadd.f32 %v2017_v54, %v1263_v55  ;;  %v2228_v57 = vpop.f32.mrb[25].mxu1  ;;  %v2331_v54 = vld [vmem:[%s2739_s4 + $0x38] sm:$0xff]  }
 0x3e3   : > { %v1266_v58 = vpop.f32.mrb[26].mxu1 }
 0x3e4   : > { %v1335_v59 = vpack.c.bf16 %v1264_v56, %v1264_v56  ;;  %v2229_v60 = vpop.f32.mrb[27].mxu1 }
 0x3e6   : > { %v1340_v61 = vsel %vm630_vm3, %v1335_v59, 0  ;;  %v2048_v59 = vld [vmem:[%s2742_s7 + $0x3] ss:$0 sm:$0xff] }
 0x3e7   : > { %2239 = vmatpush3.bf16.xpose.msra.mxu1 %v1340_v61 }
 0x3e8   : > { %2250 = vmatprep.subr.bf16.mxu1 %v2358_v1 }
 0x3e9   : > { %v2339_v49 = vpop.eup %2338 }
 0x3ea   : > { %v993_v50 = vmul.f32 %v2339_v49, %v2337_v40 }
 0x3ec   : > { %v994_v52 = vpack.c.bf16 %v993_v50, %v993_v50 }
 0x3ee   : > { %2205 = vmatmul.mubr.msk.bf16.vlgmr.msra.gmra.mrb[20].mxu0 %vm1045_vm6, %v994_v52 }
 0x3ef   : > { %2215 = vmatpush3.bf16.msra.mxu0 %v2322_v51  ;;  %2218 = vmatprep.mubr.msk.bf16.mxu0 %vm2359_vm0, %v2358_v1 }
 0x3f0   : > { %2216 = vmatprep.subr.bf16.mxu0 %v2358_v1 }
 0x3f3   : > { %2217 = vmatpush3.bf16.msra.mxu0 %v2323_v53  ;;  %v2330_v53 = vld [vmem:[%s2739_s4 + $0x30] sm:$0xff]  }
 0x3f4   : > { %2230 = vmatprep.subr.bf16.mxu0 %v2358_v1 }
 0x3f6   : > { %2219 = vmatmul.mubr.msk.bf16.vlgmr.msra.gmra.mrb[24].mxu0 %vm455_vm1, %v2471_v9 }
 0x3f7   : > { %2234 = vmatprep.mubr.msk.bf16.mxu0 %vm2359_vm0, %v2358_v1  ;;  %2231 = vmatpush3.bf16.msra.mxu0 %v2324_v62 }
 0x3f8   : > { %2232 = vmatprep.subr.bf16.mxu0 %v2358_v1 }
 0x3fb   : > { %2233 = vmatpush3.bf16.msra.mxu0 %v2325_v63 }
 0x3fc   : > { %2244 = vmatprep.subr.bf16.mxu0 %v2358_v1 }
 0x3fe   : > { %2235 = vmatmul.mubr.msk.bf16.vlgmr.msra.gmra.mrb[28].mxu0 %vm455_vm1, %v2487_v11 }
 0x3ff   : > { %2246 = vmatprep.mubr.msk.bf16.mxu0 %vm2359_vm0, %v2358_v1  ;;  %2245 = vmatpush3.bf16.msra.mxu0 %v1401_v17 }
 0x400   : > { %2256 = vmatprep.subr.bf16.mxu0 %v2358_v1 }
 0x4c1   : > { %v1087_v0 = vpop.f32.mrb[20].mxu0 }
 0x4c2   : > { %v2629_v2 = vadd.f32 %v1133_v44, %v1087_v0  ;;  %v2206_v3 = vpop.f32.mrb[21].mxu0 }
 0x4c3   : > { %v1090_v4 = vpop.f32.mrb[22].mxu0 }
 0x4c4   : > { %v2207_v6 = vpop.f32.mrb[23].mxu0 }
 0x4c9   : > { %v1198_v8 = vpop.f32.mrb[24].mxu0 }
 0x4ca   : > { %v1199_v10 = vadd.f32 %v2008_v7, %v1198_v8  ;;  %v2220_v12 = vpop.f32.mrb[25].mxu0  ;;  %v2062_v7 = vld [vmem:[%s2740_s5 + $0xc] sm:$0xf] }
 0x4cb   : > { %v1201_v13 = vpop.f32.mrb[26].mxu0  ;;  %v1753_v8 = vsel %vm695_vm2, %v2062_v7, 0 }
 0x4cc   : > { %v1334_v14 = vpack.c.bf16 %v1199_v10, %v1199_v10  ;;  %v2221_v15 = vpop.f32.mrb[27].mxu0  ;;  %v2057_v10 = vld [vmem:[%s2743_s8 + $0x3] ss:$0 sm:$0xff] }
 0x4ce   : > { %2241 = vmatmul.mubr.msk.bf16.vlgmr.msra.gmra.mrb[28].mxu1 %vm630_vm3, %v1334_v14 }
 0x4cf   : > { %2252 = vmatprep.mubr.msk.bf16.mxu1 %vm2359_vm0, %v2358_v1 }
 0x4d1   : > { %v1328_v19 = vpop.f32.mrb[28].mxu0 }
 0x4d2   : > { %v1329_v20 = vadd.f32 %v2026_v18, %v1328_v19  ;;  %v2236_v21 = vpop.f32.mrb[29].mxu0 }
 0x4d3   : > { %v1331_v22 = vpop.f32.mrb[30].mxu0 }
 0x4d4   : > { %v1394_v23 = vpack.c.bf16 %v1329_v20, %v1329_v20  ;;  %v2237_v24 = vpop.f32.mrb[31].mxu0 }
 0x4d6   : > { %2247 = vmatmul.mubr.msk.bf16.vlgmr.msra.gmra.mrb[32].mxu0 %vm630_vm3, %v1394_v23 }
 0x4d7   : > { %2260 = vmatprep.mubr.msk.bf16.mxu0 %vm2359_vm0, %v2358_v1  ;;  %2257 = vmatpush3.bf16.msra.mxu0 %v2328_v41  ;;  %v2065_v41 = vld [vmem:[%s2744_s9] ss:$0 sm:$0xff] }
 0x4d8   : > { %2258 = vmatprep.subr.bf16.mxu0 %v2358_v1 }
 0x4db   : > { %2259 = vmatpush3.bf16.msra.mxu0 %v2329_v42 }
 0x4dc   : > { %2272 = vmatprep.subr.bf16.mxu0 %v2358_v1 }
 0x4de   : > { %2261 = vmatmul.mubr.msk.bf16.vlgmr.msra.gmra.mrb[36].mxu0 %vm455_vm1, %v2471_v9 }
 0x4df   : > { %2276 = vmatprep.mubr.msk.bf16.mxu0 %vm2359_vm0, %v2358_v1  ;;  %2273 = vmatpush3.bf16.msra.mxu0 %v2330_v53 }
 0x4e0   : > { %2274 = vmatprep.subr.bf16.mxu0 %v2358_v1 }
 0x4e3   : > { %2275 = vmatpush3.bf16.msra.mxu0 %v2331_v54 }
 0x4e4   : > { %2286 = vmatprep.subr.bf16.mxu0 %v2358_v1 }
 0x4e6   : > { %2277 = vmatmul.mubr.msk.bf16.vlgmr.msra.gmra.mrb[40].mxu0 %vm455_vm1, %v2487_v11  ;;  %v2039_v11 = vld [vmem:[%s2741_s6 + $0x3] ss:$0 sm:$0xff] }
 0x4e7   : > { %2288 = vmatprep.mubr.msk.bf16.mxu0 %vm2359_vm0, %v2358_v1  ;;  %2287 = vmatpush3.bf16.msra.mxu0 %v1753_v8 }
 0x5a1   : > { %v1376_v25 = vpop.f32.mrb[28].mxu1 }
 0x5a2   : > { %v2242_v26 = vpop.f32.mrb[29].mxu1  ;;  %v1382_v27 = vsel %vm677_vm4, %v1376_v25, -inf }
 0x5a3   : > { %1383 = vmax.xlane.f32.xlu0 %v1382_v27  ;;  %v1379_v28 = vpop.f32.mrb[30].mxu1 }
 0x5a4   : > { %v2243_v29 = vpop.f32.mrb[31].mxu1 }
 0x5a9   : > { %v1437_v35 = vpop.f32.mrb[32].mxu0 }
 0x5aa   : > { %v2248_v36 = vpop.f32.mrb[33].mxu0  ;;  %v1443_v39 = vpack.c.bf16 %v1437_v35, %v1437_v35 }
 0x5ab   : > { %v1440_v37 = vpop.f32.mrb[34].mxu0 }
 0x5ac   : > { %v2249_v38 = vpop.f32.mrb[35].mxu0  ;;  %v1448_v40 = vsel %vm1049_vm5, %v1443_v39, 0 }
 0x5ad   : > { %2251 = vmatpush3.bf16.msra.mxu1 %v1448_v40 }
 0x5ae   : > { %2264 = vmatprep.subr.bf16.mxu1 %v2358_v1 }
 0x5b1   : > { %v1550_v49 = vpop.f32.mrb[36].mxu0 }
 0x5b2   : > { %v2262_v50 = vpop.f32.mrb[37].mxu0 }
 0x5b3   : > { %v1553_v51 = vpop.f32.mrb[38].mxu0 }
 0x5b4   : > { %v2263_v52 = vpop.f32.mrb[39].mxu0 }
 0x5b9   : > { %v1680_v12 = vpop.f32.mrb[40].mxu0 }
 0x5ba   : > { %v1681_v13 = vadd.f32 %v2057_v10, %v1680_v12  ;;  %v2278_v14 = vpop.f32.mrb[41].mxu0 }
 0x5bb   : > { %v1683_v15 = vpop.f32.mrb[42].mxu0 }
 0x5bc   : > { %v1746_v16 = vpack.c.bf16 %v1681_v13, %v1681_v13  ;;  %v2279_v17 = vpop.f32.mrb[43].mxu0 }
 0x5be   : > { %2289 = vmatmul.mubr.msk.bf16.vlgmr.msra.gmra.mrb[44].mxu0 %vm630_vm3, %v1746_v16 }
 0x630   : > { %v1384_v30 = vpop.xlane.xlu0 %1383 }
 0x631   : > { %v1385_v31 = vsub.f32 %v1376_v25, %v1384_v30 }
 0x633   : > { %v1386_v32 = vmul.f32 1.442695, %v1385_v31 }
 0x635   : > { %2340 = vpow2.f32 %v1386_v32 }
 0x63f   : > { %v2341_v33 = vpop.eup %2340 }
 0x640   : > { %v1388_v34 = vsel %vm677_vm4, %v2341_v33, 0.0 }
 0x641   : > { %1389 = vadd.xlane.f32.xlu1 %v1388_v34 }
 0x691   : > { %v1789_v27 = vpop.f32.mrb[44].mxu0 }
 0x692   : > { %v2290_v28 = vpop.f32.mrb[45].mxu0  ;;  %v1795_v31 = vpack.c.bf16 %v1789_v27, %v1789_v27 }
 0x693   : > { %v1792_v29 = vpop.f32.mrb[46].mxu0 }
 0x694   : > { %v2291_v30 = vpop.f32.mrb[47].mxu0  ;;  %v1800_v32 = vsel %vm1049_vm5, %v1795_v31, 0 }
 0x6ce   : > { %v1390_v43 = vpop.xlane.xlu1 %1389 }
 0x6cf   : > { %2342 = vrcp.f32 %v1390_v43 }
 0x6d9   : > { %v2343_v44 = vpop.eup %2342 }
 0x6da   : > { %v1392_v45 = vmul.f32 %v2343_v44, %v2341_v33 }
 0x6dc   : > { %v1393_v47 = vpack.c.bf16 %v1392_v45, %v1392_v45 }
 0x6de   : > { %2253 = vmatmul.mubr.msk.bf16.vlgmr.msra.gmra.mrb[32].mxu1 %vm1045_vm6, %v1393_v47 }
 0x6df   : > { %2265 = vmatpush3.bf16.msra.mxu1 %v2326_v46  ;;  %2268 = vmatprep.mubr.msk.bf16.mxu1 %vm2359_vm0, %v2358_v1 }
 0x6e0   : > { %2266 = vmatprep.subr.bf16.mxu1 %v2358_v1 }
 0x6e3   : > { %2267 = vmatpush3.bf16.msra.mxu1 %v2327_v48 }
 0x6e4   : > { %2280 = vmatprep.subr.bf16.mxu1 %v2358_v1 }
 0x6e6   : > { %2269 = vmatmul.mubr.msk.bf16.vlgmr.msra.gmra.mrb[36].mxu1 %vm455_vm1, %v2471_v9 }
 0x6e7   : > { %2282 = vmatprep.mubr.msk.bf16.mxu1 %vm2359_vm0, %v2358_v1 }
 0x7b1   : > { %v1484_v9 = vpop.f32.mrb[32].mxu1 }
 0x7b2   : > { %v1490_v55 = vadd.f32 %v1484_v9, %v2629_v2  ;;  %v2254_v56 = vpop.f32.mrb[33].mxu1  ;;  %v1551_v2 = vadd.f32 %v2039_v11, %v1550_v49 }
 0x7b3   : > { %v1487_v57 = vpop.f32.mrb[34].mxu1 }
 0x7b4   : > { %v2255_v58 = vpop.f32.mrb[35].mxu1  ;;  %v1686_v6 = vpack.c.bf16 %v1551_v2, %v1551_v2 }
 0x7b9   : > { %v1615_v60 = vpop.f32.mrb[36].mxu1 }
 0x7ba   : > { %v1616_v61 = vadd.f32 %v2048_v59, %v1615_v60  ;;  %v2270_v62 = vpop.f32.mrb[37].mxu1 }
 0x7bb   : > { %v1618_v63 = vpop.f32.mrb[38].mxu1 }
 0x7bc   : > { %v1687_v0 = vpack.c.bf16 %v1616_v61, %v1616_v61  ;;  %v2271_v3 = vpop.f32.mrb[39].mxu1 }
 0x7be   : > { %v1692_v4 = vsel %vm630_vm3, %v1687_v0, 0 }
 0x7bf   : > { %2281 = vmatpush3.bf16.xpose.msra.mxu1 %v1692_v4 }
 0x7c0   : > { %2292 = vmatprep.subr.bf16.mxu1 %v2358_v1 }
 0x7c6   : > { %2283 = vmatmul.mubr.msk.bf16.vlgmr.msra.gmra.mrb[40].mxu1 %vm630_vm3, %v1686_v6 }
 0x7c7   : > { %2294 = vmatprep.mubr.msk.bf16.mxu1 %vm2359_vm0, %v2358_v1  ;;  %2293 = vmatpush3.bf16.msra.mxu1 %v1800_v32 }
 0x899   : > { %v1728_v1 = vpop.f32.mrb[40].mxu1 }
 0x89a   : > { %v2284_v18 = vpop.f32.mrb[41].mxu1  ;;  %v1734_v19 = vsel %vm677_vm4, %v1728_v1, -inf }
 0x89b   : > { %1735 = vmax.xlane.f32.xlu0 %v1734_v19  ;;  %v1731_v20 = vpop.f32.mrb[42].mxu1 }
 0x89c   : > { %v2285_v21 = vpop.f32.mrb[43].mxu1 }
 0x928   : > { %v1736_v22 = vpop.xlane.xlu0 %1735 }
 0x929   : > { %v1737_v23 = vsub.f32 %v1728_v1, %v1736_v22 }
 0x92b   : > { %v1738_v24 = vmul.f32 1.442695, %v1737_v23 }
 0x92d   : > { %2344 = vpow2.f32 %v1738_v24 }
 0x937   : > { %v2345_v25 = vpop.eup %2344 }
 0x938   : > { %v1740_v26 = vsel %vm677_vm4, %v2345_v25, 0.0 }
 0x939   : > { %1741 = vadd.xlane.f32.xlu1 %v1740_v26 }
 0x9c6   : > { %v1742_v33 = vpop.xlane.xlu1 %1741 }
 0x9c7   : > { %2346 = vrcp.f32 %v1742_v33 }
 0x9d1   : > { %v2347_v34 = vpop.eup %2346 }
 0x9d2   : > { %v1744_v35 = vmul.f32 %v2347_v34, %v2345_v25 }
 0x9d4   : > { %v1745_v36 = vpack.c.bf16 %v1744_v35, %v1744_v35 }
 0x9d6   : > { %2295 = vmatmul.mubr.msk.bf16.vlgmr.msra.gmra.mrb[44].mxu1 %vm1045_vm6, %v1745_v36 }
 0xaa9   : > { %v1836_v37 = vpop.f32.mrb[44].mxu1 }
 0xaaa   : > { %v1842_v38 = vadd.f32 %v1836_v37, %v1490_v55  ;;  %v2296_v39 = vpop.f32.mrb[45].mxu1  ;;  %v2067_v55 = vld [vmem:[%s2746_s11] ss:$0 sm:$0xff] }
 0xaab   : > { %v1839_v40 = vpop.f32.mrb[46].mxu1 }
 0xaac   : > { %v1843_v42 = vadd.f32 %v1842_v38, %v2464_v5  ;;  %v2297_v43 = vpop.f32.mrb[47].mxu1  ;;  %v2066_v5 = vld [vmem:[%s2745_s10] ss:$0 sm:$0xff] }
 0xaae   : > { %v1851_v44 = vadd.f32 %v2065_v41, %v1843_v42 }
 0xab0   : > { %v1855_v45 = vsel %vm1854_vm7, %v1851_v44, 0.0 }
 0xab1   : > { %1856 = vadd.xlane.f32.xlu0 %v1855_v45 }
 0xb3e   : > { %v1857_v46 = vpop.xlane.xlu0 %1856 }
 0xb3f   : > { %v1859_v47 = vmul.f32 0.03125, %v1857_v46 }
 0xb41   : > { %v1860_v48 = vsub.f32 %v1851_v44, %v1859_v47 }
 0xb43   : > { %v1861_v49 = vmul.f32 %v1860_v48, %v1860_v48 }
 0xb45   : > { %v1862_v50 = vsel %vm1854_vm7, %v1861_v49, 0.0 }
 0xb46   : > { %1863 = vadd.xlane.f32.xlu1 %v1862_v50 }
 0xbd3   : > { %v1864_v51 = vpop.xlane.xlu1 %1863 }
 0xbd4   : > { %v1865_v52 = vmul.f32 0.03125, %v1864_v51 }
 0xbd6   : > { %v1866_v53 = vadd.f32 1e-05, %v1865_v52 }
 0xbd8   : > { %2348 = vrsqrt.f32 %v1866_v53 }
 0xbe2   : > { %v2349_v54 = vpop.eup %2348 }
 0xbe3   : > { %v1868_v9 = vmul.f32 %v2349_v54, %v1860_v48 }
 0xbe5   : > { %v1875_v56 = vmul.f32 %v2066_v5, %v1868_v9 }
 0xbe7   : > { %v1882_v57 = vadd.f32 %v2067_v55, %v1875_v56 }
 0xbe9   : > { %1883 = vst.msk [vmem:[%s425_s20] sm:$0xf] %vm1854_vm7, %v1882_v57 }
 0xbea PF: > { %s22_s21 = sadd.s32 1, %s2356_s21  }
 0xbeb   : > { %p19_p4 = scmp.ge.s32.totalorder %s22_s21, 4  }
 0xbed   :  { %21 = sbr.rel (!%p19_p4) target bundleno = 1 (0x1), region = 122 }

// kernel: geotr_forward.26
= control target key start
LH: loop header
LB: loop body
LE: loop exit
PB: predicated region body
PF: predicated region fallthrough
CT: control target
= control target key end

     0   :  { %s1529_s12 = smov 0   ;;  %s1803_s0 = inlined_call_operand.vmem [shape: bf16[2,4,4,64], index: 0, kind: input, shape index: {}]   ;;  %s1804_s1 = inlined_call_operand.vmem [shape: bf16[9,64,2], index: 1, kind: input, shape index: {}]   ;;  %s1805_s2 = inlined_call_operand.vmem [shape: f32[1,2], index: 2, kind: input, shape index: {}]   ;;  %s1806_s3 = inlined_call_operand.vmem [shape: f32[2,2,2,2], index: 3, kind: output, shape index: {}]  }
   0x1 LB: > { %s1166_s13 = sadd.s32 4294967295, %s1503_s12   ;;  %p1170_p0 = scmp.ge.s32.totalorder %s1503_s12, 1  ;;  %s1503_s12 = sphi %s1529_s12, %s13_s12  }
   0x2   : > { %p137_p1 = scmp.lt.s32.totalorder %s1503_s12, 3 }
   0x4   : > { %p138_p2 = pnand %p1170_p0, %p137_p1 }
   0x5   : > { %v1461_v0 = vld [vmem:[%s1804_s1 + $0x20] sm:$0xff] (!%p138_p2)   ;;  %v1505_v1 = vmov (!%p138_p2), 0.0   ;;  %v1463_v3 = vld [vmem:[%s1804_s1 + $0x28] sm:$0xff] (!%p138_p2)   ;;  %vm1506_vm0 = vmmov (!%p138_p2), 0   ;;  %p161_p3 = scmp.lt.s32.totalorder (!%p138_p2), %s1166_s13, 1  ;;  %v183_v5 = vlaneseq (!%p138_p2)  ;;  %v1465_v6 = vld [vmem:[%s1804_s1 + $0x30] sm:$0xff] (!%p138_p2)  }
   0x6   : > { %141 = sbr.rel (%p138_p2) target bundleno = 315 (0x13b), region = 32  ;;  %1341 = vmatprep.subr.bf16.mxu0 (!%p138_p2), %v1505_v1  ;;  %1353 = vmatprep.subr.bf16.mxu1 (!%p138_p2), %v1505_v1  ;;  %v1462_v2 = vld [vmem:[%s1804_s1] sm:$0xff] (!%p138_p2)   ;;  %v1464_v4 = vld [vmem:[%s1804_s1 + $0x8] sm:$0xff] (!%p138_p2)   ;;  %v1466_v7 = vld [vmem:[%s1804_s1 + $0x10] sm:$0xff] (!%p138_p2)   ;;  %vm212_vm1 = vsmask.f32 (!%p138_p2), 256 }
   0x7   : > { %1342 = vmatpush3.bf16.msra.mxu0 (!%p138_p2), %v1461_v0  ;;  %1349 = vmatprep.mubr.msk.bf16.mxu0 (!%p138_p2), %vm1506_vm0, %v1505_v1  ;;  %v1573_v8 = vshrl.u32 (!%p138_p2), %v183_v5, 7  ;;  %v1467_v9 = vld [vmem:[%s1804_s1 + $0x38] sm:$0xff] (!%p138_p2)   ;;  %v1507_v11 = vmov (!%p138_p2), 1966171168   ;;  %vm213_vm2 = vsmask.f32 (!%p138_p2), 1284 }
   0x8   : > { %1354 = vmatpush3.bf16.msra.mxu1 (!%p138_p2), %v1462_v2  ;;  %1343 = vmatprep.subr.bf16.mxu0 (!%p138_p2), %v1505_v1  ;;  %v1468_v10 = vld [vmem:[%s1804_s1 + $0x18] sm:$0xff] (!%p138_p2)   ;;  %v181_v12 = vunpack.c.l.s4 (!%p138_p2), %v1507_v11  ;;  %vm215_vm3 = vsmask.f32 (!%p138_p2), 2312  ;;  %vm217_vm4 = vsmask.f32 (!%p138_p2), 3340  ;;  %vm214_vm5 = vmor (!%p138_p2), %vm212_vm1, %vm213_vm2  ;;  %vm319_vm1 = vcmask (!%p138_p2), 523264  }
   0x9   : > { %1355 = vmatprep.subr.bf16.mxu1 (!%p138_p2), %v1505_v1  ;;  %1361 = vmatprep.mubr.msk.bf16.mxu1 (!%p138_p2), %vm1506_vm0, %v1505_v1  ;;  %vm219_vm6 = vsmask.f32 (!%p138_p2), 4368  ;;  %vm216_vm7 = vmor (!%p138_p2), %vm214_vm5, %vm215_vm3  ;;  %vm221_vm8 = vsmask.f32 (!%p138_p2), 5396  ;;  %vm223_vm10 = vsmask.f32 (!%p138_p2), 6424 }
   0xa   : > { %v182_v15 = vunpack.c.0.s8 (!%p138_p2), %v181_v12  ;;  %vm218_vm9 = vmor (!%p138_p2), %vm216_vm7, %vm217_vm4  ;;  %vm225_vm14 = vsmask.f32 (!%p138_p2), 7452  ;;  %v1470_v28 = vld [vmem:[%s1804_s1 + $0x60] sm:$0xff] (!%p138_p2)   ;;  %v1472_v34 = vld [vmem:[%s1804_s1 + $0x68] sm:$0xff] (!%p138_p2)  }
   0xb   : > { %1344 = vmatpush3.bf16.msra.mxu0 (!%p138_p2), %v1463_v3  ;;  %vm220_vm11 = vmor (!%p138_p2), %vm218_vm9, %vm219_vm6  ;;  %v1469_v36 = vld [vmem:[%s1804_s1 + $0x40] sm:$0xff] (!%p138_p2)   ;;  %v1474_v39 = vld [vmem:[%s1804_s1 + $0x70] sm:$0xff] (!%p138_p2)  }
   0xc   : > { %1356 = vmatpush3.bf16.msra.mxu1 (!%p138_p2), %v1464_v4  ;;  %1345 = vmatprep.subr.bf16.mxu0 (!%p138_p2), %v1505_v1  ;;  %v1586_v17 = vsub.s32 (!%p138_p2), %v182_v15, %v1573_v8  ;;  %vm222_vm12 = vmor (!%p138_p2), %vm220_vm11, %vm221_vm8  ;;  %v1471_v40 = vld [vmem:[%s1804_s1 + $0x48] sm:$0xff] (!%p138_p2)   ;;  %v1476_v42 = vld [vmem:[%s1804_s1 + $0x78] sm:$0xff] (!%p138_p2)  }
   0xd   : > { %s1810_s13 = smov (!%p161_p3, %s1166_s13), 1  ;;  %1357 = vmatprep.subr.bf16.mxu1 %v1505_v1  ;;  %vm224_vm13 = vmor %vm222_vm12, %vm223_vm10  ;;  %v1473_v45 = vld [vmem:[%s1804_s1 + $0x50] sm:$0xff]   ;;  %v1478_v47 = vld [vmem:[%s1804_s1 + $0xa0] sm:$0xff]  }
   0xe   : > { %s1294_s24 = sshll.u32 %s1810_s13, 3  ;;  %vm1597_vm15 = vmor %vm224_vm13, %vm225_vm14  ;;  %v1475_v50 = vld [vmem:[%s1804_s1 + $0x58] sm:$0xff]   ;;  %v1480_v52 = vld [vmem:[%s1804_s1 + $0xa8] sm:$0xff]   ;;  %s1295_s17 = sshll.u32 %s1810_s13, 2 }
   0xf   : > { %s1571_s29 = scalar_lea.vmem %s1803_s0, %s1294_s24  ;;  %1346 = vmatpush3.bf16.msra.mxu0 %v1465_v6  ;;  %v1477_v56 = vld [vmem:[%s1804_s1 + $0x80] sm:$0xff]   ;;  %v1482_v59 = vld [vmem:[%s1804_s1 + $0xb0] sm:$0xff]   ;;  %v1479_v61 = vld [vmem:[%s1804_s1 + $0x88] sm:$0xff]   ;;  %s170_s20 = scalar_lea.vmem %s1806_s3, %s1295_s17 }
  0x10   : > { %1358 = vmatpush3.bf16.msra.mxu1 %v1466_v7  ;;  %1347 = vmatprep.subr.bf16.mxu0 %v1505_v1  ;;  %v172_v13 = vld [vmem:[%s1571_s29] sm:$0x3]  ;;  %v173_v14 = vld [vmem:[%s1571_s29 + $0x2] sm:$0x3]  ;;  %v1613_v32 = vld [vmem:[%s1571_s29 + $0x4] sm:$0x3] }
  0x11   : > { %1359 = vmatprep.subr.bf16.mxu1 %v1505_v1  ;;  %v363_v16 = vcombine.low %v172_v13, %v173_v14  ;;  %v186_v18 = vrot.slane %v172_v13, %v1586_v17  ;;  %v1591_v19 = vrot.slane %v173_v14, %v1586_v17  ;;  %v546_v38 = vcombine.low %v173_v14, %v1613_v32  ;;  %v1666_v51 = vld [vmem:[%s1571_s29 + $0x6] sm:$0x3]  ;;  %v1484_v0 = vld [vmem:[%s1804_s1 + $0xb8] sm:$0xff]   ;;  %v1481_v3 = vld [vmem:[%s1804_s1 + $0x90] sm:$0xff]  }
  0x12   : > { %v1648_v44 = vrot.slane %v1613_v32, %v1586_v17  ;;  %v1686_v58 = vrot.slane %v1666_v51, %v1586_v17  ;;  %v1486_v7 = vld [vmem:[%s1804_s1 + $0xe0] sm:$0xff]   ;;  %v1488_v12 = vld [vmem:[%s1804_s1 + $0xe8] sm:$0xff]  }
  0x13   : > { %1348 = vmatpush3.bf16.msra.mxu0 %v1467_v9  ;;  %v370_v20 = vrot.slane %v363_v16, %v1586_v17  ;;  %v187_v21 = vcombine.high %v186_v18, %v186_v18  ;;  %v195_v22 = vcombine.high %v1591_v19, %v1591_v19  ;;  %v228_v24 = vshrl.u32 %v186_v18, 16  ;;  %v1485_v14 = vld [vmem:[%s1804_s1 + $0xc0] sm:$0xff]   ;;  %v1490_v16 = vld [vmem:[%s1804_s1 + $0xf0] sm:$0xff]  }
  0x14   : > { %1360 = vmatpush3.bf16.msra.mxu1 %v1468_v10  ;;  %1365 = vmatprep.subr.bf16.mxu0 %v1505_v1  ;;  %v237_v25 = vshrl.u32 %v1591_v19, 16  ;;  %v553_v41 = vrot.slane %v546_v38, %v1586_v17  ;;  %v1205_v43 = vcombine.high %v186_v18, %v1591_v19  ;;  %v203_v49 = vcombine.high %v1648_v44, %v1648_v44  ;;  %v1483_v10 = vld [vmem:[%s1804_s1 + $0x98] sm:$0xff]   ;;  %v1487_v18 = vld [vmem:[%s1804_s1 + $0xc8] sm:$0xff]  }
  0x15   : > { %1377 = vmatprep.subr.bf16.mxu1 %v1505_v1  ;;  %v233_v26 = vshll.u32 %v187_v21, 16  ;;  %v242_v27 = vshll.u32 %v195_v22, 16  ;;  %v377_v29 = vrot.slane %v370_v20, %v1586_v17  ;;  %v246_v53 = vshrl.u32 %v1648_v44, 16  ;;  %v1492_v20 = vld [vmem:[%s1804_s1 + $0xf8] sm:$0xff]   ;;  %v1489_v22 = vld [vmem:[%s1804_s1 + $0xd0] sm:$0xff]  }
  0x16   : > { %v560_v46 = vrot.slane %v553_v41, %v1586_v17  ;;  %v461_v48 = vrot.slane %v1205_v43, %v1586_v17  ;;  %v251_v55 = vshll.u32 %v203_v49, 16  ;;  %v1245_v57 = vcombine.high %v1591_v19, %v1648_v44 }
  0x17   : > { %v235_v30 = vsel %vm1597_vm15, %v228_v24, %v233_v26  ;;  %v1610_v31 = vsel %vm1597_vm15, %v237_v25, %v242_v27  ;;  %1362 = vmatmul.mubr.msk.bf16.vlgmr.msra.gmra.mrb[0].mxu1 %vm319_vm1, %v377_v29  ;;  %v211_v63 = vcombine.high %v1686_v58, %v1686_v58  ;;  %v255_v5 = vshrl.u32 %v1686_v58, 16  ;;  %v1491_v25 = vld [vmem:[%s1804_s1 + $0xd8] sm:$0xff]   ;;  %v1493_v27 = vld [vmem:[%s1804_s1 + $0x100] sm:$0xff]  }
  0x18   : > { %v280_v33 = vcombine.low %v235_v30, %v1610_v31  ;;  %1378 = vmatpush3.bf16.msra.mxu1 %v1470_v28  ;;  %1385 = vmatprep.mubr.msk.bf16.mxu1 %vm1506_vm0, %v1505_v1  ;;  %v468_v54 = vrot.slane %v461_v48, %v1586_v17  ;;  %v253_v60 = vsel %vm1597_vm15, %v246_v53, %v251_v55  ;;  %v1494_v28 = vld [vmem:[%s1804_s1 + $0x108] sm:$0xff]   ;;  %v1495_v30 = vld [vmem:[%s1804_s1 + $0x110] sm:$0xff]  }
  0x19   : > { %1379 = vmatprep.subr.bf16.mxu1 %v1505_v1  ;;  %v737_v62 = vrot.slane %v1245_v57, %v1586_v17  ;;  %v638_v2 = vcombine.low %v1610_v31, %v253_v60  ;;  %v260_v6 = vshll.u32 %v211_v63, 16  ;;  %v822_v21 = vcombine.low %v1613_v32, %v1666_v51  ;;  %v1496_v32 = vld [vmem:[%s1804_s1 + $0x118] sm:$0xff]  }
  0x1a   : > { %v287_v35 = vrot.slane %v280_v33, %v1586_v17  ;;  %v1285_v29 = vcombine.high %v1648_v44, %v1686_v58 }
  0x1b   : > { %v744_v4 = vrot.slane %v737_v62, %v1586_v17  ;;  %v645_v9 = vrot.slane %v638_v2, %v1586_v17  ;;  %v262_v11 = vsel %vm1597_vm15, %v255_v5, %v260_v6  ;;  %v829_v24 = vrot.slane %v822_v21, %v1586_v17 }
  0x1c   : > { %v294_v37 = vrot.slane %v287_v35, %v1586_v17  ;;  %1380 = vmatpush3.bf16.msra.mxu1 %v1472_v34  ;;  %v914_v15 = vcombine.low %v253_v60, %v262_v11  ;;  %v1013_v31 = vrot.slane %v1285_v29, %v1586_v17 }
  0x1d   : > { %1381 = vmatprep.subr.bf16.mxu1 %v1505_v1  ;;  %v652_v13 = vrot.slane %v645_v9, %v1586_v17  ;;  %v836_v26 = vrot.slane %v829_v24, %v1586_v17  ;;  %v1508_v9 = vmov 1983009808  }
  0x1e   : > { %1350 = vmatmul.mubr.msk.bf16.vlgmr.msra.gmra.mrb[0].mxu0 %vm319_vm1, %v294_v37  ;;  %v921_v19 = vrot.slane %v914_v15, %v1586_v17  ;;  %v1020_v33 = vrot.slane %v1013_v31, %v1586_v17 }
  0x1f   : > { %1366 = vmatpush3.bf16.msra.mxu0 %v1469_v36  ;;  %1373 = vmatprep.mubr.msk.bf16.mxu0 %vm1506_vm0, %v1505_v1 }
  0x20   : > { %1367 = vmatprep.subr.bf16.mxu0 %v1505_v1  ;;  %1382 = vmatpush3.bf16.msra.mxu1 %v1474_v39  ;;  %v928_v23 = vrot.slane %v921_v19, %v1586_v17 }
  0x21   : > { %1383 = vmatprep.subr.bf16.mxu1 %v1505_v1 }
  0x23   : > { %1368 = vmatpush3.bf16.msra.mxu0 %v1471_v40 }
  0x24   : > { %1369 = vmatprep.subr.bf16.mxu0 %v1505_v1  ;;  %1384 = vmatpush3.bf16.msra.mxu1 %v1476_v42 }
  0x25   : > { %1401 = vmatprep.subr.bf16.mxu1 %v1505_v1 }
  0x27   : > { %1370 = vmatpush3.bf16.msra.mxu0 %v1473_v45  ;;  %1386 = vmatmul.mubr.msk.bf16.vlgmr.msra.gmra.mrb[4].mxu1 %vm319_vm1, %v560_v46 }
  0x28   : > { %1371 = vmatprep.subr.bf16.mxu0 %v1505_v1  ;;  %1402 = vmatpush3.bf16.msra.mxu1 %v1478_v47 }
  0x29   : > { %1409 = vmatprep.mubr.msk.bf16.mxu1 %vm1506_vm0, %v1505_v1  ;;  %1403 = vmatprep.subr.bf16.mxu1 %v1505_v1 }
  0x2b   : > { %1372 = vmatpush3.bf16.msra.mxu0 %v1475_v50 }
  0x2c   : > { %1389 = vmatprep.subr.bf16.mxu0 %v1505_v1  ;;  %1404 = vmatpush3.bf16.msra.mxu1 %v1480_v52 }
  0x2d   : > { %1405 = vmatprep.subr.bf16.mxu1 %v1505_v1 }
  0x2e   : > { %1374 = vmatmul.mubr.msk.bf16.vlgmr.msra.gmra.mrb[4].mxu0 %vm319_vm1, %v468_v54 }
  0x2f   : > { %1390 = vmatpush3.bf16.msra.mxu0 %v1477_v56  ;;  %1397 = vmatprep.mubr.msk.bf16.mxu0 %vm1506_vm0, %v1505_v1 }
  0x30   : > { %1391 = vmatprep.subr.bf16.mxu0 %v1505_v1  ;;  %1406 = vmatpush3.bf16.msra.mxu1 %v1482_v59 }
  0x31   : > { %1407 = vmatprep.subr.bf16.mxu1 %v1505_v1 }
  0x33   : > { %1392 = vmatpush3.bf16.msra.mxu0 %v1479_v61 }
  0x34   : > { %1393 = vmatprep.subr.bf16.mxu0 %v1505_v1  ;;  %1408 = vmatpush3.bf16.msra.mxu1 %v1484_v0 }
  0x35   : > { %1425 = vmatprep.subr.bf16.mxu1 %v1505_v1 }
  0x37   : > { %1394 = vmatpush3.bf16.msra.mxu0 %v1481_v3  ;;  %1410 = vmatmul.mubr.msk.bf16.vlgmr.msra.gmra.mrb[8].mxu1 %vm319_vm1, %v744_v4 }
  0x38   : > { %1395 = vmatprep.subr.bf16.mxu0 %v1505_v1  ;;  %1426 = vmatpush3.bf16.msra.mxu1 %v1486_v7 }
  0x39   : > { %1433 = vmatprep.mubr.msk.bf16.mxu1 %vm1506_vm0, %v1505_v1  ;;  %1427 = vmatprep.subr.bf16.mxu1 %v1505_v1 }
  0x3b   : > { %1396 = vmatpush3.bf16.msra.mxu0 %v1483_v10  ;;  %v1099_v10 = vunpack.c.l.s4 %v1508_v9 }
  0x3c   : > { %1413 = vmatprep.subr.bf16.mxu0 %v1505_v1  ;;  %1428 = vmatpush3.bf16.msra.mxu1 %v1488_v12 }
  0x3d   : > { %1429 = vmatprep.subr.bf16.mxu1 %v1505_v1  ;;  %v1100_v11 = vunpack.c.0.s8 %v1099_v10 }
  0x3e   : > { %1398 = vmatmul.mubr.msk.bf16.vlgmr.msra.gmra.mrb[8].mxu0 %vm319_vm1, %v652_v13  ;;  %v1291_v13 = vld [vmem:[%s1805_s2] ss:$0 sm:$0xff] }
  0x3f   : > { %1414 = vmatpush3.bf16.msra.mxu0 %v1485_v14  ;;  %1421 = vmatprep.mubr.msk.bf16.mxu0 %vm1506_vm0, %v1505_v1  ;;  %v1103_v15 = vsub.s32 %v1100_v11, %v1573_v8 }
  0x40   : > { %1415 = vmatprep.subr.bf16.mxu0 %v1505_v1  ;;  %1430 = vmatpush3.bf16.msra.mxu1 %v1490_v16 }
  0x41   : > { %1431 = vmatprep.subr.bf16.mxu1 %v1505_v1 }
  0x43   : > { %1416 = vmatpush3.bf16.msra.mxu0 %v1487_v18 }
  0x44   : > { %1417 = vmatprep.subr.bf16.mxu0 %v1505_v1  ;;  %1432 = vmatpush3.bf16.msra.mxu1 %v1492_v20 }
  0x47   : > { %1418 = vmatpush3.bf16.msra.mxu0 %v1489_v22  ;;  %1434 = vmatmul.mubr.msk.bf16.vlgmr.msra.gmra.mrb[12].mxu1 %vm319_vm1, %v928_v23 }
  0x48   : > { %1419 = vmatprep.subr.bf16.mxu0 %v1505_v1 }
  0x4b   : > { %1420 = vmatpush3.bf16.msra.mxu0 %v1491_v25 }
  0x4c   : > { %1437 = vmatprep.subr.bf16.mxu0 %v1505_v1 }
  0x4e   : > { %1422 = vmatmul.mubr.msk.bf16.vlgmr.msra.gmra.mrb[12].mxu0 %vm319_vm1, %v836_v26 }
  0x4f   : > { %1438 = vmatpush3.bf16.msra.mxu0 %v1493_v27  ;;  %1445 = vmatprep.mubr.msk.bf16.mxu0 %vm1506_vm0, %v1505_v1  ;;  %vm1108_vm0 = vcmask 9216  }
  0x50   : > { %1439 = vmatprep.subr.bf16.mxu0 %v1505_v1 }
  0x53   : > { %1440 = vmatpush3.bf16.msra.mxu0 %v1494_v28 }
  0x54   : > { %1441 = vmatprep.subr.bf16.mxu0 %v1505_v1 }
  0x57   : > { %1442 = vmatpush3.bf16.msra.mxu0 %v1495_v30 }
  0x58   : > { %1443 = vmatprep.subr.bf16.mxu0 %v1505_v1 }
  0x5b   : > { %1444 = vmatpush3.bf16.msra.mxu0 %v1496_v32 }
  0x5e   : > { %1446 = vmatmul.mubr.msk.bf16.vlgmr.msra.gmra.mrb[16].mxu0 %vm319_vm1, %v1020_v33 }
  0xea   : > { %v439_v34 = vpop.f32.mrb[0].mxu1 }
  0xeb   : > { %v1363_v35 = vpop.f32.mrb[1].mxu1 }
  0xec   : > { %v442_v36 = vpop.f32.mrb[2].mxu1 }
  0xed   : > { %v1364_v37 = vpop.f32.mrb[3].mxu1 }
  0xf1   : > { %v357_v38 = vpop.f32.mrb[0].mxu0 }
  0xf2   : > { %v440_v39 = vadd.f32 %v439_v34, %v357_v38  ;;  %v1351_v40 = vpop.f32.mrb[1].mxu0 }
  0xf3   : > { %v360_v41 = vpop.f32.mrb[2].mxu0 }
  0xf4   : > { %v1352_v42 = vpop.f32.mrb[3].mxu0 }
  0xfa   : > { %v622_v43 = vpop.f32.mrb[4].mxu1 }
  0xfb   : > { %v1387_v44 = vpop.f32.mrb[5].mxu1 }
  0xfc   : > { %v625_v45 = vpop.f32.mrb[6].mxu1 }
  0xfd   : > { %v1388_v46 = vpop.f32.mrb[7].mxu1 }
 0x101   : > { %v530_v47 = vpop.f32.mrb[4].mxu0 }
 0x102   : > { %v536_v1 = vadd.f32 %v530_v47, %v440_v39  ;;  %v1375_v48 = vpop.f32.mrb[5].mxu0 }
 0x103   : > { %v533_v17 = vpop.f32.mrb[6].mxu0 }
 0x104   : > { %v628_v49 = vadd.f32 %v622_v43, %v536_v1  ;;  %v1376_v50 = vpop.f32.mrb[7].mxu0 }
 0x10a   : > { %v806_v51 = vpop.f32.mrb[8].mxu1 }
 0x10b   : > { %v1411_v52 = vpop.f32.mrb[9].mxu1 }
 0x10c   : > { %v809_v53 = vpop.f32.mrb[10].mxu1 }
 0x10d   : > { %v1412_v54 = vpop.f32.mrb[11].mxu1 }
 0x111   : > { %v714_v55 = vpop.f32.mrb[8].mxu0 }
 0x112   : > { %v720_v56 = vadd.f32 %v714_v55, %v628_v49  ;;  %v1399_v57 = vpop.f32.mrb[9].mxu0 }
 0x113   : > { %v717_v58 = vpop.f32.mrb[10].mxu0 }
 0x114   : > { %v812_v59 = vadd.f32 %v806_v51, %v720_v56  ;;  %v1400_v60 = vpop.f32.mrb[11].mxu0 }
 0x11a   : > { %v990_v61 = vpop.f32.mrb[12].mxu1 }
 0x11b   : > { %v1435_v62 = vpop.f32.mrb[13].mxu1 }
 0x11c   : > { %v993_v63 = vpop.f32.mrb[14].mxu1 }
 0x11d   : > { %v1436_v0 = vpop.f32.mrb[15].mxu1 }
 0x121   : > { %v898_v2 = vpop.f32.mrb[12].mxu0 }
 0x122   : > { %v904_v3 = vadd.f32 %v898_v2, %v812_v59  ;;  %v1423_v4 = vpop.f32.mrb[13].mxu0 }
 0x123   : > { %v901_v5 = vpop.f32.mrb[14].mxu0 }
 0x124   : > { %v996_v6 = vadd.f32 %v990_v61, %v904_v3  ;;  %v1424_v7 = vpop.f32.mrb[15].mxu0 }
 0x131   : > { %v1082_v12 = vpop.f32.mrb[16].mxu0 }
 0x132   : > { %v1088_v14 = vadd.f32 %v1082_v12, %v996_v6  ;;  %v1447_v16 = vpop.f32.mrb[17].mxu0 }
 0x133   : > { %v1085_v18 = vpop.f32.mrb[18].mxu0 }
 0x134   : > { %v1096_v19 = vadd.f32 %v1291_v13, %v1088_v14  ;;  %v1448_v20 = vpop.f32.mrb[19].mxu0 }
 0x136   : > { %v1104_v21 = vrot.slane %v1096_v19, %v1103_v15 }
 0x138   : > { %v1105_v22 = vcombine.high %v1104_v21, %v1104_v21  ;;  %1109 = vst.msk [vmem:[%s170_s20] sm:$0x3] %vm1108_vm0, %v1104_v21 }
 0x13a   : > { %1110 = vst.msk [vmem:[%s170_s20 + $0x2] sm:$0x3] %vm1108_vm0, %v1105_v22 }
 0x13b PF: > { %s13_s12 = sadd.s32 1, %s1503_s12  }
 0x13c   : > { %p10_p4 = scmp.ge.s32.totalorder %s13_s12, 4  }
 0x13e   :  { %12 = sbr.rel (!%p10_p4) target bundleno = 1 (0x1), region = 70 }

// kernel: geotr_forward.24
= control target key start
LH: loop header
LB: loop body
LE: loop exit
PB: predicated region body
PF: predicated region fallthrough
CT: control target
= control target key end

     0   :  { %v382_v1 = vmov 0   ;;  %vm171_vm0 = vcmask 523264   ;;  %v383_v18 = vmov 0.0   ;;  %vm384_vm1 = vmmov 0   ;;  %s490_s1 = inlined_call_operand.vmem [shape: bf16[64,576], index: 1, kind: input, shape index: {}]   ;;  %s491_s0 = inlined_call_operand.vmem [shape: bf16[8,64], index: 0, kind: input, shape index: {}]   ;;  %s492_s2 = inlined_call_operand.vmem [shape: f32[1,576], index: 2, kind: input, shape index: {}]   ;;  %s493_s3 = inlined_call_operand.vmem [shape: f32[8,576], index: 3, kind: output, shape index: {}]  }
   0x1   :  { %v354_v0 = vld [vmem:[%s490_s1 + $0x4] ss:$20 sps:$4 sm:$0xff]   ;;  %207 = vmatprep.mubr.bf16.mxu0 %v382_v1  ;;  %248 = vmatprep.mubr.bf16.mxu1 %v382_v1  ;;  %v356_v2 = vld [vmem:[%s490_s1] ss:$20 sps:$4 sm:$0xff]   ;;  %v359_v4 = vld [vmem:[%s490_s1 + $0x28] ss:$20 sps:$4 sm:$0xff]   ;;  %v42_v23 = vlaneseq }
   0x2   :  { %175 = vmatprep.subr.bf16.mxu0 %v354_v0  ;;  %v357_v3 = vld [vmem:[%s490_s1 + $0x2c] ss:$20 sps:$4 sm:$0xff]   ;;  %v360_v5 = vld [vmem:[%s490_s1 + $0x54] ss:$20 sps:$4 sm:$0xff]   ;;  %v362_v7 = vld [vmem:[%s490_s1 + $0x50] ss:$20 sps:$4 sm:$0xff]  }
   0x3   :  { %176 = vmatpush1.bf16.msra.mxu0 %v356_v2  ;;  %v365_v6 = vld [vmem:[%s490_s1 + $0xc] ss:$20 sps:$4 sm:$0xff]   ;;  %v363_v8 = vld [vmem:[%s490_s1 + $0x7c] ss:$20 sps:$4 sm:$0xff]   ;;  %v369_v10 = vld [vmem:[%s490_s1 + $0x34] ss:$20 sps:$4 sm:$0xff]  }
   0x4   :  { %177 = vmatprep.subr.bf16.mxu0 %v357_v3  ;;  %v368_v9 = vld [vmem:[%s490_s1 + $0x8] ss:$20 sps:$4 sm:$0xff]   ;;  %216 = vmatprep.subr.bf16.mxu1 %v365_v6  ;;  %v371_v11 = vld [vmem:[%s490_s1 + $0x30] ss:$20 sps:$4 sm:$0xff]   ;;  %v367_v13 = vld [vmem:[%s490_s1 + $0x78] ss:$20 sps:$4 sm:$0xff]  }
   0x5   :  { %217 = vmatpush1.bf16.msra.mxu1 %v368_v9  ;;  %v373_v12 = vld [vmem:[%s490_s1 + $0x5c] ss:$20 sps:$4 sm:$0xff]   ;;  %v375_v14 = vld [vmem:[%s490_s1 + $0x58] ss:$20 sps:$4 sm:$0xff]   ;;  %v15_v16 = vld [vmem:[%s491_s0] sm:$0xf] }
   0x6   :  { %218 = vmatprep.subr.bf16.mxu1 %v369_v10  ;;  %v377_v15 = vld [vmem:[%s490_s1 + $0x84] ss:$20 sps:$4 sm:$0xff]   ;;  %v379_v19 = vld [vmem:[%s490_s1 + $0x80] ss:$20 sps:$4 sm:$0xff]   ;;  %v381_v22 = vld [vmem:[%s490_s1 + $0x88] ss:$20 sps:$4 sm:$0xff]  }
   0x7   :  { %178 = vmatpush1.bf16.msra.mxu0 %v359_v4  ;;  %v372_v17 = vld [vmem:[%s490_s1 + $0x10] ss:$20 sps:$4 sm:$0xff]   ;;  %v376_v20 = vld [vmem:[%s490_s1 + $0x38] ss:$20 sps:$4 sm:$0xff]   ;;  %v380_v21 = vld [vmem:[%s490_s1 + $0x60] ss:$20 sps:$4 sm:$0xff]  }
   0x8   :  { %179 = vmatprep.subr.bf16.mxu0 %v360_v5  ;;  %v43_v24 = vshrl.u32 %v42_v23, 7  ;;  %v40_v26 = vld [vmem:[%s492_s2] sm:$0x1f] }
   0x9   :  { %219 = vmatpush1.bf16.msra.mxu1 %v371_v11 }
   0xa   :  { %220 = vmatprep.subr.bf16.mxu1 %v373_v12  ;;  %v44_v25 = vsub.s32 0, %v43_v24  ;;  %v48_v27 = vsub.s32 1, %v43_v24  ;;  %v52_v30 = vsub.s32 2, %v43_v24  ;;  %v56_v31 = vsub.s32 3, %v43_v24 }
   0xb   :  { %180 = vmatpush1.bf16.msra.mxu0 %v362_v7  ;;  %v60_v50 = vsub.s32 4, %v43_v24 }
   0xc   :  { %181 = vmatprep.subr.bf16.mxu0 %v363_v8  ;;  %v45_v28 = vrot.slane %v40_v26, %v44_v25  ;;  %v49_v29 = vrot.slane %v40_v26, %v48_v27  ;;  %v53_v37 = vrot.slane %v40_v26, %v52_v30  ;;  %v57_v40 = vrot.slane %v40_v26, %v56_v31 }
   0xd   :  { %221 = vmatpush1.bf16.msra.mxu1 %v375_v14  ;;  %v61_v51 = vrot.slane %v40_v26, %v60_v50 }
   0xe   :  { %222 = vmatprep.subr.bf16.mxu1 %v377_v15 }
   0xf   :  { %182 = vmatpush1.bf16.msra.mxu0 %v367_v13 }
  0x10   :  { %339 = vmatprep.subr.bf16.mxu0 %v383_v18 }
  0x11   :  { %223 = vmatpush1.bf16.msra.mxu1 %v379_v19 }
  0x12   :  { %331 = vmatmul.mubr.msk.bf16.vlgmr.msra.gmra.mrb[0].mxu0 %vm171_vm0, %v15_v16 }
  0x13   :  { %340 = vmatpush3.bf16.msra.mxu0 %v372_v17  ;;  %347 = vmatprep.mubr.msk.bf16.mxu0 %vm384_vm1, %v383_v18 }
  0x14   :  { %341 = vmatprep.subr.bf16.mxu0 %v383_v18  ;;  %332 = vmatmul.mubr.msk.bf16.vlgmr.msra.gmra.mrb[0].mxu1 %vm171_vm0, %v15_v16 }
  0x17   :  { %342 = vmatpush3.bf16.msra.mxu0 %v376_v20 }
  0x18   :  { %343 = vmatprep.subr.bf16.mxu0 %v383_v18 }
  0x1b   :  { %344 = vmatpush3.bf16.msra.mxu0 %v380_v21 }
  0x1c   :  { %345 = vmatprep.subr.bf16.mxu0 %v383_v18 }
  0x1f   :  { %346 = vmatpush3.bf16.msra.mxu0 %v381_v22 }
  0x22   :  { %348 = vmatmul.mubr.msk.bf16.vlgmr.msra.gmra.mrb[4].mxu0 %vm171_vm0, %v15_v16 }
  0xe5   :  { %v209_v32 = vpop.f32.mrb[0].mxu0 }
  0xe6   :  { %v210_v33 = vadd.f32 %v209_v32, %v45_v28  ;;  %v211_v34 = vpop.f32.mrb[1].mxu0 }
  0xe7   :  { %v212_v35 = vadd.f32 %v211_v34, %v49_v29  ;;  %v213_v36 = vpop.f32.mrb[2].mxu0  ;;  %v250_v42 = vpop.f32.mrb[0].mxu1 }
  0xe8   :  { %v297_v38 = vmul.f32 0.25, %v210_v33  ;;  %v214_v39 = vpop.f32.mrb[3].mxu0  ;;  %v251_v43 = vadd.f32 %v250_v42, %v53_v37  ;;  %v252_v44 = vpop.f32.mrb[1].mxu1 }
  0xe9   :  { %v298_v41 = vmul.f32 0.25, %v212_v35  ;;  %v253_v45 = vadd.f32 %v252_v44, %v57_v40  ;;  %v254_v46 = vpop.f32.mrb[2].mxu1 }
  0xea   :  { %302 = vst [vmem:[%s493_s3] sm:$0xff] %v297_v38  ;;  %v299_v47 = vmul.f32 0.25, %v251_v43  ;;  %v255_v48 = vpop.f32.mrb[3].mxu1 }
  0xeb   :  { %303 = vst [vmem:[%s493_s3 + $0x8] sm:$0xff] %v298_v41  ;;  %v300_v49 = vmul.f32 0.25, %v253_v45 }
  0xec   :  { %304 = vst [vmem:[%s493_s3 + $0x10] sm:$0xff] %v299_v47 }
  0xed   :  { %305 = vst [vmem:[%s493_s3 + $0x18] sm:$0xff] %v300_v49 }
  0xf5   :  { %v291_v52 = vpop.f32.mrb[4].mxu0 }
  0xf6   :  { %v292_v53 = vadd.f32 %v291_v52, %v61_v51  ;;  %v349_v54 = vpop.f32.mrb[5].mxu0 }
  0xf7   :  { %v294_v55 = vpop.f32.mrb[6].mxu0 }
  0xf8   :  { %v301_v56 = vmul.f32 0.25, %v292_v53  ;;  %v350_v57 = vpop.f32.mrb[7].mxu0 }
  0xfa   :  { %306 = vst.msk [vmem:[%s493_s3 + $0x20] sm:$0xff] %vm171_vm0, %v301_v56 }

// kernel: geotr_forward.27
= control target key start
LH: loop header
LB: loop body
LE: loop exit
PB: predicated region body
PF: predicated region fallthrough
CT: control target
= control target key end

     0   :  { %v1460_v0 = vmov 0   ;;  %v1461_v9 = vmov 1   ;;  %v1462_v10 = vmov 2   ;;  %v1463_v11 = vmov 3   ;;  %s2456_s1 = inlined_call_operand.vmem [shape: f32[8,2,9], index: 1, kind: input, shape index: {}]   ;;  %s2457_s0 = inlined_call_operand.vmem [shape: f32[8,9,64], index: 0, kind: input, shape index: {}]   ;;  %s2458_s2 = inlined_call_operand.vmem [shape: f32[8,2,64], index: 2, kind: output, shape index: {}]  }
   0x1   :  { %1395 = vset.pattern.permute.xlu1 %v1460_v0  ;;  %1394 = vset.pattern.permute.xlu0 %v1460_v0  ;;  %v1487_v1 = vld [vmem:[%s2456_s1 + $0x4] sm:$0x3]  ;;  %v1492_v2 = vld [vmem:[%s2456_s1] sm:$0x3]  ;;  %v1499_v3 = vld [vmem:[%s2456_s1 + $0x6] sm:$0x3] }
   0x2   :  { %249 = vperm.xlu1 %1395, %v1487_v1   ;;  %239 = vperm.xlu0 %1394, %v1492_v2   ;;  %v1504_v4 = vld [vmem:[%s2456_s1 + $0x2] sm:$0x3]  ;;  %v1511_v5 = vld [vmem:[%s2456_s1 + $0xa] sm:$0x3]  ;;  %v1516_v6 = vld [vmem:[%s2456_s1 + $0x8] sm:$0x3] }
   0x3   :  { %v1523_v7 = vld [vmem:[%s2456_s1 + $0xe] sm:$0x3]  ;;  %v1528_v8 = vld [vmem:[%s2456_s1 + $0xc] sm:$0x3]  ;;  %v1464_v12 = vmov 4   ;;  %v1465_v13 = vmov 5  }
   0x4   :  { %v1564_v14 = vld [vmem:[%s2457_s0 + $0x10] sm:$0xff]  ;;  %v1569_v15 = vld [vmem:[%s2457_s0 + $0x18] sm:$0x1]  ;;  %v1575_v16 = vld [vmem:[%s2457_s0 + $0x40] sm:$0xff]  ;;  %vm27_vm0 = vcmask 523264   ;;  %vm29_vm1 = vcmask 516096  }
   0x5   :  { %v1580_v17 = vld [vmem:[%s2457_s0 + $0x48] sm:$0x1]  ;;  %v38_v18 = vsel %vm27_vm0, %v1564_v14, -inf  ;;  %v39_v19 = vsel %vm29_vm1, %v1569_v15, -inf  ;;  %v65_v20 = vsel %vm27_vm0, %v1575_v16, -inf  ;;  %v1595_v24 = vld [vmem:[%s2457_s0 + $0x60] sm:$0xff] }
   0x6   :  { %254 = vperm.xlu1 %1395, %v1499_v3   ;;  %244 = vperm.xlu0 %1394, %v1504_v4   ;;  %v66_v21 = vsel %vm29_vm1, %v1580_v17, -inf  ;;  %v40_v22 = vmax.f32 %v38_v18, %v39_v19  ;;  %v1600_v25 = vld [vmem:[%s2457_s0 + $0x68] sm:$0x1]  ;;  %v1606_v26 = vld [vmem:[%s2457_s0 + $0x20] sm:$0xff]  ;;  %v83_v31 = vsel %vm27_vm0, %v1595_v24, -inf  ;;  %v1640_v38 = vld [vmem:[%s2457_s0 + $0x30] sm:$0xff] }
   0x7   :  { %v67_v23 = vmax.f32 %v65_v20, %v66_v21  ;;  %v1611_v27 = vld [vmem:[%s2457_s0 + $0x28] sm:$0x1]  ;;  %v1617_v28 = vld [vmem:[%s2457_s0] sm:$0xff]  ;;  %v84_v32 = vsel %vm29_vm1, %v1600_v25, -inf  ;;  %v47_v33 = vsel %vm27_vm0, %v1606_v26, -inf  ;;  %v56_v44 = vsel %vm27_vm0, %v1640_v38, -inf }
   0x8   :  { %v1622_v29 = vld [vmem:[%s2457_s0 + $0x8] sm:$0x1]  ;;  %v41_v30 = vrot.slane %v40_v22, 4  ;;  %v48_v34 = vsel %vm29_vm1, %v1611_v27, -inf  ;;  %v28_v36 = vsel %vm27_vm0, %v1617_v28, -inf  ;;  %v85_v40 = vmax.f32 %v83_v31, %v84_v32  ;;  %v1657_v51 = vld [vmem:[%s2457_s0 + $0x50] sm:$0xff] }
   0x9   :  { %v68_v35 = vrot.slane %v67_v23, 4  ;;  %v30_v37 = vsel %vm29_vm1, %v1622_v29, -inf  ;;  %v1645_v39 = vld [vmem:[%s2457_s0 + $0x38] sm:$0x1]  ;;  %v49_v41 = vmax.f32 %v47_v33, %v48_v34  ;;  %v1466_v47 = vmov 6   ;;  %v1673_v61 = vld [vmem:[%s2457_s0 + $0x70] sm:$0xff] }
   0xa   :  { %264 = vperm.xlu1 %1395, %v1511_v5   ;;  %259 = vperm.xlu0 %1394, %v1516_v6   ;;  %v42_v42 = vmax.f32 %v40_v22, %v41_v30  ;;  %v31_v43 = vmax.f32 %v28_v36, %v30_v37  ;;  %v57_v45 = vsel %vm29_vm1, %v1645_v39, -inf  ;;  %v86_v48 = vrot.slane %v85_v40, 4  ;;  %v1662_v52 = vld [vmem:[%s2457_s0 + $0x58] sm:$0x1] }
   0xb   :  { %v69_v46 = vmax.f32 %v67_v23, %v68_v35  ;;  %v58_v49 = vmax.f32 %v56_v44, %v57_v45  ;;  %v50_v53 = vrot.slane %v49_v41, 4  ;;  %v74_v56 = vsel %vm27_vm0, %v1657_v51, -inf  ;;  %v1678_v62 = vld [vmem:[%s2457_s0 + $0x78] sm:$0x1] }
   0xc   :  { %v43_v50 = vrot.slane %v42_v42, 2  ;;  %v32_v54 = vrot.slane %v31_v43, 4  ;;  %v75_v57 = vsel %vm29_vm1, %v1662_v52, -inf  ;;  %v87_v58 = vmax.f32 %v85_v40, %v86_v48 }
   0xd   :  { %v70_v55 = vrot.slane %v69_v46, 2  ;;  %v59_v59 = vrot.slane %v58_v49, 4  ;;  %v51_v63 = vmax.f32 %v49_v41, %v50_v53  ;;  %v1467_v32 = vmov 7  }
   0xe   :  { %274 = vperm.xlu1 %1395, %v1523_v7   ;;  %269 = vperm.xlu0 %1394, %v1528_v8   ;;  %v44_v60 = vmax.f32 %v42_v42, %v43_v50  ;;  %v33_v0 = vmax.f32 %v31_v43, %v32_v54 }
   0xf   :  { %v60_v18 = vmax.f32 %v58_v49, %v59_v59  ;;  %v52_v20 = vrot.slane %v51_v63, 2 }
  0x10   :  { %v45_v19 = vrot.slane %v44_v60, 1  ;;  %v34_v21 = vrot.slane %v33_v0, 2 }
  0x11   :  { %v61_v33 = vrot.slane %v60_v18, 2  ;;  %v53_v35 = vmax.f32 %v51_v63, %v52_v20 }
  0x12   :  { %1397 = vset.pattern.permute.xlu1 %v1461_v9  ;;  %1396 = vset.pattern.permute.xlu0 %v1461_v9  ;;  %v71_v9 = vmax.f32 %v69_v46, %v70_v55  ;;  %v46_v34 = vmax.f32 %v44_v60, %v45_v19  ;;  %v35_v36 = vmax.f32 %v33_v0, %v34_v21  ;;  %v1468_v21 = vmov 8  }
  0x13   :  { %297 = vperm.xlu1 %1397, %v1504_v4   ;;  %294 = vperm.xlu0 %1396, %v1492_v2   ;;  %v62_v45 = vmax.f32 %v60_v18, %v61_v33  ;;  %v54_v48 = vrot.slane %v53_v35, 1 }
  0x14   :  { %v72_v22 = vrot.slane %v71_v9, 1  ;;  %v104_v42 = vsub.f32 %v1569_v15, %v46_v34  ;;  %v103_v46 = vsub.f32 %v1564_v14, %v46_v34  ;;  %v36_v49 = vrot.slane %v35_v36, 1 }
  0x16   :  { %v73_v37 = vmax.f32 %v71_v9, %v72_v22  ;;  %v123_v55 = vmul.f32 1.442695, %v104_v42 }
  0x17   :  { %300 = vperm.xlu1 %1397, %v1487_v1   ;;  %303 = vperm.xlu0 %1396, %v1499_v3  }
  0x18   :  { %v110_v44 = vsub.f32 %v1580_v17, %v73_v37  ;;  %v109_v50 = vsub.f32 %v1575_v16, %v73_v37  ;;  %v121_v17 = vmul.f32 1.442695, %v103_v46  ;;  %1412 = vpow2.f32 %v123_v55 }
  0x1a   :  { %v135_v15 = vmul.f32 1.442695, %v110_v44  ;;  %v133_v14 = vmul.f32 1.442695, %v109_v50 }
  0x1b   :  { %306 = vperm.xlu1 %1397, %v1516_v6   ;;  %309 = vperm.xlu0 %1396, %v1511_v5  }
  0x1c   :  { %1414 = vpow2.f32 %v135_v15 }
  0x1d   :  { %1416 = vpow2.f32 %v121_v17 }
  0x1e   :  { %1418 = vpow2.f32 %v133_v14 }
  0x1f   :  { %312 = vperm.xlu1 %1397, %v1528_v8   ;;  %315 = vperm.xlu0 %1396, %v1523_v7  }
  0x23   :  { %1398 = vset.pattern.permute.xlu1 %v1462_v10  ;;  %1399 = vset.pattern.permute.xlu0 %v1462_v10  ;;  %v76_v10 = vmax.f32 %v74_v56, %v75_v57  ;;  %v55_v57 = vmax.f32 %v53_v35, %v54_v48 }
  0x24   :  { %374 = vperm.xlu1 %1398, %v1492_v2   ;;  %377 = vperm.xlu0 %1399, %v1504_v4  }
  0x25   :  { %v77_v23 = vrot.slane %v76_v10, 4  ;;  %v106_v22 = vsub.f32 %v1611_v27, %v55_v57 }
  0x27   :  { %v78_v40 = vmax.f32 %v76_v10, %v77_v23  ;;  %v105_v10 = vsub.f32 %v1606_v26, %v55_v57  ;;  %v1714_v23 = vpop.eup %1412 }
  0x28   :  { %380 = vperm.xlu1 %1398, %v1487_v1   ;;  %386 = vperm.xlu0 %1399, %v1516_v6  }
  0x29   :  { %v79_v53 = vrot.slane %v78_v40, 2  ;;  %v125_v20 = vmul.f32 1.442695, %v105_v10 }
  0x2b   :  { %v80_v59 = vmax.f32 %v78_v40, %v79_v53  ;;  %v159_v40 = vsel %vm29_vm1, %v1714_v23, 0.0 }
  0x2c   :  { %383 = vperm.xlu1 %1398, %v1499_v3   ;;  %392 = vperm.xlu0 %1399, %v1528_v8  }
  0x30   :  { %389 = vperm.xlu1 %1398, %v1511_v5   ;;  %1400 = vset.pattern.permute.xlu0 %v1463_v11 }
  0x31   :  { %454 = vperm.xlu0 %1400, %v1492_v2  }
  0x34   :  { %395 = vperm.xlu1 %1398, %v1523_v7  }
  0x35   :  { %463 = vperm.xlu0 %1400, %v1499_v3  }
  0x38   :  { %1401 = vset.pattern.permute.xlu1 %v1463_v11  ;;  %v92_v11 = vsel %vm27_vm0, %v1673_v61, -inf }
  0x39   :  { %457 = vperm.xlu1 %1401, %v1504_v4   ;;  %469 = vperm.xlu0 %1400, %v1511_v5  }
  0x3d   :  { %460 = vperm.xlu1 %1401, %v1487_v1   ;;  %475 = vperm.xlu0 %1400, %v1523_v7  }
  0x41   :  { %466 = vperm.xlu1 %1401, %v1516_v6   ;;  %1403 = vset.pattern.permute.xlu0 %v1464_v12 }
  0x42   :  { %537 = vperm.xlu0 %1403, %v1504_v4  }
  0x45   :  { %472 = vperm.xlu1 %1401, %v1528_v8  }
  0x46   :  { %546 = vperm.xlu0 %1403, %v1516_v6  }
  0x49   :  { %1402 = vset.pattern.permute.xlu1 %v1464_v12  ;;  %v93_v12 = vsel %vm29_vm1, %v1678_v62, -inf }
  0x4a   :  { %534 = vperm.xlu1 %1402, %v1492_v2   ;;  %552 = vperm.xlu0 %1403, %v1528_v8   ;;  %v94_v30 = vmax.f32 %v92_v11, %v93_v12  ;;  %v81_v12 = vrot.slane %v80_v59, 1 }
  0x4c   :  { %v95_v41 = vrot.slane %v94_v30, 4 }
  0x4e   :  { %540 = vperm.xlu1 %1402, %v1487_v1   ;;  %1404 = vset.pattern.permute.xlu0 %v1465_v13  ;;  %v96_v54 = vmax.f32 %v94_v30, %v95_v41  ;;  %v1717_v30 = vpop.eup %1414  ;;  %v127_v41 = vmul.f32 1.442695, %v106_v22 }
  0x4f   :  { %614 = vperm.xlu0 %1404, %v1492_v2   ;;  %v1719_v34 = vpop.eup %1416 }
  0x50   :  { %v97_v60 = vrot.slane %v96_v54, 2  ;;  %v1726_v27 = vpop.eup %1418  ;;  %v158_v37 = vsel %vm27_vm0, %v1719_v34, 0.0 }
  0x51   :  { %v185_v42 = vsel %vm27_vm0, %v1726_v27, 0.0  ;;  %v160_v48 = vadd.f32 %v159_v40, %v158_v37 }
  0x52   :  { %543 = vperm.xlu1 %1402, %v1499_v3  }
  0x53   :  { %623 = vperm.xlu0 %1404, %v1499_v3  }
  0x56   :  { %549 = vperm.xlu1 %1402, %v1511_v5  }
  0x57   :  { %629 = vperm.xlu0 %1404, %v1511_v5  }
  0x5a   :  { %555 = vperm.xlu1 %1402, %v1523_v7  }
  0x5b   :  { %635 = vperm.xlu0 %1404, %v1523_v7  }
  0x5e   :  { %1405 = vset.pattern.permute.xlu1 %v1465_v13  ;;  %v88_v13 = vrot.slane %v87_v58, 2 }
  0x5f   :  { %617 = vperm.xlu1 %1405, %v1504_v4   ;;  %1407 = vset.pattern.permute.xlu0 %v1466_v47 }
  0x60   :  { %697 = vperm.xlu0 %1407, %v1504_v4   ;;  %v89_v31 = vmax.f32 %v87_v58, %v88_v13  ;;  %v37_v58 = vmax.f32 %v35_v36, %v36_v49  ;;  %v98_v13 = vmax.f32 %v96_v54, %v97_v60 }
  0x62   :  { %v90_v43 = vrot.slane %v89_v31, 1  ;;  %v102_v9 = vsub.f32 %v1622_v29, %v37_v58  ;;  %v101_v11 = vsub.f32 %v1617_v28, %v37_v58  ;;  %v1710_v29 = vmax.f32 %v80_v59, %v81_v12 }
  0x63   :  { %620 = vperm.xlu1 %1405, %v1487_v1   ;;  %v99_v28 = vrot.slane %v98_v13, 1 }
  0x64   :  { %706 = vperm.xlu0 %1407, %v1516_v6   ;;  %v91_v56 = vmax.f32 %v89_v31, %v90_v43  ;;  %v119_v19 = vmul.f32 1.442695, %v102_v9  ;;  %v117_v26 = vmul.f32 1.442695, %v101_v11  ;;  %v111_v35 = vsub.f32 %v1657_v51, %v1710_v29 }
  0x65   :  { %v1723_v36 = vmax.f32 %v98_v13, %v99_v28  ;;  %v186_v51 = vsel %vm29_vm1, %v1717_v30, 0.0  ;;  %v112_v9 = vsub.f32 %v1662_v52, %v1710_v29 }
  0x66   :  { %v114_v63 = vsub.f32 %v1600_v25, %v91_v56  ;;  %v113_v16 = vsub.f32 %v1595_v24, %v91_v56  ;;  %v161_v56 = vrot.slane %v160_v48, 4 }
  0x67   :  { %626 = vperm.xlu1 %1405, %v1516_v6   ;;  %v115_v46 = vsub.f32 %v1673_v61, %v1723_v36  ;;  %v139_v22 = vmul.f32 1.442695, %v112_v9 }
  0x68   :  { %712 = vperm.xlu0 %1407, %v1528_v8   ;;  %v143_v25 = vmul.f32 1.442695, %v114_v63  ;;  %v141_v18 = vmul.f32 1.442695, %v113_v16  ;;  %v1775_v12 = vadd.f32 %v161_v56, %v160_v48 }
  0x69   :  { %v145_v61 = vmul.f32 1.442695, %v115_v46 }
  0x6a   :  { %1420 = vpow2.f32 %v143_v25 }
  0x6b   :  { %632 = vperm.xlu1 %1405, %v1528_v8   ;;  %1422 = vpow2.f32 %v141_v18 }
  0x6c   :  { %1408 = vset.pattern.permute.xlu0 %v1467_v32  ;;  %1424 = vpow2.f32 %v119_v19 }
  0x6d   :  { %774 = vperm.xlu0 %1408, %v1492_v2   ;;  %1426 = vpow2.f32 %v125_v20 }
  0x6e   :  { %1428 = vpow2.f32 %v117_v26 }
  0x6f   :  { %1406 = vset.pattern.permute.xlu1 %v1466_v47  ;;  %v63_v47 = vrot.slane %v62_v45, 1 }
  0x70   :  { %694 = vperm.xlu1 %1406, %v1492_v2  }
  0x71   :  { %783 = vperm.xlu0 %1408, %v1499_v3   ;;  %v1700_v0 = vmax.f32 %v62_v45, %v63_v47  ;;  %v137_v45 = vmul.f32 1.442695, %v111_v35 }
  0x73   :  { %v107_v24 = vsub.f32 %v1640_v38, %v1700_v0  ;;  %v108_v49 = vsub.f32 %v1645_v39, %v1700_v0 }
  0x74   :  { %700 = vperm.xlu1 %1406, %v1487_v1   ;;  %v1745_v50 = vpop.eup %1420 }
  0x75   :  { %789 = vperm.xlu0 %1408, %v1511_v5   ;;  %v129_v38 = vmul.f32 1.442695, %v107_v24  ;;  %v1747_v53 = vpop.eup %1422  ;;  %v204_v17 = vsel %vm29_vm1, %v1745_v50, 0.0  ;;  %v131_v57 = vmul.f32 1.442695, %v108_v49 }
  0x76   :  { %v1752_v55 = vpop.eup %1424  ;;  %v203_v39 = vsel %vm27_vm0, %v1747_v53, 0.0 }
  0x77   :  { %1430 = vpow2.f32 %v129_v38  ;;  %v1754_v15 = vpop.eup %1426  ;;  %v150_v0 = vsel %vm29_vm1, %v1752_v55, 0.0  ;;  %v1777_v13 = vadd.f32 %v204_v17, %v203_v39  ;;  %v116_v38 = vsub.f32 %v1678_v62, %v1723_v36 }
  0x78   :  { %703 = vperm.xlu1 %1406, %v1499_v3   ;;  %1432 = vpow2.f32 %v127_v41  ;;  %v1760_v58 = vpop.eup %1428  ;;  %v1813_v48 = vsel %vm27_vm0, %v1754_v15, 0.0 }
  0x79   :  { %795 = vperm.xlu0 %1408, %v1523_v7   ;;  %1434 = vpow2.f32 %v137_v45  ;;  %v149_v16 = vsel %vm27_vm0, %v1760_v58, 0.0  ;;  %v206_v41 = vrot.slane %v1777_v13, 4 }
  0x7a   :  { %1436 = vpow2.f32 %v145_v61  ;;  %v1790_v20 = vadd.f32 %v150_v0, %v149_v16 }
  0x7b   :  { %1438 = vpow2.f32 %v131_v57 }
  0x7c   :  { %709 = vperm.xlu1 %1406, %v1511_v5   ;;  %1440 = vpow2.f32 %v139_v22 }
  0x7d   :  { %1411 = vset.pattern.permute.xlu0 %v1468_v21 }
  0x7e   :  { %858 = vperm.xlu0 %1411, %v1504_v4  }
  0x80   :  { %715 = vperm.xlu1 %1406, %v1523_v7  }
  0x81   :  { %v250_v31 = vpop.permute.xlu1 %249  ;;  %v240_v33 = vpop.permute.xlu0 %239 }
  0x82   :  { %870 = vperm.xlu0 %1411, %v1516_v6   ;;  %v919_v14 = vrot.slane %v250_v31, 1  ;;  %v917_v59 = vrot.slane %v240_v33, 1  ;;  %v1773_v10 = vpop.eup %1430  ;;  %v277_v25 = vmul.f32 %v1760_v58, %v240_v33 }
  0x83   :  { %v1792_v26 = vpop.eup %1432 }
  0x84   :  { %1409 = vset.pattern.permute.xlu1 %v1467_v32  ;;  %v187_v32 = vadd.f32 %v186_v51, %v185_v42  ;;  %v1786_v24 = vmul.f32 %v1754_v15, %v919_v14  ;;  %v933_v52 = vmul.f32 %v1760_v58, %v917_v59  ;;  %2473 = vst [vmem:[#allocation2_spill] sm:$0xff] %v1792_v26 }
  0x85   :  { %v1737_v43 = vpop.permute.xlu1 %254  ;;  %777 = vperm.xlu1 %1409, %v1504_v4   ;;  %v245_v44 = vpop.permute.xlu0 %244 }
  0x86   :  { %878 = vperm.xlu0 %1411, %v1528_v8   ;;  %v188_v47 = vrot.slane %v187_v32, 4  ;;  %v918_v11 = vrot.slane %v245_v44, 1  ;;  %v920_v19 = vrot.slane %v1737_v43, 1  ;;  %v1796_v29 = vmul.f32 %v1773_v10, %v1737_v43 }
  0x87   :  { %v278_v28 = vmul.f32 %v1719_v34, %v245_v44 }
  0x88   :  { %v1783_v18 = vadd.f32 %v188_v47, %v187_v32  ;;  %v936_v45 = vmul.f32 %v1773_v10, %v920_v19  ;;  %v1817_v32 = vsel %vm29_vm1, %v1792_v26, 0.0 }
  0x89   :  { %v1749_v54 = vpop.permute.xlu1 %264  ;;  %780 = vperm.xlu1 %1409, %v1487_v1   ;;  %v260_v4 = vpop.permute.xlu0 %259 }
  0x8a   :  { %v922_v33 = vrot.slane %v1749_v54, 1  ;;  %v921_v35 = vrot.slane %v260_v4, 1  ;;  %v281_v17 = vmul.f32 %v1726_v27, %v260_v4 }
  0x8c   :  { %v937_v57 = vmul.f32 %v1726_v27, %v921_v35 }
  0x8d   :  { %v1762_v60 = vpop.permute.xlu1 %274  ;;  %786 = vperm.xlu1 %1409, %v1516_v6   ;;  %v1765_v63 = vpop.permute.xlu0 %269  ;;  %v1780_v6 = vmul.f32 %v1754_v15, %v250_v31  ;;  %v934_v31 = vmul.f32 %v1719_v34, %v918_v11 }
  0x8e   :  { %v923_v22 = vrot.slane %v1765_v63, 1 }
  0x91   :  { %792 = vperm.xlu1 %1409, %v1528_v8   ;;  %v1807_v8 = vpop.eup %1434 }
  0x92   :  { %v298_v37 = vpop.permute.xlu1 %297  ;;  %v295_v40 = vpop.permute.xlu0 %294  ;;  %v938_v39 = vmul.f32 %v1807_v8, %v922_v33 }
  0x93   :  { %v318_v42 = vrot.slane %v298_v37, 7  ;;  %v958_v51 = vmul.f32 %v1719_v34, %v298_v37  ;;  %v317_v43 = vrot.slane %v295_v40, 7  ;;  %v957_v44 = vmul.f32 %v1760_v58, %v295_v40  ;;  %v1830_v19 = vpop.eup %1436 }
  0x94   :  { %v1834_v35 = vpop.eup %1438 }
  0x95   :  { %v334_v49 = vmul.f32 %v1719_v34, %v318_v42  ;;  %v974_v61 = vrot.slane %v958_v51, 1  ;;  %v333_v56 = vmul.f32 %v1760_v58, %v317_v43  ;;  %v973_v47 = vrot.slane %v957_v44, 1  ;;  %1410 = vset.pattern.permute.xlu1 %v1468_v21  ;;  %2474 = vst [vmem:[#allocation3_spill] sm:$0xff] %v1834_v35 }
  0x96   :  { %v301_v14 = vpop.permute.xlu1 %300  ;;  %854 = vperm.xlu1 %1410, %v1492_v2   ;;  %v304_v59 = vpop.permute.xlu0 %303  ;;  %v924_v2 = vrot.slane %v1762_v60, 1 }
  0x97   :  { %v350_v16 = vrot.slane %v334_v49, 1  ;;  %v1826_v0 = vadd.f32 %v974_v61, %v934_v31  ;;  %v349_v9 = vrot.slane %v333_v56, 1  ;;  %v1828_v11 = vadd.f32 %v973_v47, %v933_v52 }
  0x98   :  { %v319_v21 = vrot.slane %v301_v14, 7  ;;  %v959_v33 = vmul.f32 %v1754_v15, %v301_v14  ;;  %v320_v37 = vrot.slane %v304_v59, 7  ;;  %v960_v4 = vmul.f32 %v1773_v10, %v304_v59 }
  0x99   :  { %v1838_v40 = vadd.f32 %v350_v16, %v278_v28  ;;  %v1840_v31 = vadd.f32 %v349_v9, %v277_v25 }
  0x9a   :  { %v335_v52 = vmul.f32 %v1754_v15, %v319_v21  ;;  %v975_v42 = vrot.slane %v959_v33, 1  ;;  %v336_v51 = vmul.f32 %v1773_v10, %v320_v37  ;;  %v976_v43 = vrot.slane %v960_v4, 1  ;;  %v307_v44 = vpop.permute.xlu1 %306  ;;  %862 = vperm.xlu1 %1410, %v1487_v1   ;;  %v310_v49 = vpop.permute.xlu0 %309 }
  0x9b   :  { %v321_v61 = vrot.slane %v307_v44, 7  ;;  %v961_v56 = vmul.f32 %v1726_v27, %v307_v44  ;;  %v322_v47 = vrot.slane %v310_v49, 7  ;;  %v962_v14 = vmul.f32 %v1807_v8, %v310_v49 }
  0x9c   :  { %v351_v28 = vrot.slane %v335_v52, 1  ;;  %v1848_v25 = vadd.f32 %v975_v42, %v1786_v24  ;;  %v352_v59 = vrot.slane %v336_v51, 1  ;;  %v1850_v16 = vadd.f32 %v976_v43, %v936_v45 }
  0x9d   :  { %v337_v9 = vmul.f32 %v1726_v27, %v321_v61  ;;  %v977_v21 = vrot.slane %v961_v56, 1  ;;  %v338_v33 = vmul.f32 %v1807_v8, %v322_v47  ;;  %v978_v1 = vrot.slane %v962_v14, 1  ;;  %v1868_v61 = vpop.eup %1440 }
  0x9e   :  { %v282_v37 = vmul.f32 %v1807_v8, %v1749_v54  ;;  %v939_v4 = vmul.f32 %v1747_v53, %v923_v22  ;;  %v1858_v44 = vadd.f32 %v351_v28, %v1780_v6  ;;  %v1861_v24 = vadd.f32 %v352_v59, %v1796_v29  ;;  %v313_v52 = vpop.permute.xlu1 %312  ;;  %866 = vperm.xlu1 %1410, %v1499_v3   ;;  %v316_v45 = vpop.permute.xlu0 %315 }
  0x9f   :  { %v353_v42 = vrot.slane %v337_v9, 1  ;;  %v1864_v51 = vadd.f32 %v977_v21, %v937_v57  ;;  %v354_v43 = vrot.slane %v338_v33, 1  ;;  %v1866_v49 = vadd.f32 %v978_v1, %v938_v39  ;;  %2475 = vst [vmem:[#allocation4_spill] sm:$0xff] %v1868_v61 }
  0xa0   :  { %v323_v54 = vrot.slane %v313_v52, 7  ;;  %v963_v22 = vmul.f32 %v1747_v53, %v313_v52  ;;  %v324_v6 = vrot.slane %v316_v45, 7  ;;  %v964_v56 = vmul.f32 %v1830_v19, %v316_v45 }
  0xa1   :  { %v940_v29 = vmul.f32 %v1830_v19, %v924_v2  ;;  %v283_v3 = vmul.f32 %v1747_v53, %v1765_v63  ;;  %v369_v47 = vadd.f32 %v353_v42, %v281_v17  ;;  %v1875_v14 = vadd.f32 %v354_v43, %v282_v37 }
  0xa2   :  { %v339_v57 = vmul.f32 %v1747_v53, %v323_v54  ;;  %v979_v39 = vrot.slane %v963_v22, 1  ;;  %v340_v28 = vmul.f32 %v1830_v19, %v324_v6  ;;  %v980_v59 = vrot.slane %v964_v56, 1  ;;  %874 = vperm.xlu1 %1410, %v1511_v5  }
  0xa3   :  { %v284_v9 = vmul.f32 %v1830_v19, %v1762_v60  ;;  %v375_v21 = vpop.permute.xlu1 %374  ;;  %v378_v33 = vpop.permute.xlu0 %377  ;;  %v1884_v2 = vadd.f32 %v1817_v32, %v1813_v48  ;;  %v176_v63 = vsel %vm27_vm0, %v1773_v10, 0.0  ;;  %v177_v17 = vsel %vm29_vm1, %v1834_v35, 0.0 }
  0xa4   :  { %v355_v1 = vrot.slane %v339_v57, 1  ;;  %v1890_v37 = vadd.f32 %v979_v39, %v939_v4  ;;  %v356_v52 = vrot.slane %v340_v28, 1  ;;  %v1892_v5 = vadd.f32 %v980_v59, %v940_v29 }
  0xa5   :  { %v397_v45 = vrot.slane %v375_v21, 6  ;;  %v997_v60 = vrot.slane %v375_v21, 7  ;;  %v398_v42 = vrot.slane %v378_v33, 6  ;;  %v998_v43 = vrot.slane %v378_v33, 7 }
  0xa6   :  { %v371_v54 = vadd.f32 %v355_v1, %v283_v3  ;;  %v1894_v22 = vadd.f32 %v356_v52, %v284_v9  ;;  %882 = vperm.xlu1 %1410, %v1523_v7   ;;  %v1897_v48 = vadd.f32 %v177_v17, %v176_v63  ;;  %v1901_v32 = vsel %vm27_vm0, %v1807_v8, 0.0 }
  0xa7   :  { %v413_v4 = vmul.f32 %v1760_v58, %v397_v45  ;;  %v1013_v6 = vmul.f32 %v1760_v58, %v997_v60  ;;  %v414_v56 = vmul.f32 %v1719_v34, %v398_v42  ;;  %v1014_v29 = vmul.f32 %v1719_v34, %v998_v43  ;;  %v381_v57 = vpop.permute.xlu1 %380  ;;  %v387_v3 = vpop.permute.xlu0 %386 }
  0xa8   :  { %v399_v39 = vrot.slane %v381_v57, 6  ;;  %v999_v28 = vrot.slane %v381_v57, 7  ;;  %v401_v59 = vrot.slane %v387_v3, 6  ;;  %v1001_v7 = vrot.slane %v387_v3, 7 }
  0xa9   :  { %v429_v9 = vrot.slane %v413_v4, 2  ;;  %v1029_v21 = vrot.slane %v1013_v6, 2  ;;  %v430_v33 = vrot.slane %v414_v56, 2  ;;  %v1030_v63 = vrot.slane %v1014_v29, 2 }
  0xaa   :  { %v415_v17 = vmul.f32 %v1754_v15, %v399_v39  ;;  %v1015_v1 = vmul.f32 %v1754_v15, %v999_v28  ;;  %v417_v52 = vmul.f32 %v1726_v27, %v401_v59  ;;  %v1017_v45 = vmul.f32 %v1726_v27, %v1001_v7 }
  0xab   :  { %v445_v60 = vadd.f32 %v429_v9, %v1840_v31  ;;  %v1045_v42 = vadd.f32 %v1029_v21, %v1828_v11  ;;  %v1914_v43 = vadd.f32 %v430_v33, %v1838_v40  ;;  %v1917_v4 = vadd.f32 %v1030_v63, %v1826_v0  ;;  %v384_v6 = vpop.permute.xlu1 %383  ;;  %v393_v56 = vpop.permute.xlu0 %392 }
  0xac   :  { %v431_v29 = vrot.slane %v415_v17, 2  ;;  %v1031_v57 = vrot.slane %v1015_v1, 2  ;;  %v433_v3 = vrot.slane %v417_v52, 2  ;;  %v1033_v39 = vrot.slane %v1017_v45, 2 }
  0xad   :  { %v400_v28 = vrot.slane %v384_v6, 6  ;;  %v1000_v59 = vrot.slane %v384_v6, 7  ;;  %v403_v46 = vrot.slane %v393_v56, 6  ;;  %v1003_v7 = vrot.slane %v393_v56, 7 }
  0xae   :  { %v1920_v31 = vadd.f32 %v431_v29, %v1858_v44  ;;  %v1923_v11 = vadd.f32 %v1031_v57, %v1848_v25  ;;  %v1925_v40 = vadd.f32 %v433_v3, %v369_v47  ;;  %v1928_v0 = vadd.f32 %v1033_v39, %v1864_v51 }
  0xaf   :  { %v416_v9 = vmul.f32 %v1773_v10, %v400_v28  ;;  %v1016_v21 = vmul.f32 %v1773_v10, %v1000_v59  ;;  %v419_v33 = vmul.f32 %v1747_v53, %v403_v46  ;;  %v1019_v63 = vmul.f32 %v1747_v53, %v1003_v7  ;;  %v390_v17 = vpop.permute.xlu1 %389 }
  0xb0   :  { %v402_v1 = vrot.slane %v390_v17, 6  ;;  %v1002_v44 = vrot.slane %v390_v17, 7  ;;  %v455_v52 = vpop.permute.xlu0 %454  ;;  %v195_v25 = vsel %vm29_vm1, %v1868_v61, 0.0  ;;  %v147_v51 = vmul.f32 1.442695, %v116_v38 }
  0xb1   :  { %v432_v47 = vrot.slane %v416_v9, 2  ;;  %v1032_v45 = vrot.slane %v1016_v21, 2  ;;  %v435_v6 = vrot.slane %v419_v33, 2  ;;  %v1035_v56 = vrot.slane %v1019_v63, 2 }
  0xb2   :  { %v418_v29 = vmul.f32 %v1807_v8, %v402_v1  ;;  %v1018_v46 = vmul.f32 %v1807_v8, %v1002_v44  ;;  %v477_v57 = vrot.slane %v455_v52, 5  ;;  %v1053_v3 = vrot.slane %v455_v52, 6 }
  0xb3   :  { %v448_v39 = vadd.f32 %v432_v47, %v1861_v24  ;;  %v1048_v28 = vadd.f32 %v1032_v45, %v1850_v16  ;;  %v1943_v59 = vadd.f32 %v435_v6, %v371_v54  ;;  %v1946_v7 = vadd.f32 %v1035_v56, %v1890_v37  ;;  %v396_v62 = vpop.permute.xlu1 %395 }
  0xb4   :  { %v434_v36 = vrot.slane %v418_v29, 2  ;;  %v1034_v38 = vrot.slane %v1018_v46, 2  ;;  %v493_v9 = vmul.f32 %v1760_v58, %v477_v57  ;;  %v1069_v21 = vmul.f32 %v1760_v58, %v1053_v3  ;;  %v464_v33 = vpop.permute.xlu0 %463 }
  0xb5   :  { %v404_v63 = vrot.slane %v396_v62, 6  ;;  %v1004_v17 = vrot.slane %v396_v62, 7  ;;  %v480_v1 = vrot.slane %v464_v33, 5  ;;  %v1056_v44 = vrot.slane %v464_v33, 6 }
  0xb6   :  { %v450_v24 = vadd.f32 %v434_v36, %v1875_v14  ;;  %v1050_v16 = vadd.f32 %v1034_v38, %v1866_v49  ;;  %v509_v54 = vrot.slane %v493_v9, 3  ;;  %v1085_v52 = vrot.slane %v1069_v21, 3 }
  0xb7   :  { %v420_v37 = vmul.f32 %v1830_v19, %v404_v63  ;;  %v1020_v47 = vmul.f32 %v1830_v19, %v1004_v17  ;;  %v496_v45 = vmul.f32 %v1773_v10, %v480_v1  ;;  %v1072_v6 = vmul.f32 %v1773_v10, %v1056_v44 }
  0xb8   :  { %v1956_v56 = vadd.f32 %v509_v54, %v445_v60  ;;  %v1958_v29 = vadd.f32 %v1085_v52, %v1045_v42  ;;  %v458_v46 = vpop.permute.xlu1 %457  ;;  %v470_v57 = vpop.permute.xlu0 %469  ;;  %v1961_v14 = vadd.f32 %v195_v25, %v1901_v32  ;;  %1442 = vpow2.f32 %v147_v51 }
  0xb9   :  { %v436_v49 = vrot.slane %v420_v37, 2  ;;  %v1036_v3 = vrot.slane %v1020_v47, 2  ;;  %v512_v62 = vrot.slane %v496_v45, 3  ;;  %v1088_v36 = vrot.slane %v1072_v6, 3 }
  0xba   :  { %v478_v38 = vrot.slane %v458_v46, 5  ;;  %v1054_v9 = vrot.slane %v458_v46, 6  ;;  %v482_v21 = vrot.slane %v470_v57, 5  ;;  %v1058_v33 = vrot.slane %v470_v57, 6 }
  0xbb   :  { %v452_v63 = vadd.f32 %v436_v49, %v1894_v22  ;;  %v1052_v60 = vadd.f32 %v1036_v3, %v1892_v5  ;;  %v1965_v42 = vadd.f32 %v512_v62, %v448_v39  ;;  %v1967_v17 = vadd.f32 %v1088_v36, %v1048_v28 }
  0xbc   :  { %v494_v32 = vmul.f32 %v1719_v34, %v478_v38  ;;  %v1070_v25 = vmul.f32 %v1719_v34, %v1054_v9  ;;  %v498_v51 = vmul.f32 %v1807_v8, %v482_v21  ;;  %v1074_v1 = vmul.f32 %v1807_v8, %v1058_v33  ;;  %v461_v44 = vpop.permute.xlu1 %460  ;;  %v476_v54 = vpop.permute.xlu0 %475 }
  0xbd   :  { %v479_v52 = vrot.slane %v461_v44, 5  ;;  %v1055_v37 = vrot.slane %v461_v44, 6  ;;  %v484_v47 = vrot.slane %v476_v54, 5  ;;  %v1060_v22 = vrot.slane %v476_v54, 6 }
  0xbe   :  { %v510_v45 = vrot.slane %v494_v32, 3  ;;  %v1086_v5 = vrot.slane %v1070_v25, 3  ;;  %v514_v39 = vrot.slane %v498_v51, 3  ;;  %v1090_v6 = vrot.slane %v1074_v1, 3 }
  0xbf   :  { %v495_v28 = vmul.f32 %v1754_v15, %v479_v52  ;;  %v1071_v46 = vmul.f32 %v1754_v15, %v1055_v37  ;;  %v500_v57 = vmul.f32 %v1830_v19, %v484_v47  ;;  %v1076_v49 = vmul.f32 %v1830_v19, %v1060_v22 }
  0xc0   :  { %v1978_v3 = vadd.f32 %v510_v45, %v1914_v43  ;;  %v1981_v62 = vadd.f32 %v1086_v5, %v1917_v4  ;;  %v1983_v36 = vadd.f32 %v514_v39, %v450_v24  ;;  %v1985_v38 = vadd.f32 %v1090_v6, %v1050_v16  ;;  %v467_v9 = vpop.permute.xlu1 %466 }
  0xc1   :  { %v511_v21 = vrot.slane %v495_v28, 3  ;;  %v1087_v33 = vrot.slane %v1071_v46, 3  ;;  %v516_v32 = vrot.slane %v500_v57, 3  ;;  %v1092_v25 = vrot.slane %v1076_v49, 3  ;;  %v1987_v51 = vpop.permute.xlu0 %537 }
  0xc2   :  { %v1989_v1 = vpop.eup %1442  ;;  %v481_v44 = vrot.slane %v467_v9, 5  ;;  %v1057_v54 = vrot.slane %v467_v9, 6  ;;  %v170_v43 = vrot.slane %v1884_v2, 4  ;;  %v179_v4 = vrot.slane %v1897_v48, 4 }
  0xc3   :  { %2476 = vst [vmem:[#allocation5_spill] sm:$0xff] %v1989_v1  ;;  %v1994_v24 = vadd.f32 %v511_v21, %v1920_v31  ;;  %v1997_v16 = vadd.f32 %v1087_v33, %v1923_v11  ;;  %v1999_v52 = vadd.f32 %v516_v32, %v452_v63  ;;  %v2001_v37 = vadd.f32 %v1092_v25, %v1052_v60 }
  0xc4   :  { %v497_v47 = vmul.f32 %v1726_v27, %v481_v44  ;;  %v1073_v22 = vmul.f32 %v1726_v27, %v1057_v54  ;;  %v473_v45 = vpop.permute.xlu1 %472  ;;  %v207_v5 = vadd.f32 %v206_v41, %v1777_v13  ;;  %v197_v39 = vrot.slane %v1961_v14, 4 }
  0xc5   :  { %v483_v31 = vrot.slane %v473_v45, 5  ;;  %v1059_v6 = vrot.slane %v473_v45, 6  ;;  %v2009_v28 = vpop.permute.xlu0 %546  ;;  %v163_v11 = vrot.slane %v1775_v12, 2  ;;  %v2477_v63 = vrot.slane %v1790_v20, 4 }
  0xc6   :  { %v513_v46 = vrot.slane %v497_v47, 3  ;;  %v1089_v57 = vrot.slane %v1073_v22, 3  ;;  %v171_v49 = vadd.f32 %v170_v43, %v1884_v2  ;;  %v190_v41 = vrot.slane %v1783_v18, 2 }
  0xc7   :  { %v153_v60 = vadd.f32 %v2477_v63, %v1790_v20  ;;  %v499_v9 = vmul.f32 %v1747_v53, %v483_v31  ;;  %v1075_v13 = vmul.f32 %v1747_v53, %v1059_v6  ;;  %v180_v21 = vadd.f32 %v179_v4, %v1897_v48 }
  0xc8   :  { %v2021_v33 = vadd.f32 %v513_v46, %v1925_v40  ;;  %v2024_v32 = vadd.f32 %v1089_v57, %v1928_v0  ;;  %v208_v25 = vrot.slane %v207_v5, 2  ;;  %v198_v20 = vadd.f32 %v197_v39, %v1961_v14 }
  0xc9   :  { %v515_v44 = vrot.slane %v499_v9, 3  ;;  %v1091_v54 = vrot.slane %v1075_v13, 3  ;;  %v535_v2 = vpop.permute.xlu1 %534  ;;  %v2027_v43 = vpop.permute.xlu0 %552  ;;  %v164_v47 = vadd.f32 %v163_v11, %v1775_v12  ;;  %v154_v22 = vrot.slane %v153_v60, 2 }
  0xca   :  { %v172_v45 = vrot.slane %v171_v49, 2  ;;  %v191_v0 = vadd.f32 %v190_v41, %v1783_v18  ;;  %v181_v4 = vrot.slane %v180_v21, 2  ;;  %v209_v31 = vadd.f32 %v208_v25, %v207_v5 }
  0xcb   :  { %v2031_v48 = vadd.f32 %v515_v44, %v1943_v59  ;;  %v2034_v40 = vadd.f32 %v1091_v54, %v1946_v7  ;;  %v199_v14 = vrot.slane %v198_v20, 2  ;;  %v165_v6 = vrot.slane %v164_v47, 1 }
  0xcc   :  { %v155_v63 = vadd.f32 %v154_v22, %v153_v60  ;;  %v173_v12 = vadd.f32 %v172_v45, %v171_v49  ;;  %v212_v11 = vsel %vm27_vm0, %v1830_v19, 0.0  ;;  %v213_v59 = vsel %vm29_vm1, %v1989_v1, 0.0 }
  0xcd   :  { %v2037_v39 = vpop.permute.xlu1 %540  ;;  %v192_v7 = vrot.slane %v191_v0, 1  ;;  %v182_v57 = vadd.f32 %v181_v4, %v180_v21  ;;  %v210_v9 = vrot.slane %v209_v31, 1  ;;  %v200_v18 = vadd.f32 %v199_v14, %v198_v20 }
  0xce   :  { %v2039_v46 = vpop.permute.xlu0 %614  ;;  %v166_v5 = vadd.f32 %v165_v6, %v164_v47  ;;  %v156_v41 = vrot.slane %v155_v63, 1  ;;  %v214_v25 = vadd.f32 %v213_v59, %v212_v11  ;;  %v558_v60 = vrot.slane %v1987_v51, 4 }
  0xcf   :  { %v174_v49 = vrot.slane %v173_v12, 1  ;;  %v1110_v54 = vrot.slane %v1987_v51, 5  ;;  %v561_v22 = vrot.slane %v2009_v28, 4  ;;  %v193_v45 = vadd.f32 %v192_v7, %v191_v0 }
  0xd0   :  { %v183_v1 = vrot.slane %v182_v57, 1  ;;  %v1113_v21 = vrot.slane %v2009_v28, 5  ;;  %v211_v4 = vadd.f32 %v210_v9, %v209_v31  ;;  %v201_v20 = vrot.slane %v200_v18, 1 }
  0xd1   :  { %v2045_v13 = vpop.permute.xlu1 %543  ;;  %1444 = vrcp.f32 %v166_v5  ;;  %v157_v47 = vadd.f32 %v156_v41, %v155_v63  ;;  %v215_v6 = vrot.slane %v214_v25, 4  ;;  %v574_v11 = vmul.f32 %v1719_v34, %v558_v60 }
  0xd2   :  { %v2048_v44 = vpop.permute.xlu0 %623  ;;  %v557_v59 = vrot.slane %v535_v2, 4  ;;  %v1109_v61 = vrot.slane %v535_v2, 5  ;;  %v175_v51 = vadd.f32 %v174_v49, %v173_v12  ;;  %v1126_v26 = vmul.f32 %v1719_v34, %v1110_v54 }
  0xd3   :  { %v577_v0 = vmul.f32 %v1726_v27, %v561_v22  ;;  %1446 = vrcp.f32 %v193_v45  ;;  %v184_v28 = vadd.f32 %v183_v1, %v182_v57  ;;  %v1129_v31 = vmul.f32 %v1726_v27, %v1113_v21 }
  0xd4   :  { %v563_v7 = vrot.slane %v2027_v43, 4  ;;  %1448 = vrcp.f32 %v211_v4  ;;  %v202_v63 = vadd.f32 %v201_v20, %v200_v18  ;;  %v1115_v9 = vrot.slane %v2027_v43, 5 }
  0xd5   :  { %v2053_v14 = vpop.permute.xlu1 %549  ;;  %1450 = vrcp.f32 %v157_v47  ;;  %v216_v2 = vadd.f32 %v215_v6, %v214_v25  ;;  %v590_v41 = vrot.slane %v574_v11, 4  ;;  %v573_v12 = vmul.f32 %v1760_v58, %v557_v59 }
  0xd6   :  { %v2056_v35 = vpop.permute.xlu0 %629  ;;  %v1125_v60 = vmul.f32 %v1760_v58, %v1109_v61  ;;  %1452 = vrcp.f32 %v175_v51  ;;  %v1142_v1 = vrot.slane %v1126_v26, 4  ;;  %v593_v57 = vrot.slane %v577_v0, 4 }
  0xd7   :  { %1454 = vrcp.f32 %v184_v28  ;;  %v1145_v54 = vrot.slane %v1129_v31, 4  ;;  %v579_v18 = vmul.f32 %v1747_v53, %v563_v7  ;;  %v1131_v43 = vmul.f32 %v1747_v53, %v1115_v9 }
  0xd8   :  { %1456 = vrcp.f32 %v202_v63  ;;  %v559_v22 = vrot.slane %v2037_v39, 4  ;;  %v1111_v25 = vrot.slane %v2037_v39, 5  ;;  %v217_v45 = vrot.slane %v216_v2, 2 }
  0xd9   :  { %v2063_v5 = vpop.permute.xlu1 %555  ;;  %v2074_v21 = vadd.f32 %v590_v41, %v1978_v3  ;;  %v589_v61 = vrot.slane %v573_v12, 4  ;;  %v1141_v4 = vrot.slane %v1125_v60, 4  ;;  %v560_v26 = vrot.slane %v2045_v13, 4 }
  0xda   :  { %v2067_v49 = vpop.permute.xlu0 %635  ;;  %v2082_v6 = vadd.f32 %v1142_v1, %v1981_v62  ;;  %v2085_v11 = vadd.f32 %v593_v57, %v2021_v33  ;;  %v637_v39 = vrot.slane %v2039_v46, 3  ;;  %v1112_v59 = vrot.slane %v2045_v13, 5 }
  0xdb   :  { %v2079_v47 = vpop.eup %1444  ;;  %v2092_v51 = vadd.f32 %v1145_v54, %v2024_v32  ;;  %v595_v0 = vrot.slane %v579_v18, 4  ;;  %v1165_v28 = vrot.slane %v2039_v46, 4  ;;  %v562_v31 = vrot.slane %v2053_v14, 4 }
  0xdc   :  { %v1147_v62 = vrot.slane %v1131_v43, 4  ;;  %v575_v33 = vmul.f32 %v1754_v15, %v559_v22  ;;  %v1127_v63 = vmul.f32 %v1754_v15, %v1111_v25  ;;  %v2100_v9 = vadd.f32 %v217_v45, %v216_v2 }
  0xdd   :  { %v2096_v7 = vpop.eup %1446  ;;  %v605_v41 = vadd.f32 %v589_v61, %v1956_v56  ;;  %v1157_v32 = vadd.f32 %v1141_v4, %v1958_v29  ;;  %v576_v12 = vmul.f32 %v1773_v10, %v560_v26  ;;  %v1114_v46 = vrot.slane %v2053_v14, 5 }
  0xde   :  { %v2077_v20 = vpop.permute.xlu1 %617  ;;  %2478 = vst [vmem:[#allocation6_spill] sm:$0xff] %v2096_v7  ;;  %v2102_v13 = vpop.eup %1448  ;;  %v653_v57 = vmul.f32 %v1760_v58, %v637_v39  ;;  %v1128_v54 = vmul.f32 %v1773_v10, %v1112_v59  ;;  %v640_v2 = vrot.slane %v2048_v44, 3  ;;  %v1168_v18 = vrot.slane %v2048_v44, 4 }
  0xdf   :  { %v2089_v3 = vpop.permute.xlu0 %697  ;;  %2479 = vst [vmem:[#allocation7_spill] sm:$0xff] %v2102_v13  ;;  %v2110_v1 = vpop.eup %1450  ;;  %v2121_v29 = vadd.f32 %v595_v0, %v2031_v48  ;;  %v1181_v14 = vmul.f32 %v1760_v58, %v1165_v28  ;;  %v578_v22 = vmul.f32 %v1807_v8, %v562_v31  ;;  %v642_v25 = vrot.slane %v2056_v35, 3 }
  0xe0   :  { %2480 = vst [vmem:[#allocation8_spill] sm:$0xff] %v2110_v1  ;;  %v2118_v56 = vpop.eup %1452  ;;  %v2129_v61 = vadd.f32 %v1147_v62, %v2034_v40  ;;  %v591_v4 = vrot.slane %v575_v33, 4  ;;  %v1143_v44 = vrot.slane %v1127_v63, 4  ;;  %v564_v26 = vrot.slane %v2063_v5, 4 }
  0xe1   :  { %2481 = vst [vmem:[#allocation9_spill] sm:$0xff] %v2118_v56  ;;  %v2126_v45 = vpop.eup %1454  ;;  %v592_v59 = vrot.slane %v576_v12, 4  ;;  %v1130_v48 = vmul.f32 %v1807_v8, %v1114_v46  ;;  %v1170_v0 = vrot.slane %v2056_v35, 4  ;;  %v219_v31 = vrot.slane %v2100_v9, 1 }
  0xe2   :  { %v2108_v60 = vpop.permute.xlu1 %620  ;;  %2482 = vst [vmem:[#allocation10_spill] sm:$0xff] %v2126_v45  ;;  %v2132_v39 = vpop.eup %1456  ;;  %v669_v56 = vrot.slane %v653_v57, 5  ;;  %v1144_v45 = vrot.slane %v1128_v54, 4  ;;  %v656_v40 = vmul.f32 %v1773_v10, %v640_v2  ;;  %v1184_v62 = vmul.f32 %v1773_v10, %v1168_v18 }
  0xe3   :  { %v2116_v43 = vpop.permute.xlu0 %706  ;;  %2483 = vst [vmem:[#allocation11_spill] sm:$0xff] %v2132_v39  ;;  %v1197_v33 = vrot.slane %v1181_v14, 5  ;;  %v594_v63 = vrot.slane %v578_v22, 4  ;;  %v658_v13 = vmul.f32 %v1807_v8, %v642_v25  ;;  %v1116_v12 = vrot.slane %v2063_v5, 5 }
  0xe4   :  { %v2146_v35 = vadd.f32 %v591_v4, %v1994_v24  ;;  %v2149_v46 = vadd.f32 %v1143_v44, %v1997_v16  ;;  %v580_v57 = vmul.f32 %v1830_v19, %v564_v26  ;;  %v644_v54 = vrot.slane %v2067_v49, 3 }
  0xe5   :  { %v608_v2 = vadd.f32 %v592_v59, %v1965_v42  ;;  %v1146_v18 = vrot.slane %v1130_v48, 4  ;;  %v1186_v14 = vmul.f32 %v1807_v8, %v1170_v0  ;;  %v638_v22 = vrot.slane %v2077_v20, 3 }
  0xe6   :  { %v2136_v28 = vpop.permute.xlu1 %626  ;;  %v1160_v25 = vadd.f32 %v1144_v45, %v1967_v17  ;;  %v672_v24 = vrot.slane %v656_v40, 5  ;;  %v1200_v4 = vrot.slane %v1184_v62, 5  ;;  %v1166_v16 = vrot.slane %v2077_v20, 4 }
  0xe7   :  { %v2143_v39 = vpop.permute.xlu0 %712  ;;  %v610_v44 = vadd.f32 %v594_v63, %v1983_v36  ;;  %v674_v26 = vrot.slane %v658_v13, 5  ;;  %v1132_v1 = vmul.f32 %v1830_v19, %v1116_v12  ;;  %v1172_v42 = vrot.slane %v2067_v49, 4 }
  0xe8   :  { %v2163_v59 = vadd.f32 %v669_v56, %v605_v41  ;;  %v2165_v48 = vadd.f32 %v1197_v33, %v1157_v32  ;;  %v596_v0 = vrot.slane %v580_v57, 4  ;;  %v660_v7 = vmul.f32 %v1830_v19, %v644_v54 }
  0xe9   :  { %v1162_v17 = vadd.f32 %v1146_v18, %v1985_v38  ;;  %v1202_v45 = vrot.slane %v1186_v14, 5  ;;  %v654_v40 = vmul.f32 %v1719_v34, %v638_v22  ;;  %v718_v20 = vrot.slane %v2089_v3, 2 }
  0xea   :  { %v2156_v5 = vpop.permute.xlu1 %632  ;;  %v2173_v13 = vadd.f32 %v672_v24, %v608_v2  ;;  %v2175_v62 = vadd.f32 %v1200_v4, %v1160_v25  ;;  %v1182_v49 = vmul.f32 %v1719_v34, %v1166_v16  ;;  %v1222_v41 = vrot.slane %v2089_v3, 3 }
  0xeb   :  { %v2181_v56 = vadd.f32 %v674_v26, %v610_v44  ;;  %v1148_v38 = vrot.slane %v1132_v1, 4  ;;  %v2184_v33 = vmul.f32 %v1830_v19, %v1172_v42  ;;  %v220_v63 = vadd.f32 %v219_v31, %v2100_v9 }
  0xec   :  { %v2171_v36 = vpop.permute.xlu0 %774  ;;  %v612_v12 = vadd.f32 %v596_v0, %v1999_v52  ;;  %v676_v57 = vrot.slane %v660_v7, 5  ;;  %v641_v54 = vrot.slane %v2136_v28, 3  ;;  %v1169_v2 = vrot.slane %v2136_v28, 4 }
  0xed   :  { %v2190_v18 = vadd.f32 %v1202_v45, %v1162_v17  ;;  %v670_v3 = vrot.slane %v654_v40, 5  ;;  %v734_v14 = vmul.f32 %v1719_v34, %v718_v20  ;;  %v639_v22 = vrot.slane %v2108_v60, 3 }
  0xee   :  { %v1198_v25 = vrot.slane %v1182_v49, 5  ;;  %v1238_v24 = vmul.f32 %v1719_v34, %v1222_v41  ;;  %v1167_v9 = vrot.slane %v2108_v60, 4  ;;  %v643_v52 = vrot.slane %v2156_v5, 3 }
  0xef   :  { %v2179_v32 = vpop.permute.xlu1 %694  ;;  %v2202_v28 = vadd.f32 %v1148_v38, %v2001_v37  ;;  %v1204_v31 = vrot.slane %v2184_v33, 5  ;;  %v721_v4 = vrot.slane %v2116_v43, 2  ;;  %v1225_v16 = vrot.slane %v2116_v43, 3 }
  0xf0   :  { %v2194_v1 = vpop.permute.xlu0 %783  ;;  %v2207_v44 = vadd.f32 %v676_v57, %v612_v12  ;;  %v657_v26 = vmul.f32 %v1726_v27, %v641_v54  ;;  %v1185_v42 = vmul.f32 %v1726_v27, %v1169_v2  ;;  %v1171_v60 = vrot.slane %v2156_v5, 4 }
  0xf1   :  { %v686_v0 = vadd.f32 %v670_v3, %v2074_v21  ;;  %v750_v17 = vrot.slane %v734_v14, 6  ;;  %v655_v37 = vmul.f32 %v1754_v15, %v639_v22  ;;  %v723_v45 = vrot.slane %v2143_v39, 2 }
  0xf2   :  { %v1214_v40 = vadd.f32 %v1198_v25, %v2082_v6  ;;  %v1254_v20 = vrot.slane %v1238_v24, 6  ;;  %v1183_v43 = vmul.f32 %v1754_v15, %v1167_v9  ;;  %v659_v49 = vmul.f32 %v1747_v53, %v643_v52 }
  0xf3   :  { %v2199_v7 = vpop.permute.xlu1 %700  ;;  %v737_v38 = vmul.f32 %v1726_v27, %v721_v4  ;;  %v1241_v5 = vmul.f32 %v1726_v27, %v1225_v16  ;;  %v1227_v21 = vrot.slane %v2143_v39, 3  ;;  %1458 = vrcp.f32 %v220_v63 }
  0xf4   :  { %v2223_v12 = vpop.permute.xlu0 %789  ;;  %v673_v57 = vrot.slane %v657_v26, 5  ;;  %v1201_v54 = vrot.slane %v1185_v42, 5  ;;  %v1187_v6 = vmul.f32 %v1747_v53, %v1171_v60  ;;  %v797_v2 = vrot.slane %v2171_v36, 1 }
  0xf5   :  { %v2227_v3 = vadd.f32 %v750_v17, %v686_v0  ;;  %v671_v14 = vrot.slane %v655_v37, 5  ;;  %v739_v22 = vmul.f32 %v1747_v53, %v723_v45  ;;  %v1221_v25 = vrot.slane %v2179_v32, 3 }
  0xf6   :  { %v2231_v24 = vadd.f32 %v1254_v20, %v1214_v40  ;;  %v1199_v9 = vrot.slane %v1183_v43, 5  ;;  %v675_v39 = vrot.slane %v659_v49, 5  ;;  %v1277_v52 = vrot.slane %v2171_v36, 2 }
  0xf7   :  { %v2218_v41 = vpop.permute.xlu1 %703  ;;  %v753_v4 = vrot.slane %v737_v38, 6  ;;  %v1257_v16 = vrot.slane %v1241_v5, 6  ;;  %v1243_v26 = vmul.f32 %v1747_v53, %v1227_v21  ;;  %v717_v42 = vrot.slane %v2179_v32, 2 }
  0xf8   :  { %v689_v60 = vadd.f32 %v673_v57, %v2085_v11  ;;  %v1217_v0 = vadd.f32 %v1201_v54, %v2092_v51  ;;  %v1203_v17 = vrot.slane %v1187_v6, 5  ;;  %v2241_v37 = vmul.f32 %v1760_v58, %v797_v2  ;;  %v2246_v43 = vpop.permute.xlu0 %795 }
  0xf9   :  { %v687_v45 = vadd.f32 %v671_v14, %v2146_v35  ;;  %v755_v40 = vrot.slane %v739_v22, 6  ;;  %v1237_v36 = vmul.f32 %v1760_v58, %v1221_v25  ;;  %v800_v20 = vrot.slane %v2194_v1, 1 }
  0xfa   :  { %v691_v49 = vadd.f32 %v675_v39, %v2121_v29  ;;  %v1293_v32 = vmul.f32 %v1760_v58, %v1277_v52  ;;  %v719_v11 = vrot.slane %v2199_v7, 2  ;;  %v1280_v51 = vrot.slane %v2194_v1, 2 }
  0xfb   :  { %v2234_v63 = vpop.permute.xlu1 %709  ;;  %v1215_v5 = vadd.f32 %v1199_v9, %v2149_v46  ;;  %v1259_v35 = vrot.slane %v1243_v26, 6  ;;  %v733_v21 = vmul.f32 %v1760_v58, %v717_v42  ;;  %v1223_v57 = vrot.slane %v2199_v7, 3 }
  0xfc   :  { %v2257_v54 = vadd.f32 %v753_v4, %v689_v60  ;;  %v2259_v6 = vadd.f32 %v1257_v16, %v1217_v0  ;;  %v1219_v29 = vadd.f32 %v1203_v17, %v2129_v61  ;;  %v829_v2 = vrot.slane %v2241_v37, 7 }
  0xfd   :  { %v2263_v14 = vpop.eup %1458  ;;  %v1253_v1 = vrot.slane %v1237_v36, 6  ;;  %v720_v22 = vrot.slane %v2218_v41, 2  ;;  %v2267_v46 = vmul.f32 %v1773_v10, %v800_v20  ;;  %v802_v58 = vrot.slane %v2223_v12, 1  ;;  %v859_v25 = vpop.permute.xlu0 %858 }
  0xfe   :  { %v2270_v7 = vadd.f32 %v755_v40, %v691_v49  ;;  %v1309_v9 = vrot.slane %v1293_v32, 7  ;;  %v735_v39 = vmul.f32 %v1754_v15, %v719_v11  ;;  %v2274_v61 = vmul.f32 %v1773_v10, %v1280_v51 }
  0xff   :  { %v2252_v38 = vpop.permute.xlu1 %715  ;;  %v749_v52 = vrot.slane %v733_v21, 6  ;;  %v1239_v4 = vmul.f32 %v1754_v15, %v1223_v57  ;;  %v1224_v16 = vrot.slane %v2218_v41, 3  ;;  %v1282_v26 = vrot.slane %v2223_v12, 2 }
 0x100   :  { %v2279_v60 = vadd.f32 %v1259_v35, %v1219_v29  ;;  %v1334_v37 = vrot.slane %v859_v25, 1  ;;  %v1269_v40 = vadd.f32 %v1253_v1, %v2165_v48  ;;  %v736_v36 = vmul.f32 %v1773_v10, %v720_v22 }
 0x101   :  { %v832_v20 = vrot.slane %v2267_v46, 7  ;;  %v2285_v49 = vmul.f32 %v1807_v8, %v802_v58  ;;  %v751_v32 = vrot.slane %v735_v39, 6  ;;  %v1312_v41 = vrot.slane %v2274_v61, 7  ;;  %v871_v29 = vpop.permute.xlu0 %870 }
 0x102   :  { %v765_v51 = vadd.f32 %v749_v52, %v2163_v59  ;;  %v1255_v35 = vrot.slane %v1239_v4, 6  ;;  %v1240_v21 = vmul.f32 %v1773_v10, %v1224_v16  ;;  %v2293_v48 = vmul.f32 %v1807_v8, %v1282_v26 }
 0x103   :  { %v886_v58 = vmul.f32 %v1714_v23, %v859_v25  ;;  %v1350_v39 = vmul.f32 %v1714_v23, %v1334_v37  ;;  %v804_v59 = vrot.slane %v2246_v43, 1  ;;  %v2301_v52 = vadd.f32 %v751_v32, %v687_v45 }
 0x104   :  { %v778_v42 = vpop.permute.xlu1 %777  ;;  %v722_v10 = vrot.slane %v2234_v63, 2  ;;  %v2306_v26 = vadd.f32 %v1255_v35, %v1215_v5  ;;  %v1256_v25 = vrot.slane %v1240_v21, 6  ;;  %v1226_v23 = vrot.slane %v2234_v63, 3 }
 0x105   :  { %v798_v0 = vrot.slane %v778_v42, 1  ;;  %v1278_v17 = vrot.slane %v778_v42, 2  ;;  %v2297_v42 = vadd.f32 %v1309_v9, %v1269_v40  ;;  %v1284_v9 = vrot.slane %v2246_v43, 2 }
 0x106   :  { %v2319_v21 = vadd.f32 %v1256_v25, %v2175_v62  ;;  %v1314_v46 = vrot.slane %v2293_v48, 7 }
 0x107   :  { %v814_v12 = vmul.f32 %v1719_v34, %v798_v0  ;;  %v1294_v11 = vmul.f32 %v1719_v34, %v1278_v17  ;;  %v752_v0 = vrot.slane %v736_v36, 6  ;;  %v834_v34 = vrot.slane %v2285_v49, 7 }
 0x108   :  { %v781_v57 = vpop.permute.xlu1 %780 }
 0x109   :  { %v830_v1 = vrot.slane %v814_v12, 7  ;;  %v1310_v22 = vrot.slane %v1294_v11, 7  ;;  %v799_v37 = vrot.slane %v781_v57, 1  ;;  %v845_v12 = vadd.f32 %v829_v2, %v765_v51 }
 0x10a   :  { %v2311_v45 = vadd.f32 %v752_v0, %v2173_v13  ;;  %v1279_v5 = vrot.slane %v781_v57, 2  ;;  %v2322_v2 = vmul.f32 %v1807_v8, %v1226_v23  ;;  %v724_v23 = vrot.slane %v2252_v38, 2 }
 0x10b   :  { %v1326_v4 = vadd.f32 %v1310_v22, %v2231_v24  ;;  %v846_v16 = vadd.f32 %v830_v1, %v2227_v3  ;;  %v1337_v24 = vrot.slane %v871_v29, 1  ;;  %v879_v22 = vpop.permute.xlu0 %878  ;;  %v2314_v3 = vmul.f32 %v1807_v8, %v722_v10 }
 0x10c   :  { %v787_v17 = vpop.permute.xlu1 %786  ;;  %v1339_v62 = vrot.slane %v879_v22, 1 }
 0x10d   :  { %v894_v40 = vadd.f32 %v886_v58, %v846_v16  ;;  %v1358_v36 = vadd.f32 %v1350_v39, %v1326_v4  ;;  %v801_v32 = vrot.slane %v787_v17, 1  ;;  %v1281_v11 = vrot.slane %v787_v17, 2 }
 0x10e   :  { %v815_v58 = vmul.f32 %v1754_v15, %v799_v37  ;;  %v1353_v0 = vmul.f32 %v1717_v30, %v1337_v24  ;;  %v754_v10 = vrot.slane %v2314_v3, 6  ;;  %v1295_v4 = vmul.f32 %v1754_v15, %v1279_v5 }
 0x10f   :  { %v902_v63 = vmul.f32 %v2079_v47, %v894_v40  ;;  %v1366_v35 = vmul.f32 %v2079_v47, %v1358_v36  ;;  %v817_v13 = vmul.f32 %v1726_v27, %v801_v32  ;;  %v1297_v51 = vmul.f32 %v1726_v27, %v1281_v11 }
 0x110   :  { %v793_v1 = vpop.permute.xlu1 %792  ;;  %v889_v27 = vmul.f32 %v1717_v30, %v871_v29  ;;  %v891_v40 = vmul.f32 %v1745_v50, %v879_v22  ;;  %v831_v36 = vrot.slane %v815_v58, 7  ;;  %v1355_v30 = vmul.f32 %v1745_v50, %v1339_v62 }
 0x111   :  { %910 = vst.msk [vmem:[%s2458_s2 + $0x2] sm:$0x1] %vm29_vm1, %v902_v63  ;;  %1374 = vst.msk [vmem:[%s2458_s2 + $0x3] sm:$0x1] %vm29_vm1, %v1366_v35  ;;  %v803_v47 = vrot.slane %v793_v1, 1  ;;  %v1283_v8 = vrot.slane %v793_v1, 2  ;;  %v740_v1 = vmul.f32 %v1830_v19, %v724_v23 }
 0x112   :  { %v833_v57 = vrot.slane %v817_v13, 7  ;;  %v1313_v39 = vrot.slane %v1297_v51, 7  ;;  %v1311_v63 = vrot.slane %v1295_v4, 7  ;;  %v2484_v35 = vld [vmem:[#allocation6_spill] sm:$0xff]  ;;  %v847_v62 = vadd.f32 %v831_v36, %v2301_v52  ;;  %v2489_v36 = vld [vmem:[#allocation3_spill] sm:$0xff] }
 0x113   :  { %v819_v16 = vmul.f32 %v1747_v53, %v803_v47  ;;  %v1299_v25 = vmul.f32 %v1747_v53, %v1283_v8  ;;  %v1228_v53 = vrot.slane %v2252_v38, 3  ;;  %v2485_v38 = vld [vmem:[#allocation8_spill] sm:$0xff] }
 0x114   :  { %v1329_v17 = vadd.f32 %v1313_v39, %v2259_v6  ;;  %v849_v37 = vadd.f32 %v833_v57, %v2257_v54  ;;  %v1258_v39 = vrot.slane %v2322_v2, 6  ;;  %v770_v2 = vadd.f32 %v754_v10, %v2181_v56 }
 0x115   :  { %v835_v29 = vrot.slane %v819_v16, 7  ;;  %v1315_v32 = vrot.slane %v1299_v25, 7  ;;  %v855_v11 = vpop.permute.xlu1 %854  ;;  %v1244_v52 = vmul.f32 %v1830_v19, %v1228_v53  ;;  %v1327_v16 = vadd.f32 %v1311_v63, %v2306_v26 }
 0x116   :  { %v897_v24 = vadd.f32 %v889_v27, %v849_v37  ;;  %v1361_v15 = vadd.f32 %v1353_v0, %v1329_v17  ;;  %v885_v3 = vmul.f32 %v1752_v55, %v855_v11  ;;  %v1333_v5 = vrot.slane %v855_v11, 1  ;;  %v2487_v27 = vld [vmem:[#allocation7_spill] sm:$0xff] }
 0x117   :  { %v1331_v6 = vadd.f32 %v1315_v32, %v2279_v60  ;;  %v851_v54 = vadd.f32 %v835_v29, %v2270_v7  ;;  %v2486_v60 = vld [vmem:[#allocation2_spill] sm:$0xff]  ;;  %v756_v17 = vrot.slane %v740_v1, 6  ;;  %v820_v37 = vmul.f32 %v1830_v19, %v804_v59  ;;  %v2488_v59 = vld [vmem:[#allocation9_spill] sm:$0xff] }
 0x118   :  { %v905_v22 = vmul.f32 %v2484_v35, %v897_v24  ;;  %v1369_v13 = vmul.f32 %v2484_v35, %v1361_v15  ;;  %v893_v51 = vadd.f32 %v885_v3, %v845_v12  ;;  %v1349_v50 = vmul.f32 %v1752_v55, %v1333_v5  ;;  %v2491_v5 = vld [vmem:[#allocation4_spill] sm:$0xff]  ;;  %v2492_v35 = vld [vmem:[#allocation11_spill] sm:$0xff] }
 0x119   :  { %v899_v58 = vadd.f32 %v891_v40, %v851_v54  ;;  %v1363_v47 = vadd.f32 %v1355_v30, %v1331_v6  ;;  %v863_v8 = vpop.permute.xlu1 %862  ;;  %v848_v56 = vadd.f32 %v832_v20, %v2311_v45  ;;  %v1328_v30 = vadd.f32 %v1312_v41, %v2319_v21 }
 0x11a   :  { %913 = vst.msk [vmem:[%s2458_s2 + $0x8] sm:$0x1] %vm29_vm1, %v905_v22  ;;  %1377 = vst.msk [vmem:[%s2458_s2 + $0x9] sm:$0x1] %vm29_vm1, %v1369_v13  ;;  %v901_v7 = vmul.f32 %v2485_v38, %v893_v51  ;;  %v1357_v55 = vadd.f32 %v1349_v50, %v2297_v42  ;;  %v887_v12 = vmul.f32 %v2486_v60, %v863_v8  ;;  %v1335_v57 = vrot.slane %v863_v8, 1  ;;  %v2493_v51 = vld [vmem:[#allocation5_spill] sm:$0xff] }
 0x11b   :  { %v907_v0 = vmul.f32 %v2487_v27, %v899_v58  ;;  %v1371_v4 = vmul.f32 %v2487_v27, %v1363_v47  ;;  %v1274_v11 = vadd.f32 %v1258_v39, %v2190_v18  ;;  %v1300_v20 = vmul.f32 %v1830_v19, %v1284_v9  ;;  %v2490_v9 = vld [vmem:[#allocation10_spill] sm:$0xff] }
 0x11c   :  { %909 = vst.msk [vmem:[%s2458_s2] sm:$0x1] %vm29_vm1, %v901_v7  ;;  %v1365_v42 = vmul.f32 %v2485_v38, %v1357_v55  ;;  %v895_v25 = vadd.f32 %v887_v12, %v847_v62  ;;  %v1351_v23 = vmul.f32 %v2486_v60, %v1335_v57  ;;  %v1260_v45 = vrot.slane %v1244_v52, 6 }
 0x11d   :  { %915 = vst.msk [vmem:[%s2458_s2 + $0xc] sm:$0x1] %vm29_vm1, %v907_v0  ;;  %1379 = vst.msk [vmem:[%s2458_s2 + $0xd] sm:$0x1] %vm29_vm1, %v1371_v4  ;;  %v867_v26 = vpop.permute.xlu1 %866  ;;  %v1220_v18 = vadd.f32 %v1204_v31, %v2202_v28  ;;  %v772_v41 = vadd.f32 %v756_v17, %v2207_v44  ;;  %v836_v43 = vrot.slane %v820_v37, 7  ;;  %v850_v19 = vadd.f32 %v834_v34, %v770_v2 }
 0x11e   :  { %1373 = vst.msk [vmem:[%s2458_s2 + $0x1] sm:$0x1] %vm29_vm1, %v1365_v42  ;;  %v903_v10 = vmul.f32 %v2488_v59, %v895_v25  ;;  %v1359_v40 = vadd.f32 %v1351_v23, %v1327_v16  ;;  %v888_v29 = vmul.f32 %v2489_v36, %v867_v26  ;;  %v1336_v32 = vrot.slane %v867_v26, 1 }
 0x11f   :  { %v1330_v33 = vadd.f32 %v1314_v46, %v1274_v11  ;;  %v1316_v28 = vrot.slane %v1300_v20, 7  ;;  %v1276_v31 = vadd.f32 %v1260_v45, %v1220_v18  ;;  %v852_v54 = vadd.f32 %v836_v43, %v772_v41 }
 0x120   :  { %911 = vst.msk [vmem:[%s2458_s2 + $0x4] sm:$0x1] %vm29_vm1, %v903_v10  ;;  %v1367_v24 = vmul.f32 %v2488_v59, %v1359_v40  ;;  %v896_v15 = vadd.f32 %v888_v29, %v848_v56  ;;  %v1352_v61 = vmul.f32 %v2489_v36, %v1336_v32 }
 0x121   :  { %v875_v48 = vpop.permute.xlu1 %874  ;;  %v1332_v58 = vadd.f32 %v1316_v28, %v1276_v31 }
 0x122   :  { %1375 = vst.msk [vmem:[%s2458_s2 + $0x5] sm:$0x1] %vm29_vm1, %v1367_v24  ;;  %v904_v21 = vmul.f32 %v2490_v9, %v896_v15  ;;  %v1360_v3 = vadd.f32 %v1352_v61, %v1328_v30  ;;  %v890_v53 = vmul.f32 %v2491_v5, %v875_v48  ;;  %v1338_v63 = vrot.slane %v875_v48, 1 }
 0x124   :  { %912 = vst.msk [vmem:[%s2458_s2 + $0x6] sm:$0x1] %vm29_vm1, %v904_v21  ;;  %v1368_v44 = vmul.f32 %v2490_v9, %v1360_v3  ;;  %v898_v49 = vadd.f32 %v890_v53, %v850_v19  ;;  %v1354_v34 = vmul.f32 %v2491_v5, %v1338_v63 }
 0x125   :  { %v883_v6 = vpop.permute.xlu1 %882 }
 0x126   :  { %1376 = vst.msk [vmem:[%s2458_s2 + $0x7] sm:$0x1] %vm29_vm1, %v1368_v44  ;;  %v906_v22 = vmul.f32 %v2492_v35, %v898_v49  ;;  %v1362_v13 = vadd.f32 %v1354_v34, %v1330_v33  ;;  %v892_v50 = vmul.f32 %v2493_v51, %v883_v6  ;;  %v1340_v1 = vrot.slane %v883_v6, 1 }
 0x128   :  { %914 = vst.msk [vmem:[%s2458_s2 + $0xa] sm:$0x1] %vm29_vm1, %v906_v22  ;;  %v1370_v47 = vmul.f32 %v2492_v35, %v1362_v13  ;;  %v900_v8 = vadd.f32 %v892_v50, %v852_v54  ;;  %v1356_v62 = vmul.f32 %v2493_v51, %v1340_v1 }
 0x12a   :  { %1378 = vst.msk [vmem:[%s2458_s2 + $0xb] sm:$0x1] %vm29_vm1, %v1370_v47  ;;  %v908_v38 = vmul.f32 %v2263_v14, %v900_v8  ;;  %v1364_v7 = vadd.f32 %v1356_v62, %v1332_v58 }
 0x12c   :  { %916 = vst.msk [vmem:[%s2458_s2 + $0xe] sm:$0x1] %vm29_vm1, %v908_v38  ;;  %v1372_v55 = vmul.f32 %v2263_v14, %v1364_v7 }
 0x12e   :  { %1380 = vst.msk [vmem:[%s2458_s2 + $0xf] sm:$0x1] %vm29_vm1, %v1372_v55 }

</bundles_post_ra>
